<compile_context>
chip_gen: v7x
topology: tpu7x:2x2x1
jax: 0.10.0
libtpu: 0.0.40
codegen_flags: <defaults>
</compile_context>

<pallas_src>
import functools

import jax
import jax.numpy as jnp
from jax.experimental import pallas as pl
from jax.experimental.pallas import tpu as pltpu

C = 512      # fixed by the module definition
EPS = 1e-5   # nn.BatchNorm1d default eps


def _visual_conv1d_kernel(x_ref, halo_ref, dww_ref, bias_ref, a_ref,
                          pww_ref, pwb_ref, o_ref, m1_buf, p1_buf,
                          *, last_tile, last_row):
    t_idx = pl.program_id(1)

    x = x_ref[0].astype(jnp.float32)              # (TM, C)
    tm = x.shape[0]

    # 1-2) ReLU.  BN1 is folded: its per-channel scale is pre-multiplied into
    # the depthwise taps; its shift becomes bias_ref[0] (= sh1*(w0+w1+w2))
    # with 1-row corrections (bias_ref[1], bias_ref[2]) at the true sequence
    # boundaries to preserve the conv's zero-padding semantics.
    r = jnp.maximum(x, 0.0)
    r_halo = jnp.maximum(halo_ref[0, 0].astype(jnp.float32), 0.0)   # (2, C)

    # 3) depthwise conv1d, kernel=3, padding=1, groups=C, no bias.
    # +/-1 time shifts via XLU rolls staged through VMEM scratch; the wrapped
    # row is overwritten by the halo row with a cheap 1-row store (no
    # full-tile iota/compare/select).
    m1_buf[...] = pltpu.roll(r, shift=1, axis=0)
    m1_buf[0:1, :] = r_halo[0:1, :]
    p1_buf[...] = pltpu.roll(r, shift=tm - 1, axis=0)
    p1_buf[tm - 1:tm, :] = r_halo[1:2, :]

    y = (dww_ref[0:1, :] * m1_buf[...]
         + dww_ref[1:2, :] * r
         + dww_ref[2:3, :] * p1_buf[...]
         + bias_ref[0:1, :])

    # Zero-padding corrections: the folded BN1-shift bias assumed both time
    # neighbours exist; subtract the missing-neighbour term at the true first
    # and last rows of the sequence (1-row stores under pl.when).
    m1_buf[...] = y        # reuse scratch so the row fixes can be side effects

    @pl.when(t_idx == 0)
    def _():
        m1_buf[0:1, :] = m1_buf[0:1, :] - bias_ref[1:2, :]

    @pl.when(t_idx == last_tile)
    def _():
        m1_buf[last_row:last_row + 1, :] = (
            m1_buf[last_row:last_row + 1, :] - bias_ref[2:3, :])

    y = m1_buf[...]

    # 4) PReLU (single shared parameter, scalar read from SMEM)
    a = a_ref[0, 0]
    y = jnp.where(y > 0.0, y, a * y)

    # 5-6) BN2 folded into the pointwise conv (row-scaled bf16 weight + bias);
    # bf16 operands, f32 accumulation on the MXU.
    out = jnp.dot(y.astype(pww_ref.dtype), pww_ref[...],
                  preferred_element_type=jnp.float32)
    out = out + pwb_ref[...] + x                  # 7) residual (bf16-rounded x)

    o_ref[0] = out.astype(o_ref.dtype)


def _pick_time_tile(T, requested):
    if requested is not None:
        tm = int(requested)
    else:
        tm = None
        for cand in (512, 256, 128, 64):
            if T % cand == 0:
                tm = cand
                break
        if tm is None:
            tm = 128     # pad T up instead of one giant un-pipelined block
    assert tm % 16 == 0 and tm >= 16, "time_tile must be a multiple of 16"
    t_pad = ((T + tm - 1) // tm) * tm
    return tm, t_pad


def visual_conv1d(x_ntc, dw_taps, dw_bias, prelu_a, pw_w, pw_b, *, time_tile=None):
    """x_ntc: (N, T, C) -> (N, T, C) bf16.  Pass bf16 x for a single HBM pass.

    Use fold_params() to produce dw_taps / dw_bias / pw_w / pw_b from the
    PyTorch parameters.  On v7x pick time_tile so N * ceil(T/tm) is even (the
    2 TensorCores are sharded over the parallel grid axes).
    """
    N, T, c_in = x_ntc.shape
    assert c_in == C
    tm, t_pad = _pick_time_tile(T, time_tile)
    nt = t_pad // tm

    xb = x_ntc.astype(jnp.bfloat16)
    if t_pad != T:
        xb = jnp.pad(xb, ((0, 0), (0, t_pad - T), (0, 0)))

    # Halo rows for the depthwise conv: previous tile's last row / next tile's
    # first row per (batch, tile).  Zero rows at the true sequence boundaries
    # (ReLU(0)=0 == the conv's zero padding once BN1 is folded into the taps).
    xr = xb.reshape(N, nt, tm, C)
    zero = jnp.zeros((N, 1, C), xb.dtype)
    prev_rows = jnp.concatenate([zero, xr[:, :-1, tm - 1, :]], axis=1)  # (N,nt,C)
    next_rows = jnp.concatenate([xr[:, 1:, 0, :], zero], axis=1)        # (N,nt,C)
    halo = jnp.stack([prev_rows, next_rows], axis=2)                    # (N,nt,2,C)

    last_tile = (T - 1) // tm      # static: true last row, even when padded
    last_row = (T - 1) % tm

    kernel = functools.partial(_visual_conv1d_kernel,
                               last_tile=last_tile, last_row=last_row)
    const = lambda shape: pl.BlockSpec(shape, lambda n, t: (0,) * len(shape))

    out = pl.pallas_call(
        kernel,
        out_shape=jax.ShapeDtypeStruct((N, t_pad, C), jnp.bfloat16),
        grid_spec=pltpu.PrefetchScalarGridSpec(
            num_scalar_prefetch=0,
            grid=(N, nt),
            in_specs=[
                pl.BlockSpec((1, tm, C), lambda n, t: (n, t, 0)),       # x tile (bf16)
                pl.BlockSpec((1, 1, 2, C), lambda n, t: (n, t, 0, 0)),  # halo rows
                const((3, C)),    # depthwise taps (BN1-scale folded)
                const((3, C)),    # [full bias, first-row corr, last-row corr]
                pl.BlockSpec(memory_space=pltpu.MemorySpace.SMEM),      # prelu a
                const((C, C)),    # pointwise weight (bf16, BN2-scaled), VMEM-resident
                const((1, C)),    # pointwise bias (from BN2 shift)
            ],
            out_specs=pl.BlockSpec((1, tm, C), lambda n, t: (n, t, 0)),
            scratch_shapes=[pltpu.VMEM((tm, C), jnp.float32),
                            pltpu.VMEM((tm, C), jnp.float32)],
        ),
        compiler_params=pltpu.CompilerParams(
            dimension_semantics=("parallel", "parallel")),
    )(xb, halo, dw_taps, dw_bias, prelu_a, pw_w, pw_b)

    return out[:, :T, :] if t_pad != T else out


def fold_params(g1, b1, m1, v1, dw_w, g2, b2, m2, v2, pw_w):
    """Eval-mode folding of both BatchNorms.

    BN1 -> scale folded into the depthwise taps, shift folded into a
    per-channel bias (+ exact first/last-row corrections for zero padding).
    BN2 -> folded into the pointwise weight (row scaling) + an output bias.
    """
    s1 = g1 / jnp.sqrt(v1 + EPS)
    sh1 = b1 - m1 * s1
    s2 = g2 / jnp.sqrt(v2 + EPS)
    sh2 = b2 - m2 * s2

    dw_taps = (dw_w * s1[None, :]).astype(jnp.float32)            # (3, C)
    dw_bias = jnp.stack([sh1 * (dw_w[0] + dw_w[1] + dw_w[2]),     # every row
                         sh1 * dw_w[0],                           # minus @ t=0
                         sh1 * dw_w[2]],                          # minus @ t=T-1
                        axis=0).astype(jnp.float32)               # (3, C)

    pw_folded = (s2[:, None] * pw_w).astype(jnp.bfloat16)         # (C_in, C_out)
    pw_bias = (sh2[None, :] @ pw_w).astype(jnp.float32)           # (1, C_out)
    return dw_taps, dw_bias, pw_folded, pw_bias


def _reference(x_ntc, g1, b1, m1, v1, dw_w, prelu_a, g2, b2, m2, v2, pw_w):
    """Pure-JAX full-f32 reference of the original module (eval-mode BN)."""
    s1 = g1 / jnp.sqrt(v1 + EPS); sh1 = b1 - m1 * s1
    s2 = g2 / jnp.sqrt(v2 + EPS); sh2 = b2 - m2 * s2
    h = jnp.maximum(x_ntc, 0.0) * s1 + sh1
    hp = jnp.pad(h, ((0, 0), (1, 1), (0, 0)))
    y = dw_w[0] * hp[:, :-2] + dw_w[1] * hp[:, 1:-1] + dw_w[2] * hp[:, 2:]
    y = jnp.where(y > 0.0, y, prelu_a * y)
    z = y * s2 + sh2
    out = jnp.einsum("ntc,cd->ntd", z, pw_w)
    return out + x_ntc


if __name__ == "__main__":
    key = jax.random.PRNGKey(0)
    (kx, kdw, kpw, kg1, kb1, km1, kv1, kg2, kb2, km2, kv2) = jax.random.split(key, 11)

    N, T = 2, 512   # C = 512 is fixed by the module
    x_f32 = jax.random.normal(kx, (N, T, C), dtype=jnp.float32)

    # Synthetic parameters (shapes implied by the nn.Module __init__).
    g1 = 1.0 + 0.1 * jax.random.normal(kg1, (C,), jnp.float32)
    b1 = 0.1 * jax.random.normal(kb1, (C,), jnp.float32)
    m1 = 0.1 * jax.random.normal(km1, (C,), jnp.float32)
    v1 = jnp.abs(1.0 + 0.1 * jax.random.normal(kv1, (C,), jnp.float32))
    g2 = 1.0 + 0.1 * jax.random.normal(kg2, (C,), jnp.float32)
    b2 = 0.1 * jax.random.normal(kb2, (C,), jnp.float32)
    m2 = 0.1 * jax.random.normal(km2, (C,), jnp.float32)
    v2 = jnp.abs(1.0 + 0.1 * jax.random.normal(kv2, (C,), jnp.float32))

    # Depthwise Conv1d(512,512,3,groups=512) weight (C,1,3) -> taps (3, C).
    dw_w = 0.2 * jax.random.normal(kdw, (3, C), dtype=jnp.float32)
    # Pointwise Conv1d(512,512,1) weight (C_out,C_in,1) -> (C_in, C_out).
    pw_w = (1.0 / jnp.sqrt(C)) * jax.random.normal(kpw, (C, C), dtype=jnp.float32)
    # PReLU default single parameter 0.25 (scalar, passed via SMEM).
    prelu_a = jnp.full((1, 1), 0.25, dtype=jnp.float32)

    dw_taps, dw_bias, pw_folded, pw_bias = fold_params(
        g1, b1, m1, v1, dw_w, g2, b2, m2, v2, pw_w)

    # --- test 1: T divisible by the tile, multiple time tiles -------------
    x_bf = x_f32.astype(jnp.bfloat16)          # cast once outside (stacked use)
    out = visual_conv1d(x_bf, dw_taps, dw_bias, prelu_a, pw_folded, pw_bias,
                        time_tile=256)
    out = jax.block_until_ready(out)

    ref = _reference(x_bf.astype(jnp.float32),
                     g1, b1, m1, v1, dw_w, 0.25, g2, b2, m2, v2, pw_w)
    assert out.shape == (N, T, C)
    max_err = float(jnp.max(jnp.abs(out.astype(jnp.float32) - ref)))
    # bf16 activation streaming + bf16 MXU operands (f32 accumulation) give a
    # small, bounded approximation vs the full-f32 reference.
    assert max_err < 1.5e-1, f"mismatch vs JAX reference (max abs err {max_err})"

    # --- test 2: awkward T -> padded last tile path ------------------------
    T2 = 200
    x2 = x_bf[:, :T2, :]
    out2 = jax.block_until_ready(
        visual_conv1d(x2, dw_taps, dw_bias, prelu_a, pw_folded, pw_bias))
    ref2 = _reference(x2.astype(jnp.float32),
                      g1, b1, m1, v1, dw_w, 0.25, g2, b2, m2, v2, pw_w)
    assert out2.shape == (N, T2, C)
    max_err2 = float(jnp.max(jnp.abs(out2.astype(jnp.float32) - ref2)))
    assert max_err2 < 1.5e-1, f"padded-path mismatch (max abs err {max_err2})"

    print("KERNEL_OK")
</pallas_src>

<mosaic_0001>
module attributes {stable_mosaic.version = 11 : i64} {
  func.func @_visual_conv1d_kernel(%arg0: i32, %arg1: i32, %arg2: memref<1x256x512xbf16, #tpu.memory_space<vmem>>, %arg3: memref<1x1x2x512xbf16, #tpu.memory_space<vmem>>, %arg4: memref<3x512xf32, #tpu.memory_space<vmem>>, %arg5: memref<3x512xf32, #tpu.memory_space<vmem>>, %arg6: memref<1x1xf32, #tpu.memory_space<smem>>, %arg7: memref<512x512xbf16, #tpu.memory_space<vmem>>, %arg8: memref<1x512xf32, #tpu.memory_space<vmem>>, %arg9: memref<1x256x512xbf16, #tpu.memory_space<vmem>>, %arg10: memref<256x512xf32, #tpu.memory_space<vmem>>, %arg11: memref<256x512xf32, #tpu.memory_space<vmem>>) attributes {dimension_semantics = [#tpu.dimension_semantics<parallel>, #tpu.dimension_semantics<parallel>], iteration_bounds = array<i64: 2, 2>, scalar_prefetch = 0 : i64, scratch_operands = 2 : i64, tpu.core_type = #tpu.core_type<tc>, window_params = [{transform_indices = @transform_0, window_bounds = array<i64: 1, 256, 512>}, {transform_indices = @transform_1, window_bounds = array<i64: 1, 1, 2, 512>}, {pipeline_mode = #tpu.pipeline_mode<synchronous>, transform_indices = @transform_2, window_bounds = array<i64: 3, 512>}, {pipeline_mode = #tpu.pipeline_mode<synchronous>, transform_indices = @transform_3, window_bounds = array<i64: 3, 512>}, {transform_indices = @transform_4, window_bounds = array<i64: 1, 1>}, {pipeline_mode = #tpu.pipeline_mode<synchronous>, transform_indices = @transform_5, window_bounds = array<i64: 512, 512>}, {pipeline_mode = #tpu.pipeline_mode<synchronous>, transform_indices = @transform_6, window_bounds = array<i64: 1, 512>}, {transform_indices = @transform_7, window_bounds = array<i64: 1, 256, 512>}]} {
    %c0 = arith.constant 0 : index
    %c0_0 = arith.constant 0 : index
    %c0_1 = arith.constant 0 : index
    %0 = vector.load %arg2[%c0, %c0_0, %c0_1] : memref<1x256x512xbf16, #tpu.memory_space<vmem>>, vector<1x256x512xbf16>
    %1 = vector.shape_cast %0 : vector<1x256x512xbf16> to vector<256x512xbf16>
    %2 = arith.extf %1 : vector<256x512xbf16> to vector<256x512xf32>
    %cst = arith.constant 0.000000e+00 : f32
    %3 = vector.broadcast %cst : f32 to vector<256x512xf32>
    %4 = arith.maximumf %2, %3 : vector<256x512xf32>
    %c0_2 = arith.constant 0 : index
    %c0_3 = arith.constant 0 : index
    %c0_4 = arith.constant 0 : index
    %c0_5 = arith.constant 0 : index
    %5 = vector.load %arg3[%c0_2, %c0_3, %c0_4, %c0_5] : memref<1x1x2x512xbf16, #tpu.memory_space<vmem>>, vector<1x1x2x512xbf16>
    %6 = vector.shape_cast %5 : vector<1x1x2x512xbf16> to vector<2x512xbf16>
    %7 = arith.extf %6 : vector<2x512xbf16> to vector<2x512xf32>
    %cst_6 = arith.constant 0.000000e+00 : f32
    %8 = vector.broadcast %cst_6 : f32 to vector<2x512xf32>
    %9 = arith.maximumf %7, %8 : vector<2x512xf32>
    %c1_i32 = arith.constant 1 : i32
    %10 = tpu.dynamic_rotate %4 by %c1_i32 dim 0 : vector<256x512xf32>, i32 -> vector<256x512xf32>
    %c0_7 = arith.constant 0 : index
    %c0_8 = arith.constant 0 : index
    %11 = vector.load %arg10[%c0_7, %c0_8] : memref<256x512xf32, #tpu.memory_space<vmem>>, vector<256x512xf32>
    tpu.vector_store %arg10[%c0_7, %c0_8], %10 {strides = array<i32>} : memref<256x512xf32, #tpu.memory_space<vmem>>, vector<256x512xf32>,
    %12 = vector.extract_strided_slice %9 {offsets = [0, 0], sizes = [1, 512], strides = [1, 1]} : vector<2x512xf32> to vector<1x512xf32>
    %c0_9 = arith.constant 0 : index
    %c0_10 = arith.constant 0 : index
    %13 = vector.load %arg10[%c0_9, %c0_10] : memref<256x512xf32, #tpu.memory_space<vmem>>, vector<1x512xf32>
    tpu.vector_store %arg10[%c0_9, %c0_10], %12 {strides = array<i32>} : memref<256x512xf32, #tpu.memory_space<vmem>>, vector<1x512xf32>,
    %c255_i32 = arith.constant 255 : i32
    %14 = tpu.dynamic_rotate %4 by %c255_i32 dim 0 : vector<256x512xf32>, i32 -> vector<256x512xf32>
    %c0_11 = arith.constant 0 : index
    %c0_12 = arith.constant 0 : index
    %15 = vector.load %arg11[%c0_11, %c0_12] : memref<256x512xf32, #tpu.memory_space<vmem>>, vector<256x512xf32>
    tpu.vector_store %arg11[%c0_11, %c0_12], %14 {strides = array<i32>} : memref<256x512xf32, #tpu.memory_space<vmem>>, vector<256x512xf32>,
    %16 = vector.extract_strided_slice %9 {offsets = [1, 0], sizes = [1, 512], strides = [1, 1]} : vector<2x512xf32> to vector<1x512xf32>
    %c255 = arith.constant 255 : index
    %c0_13 = arith.constant 0 : index
    %17 = vector.load %arg11[%c255, %c0_13] : memref<256x512xf32, #tpu.memory_space<vmem>>, vector<1x512xf32>
    tpu.vector_store %arg11[%c255, %c0_13], %16 {strides = array<i32>} : memref<256x512xf32, #tpu.memory_space<vmem>>, vector<1x512xf32>,
    %c0_14 = arith.constant 0 : index
    %c0_15 = arith.constant 0 : index
    %18 = vector.load %arg4[%c0_14, %c0_15] : memref<3x512xf32, #tpu.memory_space<vmem>>, vector<1x512xf32>
    %c0_16 = arith.constant 0 : index
    %c0_17 = arith.constant 0 : index
    %19 = vector.load %arg10[%c0_16, %c0_17] : memref<256x512xf32, #tpu.memory_space<vmem>>, vector<256x512xf32>
    %20 = vector.broadcast %18 : vector<1x512xf32> to vector<256x512xf32>
    %21 = arith.mulf %20, %19 : vector<256x512xf32>
    %c1 = arith.constant 1 : index
    %c0_18 = arith.constant 0 : index
    %22 = vector.load %arg4[%c1, %c0_18] : memref<3x512xf32, #tpu.memory_space<vmem>>, vector<1x512xf32>
    %23 = vector.broadcast %22 : vector<1x512xf32> to vector<256x512xf32>
    %24 = arith.mulf %23, %4 : vector<256x512xf32>
    %25 = arith.addf %21, %24 : vector<256x512xf32>
    %c2 = arith.constant 2 : index
    %c0_19 = arith.constant 0 : index
    %26 = vector.load %arg4[%c2, %c0_19] : memref<3x512xf32, #tpu.memory_space<vmem>>, vector<1x512xf32>
    %c0_20 = arith.constant 0 : index
    %c0_21 = arith.constant 0 : index
    %27 = vector.load %arg11[%c0_20, %c0_21] : memref<256x512xf32, #tpu.memory_space<vmem>>, vector<256x512xf32>
    %28 = vector.broadcast %26 : vector<1x512xf32> to vector<256x512xf32>
    %29 = arith.mulf %28, %27 : vector<256x512xf32>
    %30 = arith.addf %25, %29 : vector<256x512xf32>
    %c0_22 = arith.constant 0 : index
    %c0_23 = arith.constant 0 : index
    %31 = vector.load %arg5[%c0_22, %c0_23] : memref<3x512xf32, #tpu.memory_space<vmem>>, vector<1x512xf32>
    %32 = vector.broadcast %31 : vector<1x512xf32> to vector<256x512xf32>
    %33 = arith.addf %30, %32 : vector<256x512xf32>
    %c0_24 = arith.constant 0 : index
    %c0_25 = arith.constant 0 : index
    %34 = vector.load %arg10[%c0_24, %c0_25] : memref<256x512xf32, #tpu.memory_space<vmem>>, vector<256x512xf32>
    tpu.vector_store %arg10[%c0_24, %c0_25], %33 {strides = array<i32>} : memref<256x512xf32, #tpu.memory_space<vmem>>, vector<256x512xf32>,
    %c0_i32 = arith.constant 0 : i32
    %35 = arith.cmpi eq, %arg1, %c0_i32 : i32
    %36 = arith.extui %35 : i1 to i32
    %c0_i32_26 = arith.constant 0 : i32
    %37 = arith.cmpi ne, %36, %c0_i32_26 : i32
    scf.if %37 {
      %c0_42 = arith.constant 0 : index
      %c0_43 = arith.constant 0 : index
      %59 = vector.load %arg10[%c0_42, %c0_43] : memref<256x512xf32, #tpu.memory_space<vmem>>, vector<1x512xf32>
      %c1_44 = arith.constant 1 : index
      %c0_45 = arith.constant 0 : index
      %60 = vector.load %arg5[%c1_44, %c0_45] : memref<3x512xf32, #tpu.memory_space<vmem>>, vector<1x512xf32>
      %61 = arith.subf %59, %60 : vector<1x512xf32>
      %c0_46 = arith.constant 0 : index
      %c0_47 = arith.constant 0 : index
      %62 = vector.load %arg10[%c0_46, %c0_47] : memref<256x512xf32, #tpu.memory_space<vmem>>, vector<1x512xf32>
      tpu.vector_store %arg10[%c0_46, %c0_47], %61 {strides = array<i32>} : memref<256x512xf32, #tpu.memory_space<vmem>>, vector<1x512xf32>,
    } else {
    }
    %c1_i32_27 = arith.constant 1 : i32
    %38 = arith.cmpi eq, %arg1, %c1_i32_27 : i32
    %39 = arith.extui %38 : i1 to i32
    %c0_i32_28 = arith.constant 0 : i32
    %40 = arith.cmpi ne, %39, %c0_i32_28 : i32
    scf.if %40 {
      %c255_42 = arith.constant 255 : index
      %c0_43 = arith.constant 0 : index
      %59 = vector.load %arg10[%c255_42, %c0_43] : memref<256x512xf32, #tpu.memory_space<vmem>>, vector<1x512xf32>
      %c2_44 = arith.constant 2 : index
      %c0_45 = arith.constant 0 : index
      %60 = vector.load %arg5[%c2_44, %c0_45] : memref<3x512xf32, #tpu.memory_space<vmem>>, vector<1x512xf32>
      %61 = arith.subf %59, %60 : vector<1x512xf32>
      %c255_46 = arith.constant 255 : index
      %c0_47 = arith.constant 0 : index
      %62 = vector.load %arg10[%c255_46, %c0_47] : memref<256x512xf32, #tpu.memory_space<vmem>>, vector<1x512xf32>
      tpu.vector_store %arg10[%c255_46, %c0_47], %61 {strides = array<i32>} : memref<256x512xf32, #tpu.memory_space<vmem>>, vector<1x512xf32>,
    } else {
    }
    %c0_29 = arith.constant 0 : index
    %c0_30 = arith.constant 0 : index
    %41 = vector.load %arg10[%c0_29, %c0_30] : memref<256x512xf32, #tpu.memory_space<vmem>>, vector<256x512xf32>
    %c0_31 = arith.constant 0 : index
    %c0_32 = arith.constant 0 : index
    %42 = memref.load %arg6[%c0_31, %c0_32] : memref<1x1xf32, #tpu.memory_space<smem>>
    %cst_33 = arith.constant 0.000000e+00 : f32
    %43 = vector.broadcast %cst_33 : f32 to vector<256x512xf32>
    %44 = arith.cmpf ogt, %41, %43 : vector<256x512xf32>
    %45 = vector.broadcast %42 : f32 to vector<256x512xf32>
    %46 = arith.mulf %45, %41 : vector<256x512xf32>
    %47 = arith.select %44, %41, %46 : vector<256x512xi1>, vector<256x512xf32>
    %48 = arith.truncf %47 : vector<256x512xf32> to vector<256x512xbf16>
    %c0_34 = arith.constant 0 : index
    %c0_35 = arith.constant 0 : index
    %49 = vector.load %arg7[%c0_34, %c0_35] : memref<512x512xbf16, #tpu.memory_space<vmem>>, vector<512x512xbf16>
    %cst_36 = arith.constant dense<0.000000e+00> : vector<256x512xf32>
    %50 = tpu.matmul %48, %49, %cst_36 {dimension_numbers = #tpu.dot_dimension_numbers<[1], [0], [0], [1], [0, 0, 1, 1], [], []>} : vector<256x512xbf16>, vector<512x512xbf16>, vector<256x512xf32> -> vector<256x512xf32>
    %c0_37 = arith.constant 0 : index
    %c0_38 = arith.constant 0 : index
    %51 = vector.load %arg8[%c0_37, %c0_38] : memref<1x512xf32, #tpu.memory_space<vmem>>, vector<1x512xf32>
    %52 = vector.broadcast %51 : vector<1x512xf32> to vector<256x512xf32>
    %53 = arith.addf %50, %52 : vector<256x512xf32>
    %54 = arith.addf %53, %2 : vector<256x512xf32>
    %55 = arith.truncf %54 : vector<256x512xf32> to vector<256x512xbf16>
    %c0_39 = arith.constant 0 : index
    %c0_40 = arith.constant 0 : index
    %c0_41 = arith.constant 0 : index
    %56 = vector.load %arg9[%c0_39, %c0_40, %c0_41] : memref<1x256x512xbf16, #tpu.memory_space<vmem>>, vector<1x256x512xbf16>
    %57 = vector.shape_cast %56 : vector<1x256x512xbf16> to vector<256x512xbf16>
    %58 = vector.shape_cast %55 : vector<256x512xbf16> to vector<1x256x512xbf16>
    tpu.vector_store %arg9[%c0_39, %c0_40, %c0_41], %58 {strides = array<i32>} : memref<1x256x512xbf16, #tpu.memory_space<vmem>>, vector<1x256x512xbf16>,
    return
  }
  func.func @transform_0(%arg0: i32, %arg1: i32) -> (i32, i32, i32) {
    %c0_i32 = arith.constant 0 : i32
    %c0_i32_0 = arith.constant 0 : i32
    return %arg0, %arg1, %c0_i32 : i32, i32, i32
  }
  func.func @transform_1(%arg0: i32, %arg1: i32) -> (i32, i32, i32, i32) {
    %c0_i32 = arith.constant 0 : i32
    %c0_i32_0 = arith.constant 0 : i32
    %c0_i32_1 = arith.constant 0 : i32
    return %arg0, %arg1, %c0_i32, %c0_i32_0 : i32, i32, i32, i32
  }
  func.func @transform_2(%arg0: i32, %arg1: i32) -> (i32, i32) {
    %c0_i32 = arith.constant 0 : i32
    %c0_i32_0 = arith.constant 0 : i32
    %c0_i32_1 = arith.constant 0 : i32
    return %c0_i32, %c0_i32_0 : i32, i32
  }
  func.func @transform_3(%arg0: i32, %arg1: i32) -> (i32, i32) {
    %c0_i32 = arith.constant 0 : i32
    %c0_i32_0 = arith.constant 0 : i32
    %c0_i32_1 = arith.constant 0 : i32
    return %c0_i32, %c0_i32_0 : i32, i32
  }
  func.func @transform_4(%arg0: i32, %arg1: i32) -> (i32, i32) {
    %c0_i32 = arith.constant 0 : i32
    %c0_i32_0 = arith.constant 0 : i32
    %c0_i32_1 = arith.constant 0 : i32
    return %c0_i32, %c0_i32_0 : i32, i32
  }
  func.func @transform_5(%arg0: i32, %arg1: i32) -> (i32, i32) {
    %c0_i32 = arith.constant 0 : i32
    %c0_i32_0 = arith.constant 0 : i32
    %c0_i32_1 = arith.constant 0 : i32
    return %c0_i32, %c0_i32_0 : i32, i32
  }
  func.func @transform_6(%arg0: i32, %arg1: i32) -> (i32, i32) {
    %c0_i32 = arith.constant 0 : i32
    %c0_i32_0 = arith.constant 0 : i32
    %c0_i32_1 = arith.constant 0 : i32
    return %c0_i32, %c0_i32_0 : i32, i32
  }
  func.func @transform_7(%arg0: i32, %arg1: i32) -> (i32, i32, i32) {
    %c0_i32 = arith.constant 0 : i32
    %c0_i32_0 = arith.constant 0 : i32
    return %arg0, %arg1, %c0_i32 : i32, i32, i32
  }
}

</mosaic_0001>

<bundles_post_ra>
// kernel: tpu_custom_call.1
= control target key start
LH: loop header
LB: loop body
LE: loop exit
PB: predicated region body
PF: predicated region fallthrough
CT: control target
= control target key end

     0   :  { %s10194_s0 = inlined_call_operand.hbm [shape: bf16[2,512,512], index: 0, kind: input, shape index: {}]   ;;  %s10195_s1 = inlined_call_operand.hbm [shape: bf16[2,2,2,512], index: 1, kind: input, shape index: {}]   ;;  %s10196_s2 = inlined_call_operand.hbm [shape: f32[3,512], index: 2, kind: input, shape index: {}]   ;;  %s10197_s3 = inlined_call_operand.hbm [shape: f32[3,512], index: 3, kind: input, shape index: {}]   ;;  %s10198_s4 = inlined_call_operand.<no memory space> [shape: f32[1,1], index: 4, kind: input, shape index: {}]   ;;  %s10199_s5 = inlined_call_operand.hbm [shape: bf16[512,512], index: 5, kind: input, shape index: {}]   ;;  %s10200_s6 = inlined_call_operand.vmem [shape: f32[1,512], index: 6, kind: input, shape index: {}]   ;;  %s10201_s7 = inlined_call_operand.hbm [shape: bf16[2,512,512], index: 7, kind: output, shape index: {}]  }
   0x1   :  { %10655 = sst [smem:[#allocation207_spill]] %s10194_s0 }
   0x2   :  { %10656 = sst [smem:[#allocation208_spill]] %s10196_s2 }
   0x3   :  { %10657 = sst [smem:[#allocation209_spill]] %s10197_s3 }
   0x4   :  { %10658 = sst [smem:[#allocation210_spill]] %s10199_s5 }
   0x5   :  { %10659 = sst [smem:[#allocation211_spill]] %s10201_s7 }
   0x6   :  { %12 = sst [smem:[#allocation4]] %s10198_s4 }
   0x7   :  { %13 = vsyncpa [#allocation6], 0 }
   0x8   :  { %15 = vsyncpa [#allocation6 + $0x1], 0 }
   0x9   :  { %16 = vsyncpa [#allocation9], 0 }
   0xa   :  { %18 = vsyncpa [#allocation9 + $0x1], 0 }
   0xb   :  { %19 = vsyncpa [#allocation12], 0 }
   0xc   :  { %20 = vsyncpa [#allocation7], 0 }
   0xd   :  { %22 = vsyncpa [#allocation7 + $0x1], 0  ;;  %s6822_s26 = smov 0   ;;  %s6824_s27 = smov 0  }
   0xe   :  { %s6826_s28 = smov 0   ;;  %s6828_s29 = smov 0  }
   0xf   :  { %s6830_s30 = smov 0   ;;  %s6832_s8 = smov 0  }
  0x10   :  { %s6834_s4 = smov 0   ;;  %s6836_s9 = smov 0  }
  0x11 LB: > { %10660 = sst [smem:[#allocation20_spill]] %s6738_s26  ;;  %s6863_s10 = sadd.s32 4294967295, %s6766_s9   ;;  %s6766_s9 = sphi %s6836_s9, %s28_s9   ;;  %s6762_s4 = sphi %s6834_s4, %s11309_s4   ;;  %s6758_s8 = sphi %s6832_s8, %s11308_s8   ;;  %s6754_s30 = sphi %s6830_s30, %s11307_s30   ;;  %s6750_s29 = sphi %s6828_s29, %s11306_s29   ;;  %s6746_s28 = sphi %s6826_s28, %s11301_s28   ;;  %s6742_s27 = sphi %s6824_s27, %s11305_s27   ;;  %s6738_s26 = sphi %s6822_s26, %s11304_s26  }
  0x12   : > { %10661 = sst [smem:[#allocation21_spill]] %s6746_s28  ;;  %s5656_s11 = sadd.s32 4294967294, %s6766_s9  }
  0x13   : > { %p62_p0 = scmp.ne.s32.totalorder %s6742_s27, %s6738_s26  ;;  %p10202_p1 = scmp.eq.s32.totalorder %s6863_s10, 0 }
  0x14   : > { %p227_p3 = scmp.eq.s32.totalorder %s5656_s11, 3  ;;  %p5657_p5 = scmp.ge.s32.totalorder %s6766_s9, 1 }
  0x15   : > { %p6872_p4 = por %p10202_p1, %p62_p0  ;;  %p234_p7 = scmp.lt.s32.totalorder %s6766_s9, 5 }
  0x16   : > { %p6877_p6 = por %p227_p3, %p62_p0  ;;  %s6768_s15 = smov [#allocation10]  }
  0x17   : > { %s10662_s12 = scalar_select %p6872_p4, 1, 0 }
  0x18   : > { %s10663_s13 = scalar_select %p6877_p6, 1, 0 }
  0x19   : > { %p6882_p8 = pnand %p5657_p5, %p234_p7  ;;  %s247_s16 = sshll.u32 %s6768_s15, 4  ;;  %s248_s16 = int_to_ptr.vmem [resolvable:$true] %s247_s16 }
  0x1a   : > { %10664 = sst [smem:[#allocation22_spill]] %s10663_s13  ;;  %s6769_s17 = smov [#allocation11]  }
  0x1b   : > { %s10665_s14 = scalar_select %p6882_p8, 1, 0 }
  0x1c   : > { %p6219_p9 = pneg %p6882_p8  ;;  %s258_s18 = sshll.u32 %s6769_s17, 4  ;;  %s6894_s18 = int_to_ptr.vmem [resolvable:$true] %s258_s18 }
  0x1d   : > { %s6770_s20 = smov [#allocation13]   ;;  %s10667_s2 = sld [smem:[#allocation208_spill]] }
  0x1e   : > { %p6890_p10 = pnand %p6219_p9, %p10202_p1  ;;  %s271_s21 = sshll.u32 %s6770_s20, 4  ;;  %s6896_s21 = int_to_ptr.vmem [resolvable:$true] %s271_s21 }
  0x20   : > { %p6906_p12 = pneg %p6890_p10 }
  0x23   : > { %s6512_s24 = scalar_lea.hbm %s10667_s2, 256 }
  0x24   : > { %p6513_p11 = scmp.ne.s32.totalorder %s10667_s2, %s6512_s24  ;;  %p6519_p3 = scmp.lt.u32.totalorder %s6512_s24, %s10667_s2 }
  0x26   : > { %p6515_p13 = pnand %p6906_p12, %p6513_p11 }
  0x28   : > { %p6516_p0 = pneg %p6515_p13 }
  0x2a   : > { %p6521_p5 = pnand %p6519_p3, %p6516_p0 }
  0x2c   : > { %6524 = shalt.err (!%p6521_p5)
}
  0x2d   : > { %s6525_s22 = scalar_lea.vmem %s248_s16, 256  ;;  %p6533_p2 = scmp.lt.s32.totalorder %s248_s16, %s248_s16 }
  0x2e   : > { %p6526_p7 = scmp.ne.s32.totalorder %s248_s16, %s6525_s22  ;;  %p6534_p6 = scmp.lt.s32.totalorder %s6525_s22, %s6525_s22 }
  0x30   : > { %p6528_p9 = pnand %p6526_p7, %p6906_p12  ;;  %p6535_p4 = por %p6534_p6, %p6533_p2 }
  0x32   : > { %p6529_p1 = pneg %p6528_p9 }
  0x34   : > { %p6536_p8 = pnand %p6535_p4, %p6529_p1 }
  0x36   : > { %6539 = shalt.err (!%p6536_p8)
}
  0x37   : > { %6222 = dma.hbm_to_vmem [thread:$0]  (!%p6890_p10), %s10667_s2, 256, %s248_s16, [#allocation9]  }
  0x38   : > { %s10669_s3 = sld [smem:[#allocation209_spill]] }
  0x3e   : > { %s6540_s17 = scalar_lea.hbm %s10669_s3, 256 }
  0x3f   : > { %p6541_p11 = scmp.ne.s32.totalorder %s10669_s3, %s6540_s17  ;;  %p6547_p1 = scmp.lt.u32.totalorder %s6540_s17, %s10669_s3 }
  0x41   : > { %p6543_p13 = pnand %p6541_p11, %p6906_p12 }
  0x43   : > { %p6544_p2 = pneg %p6543_p13 }
  0x45   : > { %p6549_p4 = pnand %p6547_p1, %p6544_p2 }
  0x47   : > { %6552 = shalt.err (!%p6549_p4)
}
  0x48   : > { %s6553_s16 = scalar_lea.vmem %s6894_s18, 256  ;;  %p6561_p3 = scmp.lt.s32.totalorder %s6894_s18, %s6894_s18 }
  0x49   : > { %p6554_p6 = scmp.ne.s32.totalorder %s6894_s18, %s6553_s16  ;;  %p6562_p5 = scmp.lt.s32.totalorder %s6553_s16, %s6553_s16 }
  0x4b   : > { %p6556_p8 = pnand %p6554_p6, %p6906_p12  ;;  %p6563_p7 = por %p6562_p5, %p6561_p3 }
  0x4d   : > { %p6557_p0 = pneg %p6556_p8 }
  0x4f   : > { %p6564_p9 = pnand %p6563_p7, %p6557_p0 }
  0x51   : > { %6567 = shalt.err (!%p6564_p9)
}
  0x52   : > { %6225 = dma.hbm_to_vmem [thread:$0]  (!%p6890_p10), %s10669_s3, 256, %s6894_s18, [#allocation12]  }
  0x53   : > { %s10670_s5 = sld [smem:[#allocation210_spill]] }
  0x59   : > { %s6568_s24 = scalar_lea.hbm %s10670_s5, 16384 }
  0x5a   : > { %p6569_p11 = scmp.ne.s32.totalorder %s10670_s5, %s6568_s24  ;;  %p6575_p1 = scmp.lt.u32.totalorder %s6568_s24, %s10670_s5 }
  0x5c   : > { %p6571_p13 = pnand %p6569_p11, %p6906_p12 }
  0x5e   : > { %p6572_p2 = pneg %p6571_p13 }
  0x60   : > { %p6577_p4 = pnand %p6575_p1, %p6572_p2 }
  0x62   : > { %6580 = shalt.err (!%p6577_p4)
}
  0x63   : > { %s6581_s18 = scalar_lea.vmem %s6896_s21, 16384  ;;  %p6589_p3 = scmp.lt.s32.totalorder %s6896_s21, %s6896_s21 }
  0x64   : > { %p6582_p6 = scmp.ne.s32.totalorder %s6896_s21, %s6581_s18  ;;  %p6590_p5 = scmp.lt.s32.totalorder %s6581_s18, %s6581_s18 }
  0x66   : > { %p6584_p8 = pnand %p6582_p6, %p6906_p12  ;;  %p6591_p7 = por %p6590_p5, %p6589_p3 }
  0x68   : > { %p6585_p0 = pneg %p6584_p8 }
  0x6a   : > { %p6592_p9 = pnand %p6591_p7, %p6585_p0 }
  0x6c   : > { %6595 = shalt.err (!%p6592_p9)
}
  0x6d   : > { %s10207_s16 = smov 256   ;;  %s10208_s15 = smov 16  }
  0x6e   : > { %6228 = dma.hbm_to_vmem [thread:$0]  (!%p6890_p10), %s10670_s5, 16384, %s6896_s21, [#allocation12], %s10207_s16, %s10207_s16, %s10208_s15  }
  0x6f   : > { %s37_s23 = sadd.s32 1, %s6758_s8  ;;  %s40_s25 = sadd.s32 1, %s6762_s4 }
  0x70   : > { %p38_p12 = scmp.ge.s32.totalorder %s37_s23, 2  ;;  %s49_s24 = sadd.s32 1, %s6746_s28 }
  0x71   : > { %p56_p11 = scmp.ne.s32.totalorder %s6746_s28, %s6742_s27  ;;  %p57_p13 = scmp.eq.s32.totalorder %s6766_s9, 0 }
  0x72   : > { %s11311_s23 = smov (%p38_p12, %s37_s23), 0  ;;  %s11313_s25 = smov (!%p38_p12, %s40_s25), %s6762_s4 }
  0x73   : > { %10671 = sst [smem:[#allocation23_spill]] %s11311_s23  ;;  %s45_s19 = ssub.s32 %s6758_s8, %s11311_s23 }
  0x74   : > { %p42_p2 = scmp.ge.s32.totalorder %s11313_s25, 2  ;;  %p10672_p1 = scmp.eq.s32.totalorder %s6863_s10, 3 }
  0x75   : > { %p6988_p10 = por %p57_p13, %p56_p11  ;;  %p6243_p6 = scmp.lt.s32.totalorder %s6766_s9, 4 }
  0x76   : > { %p6984_p4 = por %p10672_p1, %p56_p11  ;;  %s11315_s25 = smov (%p42_p2, %s11313_s25), 0 }
  0x77   : > { %10676 = sst [smem:[#allocation25_spill]] %s11315_s25  ;;  %s6996_s17 = sand.u32 1, %s6746_s28  }
  0x78   : > { %s10673_s11 = scalar_select %p6984_p4, 1, 0 }
  0x79   : > { %s5879_s20 = sshll.u32 %s6758_s8, 7  ;;  %s44_s22 = ssub.s32 %s6762_s4, %s11315_s25 }
  0x7a   : > { %10674 = sst [smem:[#allocation24_spill]] %s10673_s11  ;;  %s46_s18 = sor.u32 %s45_s19, %s44_s22 }
  0x7b   : > { %s5662_s26 = sshll.u32 %s6996_s17, 9  ;;  %p47_p8 = scmp.eq.s32.totalorder %s46_s18, 0 }
  0x7c   : > { %s5665_s13 = sshll.u32 %s6762_s4, 8  ;;  %s292_s16 = scalar_lea.vmem [#allocation5], %s5662_s26 }
  0x7d   : > { %s302_s15 = sshll.u32 %s292_s16, 4  ;;  %s299_s3 = sadd.s32 %s5879_s20, %s5665_s13  ;;  %s7006_s15 = int_to_ptr.vmem [resolvable:$true] %s302_s15 }
  0x7e   : > { %s7004_s2 = scalar_select %p47_p8, %s6746_s28, %s49_s24  }
  0x7f   : > { %s5666_s5 = sshll.u32 %s299_s3, 6  ;;  %p7012_p0 = pnand %p6243_p6, %p6988_p10 }
  0x80   : > { %10677 = sst [smem:[#allocation26_spill]] %s7004_s2  ;;  %s289_s24 = scalar_lea.sflag [#allocation6], %s6996_s17 }
  0x81   : > { %s10679_s0 = sld [smem:[#allocation207_spill]]  ;;  %p6598_p5 = pneg %p7012_p0 }
  0x87   : > { %s7019_s19 = scalar_lea.hbm %s10679_s0, %s5666_s5  ;;  %s6601_s25 = scalar_lea.hbm %s10679_s0, 32768 }
  0x88   : > { %s6596_s3 = scalar_lea.hbm %s7019_s19, 8192  ;;  %p6602_p12 = scmp.lt.u32.totalorder %s7019_s19, %s10679_s0 }
  0x89   : > { %p6597_p3 = scmp.ne.s32.totalorder %s7019_s19, %s6596_s3  ;;  %p6603_p11 = scmp.lt.u32.totalorder %s6601_s25, %s6596_s3 }
  0x8a   : > { %p6605_p2 = scmp.lt.u32.totalorder %s6596_s3, %s7019_s19 }
  0x8b   : > { %p6599_p7 = pnand %p6598_p5, %p6597_p3  ;;  %p6604_p13 = por %p6603_p11, %p6602_p12 }
  0x8d   : > { %p6600_p9 = pneg %p6599_p7  ;;  %p6606_p1 = por %p6605_p2, %p6604_p13 }
  0x8f   : > { %p6607_p10 = pnand %p6606_p1, %p6600_p9 }
  0x91   : > { %6610 = shalt.err (!%p6607_p10)
}
  0x92   : > { %s6611_s22 = scalar_lea.vmem %s7006_s15, 8192  ;;  %s6773_s18 = smov [#allocation5]  }
  0x93   : > { %p6612_p6 = scmp.ne.s32.totalorder %s7006_s15, %s6611_s22  ;;  %s6616_s26 = sshll.u32 %s6773_s18, 4  ;;  %s6617_s26 = int_to_ptr.vmem [resolvable:$false] %s6616_s26 }
  0x94   : > { %s6618_s13 = scalar_lea.vmem %s6617_s26, 16384  ;;  %p6619_p7 = scmp.lt.s32.totalorder %s7006_s15, %s6617_s26 }
  0x95   : > { %p6614_p8 = pnand %p6612_p6, %p6598_p5  ;;  %p6620_p12 = scmp.lt.s32.totalorder %s6618_s13, %s6611_s22 }
  0x97   : > { %p6615_p3 = pneg %p6614_p8  ;;  %p6621_p11 = por %p6620_p12, %p6619_p7 }
  0x99   : > { %p6622_p13 = pnand %p6621_p11, %p6615_p3 }
  0x9b   : > { %6625 = shalt.err (!%p6622_p13)
}
  0x9c   : > { %s10680_s3 = smov 16   ;;  %s10681_s21 = smov 256  }
  0x9d   : > { %6232 = dma.hbm_to_vmem [thread:$0]  (!%p7012_p0), %s7019_s19, 8192, %s7006_s15, %s289_s24, %s10681_s21, %s10681_s21, %s10680_s3  }
  0x9e   : > { %s5667_s7 = sshll.u32 %s6996_s17, 2  ;;  %s5668_s25 = sshll.u32 %s6758_s8, 2 }
  0x9f   : > { %s5669_s5 = sshll.u32 %s6762_s4, 3  ;;  %s316_s22 = scalar_lea.vmem [#allocation8], %s5667_s7 }
  0xa0   : > { %s322_s20 = sadd.s32 %s5669_s5, %s5668_s25  ;;  %s326_s18 = sshll.u32 %s316_s22, 4  ;;  %s7056_s18 = int_to_ptr.vmem [resolvable:$true] %s326_s18 }
  0xa1   : > { %s5670_s26 = sshll.u32 %s322_s20, 4  ;;  %s10682_s2 = sand.u32 1, %s6766_s9  }
  0xa2   : > { %s324_s0 = scalar_lea.hbm %s10195_s1, %s5670_s26  ;;  %s313_s28 = scalar_lea.sflag [#allocation9], %s10682_s2 }
  0xa3   : > { %s6626_s11 = scalar_lea.hbm %s324_s0, 64  ;;  %s6631_s19 = scalar_lea.hbm %s10195_s1, 256 }
  0xa4   : > { %p6627_p9 = scmp.ne.s32.totalorder %s324_s0, %s6626_s11  ;;  %p6632_p10 = scmp.lt.u32.totalorder %s324_s0, %s10195_s1 }
  0xa5   : > { %p6633_p6 = scmp.lt.u32.totalorder %s6631_s19, %s6626_s11  ;;  %p6635_p3 = scmp.lt.u32.totalorder %s6626_s11, %s324_s0 }
  0xa6   : > { %p6629_p2 = pnand %p6627_p9, %p6598_p5 }
  0xa7   : > { %p6634_p8 = por %p6633_p6, %p6632_p10 }
  0xa8   : > { %p6630_p1 = pneg %p6629_p2 }
  0xa9   : > { %p6636_p7 = por %p6635_p3, %p6634_p8 }
  0xab   : > { %p6637_p12 = pnand %p6636_p7, %p6630_p1 }
  0xad   : > { %6640 = shalt.err (!%p6637_p12)
}
  0xae   : > { %s6641_s2 = scalar_lea.vmem %s7056_s18, 64  ;;  %s6774_s16 = smov [#allocation8]  }
  0xaf   : > { %p6642_p11 = scmp.ne.s32.totalorder %s7056_s18, %s6641_s2  ;;  %s6646_s21 = sshll.u32 %s6774_s16, 4  ;;  %s6647_s21 = int_to_ptr.vmem [resolvable:$false] %s6646_s21 }
  0xb0   : > { %s6648_s7 = scalar_lea.vmem %s6647_s21, 128  ;;  %p6649_p2 = scmp.lt.s32.totalorder %s7056_s18, %s6647_s21 }
  0xb1   : > { %p6644_p13 = pnand %p6642_p11, %p6598_p5  ;;  %p6650_p10 = scmp.lt.s32.totalorder %s6648_s7, %s6641_s2 }
  0xb3   : > { %p6645_p9 = pneg %p6644_p13  ;;  %p6651_p6 = por %p6650_p10, %p6649_p2 }
  0xb5   : > { %p6652_p8 = pnand %p6651_p6, %p6645_p9 }
  0xb7   : > { %6655 = shalt.err (!%p6652_p8)
}
  0xb8   : > { %6235 = dma.hbm_to_vmem [thread:$0]  (!%p7012_p0), %s324_s0, 64, %s7056_s18, %s313_s28  }
  0xb9   : > { %p10683_p1 = scmp.ne.s32.totalorder %s10665_s14, 0 }
  0xbb   : > { %335 = sbr.rel (%p10683_p1) target bundleno = 1190 (0x4a6), region = 48 }
  0xc2   : > { %s7084_s11 = sand.u32 1, %s6742_s27   ;;  %p10684_p5 = scmp.ne.s32.totalorder %s10662_s12, 0 }
  0xc3   : > { %s5672_s25 = sshll.u32 %s7084_s11, 9  ;;  %s338_s5 = scalar_lea.sflag [#allocation6], %s7084_s11 }
  0xc4   : > { %s7090_s20 = scalar_lea.vmem [#allocation5], %s5672_s25 }
  0xc5   : > { %6717 = dma.done.wait (%p10684_p5), %s338_s5, 8192  }
  0xc6   : > { %6719 = vsyncadd (%p10684_p5), %s338_s5, 4294959104  ;;  %s346_s0 = sand.u32 1, %s6863_s10   ;;  %s5673_s28 = sshll.u32 %s7084_s11, 2 }
  0xc7   : > { %s347_s14 = scalar_lea.sflag [#allocation9], %s346_s0  ;;  %s7098_s23 = scalar_lea.vmem [#allocation8], %s5673_s28 }
  0xc8   : > { %6721 = dma.done.wait (%p10684_p5), %s347_s14, 64  }
  0xc9   : > { %6723 = vsyncadd (%p10684_p5), %s347_s14, 4294967232  ;;  %p10685_p0 = scmp.eq.s32.totalorder %s6863_s10, 0 }
  0xcb   : > { %6725 = dma.done.wait (%p10685_p0), [#allocation9], 256   ;;  %p10686_p3 = pmov %p10685_p0 }
  0xcc   : > { %p10687_p7 = pmov %p10685_p0 }
  0xcd   : > { %6727 = vsyncadd (%p10686_p3), [#allocation9], 4294967040 }
  0xce   : > { %6729 = dma.done.wait (%p10687_p7), [#allocation12], 16640   ;;  %p10688_p12 = pmov %p10685_p0 }
  0xcf   : > { %v10243_v0 = vlaneseq  ;;  %v7116_v2 = vld [vmem:[%s7090_s20] sm:$0xff]  ;;  %v7119_v3 = vld [vmem:[%s7090_s20 + $0x1f0] sm:$0xff]  ;;  %v7123_v4 = vld [vmem:[%s7090_s20 + $0x8] sm:$0xff]  ;;  %v6775_v5 = vmov 1966171168   ;;  %s9507_s10 = scalar_lea.vmem [#allocation14], %s5672_s25 }
  0xd0   : > { %6731 = vsyncadd (%p10688_p12), [#allocation12], 4294950656  ;;  %10689 = vst [vmem:[#allocation27_spill] sm:$0xff] %v7116_v2  ;;  %v7125_v6 = vunpack.c.l.s4 %v6775_v5  ;;  %v10240_v7 = vunpack.c.l.bf16 %v7116_v2  ;;  %v10218_v8 = vunpack.c.l.bf16 %v7119_v3  ;;  %v10236_v9 = vunpack.c.h.bf16 %v7116_v2  ;;  %v7132_v11 = vld [vmem:[%s7090_s20 + $0x1f8] sm:$0xff]  ;;  %v7171_v24 = vld [vmem:[%s7090_s20 + $0x1e0] sm:$0xff]  ;;  %p5678_p11 = scmp.ne.s32.totalorder %s6750_s29, 0 }
  0xd1   : > { %v7113_v1 = vshrl.u32 %v10243_v0, 7  ;;  %10690 = vst [vmem:[#allocation28_spill] sm:$0xff] %v7119_v3  ;;  %10691 = vst [vmem:[#allocation29_spill] sm:$0xff] %v7123_v4  ;;  %v10216_v10 = vunpack.c.h.bf16 %v7119_v3  ;;  %v10239_v12 = vunpack.c.l.bf16 %v7123_v4  ;;  %v10217_v13 = vunpack.c.l.bf16 %v7132_v11  ;;  %v7178_v29 = vld [vmem:[%s7090_s20 + $0x1e8] sm:$0xff]  ;;  %v7185_v34 = vld [vmem:[%s7090_s20 + $0x10] sm:$0xff] }
  0xd2   : > { %10692 = vst [vmem:[#allocation30_spill] sm:$0xff] %v7132_v11  ;;  %v10235_v14 = vunpack.c.h.bf16 %v7123_v4  ;;  %v10215_v15 = vunpack.c.h.bf16 %v7132_v11  ;;  %v7140_v16 = vmax.f32 %v10240_v7, 0.0  ;;  %v7144_v17 = vmax.f32 %v10218_v8, 0.0  ;;  %10693 = vst [vmem:[#allocation31_spill] sm:$0xff] %v7171_v24  ;;  %v7194_v39 = vld [vmem:[%s7090_s20 + $0x18] sm:$0xff]  ;;  %v7243_v60 = vld [vmem:[%s7090_s20 + $0x20] sm:$0xff] }
  0xd3   : > { %vm853_vm0 = vcmp.lt.s32.totalorder %v7113_v1, 1  ;;  %v7148_v18 = vmax.f32 %v10236_v9, 0.0  ;;  %v7152_v19 = vmax.f32 %v10216_v10, 0.0  ;;  %v7156_v20 = vmax.f32 %v10239_v12, 0.0  ;;  %10694 = vst [vmem:[#allocation32_spill] sm:$0xff] %v7178_v29  ;;  %10695 = vst [vmem:[#allocation33_spill] sm:$0xff] %v7185_v34 }
  0xd4   : > { %v7160_v21 = vmax.f32 %v10217_v13, 0.0  ;;  %v7164_v22 = vmax.f32 %v10235_v14, 0.0  ;;  %v7168_v23 = vmax.f32 %v10215_v15, 0.0  ;;  %v723_v25 = vrot.slane %v7140_v16, 7  ;;  %10696 = vst [vmem:[#allocation34_spill] sm:$0xff] %v7194_v39  ;;  %10701 = vst [vmem:[#allocation39_spill] sm:$0xff] %v7243_v60 }
  0xd5   : > { %v847_v26 = vrot.slane %v7144_v17, 7  ;;  %v724_v27 = vrot.slane %v7148_v18, 7  ;;  %v848_v28 = vrot.slane %v7152_v19, 7  ;;  %v725_v30 = vrot.slane %v7156_v20, 7  ;;  %v7278_v10 = vld [vmem:[%s7090_s20 + $0x38] sm:$0xff]  ;;  %v7412_v3 = vld [vmem:[%s7090_s20 + $0x68] sm:$0xff] }
  0xd6   : > { %v849_v31 = vrot.slane %v7160_v21, 7  ;;  %v726_v32 = vrot.slane %v7164_v22, 7  ;;  %v850_v33 = vrot.slane %v7168_v23, 7  ;;  %v10222_v37 = vunpack.c.l.bf16 %v7171_v24  ;;  %10704 = vst [vmem:[#allocation42_spill] sm:$0xff] %v7278_v10  ;;  %v7354_v9 = vld [vmem:[%s7090_s20 + $0x58] sm:$0xff]  ;;  %10721 = vst [vmem:[#allocation59_spill] sm:$0xff] %v7412_v3 }
  0xd7   : > { %v978_v35 = vsel %vm853_vm0, %v847_v26, %v723_v25  ;;  %v979_v36 = vsel %vm853_vm0, %v848_v28, %v724_v27  ;;  %v10220_v38 = vunpack.c.h.bf16 %v7171_v24  ;;  %v10221_v42 = vunpack.c.l.bf16 %v7178_v29  ;;  %10714 = vst [vmem:[#allocation52_spill] sm:$0xff] %v7354_v9 }
  0xd8   : > { %982 = vst [vmem:[#allocation2] sm:$0xff] %v978_v35  ;;  %983 = vst [vmem:[#allocation2 + $0x8] sm:$0xff] %v979_v36  ;;  %v980_v40 = vsel %vm853_vm0, %v849_v31, %v725_v30  ;;  %v981_v41 = vsel %vm853_vm0, %v850_v33, %v726_v32  ;;  %v10219_v43 = vunpack.c.h.bf16 %v7178_v29  ;;  %v7204_v44 = vmax.f32 %v10222_v37, 0.0  ;;  %v7256_v35 = vld [vmem:[%s7090_s20 + $0x28] sm:$0xff] }
  0xd9   : > { %984 = vst [vmem:[#allocation2 + $0x10] sm:$0xff] %v980_v40  ;;  %985 = vst [vmem:[#allocation2 + $0x18] sm:$0xff] %v981_v41  ;;  %v7208_v45 = vmax.f32 %v10220_v38, 0.0  ;;  %v10234_v46 = vunpack.c.l.bf16 %v7185_v34  ;;  %v10230_v47 = vunpack.c.h.bf16 %v7185_v34  ;;  %v7214_v48 = vmax.f32 %v10221_v42, 0.0  ;;  %v7269_v41 = vld [vmem:[%s7090_s20 + $0x30] sm:$0xff] }
  0xda   : > { %10697 = vst [vmem:[#allocation35_spill] sm:$0xff] %v7204_v44  ;;  %v7218_v49 = vmax.f32 %v10219_v43, 0.0  ;;  %v10231_v50 = vunpack.c.l.bf16 %v7194_v39  ;;  %v10229_v51 = vunpack.c.h.bf16 %v7194_v39  ;;  %v10249_v52 = vrot.slane %v7204_v44, 7  ;;  %10702 = vst [vmem:[#allocation40_spill] sm:$0xff] %v7256_v35  ;;  %v7506_v39 = vld [vmem:[%s7090_s20 + $0x98] sm:$0xff] }
  0xdb   : > { %10698 = vst [vmem:[#allocation36_spill] sm:$0xff] %v7208_v45  ;;  %10699 = vst [vmem:[#allocation37_spill] sm:$0xff] %v7214_v48  ;;  %v10246_v53 = vrot.slane %v7208_v45, 7  ;;  %v7226_v54 = vmax.f32 %v10234_v46, 0.0  ;;  %v7230_v55 = vmax.f32 %v10230_v47, 0.0  ;;  %v10245_v56 = vrot.slane %v7214_v48, 7 }
  0xdc   : > { %10700 = vst [vmem:[#allocation38_spill] sm:$0xff] %v7218_v49  ;;  %v10244_v57 = vrot.slane %v7218_v49, 7  ;;  %v7236_v58 = vmax.f32 %v10231_v50, 0.0  ;;  %v7240_v59 = vmax.f32 %v10229_v51, 0.0  ;;  %v854_v61 = vsel %vm853_vm0, %v10249_v52, %v847_v26  ;;  %10703 = vst [vmem:[#allocation41_spill] sm:$0xff] %v7269_v41  ;;  %v7336_v50 = vld [vmem:[%s7090_s20 + $0x48] sm:$0xff] }
  0xdd   : > { %v855_v62 = vsel %vm853_vm0, %v10246_v53, %v848_v28  ;;  %v727_v63 = vrot.slane %v7226_v54, 7  ;;  %v728_v5 = vrot.slane %v7230_v55, 7  ;;  %1106 = vst [vmem:[#allocation2 + $0x3e0] sm:$0xff] %v854_v61  ;;  %v856_v36 = vsel %vm853_vm0, %v10245_v56, %v849_v31  ;;  %10712 = vst [vmem:[#allocation50_spill] sm:$0xff] %v7336_v50  ;;  %v7403_v53 = vld [vmem:[%s7090_s20 + $0x60] sm:$0xff] }
  0xde   : > { %1107 = vst [vmem:[#allocation2 + $0x3e8] sm:$0xff] %v855_v62  ;;  %v857_v26 = vsel %vm853_vm0, %v10244_v57, %v850_v33  ;;  %v729_v28 = vrot.slane %v7236_v58, 7  ;;  %v730_v40 = vrot.slane %v7240_v59, 7  ;;  %1108 = vst [vmem:[#allocation2 + $0x3f0] sm:$0xff] %v856_v36  ;;  %v10226_v31 = vunpack.c.l.bf16 %v7243_v60 }
  0xdf   : > { %1109 = vst [vmem:[#allocation2 + $0x3f8] sm:$0xff] %v857_v26  ;;  %v974_v61 = vsel %vm853_vm0, %v723_v25, %v727_v63  ;;  %v975_v62 = vsel %vm853_vm0, %v724_v27, %v728_v5  ;;  %v10224_v15 = vunpack.c.h.bf16 %v7243_v60  ;;  %v10225_v26 = vunpack.c.l.bf16 %v7256_v35  ;;  %10720 = vst [vmem:[#allocation58_spill] sm:$0xff] %v7403_v53 }
  0xe0   : > { %986 = vst [vmem:[#allocation2 + $0x20] sm:$0xff] %v974_v61  ;;  %987 = vst [vmem:[#allocation2 + $0x28] sm:$0xff] %v975_v62  ;;  %v976_v33 = vsel %vm853_vm0, %v725_v30, %v729_v28  ;;  %v977_v36 = vsel %vm853_vm0, %v726_v32, %v730_v40  ;;  %v10223_v25 = vunpack.c.h.bf16 %v7256_v35  ;;  %v7288_v27 = vmax.f32 %v10226_v31, 0.0  ;;  %v7327_v31 = vld [vmem:[%s7090_s20 + $0x40] sm:$0xff]  ;;  %v7488_v35 = vld [vmem:[%s7090_s20 + $0x88] sm:$0xff] }
  0xe1   : > { %988 = vst [vmem:[#allocation2 + $0x30] sm:$0xff] %v976_v33  ;;  %989 = vst [vmem:[#allocation2 + $0x38] sm:$0xff] %v977_v36  ;;  %v7292_v61 = vmax.f32 %v10224_v15, 0.0  ;;  %v10227_v30 = vunpack.c.l.bf16 %v7269_v41  ;;  %v10228_v62 = vunpack.c.h.bf16 %v7269_v41  ;;  %v7298_v32 = vmax.f32 %v10225_v26, 0.0 }
  0xe2   : > { %v7302_v33 = vmax.f32 %v10223_v25, 0.0  ;;  %v10233_v36 = vunpack.c.l.bf16 %v7278_v10  ;;  %v10232_v13 = vunpack.c.h.bf16 %v7278_v10  ;;  %v731_v8 = vrot.slane %v7288_v27, 7  ;;  %10711 = vst [vmem:[#allocation49_spill] sm:$0xff] %v7327_v31  ;;  %v7479_v10 = vld [vmem:[%s7090_s20 + $0x80] sm:$0xff]  ;;  %10735 = vst [vmem:[#allocation71_spill] sm:$0xff] %v7488_v35 }
  0xe3   : > { %10705 = vst [vmem:[#allocation43_spill] sm:$0xff] %v7292_v61  ;;  %10706 = vst [vmem:[#allocation44_spill] sm:$0xff] %v7298_v32  ;;  %v732_v43 = vrot.slane %v7292_v61, 7  ;;  %v7310_v38 = vmax.f32 %v10227_v30, 0.0  ;;  %v7314_v42 = vmax.f32 %v10228_v62, 0.0  ;;  %v733_v37 = vrot.slane %v7298_v32, 7 }
  0xe4   : > { %v734_v25 = vrot.slane %v7302_v33, 7  ;;  %v7320_v15 = vmax.f32 %v10233_v36, 0.0  ;;  %v7324_v26 = vmax.f32 %v10232_v13, 0.0  ;;  %v970_v30 = vsel %vm853_vm0, %v727_v63, %v731_v8  ;;  %10734 = vst [vmem:[#allocation70_spill] sm:$0xff] %v7479_v10  ;;  %10737 = vst [vmem:[#allocation73_spill] sm:$0xff] %v7506_v39 }
  0xe5   : > { %10707 = vst [vmem:[#allocation45_spill] sm:$0xff] %v7310_v38  ;;  %10708 = vst [vmem:[#allocation46_spill] sm:$0xff] %v7314_v42  ;;  %v971_v62 = vsel %vm853_vm0, %v728_v5, %v732_v43  ;;  %v735_v51 = vrot.slane %v7310_v38, 7  ;;  %v736_v47 = vrot.slane %v7314_v42, 7  ;;  %v972_v13 = vsel %vm853_vm0, %v729_v28, %v733_v37  ;;  %v7345_v5 = vld [vmem:[%s7090_s20 + $0x50] sm:$0xff] }
  0xe6   : > { %10709 = vst [vmem:[#allocation47_spill] sm:$0xff] %v7320_v15  ;;  %10710 = vst [vmem:[#allocation48_spill] sm:$0xff] %v7324_v26  ;;  %v973_v36 = vsel %vm853_vm0, %v730_v40, %v734_v25  ;;  %v737_v63 = vrot.slane %v7320_v15, 7  ;;  %v738_v46 = vrot.slane %v7324_v26, 7  ;;  %v10238_v28 = vunpack.c.h.bf16 %v7327_v31 }
  0xe7   : > { %990 = vst [vmem:[#allocation2 + $0x40] sm:$0xff] %v970_v30  ;;  %991 = vst [vmem:[#allocation2 + $0x48] sm:$0xff] %v971_v62  ;;  %v966_v14 = vsel %vm853_vm0, %v731_v8, %v735_v51  ;;  %v967_v30 = vsel %vm853_vm0, %v732_v43, %v736_v47  ;;  %v10237_v62 = vunpack.c.l.bf16 %v7327_v31  ;;  %v10242_v8 = vunpack.c.h.bf16 %v7336_v50 }
  0xe8   : > { %10713 = vst [vmem:[#allocation51_spill] sm:$0xff] %v7345_v5  ;;  %992 = vst [vmem:[#allocation2 + $0x50] sm:$0xff] %v972_v13  ;;  %v968_v40 = vsel %vm853_vm0, %v733_v37, %v737_v63  ;;  %v969_v13 = vsel %vm853_vm0, %v734_v25, %v738_v46  ;;  %v10247_v37 = vunpack.c.l.bf16 %v7345_v5  ;;  %v10746_v4 = vunpack.c.h.bf16 %v7506_v39 }
  0xe9   : > { %993 = vst [vmem:[#allocation2 + $0x58] sm:$0xff] %v973_v36  ;;  %994 = vst [vmem:[#allocation2 + $0x60] sm:$0xff] %v966_v14  ;;  %v10241_v36 = vunpack.c.l.bf16 %v7336_v50  ;;  %v7364_v43 = vmax.f32 %v10237_v62, 0.0  ;;  %v7368_v14 = vmax.f32 %v10238_v28, 0.0  ;;  %v10254_v62 = vunpack.c.h.bf16 %v7354_v9 }
  0xea   : > { %995 = vst [vmem:[#allocation2 + $0x68] sm:$0xff] %v967_v30  ;;  %996 = vst [vmem:[#allocation2 + $0x70] sm:$0xff] %v968_v40  ;;  %v10248_v30 = vunpack.c.h.bf16 %v7345_v5  ;;  %v7378_v40 = vmax.f32 %v10242_v8, 0.0  ;;  %v7386_v7 = vmax.f32 %v10247_v37, 0.0  ;;  %v7552_v2 = vmax.f32 %v10746_v4, 0.0 }
  0xeb   : > { %997 = vst [vmem:[#allocation2 + $0x78] sm:$0xff] %v969_v13  ;;  %10715 = vst [vmem:[#allocation53_spill] sm:$0xff] %v7364_v43  ;;  %v7374_v25 = vmax.f32 %v10241_v36, 0.0  ;;  %v10255_v13 = vunpack.c.l.bf16 %v7354_v9  ;;  %v739_v28 = vrot.slane %v7364_v43, 7  ;;  %v740_v12 = vrot.slane %v7368_v14, 7  ;;  %v7430_v9 = vld [vmem:[%s7090_s20 + $0x78] sm:$0xff] }
  0xec   : > { %10716 = vst [vmem:[#allocation54_spill] sm:$0xff] %v7368_v14  ;;  %10717 = vst [vmem:[#allocation55_spill] sm:$0xff] %v7378_v40  ;;  %v7390_v36 = vmax.f32 %v10248_v30, 0.0  ;;  %v742_v0 = vrot.slane %v7378_v40, 7  ;;  %v7400_v56 = vmax.f32 %v10254_v62, 0.0  ;;  %v743_v52 = vrot.slane %v7386_v7, 7 }
  0xed   : > { %10718 = vst [vmem:[#allocation56_spill] sm:$0xff] %v7386_v7  ;;  %v741_v8 = vrot.slane %v7374_v25, 7  ;;  %v7396_v57 = vmax.f32 %v10255_v13, 0.0  ;;  %v962_v37 = vsel %vm853_vm0, %v735_v51, %v739_v28  ;;  %v963_v30 = vsel %vm853_vm0, %v736_v47, %v740_v12  ;;  %v7421_v47 = vld [vmem:[%s7090_s20 + $0x70] sm:$0xff]  ;;  %10723 = vst [vmem:[#allocation61_spill] sm:$0xff] %v7430_v9 }
  0xee   : > { %10719 = vst [vmem:[#allocation57_spill] sm:$0xff] %v7390_v36  ;;  %v744_v11 = vrot.slane %v7390_v36, 7  ;;  %998 = vst [vmem:[#allocation2 + $0x80] sm:$0xff] %v962_v37  ;;  %v965_v13 = vsel %vm853_vm0, %v738_v46, %v742_v0  ;;  %v746_v29 = vrot.slane %v7400_v56, 7  ;;  %v958_v24 = vsel %vm853_vm0, %v739_v28, %v743_v52 }
  0xef   : > { %999 = vst [vmem:[#allocation2 + $0x88] sm:$0xff] %v963_v30  ;;  %v964_v62 = vsel %vm853_vm0, %v737_v63, %v741_v8  ;;  %v745_v51 = vrot.slane %v7396_v57, 7  ;;  %10722 = vst [vmem:[#allocation60_spill] sm:$0xff] %v7421_v47  ;;  %v10262_v30 = vunpack.c.l.bf16 %v7403_v53  ;;  %v10263_v63 = vunpack.c.h.bf16 %v7403_v53 }
  0xf0   : > { %1000 = vst [vmem:[#allocation2 + $0x90] sm:$0xff] %v964_v62  ;;  %1001 = vst [vmem:[#allocation2 + $0x98] sm:$0xff] %v965_v13  ;;  %v959_v37 = vsel %vm853_vm0, %v740_v12, %v744_v11  ;;  %v961_v62 = vsel %vm853_vm0, %v742_v0, %v746_v29  ;;  %v10266_v13 = vunpack.c.l.bf16 %v7412_v3  ;;  %v10269_v28 = vunpack.c.h.bf16 %v7412_v3 }
  0xf1   : > { %1002 = vst [vmem:[#allocation2 + $0xa0] sm:$0xff] %v958_v24  ;;  %1003 = vst [vmem:[#allocation2 + $0xa8] sm:$0xff] %v959_v37  ;;  %v960_v46 = vsel %vm853_vm0, %v741_v8, %v745_v51  ;;  %v7440_v12 = vmax.f32 %v10262_v30, 0.0  ;;  %v7444_v24 = vmax.f32 %v10263_v63, 0.0  ;;  %v10278_v8 = vunpack.c.l.bf16 %v7421_v47 }
  0xf2   : > { %1004 = vst [vmem:[#allocation2 + $0xb0] sm:$0xff] %v960_v46  ;;  %1005 = vst [vmem:[#allocation2 + $0xb8] sm:$0xff] %v961_v62  ;;  %v7450_v0 = vmax.f32 %v10266_v13, 0.0  ;;  %v7454_v46 = vmax.f32 %v10269_v28, 0.0  ;;  %v10285_v62 = vunpack.c.l.bf16 %v7430_v9  ;;  %v10729_v13 = vunpack.c.h.bf16 %v7421_v47 }
  0xf3   : > { %10724 = vst [vmem:[#allocation62_spill] sm:$0xff] %v7440_v12  ;;  %10725 = vst [vmem:[#allocation63_spill] sm:$0xff] %v7444_v24  ;;  %v747_v63 = vrot.slane %v7440_v12, 7  ;;  %v748_v53 = vrot.slane %v7444_v24, 7  ;;  %v7462_v37 = vmax.f32 %v10278_v8, 0.0  ;;  %v10732_v50 = vunpack.c.h.bf16 %v7430_v9 }
  0xf4   : > { %10726 = vst [vmem:[#allocation64_spill] sm:$0xff] %v7450_v0  ;;  %10727 = vst [vmem:[#allocation65_spill] sm:$0xff] %v7454_v46  ;;  %v7466_v5 = vmax.f32 %v10729_v13, 0.0  ;;  %v749_v28 = vrot.slane %v7450_v0, 7  ;;  %v750_v3 = vrot.slane %v7454_v46, 7  ;;  %v7472_v30 = vmax.f32 %v10285_v62, 0.0 }
  0xf5   : > { %10728 = vst [vmem:[#allocation66_spill] sm:$0xff] %v7462_v37  ;;  %v7476_v31 = vmax.f32 %v10732_v50, 0.0  ;;  %v954_v8 = vsel %vm853_vm0, %v743_v52, %v747_v63  ;;  %v955_v13 = vsel %vm853_vm0, %v744_v11, %v748_v53  ;;  %v751_v47 = vrot.slane %v7462_v37, 7  ;;  %v7497_v11 = vld [vmem:[%s7090_s20 + $0x90] sm:$0xff]  ;;  %10747 = vst [vmem:[#allocation81_spill] sm:$0xff] %v7552_v2 }
  0xf6   : > { %10730 = vst [vmem:[#allocation67_spill] sm:$0xff] %v7466_v5  ;;  %10731 = vst [vmem:[#allocation68_spill] sm:$0xff] %v7472_v30  ;;  %v752_v41 = vrot.slane %v7466_v5, 7  ;;  %v956_v50 = vsel %vm853_vm0, %v745_v51, %v749_v28  ;;  %v957_v62 = vsel %vm853_vm0, %v746_v29, %v750_v3  ;;  %v753_v52 = vrot.slane %v7472_v30, 7 }
  0xf7   : > { %10733 = vst [vmem:[#allocation69_spill] sm:$0xff] %v7476_v31  ;;  %1006 = vst [vmem:[#allocation2 + $0xc0] sm:$0xff] %v954_v8  ;;  %v754_v9 = vrot.slane %v7476_v31, 7  ;;  %v950_v60 = vsel %vm853_vm0, %v747_v63, %v751_v47  ;;  %v10293_v51 = vunpack.c.h.bf16 %v7479_v10  ;;  %v10299_v63 = vunpack.c.h.bf16 %v7488_v35 }
  0xf8   : > { %1007 = vst [vmem:[#allocation2 + $0xc8] sm:$0xff] %v955_v13  ;;  %10736 = vst [vmem:[#allocation72_spill] sm:$0xff] %v7497_v11  ;;  %v951_v8 = vsel %vm853_vm0, %v748_v53, %v752_v41  ;;  %v10292_v13 = vunpack.c.l.bf16 %v7479_v10  ;;  %v952_v29 = vsel %vm853_vm0, %v749_v28, %v753_v52  ;;  %v10308_v28 = vunpack.c.l.bf16 %v7497_v11 }
  0xf9   : > { %1008 = vst [vmem:[#allocation2 + $0xd0] sm:$0xff] %v956_v50  ;;  %1009 = vst [vmem:[#allocation2 + $0xd8] sm:$0xff] %v957_v62  ;;  %v953_v62 = vsel %vm853_vm0, %v750_v3, %v754_v9  ;;  %v10296_v50 = vunpack.c.l.bf16 %v7488_v35  ;;  %vm1253_vm2 = vcmp.lt.s32.totalorder %v7113_v1, 7 }
  0xfa   : > { %1010 = vst [vmem:[#allocation2 + $0xe0] sm:$0xff] %v950_v60  ;;  %1011 = vst [vmem:[#allocation2 + $0xe8] sm:$0xff] %v951_v8  ;;  %v7516_v53 = vmax.f32 %v10292_v13, 0.0  ;;  %v7520_v60 = vmax.f32 %v10293_v51, 0.0  ;;  %v7538_v8 = vmax.f32 %v10308_v28, 0.0 }
  0xfb   : > { %1012 = vst [vmem:[#allocation2 + $0xf0] sm:$0xff] %v952_v29  ;;  %1013 = vst [vmem:[#allocation2 + $0xf8] sm:$0xff] %v953_v62  ;;  %v7526_v3 = vmax.f32 %v10296_v50, 0.0  ;;  %v7530_v29 = vmax.f32 %v10299_v63, 0.0  ;;  %v10315_v62 = vunpack.c.l.bf16 %v7506_v39  ;;  %v10743_v50 = vunpack.c.h.bf16 %v7497_v11 }
  0xfc   : > { %10738 = vst [vmem:[#allocation74_spill] sm:$0xff] %v7516_v53  ;;  %10739 = vst [vmem:[#allocation75_spill] sm:$0xff] %v7520_v60  ;;  %v755_v51 = vrot.slane %v7516_v53, 7  ;;  %v756_v10 = vrot.slane %v7520_v60, 7  ;;  %v7555_v60 = vld [vmem:[%s7090_s20 + $0xa0] sm:$0xff]  ;;  %v759_v11 = vrot.slane %v7538_v8, 7 }
  0xfd   : > { %10740 = vst [vmem:[#allocation76_spill] sm:$0xff] %v7526_v3  ;;  %10741 = vst [vmem:[#allocation77_spill] sm:$0xff] %v7530_v29  ;;  %v7542_v34 = vmax.f32 %v10743_v50, 0.0  ;;  %v757_v63 = vrot.slane %v7526_v3, 7  ;;  %v758_v35 = vrot.slane %v7530_v29, 7  ;;  %v7548_v13 = vmax.f32 %v10315_v62, 0.0 }
  0xfe   : > { %10742 = vst [vmem:[#allocation78_spill] sm:$0xff] %v7538_v8  ;;  %10748 = vst [vmem:[#allocation82_spill] sm:$0xff] %v7555_v60  ;;  %v946_v28 = vsel %vm853_vm0, %v751_v47, %v755_v51  ;;  %v947_v50 = vsel %vm853_vm0, %v752_v41, %v756_v10  ;;  %v7564_v3 = vld [vmem:[%s7090_s20 + $0xa8] sm:$0xff]  ;;  %v762_v39 = vrot.slane %v7552_v2, 7  ;;  %v7573_v41 = vld [vmem:[%s7090_s20 + $0xb0] sm:$0xff] }
  0xff   : > { %10744 = vst [vmem:[#allocation79_spill] sm:$0xff] %v7542_v34  ;;  %10745 = vst [vmem:[#allocation80_spill] sm:$0xff] %v7548_v13  ;;  %v760_v29 = vrot.slane %v7542_v34, 7  ;;  %v948_v4 = vsel %vm853_vm0, %v753_v52, %v757_v63  ;;  %v949_v62 = vsel %vm853_vm0, %v754_v9, %v758_v35  ;;  %v761_v47 = vrot.slane %v7548_v13, 7  ;;  %v7582_v8 = vld [vmem:[%s7090_s20 + $0xb8] sm:$0xff]  ;;  %v7631_v13 = vld [vmem:[%s7090_s20 + $0xc0] sm:$0xff] }
 0x100   : > { %10749 = vst [vmem:[#allocation83_spill] sm:$0xff] %v7564_v3  ;;  %1014 = vst [vmem:[#allocation2 + $0x100] sm:$0xff] %v946_v28  ;;  %v942_v34 = vsel %vm853_vm0, %v755_v51, %v759_v11  ;;  %v10323_v52 = vunpack.c.h.bf16 %v7555_v60  ;;  %v10329_v51 = vunpack.c.h.bf16 %v7564_v3 }
 0x101   : > { %1015 = vst [vmem:[#allocation2 + $0x108] sm:$0xff] %v947_v50  ;;  %10750 = vst [vmem:[#allocation84_spill] sm:$0xff] %v7573_v41  ;;  %v943_v28 = vsel %vm853_vm0, %v756_v10, %v760_v29  ;;  %v10322_v50 = vunpack.c.l.bf16 %v7555_v60  ;;  %v944_v9 = vsel %vm853_vm0, %v757_v63, %v761_v47  ;;  %v10338_v63 = vunpack.c.l.bf16 %v7573_v41 }
 0x102   : > { %1016 = vst [vmem:[#allocation2 + $0x110] sm:$0xff] %v948_v4  ;;  %1017 = vst [vmem:[#allocation2 + $0x118] sm:$0xff] %v949_v62  ;;  %v945_v62 = vsel %vm853_vm0, %v758_v35, %v762_v39  ;;  %v10326_v4 = vunpack.c.l.bf16 %v7564_v3 }
 0x103   : > { %10751 = vst [vmem:[#allocation85_spill] sm:$0xff] %v7582_v8  ;;  %1018 = vst [vmem:[#allocation2 + $0x120] sm:$0xff] %v942_v34  ;;  %v7592_v10 = vmax.f32 %v10322_v50, 0.0  ;;  %v7596_v34 = vmax.f32 %v10323_v52, 0.0 }
 0x104   : > { %1019 = vst [vmem:[#allocation2 + $0x128] sm:$0xff] %v943_v28  ;;  %1020 = vst [vmem:[#allocation2 + $0x130] sm:$0xff] %v944_v9  ;;  %v7602_v35 = vmax.f32 %v10326_v4, 0.0  ;;  %v7606_v9 = vmax.f32 %v10329_v51, 0.0  ;;  %v7614_v28 = vmax.f32 %v10338_v63, 0.0  ;;  %v10757_v4 = vunpack.c.h.bf16 %v7573_v41 }
 0x105   : > { %1021 = vst [vmem:[#allocation2 + $0x138] sm:$0xff] %v945_v62  ;;  %10752 = vst [vmem:[#allocation86_spill] sm:$0xff] %v7592_v10  ;;  %v10345_v62 = vunpack.c.l.bf16 %v7582_v8  ;;  %v763_v52 = vrot.slane %v7592_v10, 7  ;;  %v764_v60 = vrot.slane %v7596_v34, 7  ;;  %v10760_v10 = vunpack.c.h.bf16 %v7582_v8 }
 0x106   : > { %10753 = vst [vmem:[#allocation87_spill] sm:$0xff] %v7596_v34  ;;  %10754 = vst [vmem:[#allocation88_spill] sm:$0xff] %v7602_v35  ;;  %v7618_v2 = vmax.f32 %v10757_v4, 0.0  ;;  %v765_v51 = vrot.slane %v7602_v35, 7  ;;  %v766_v3 = vrot.slane %v7606_v9, 7  ;;  %v767_v41 = vrot.slane %v7614_v28, 7 }
 0x107   : > { %10755 = vst [vmem:[#allocation89_spill] sm:$0xff] %v7606_v9  ;;  %10756 = vst [vmem:[#allocation90_spill] sm:$0xff] %v7614_v28  ;;  %v7624_v50 = vmax.f32 %v10345_v62, 0.0  ;;  %v7628_v34 = vmax.f32 %v10760_v10, 0.0  ;;  %v938_v63 = vsel %vm853_vm0, %v759_v11, %v763_v52  ;;  %v939_v4 = vsel %vm853_vm0, %v760_v29, %v764_v60  ;;  %v7640_v35 = vld [vmem:[%s7090_s20 + $0xc8] sm:$0xff]  ;;  %v7649_v29 = vld [vmem:[%s7090_s20 + $0xd0] sm:$0xff] }
 0x108   : > { %10758 = vst [vmem:[#allocation91_spill] sm:$0xff] %v7618_v2  ;;  %10762 = vst [vmem:[#allocation94_spill] sm:$0xff] %v7631_v13  ;;  %v768_v9 = vrot.slane %v7618_v2, 7  ;;  %v940_v10 = vsel %vm853_vm0, %v761_v47, %v765_v51  ;;  %v941_v62 = vsel %vm853_vm0, %v762_v39, %v766_v3  ;;  %v934_v2 = vsel %vm853_vm0, %v763_v52, %v767_v41  ;;  %v7658_v28 = vld [vmem:[%s7090_s20 + $0xd8] sm:$0xff] }
 0x109   : > { %10759 = vst [vmem:[#allocation92_spill] sm:$0xff] %v7624_v50  ;;  %10761 = vst [vmem:[#allocation93_spill] sm:$0xff] %v7628_v34  ;;  %v769_v11 = vrot.slane %v7624_v50, 7  ;;  %v770_v8 = vrot.slane %v7628_v34, 7  ;;  %v10353_v47 = vunpack.c.h.bf16 %v7631_v13  ;;  %v10359_v52 = vunpack.c.h.bf16 %v7640_v35  ;;  %v7707_v50 = vld [vmem:[%s7090_s20 + $0xe0] sm:$0xff] }
 0x10a   : > { %10763 = vst [vmem:[#allocation95_spill] sm:$0xff] %v7640_v35  ;;  %1022 = vst [vmem:[#allocation2 + $0x140] sm:$0xff] %v938_v63  ;;  %v935_v63 = vsel %vm853_vm0, %v764_v60, %v768_v9 }
 0x10b   : > { %1023 = vst [vmem:[#allocation2 + $0x148] sm:$0xff] %v939_v4  ;;  %10764 = vst [vmem:[#allocation96_spill] sm:$0xff] %v7649_v29  ;;  %v10352_v4 = vunpack.c.l.bf16 %v7631_v13  ;;  %v936_v39 = vsel %vm853_vm0, %v765_v51, %v769_v11  ;;  %v10368_v51 = vunpack.c.l.bf16 %v7649_v29 }
 0x10c   : > { %1024 = vst [vmem:[#allocation2 + $0x150] sm:$0xff] %v940_v10  ;;  %1025 = vst [vmem:[#allocation2 + $0x158] sm:$0xff] %v941_v62  ;;  %v937_v62 = vsel %vm853_vm0, %v766_v3, %v770_v8  ;;  %v10356_v10 = vunpack.c.l.bf16 %v7640_v35 }
 0x10d   : > { %10765 = vst [vmem:[#allocation97_spill] sm:$0xff] %v7658_v28  ;;  %1026 = vst [vmem:[#allocation2 + $0x160] sm:$0xff] %v934_v2  ;;  %v7668_v60 = vmax.f32 %v10352_v4, 0.0  ;;  %v7672_v2 = vmax.f32 %v10353_v47, 0.0 }
 0x10e   : > { %1027 = vst [vmem:[#allocation2 + $0x168] sm:$0xff] %v935_v63  ;;  %1028 = vst [vmem:[#allocation2 + $0x170] sm:$0xff] %v936_v39  ;;  %v7678_v3 = vmax.f32 %v10356_v10, 0.0  ;;  %v7682_v39 = vmax.f32 %v10359_v52, 0.0  ;;  %v7690_v63 = vmax.f32 %v10368_v51, 0.0  ;;  %v10771_v10 = vunpack.c.h.bf16 %v7649_v29 }
 0x10f   : > { %1029 = vst [vmem:[#allocation2 + $0x178] sm:$0xff] %v937_v62  ;;  %10766 = vst [vmem:[#allocation98_spill] sm:$0xff] %v7668_v60  ;;  %v10375_v62 = vunpack.c.l.bf16 %v7658_v28  ;;  %v771_v47 = vrot.slane %v7668_v60, 7  ;;  %v772_v13 = vrot.slane %v7672_v2, 7  ;;  %v10774_v60 = vunpack.c.h.bf16 %v7658_v28 }
 0x110   : > { %10767 = vst [vmem:[#allocation99_spill] sm:$0xff] %v7672_v2  ;;  %10768 = vst [vmem:[#allocation100_spill] sm:$0xff] %v7678_v3  ;;  %v7694_v34 = vmax.f32 %v10771_v10, 0.0  ;;  %v773_v52 = vrot.slane %v7678_v3, 7  ;;  %v774_v35 = vrot.slane %v7682_v39, 7  ;;  %v775_v29 = vrot.slane %v7690_v63, 7 }
 0x111   : > { %10769 = vst [vmem:[#allocation101_spill] sm:$0xff] %v7682_v39  ;;  %10770 = vst [vmem:[#allocation102_spill] sm:$0xff] %v7690_v63  ;;  %v7700_v4 = vmax.f32 %v10375_v62, 0.0  ;;  %v7704_v2 = vmax.f32 %v10774_v60, 0.0  ;;  %v930_v51 = vsel %vm853_vm0, %v767_v41, %v771_v47  ;;  %v931_v10 = vsel %vm853_vm0, %v768_v9, %v772_v13  ;;  %v7716_v3 = vld [vmem:[%s7090_s20 + $0xe8] sm:$0xff]  ;;  %v7725_v9 = vld [vmem:[%s7090_s20 + $0xf0] sm:$0xff] }
 0x112   : > { %10772 = vst [vmem:[#allocation103_spill] sm:$0xff] %v7694_v34  ;;  %10776 = vst [vmem:[#allocation106_spill] sm:$0xff] %v7707_v50  ;;  %v776_v39 = vrot.slane %v7694_v34, 7  ;;  %v932_v60 = vsel %vm853_vm0, %v769_v11, %v773_v52  ;;  %v933_v62 = vsel %vm853_vm0, %v770_v8, %v774_v35  ;;  %v926_v34 = vsel %vm853_vm0, %v771_v47, %v775_v29  ;;  %v7734_v63 = vld [vmem:[%s7090_s20 + $0xf8] sm:$0xff] }
 0x113   : > { %10773 = vst [vmem:[#allocation104_spill] sm:$0xff] %v7700_v4  ;;  %10775 = vst [vmem:[#allocation105_spill] sm:$0xff] %v7704_v2  ;;  %v777_v41 = vrot.slane %v7700_v4, 7  ;;  %v778_v28 = vrot.slane %v7704_v2, 7  ;;  %v10383_v11 = vunpack.c.h.bf16 %v7707_v50  ;;  %v10389_v47 = vunpack.c.h.bf16 %v7716_v3  ;;  %v7783_v4 = vld [vmem:[%s7090_s20 + $0x100] sm:$0xff] }
 0x114   : > { %10777 = vst [vmem:[#allocation107_spill] sm:$0xff] %v7716_v3  ;;  %1030 = vst [vmem:[#allocation2 + $0x180] sm:$0xff] %v930_v51  ;;  %v927_v51 = vsel %vm853_vm0, %v772_v13, %v776_v39 }
 0x115   : > { %1031 = vst [vmem:[#allocation2 + $0x188] sm:$0xff] %v931_v10  ;;  %10778 = vst [vmem:[#allocation108_spill] sm:$0xff] %v7725_v9  ;;  %v10382_v10 = vunpack.c.l.bf16 %v7707_v50  ;;  %v928_v8 = vsel %vm853_vm0, %v773_v52, %v777_v41  ;;  %v10398_v52 = vunpack.c.l.bf16 %v7725_v9 }
 0x116   : > { %1032 = vst [vmem:[#allocation2 + $0x190] sm:$0xff] %v932_v60  ;;  %1033 = vst [vmem:[#allocation2 + $0x198] sm:$0xff] %v933_v62  ;;  %v929_v62 = vsel %vm853_vm0, %v774_v35, %v778_v28  ;;  %v10386_v60 = vunpack.c.l.bf16 %v7716_v3 }
 0x117   : > { %10779 = vst [vmem:[#allocation109_spill] sm:$0xff] %v7734_v63  ;;  %1034 = vst [vmem:[#allocation2 + $0x1a0] sm:$0xff] %v926_v34  ;;  %v7744_v13 = vmax.f32 %v10382_v10, 0.0  ;;  %v7748_v34 = vmax.f32 %v10383_v11, 0.0 }
 0x118   : > { %1035 = vst [vmem:[#allocation2 + $0x1a8] sm:$0xff] %v927_v51  ;;  %1036 = vst [vmem:[#allocation2 + $0x1b0] sm:$0xff] %v928_v8  ;;  %v7754_v35 = vmax.f32 %v10386_v60, 0.0  ;;  %v7758_v8 = vmax.f32 %v10389_v47, 0.0  ;;  %v7766_v51 = vmax.f32 %v10398_v52, 0.0  ;;  %v10785_v60 = vunpack.c.h.bf16 %v7725_v9 }
 0x119   : > { %1037 = vst [vmem:[#allocation2 + $0x1b8] sm:$0xff] %v929_v62  ;;  %10780 = vst [vmem:[#allocation110_spill] sm:$0xff] %v7744_v13  ;;  %v10405_v62 = vunpack.c.l.bf16 %v7734_v63  ;;  %v779_v11 = vrot.slane %v7744_v13, 7  ;;  %v780_v50 = vrot.slane %v7748_v34, 7  ;;  %v10788_v13 = vunpack.c.h.bf16 %v7734_v63 }
 0x11a   : > { %10781 = vst [vmem:[#allocation111_spill] sm:$0xff] %v7748_v34  ;;  %10782 = vst [vmem:[#allocation112_spill] sm:$0xff] %v7754_v35  ;;  %v7770_v2 = vmax.f32 %v10785_v60, 0.0  ;;  %v781_v47 = vrot.slane %v7754_v35, 7  ;;  %v782_v3 = vrot.slane %v7758_v8, 7  ;;  %v783_v9 = vrot.slane %v7766_v51, 7 }
 0x11b   : > { %10783 = vst [vmem:[#allocation113_spill] sm:$0xff] %v7758_v8  ;;  %10784 = vst [vmem:[#allocation114_spill] sm:$0xff] %v7766_v51  ;;  %v7776_v10 = vmax.f32 %v10405_v62, 0.0  ;;  %v7780_v34 = vmax.f32 %v10788_v13, 0.0  ;;  %v922_v52 = vsel %vm853_vm0, %v775_v29, %v779_v11  ;;  %v923_v60 = vsel %vm853_vm0, %v776_v39, %v780_v50  ;;  %v7792_v35 = vld [vmem:[%s7090_s20 + $0x108] sm:$0xff]  ;;  %v7801_v39 = vld [vmem:[%s7090_s20 + $0x110] sm:$0xff] }
 0x11c   : > { %10786 = vst [vmem:[#allocation115_spill] sm:$0xff] %v7770_v2  ;;  %10790 = vst [vmem:[#allocation118_spill] sm:$0xff] %v7783_v4  ;;  %v784_v8 = vrot.slane %v7770_v2, 7  ;;  %v924_v13 = vsel %vm853_vm0, %v777_v41, %v781_v47  ;;  %v925_v62 = vsel %vm853_vm0, %v778_v28, %v782_v3  ;;  %v918_v2 = vsel %vm853_vm0, %v779_v11, %v783_v9  ;;  %v7810_v51 = vld [vmem:[%s7090_s20 + $0x118] sm:$0xff] }
 0x11d   : > { %10787 = vst [vmem:[#allocation116_spill] sm:$0xff] %v7776_v10  ;;  %10789 = vst [vmem:[#allocation117_spill] sm:$0xff] %v7780_v34  ;;  %v785_v29 = vrot.slane %v7776_v10, 7  ;;  %v786_v63 = vrot.slane %v7780_v34, 7  ;;  %v10413_v41 = vunpack.c.h.bf16 %v7783_v4  ;;  %v10419_v11 = vunpack.c.h.bf16 %v7792_v35  ;;  %v7859_v10 = vld [vmem:[%s7090_s20 + $0x120] sm:$0xff] }
 0x11e   : > { %10791 = vst [vmem:[#allocation119_spill] sm:$0xff] %v7792_v35  ;;  %1038 = vst [vmem:[#allocation2 + $0x1c0] sm:$0xff] %v922_v52  ;;  %v919_v52 = vsel %vm853_vm0, %v780_v50, %v784_v8 }
 0x11f   : > { %1039 = vst [vmem:[#allocation2 + $0x1c8] sm:$0xff] %v923_v60  ;;  %10792 = vst [vmem:[#allocation120_spill] sm:$0xff] %v7801_v39  ;;  %v10412_v60 = vunpack.c.l.bf16 %v7783_v4  ;;  %v920_v28 = vsel %vm853_vm0, %v781_v47, %v785_v29  ;;  %v10428_v47 = vunpack.c.l.bf16 %v7801_v39 }
 0x120   : > { %1040 = vst [vmem:[#allocation2 + $0x1d0] sm:$0xff] %v924_v13  ;;  %1041 = vst [vmem:[#allocation2 + $0x1d8] sm:$0xff] %v925_v62  ;;  %v921_v62 = vsel %vm853_vm0, %v782_v3, %v786_v63  ;;  %v10416_v13 = vunpack.c.l.bf16 %v7792_v35 }
 0x121   : > { %10793 = vst [vmem:[#allocation121_spill] sm:$0xff] %v7810_v51  ;;  %1042 = vst [vmem:[#allocation2 + $0x1e0] sm:$0xff] %v918_v2  ;;  %v7820_v50 = vmax.f32 %v10412_v60, 0.0  ;;  %v7824_v2 = vmax.f32 %v10413_v41, 0.0 }
 0x122   : > { %1043 = vst [vmem:[#allocation2 + $0x1e8] sm:$0xff] %v919_v52  ;;  %1044 = vst [vmem:[#allocation2 + $0x1f0] sm:$0xff] %v920_v28  ;;  %v7830_v3 = vmax.f32 %v10416_v13, 0.0  ;;  %v7834_v28 = vmax.f32 %v10419_v11, 0.0  ;;  %v7842_v52 = vmax.f32 %v10428_v47, 0.0  ;;  %v10799_v13 = vunpack.c.h.bf16 %v7801_v39 }
 0x123   : > { %1045 = vst [vmem:[#allocation2 + $0x1f8] sm:$0xff] %v921_v62  ;;  %10794 = vst [vmem:[#allocation122_spill] sm:$0xff] %v7820_v50  ;;  %v10435_v62 = vunpack.c.l.bf16 %v7810_v51  ;;  %v787_v41 = vrot.slane %v7820_v50, 7  ;;  %v788_v4 = vrot.slane %v7824_v2, 7  ;;  %v10802_v50 = vunpack.c.h.bf16 %v7810_v51 }
 0x124   : > { %10795 = vst [vmem:[#allocation123_spill] sm:$0xff] %v7824_v2  ;;  %10796 = vst [vmem:[#allocation124_spill] sm:$0xff] %v7830_v3  ;;  %v7846_v34 = vmax.f32 %v10799_v13, 0.0  ;;  %v789_v11 = vrot.slane %v7830_v3, 7  ;;  %v790_v35 = vrot.slane %v7834_v28, 7  ;;  %v791_v39 = vrot.slane %v7842_v52, 7 }
 0x125   : > { %10797 = vst [vmem:[#allocation125_spill] sm:$0xff] %v7834_v28  ;;  %10798 = vst [vmem:[#allocation126_spill] sm:$0xff] %v7842_v52  ;;  %v7852_v60 = vmax.f32 %v10435_v62, 0.0  ;;  %v7856_v2 = vmax.f32 %v10802_v50, 0.0  ;;  %v914_v47 = vsel %vm853_vm0, %v783_v9, %v787_v41  ;;  %v915_v13 = vsel %vm853_vm0, %v784_v8, %v788_v4  ;;  %v7868_v3 = vld [vmem:[%s7090_s20 + $0x128] sm:$0xff]  ;;  %v7877_v8 = vld [vmem:[%s7090_s20 + $0x130] sm:$0xff] }
 0x126   : > { %10800 = vst [vmem:[#allocation127_spill] sm:$0xff] %v7846_v34  ;;  %10804 = vst [vmem:[#allocation130_spill] sm:$0xff] %v7859_v10  ;;  %v792_v28 = vrot.slane %v7846_v34, 7  ;;  %v916_v50 = vsel %vm853_vm0, %v785_v29, %v789_v11  ;;  %v917_v62 = vsel %vm853_vm0, %v786_v63, %v790_v35  ;;  %v910_v34 = vsel %vm853_vm0, %v787_v41, %v791_v39  ;;  %v7886_v52 = vld [vmem:[%s7090_s20 + $0x138] sm:$0xff] }
 0x127   : > { %10801 = vst [vmem:[#allocation128_spill] sm:$0xff] %v7852_v60  ;;  %10803 = vst [vmem:[#allocation129_spill] sm:$0xff] %v7856_v2  ;;  %v793_v9 = vrot.slane %v7852_v60, 7  ;;  %v794_v51 = vrot.slane %v7856_v2, 7  ;;  %v10443_v29 = vunpack.c.h.bf16 %v7859_v10  ;;  %v10449_v41 = vunpack.c.h.bf16 %v7868_v3  ;;  %v7935_v60 = vld [vmem:[%s7090_s20 + $0x140] sm:$0xff] }
 0x128   : > { %10805 = vst [vmem:[#allocation131_spill] sm:$0xff] %v7868_v3  ;;  %1046 = vst [vmem:[#allocation2 + $0x200] sm:$0xff] %v914_v47  ;;  %v911_v47 = vsel %vm853_vm0, %v788_v4, %v792_v28 }
 0x129   : > { %1047 = vst [vmem:[#allocation2 + $0x208] sm:$0xff] %v915_v13  ;;  %10806 = vst [vmem:[#allocation132_spill] sm:$0xff] %v7877_v8  ;;  %v10442_v13 = vunpack.c.l.bf16 %v7859_v10  ;;  %v912_v63 = vsel %vm853_vm0, %v789_v11, %v793_v9  ;;  %v10458_v11 = vunpack.c.l.bf16 %v7877_v8 }
 0x12a   : > { %1048 = vst [vmem:[#allocation2 + $0x210] sm:$0xff] %v916_v50  ;;  %1049 = vst [vmem:[#allocation2 + $0x218] sm:$0xff] %v917_v62  ;;  %v913_v62 = vsel %vm853_vm0, %v790_v35, %v794_v51  ;;  %v10446_v50 = vunpack.c.l.bf16 %v7868_v3 }
 0x12b   : > { %10807 = vst [vmem:[#allocation133_spill] sm:$0xff] %v7886_v52  ;;  %1050 = vst [vmem:[#allocation2 + $0x220] sm:$0xff] %v910_v34  ;;  %v7896_v4 = vmax.f32 %v10442_v13, 0.0  ;;  %v7900_v34 = vmax.f32 %v10443_v29, 0.0 }
 0x12c   : > { %1051 = vst [vmem:[#allocation2 + $0x228] sm:$0xff] %v911_v47  ;;  %1052 = vst [vmem:[#allocation2 + $0x230] sm:$0xff] %v912_v63  ;;  %v7906_v35 = vmax.f32 %v10446_v50, 0.0  ;;  %v7910_v63 = vmax.f32 %v10449_v41, 0.0  ;;  %v7918_v47 = vmax.f32 %v10458_v11, 0.0  ;;  %v10813_v50 = vunpack.c.h.bf16 %v7877_v8 }
 0x12d   : > { %1053 = vst [vmem:[#allocation2 + $0x238] sm:$0xff] %v913_v62  ;;  %10808 = vst [vmem:[#allocation134_spill] sm:$0xff] %v7896_v4  ;;  %v10465_v62 = vunpack.c.l.bf16 %v7886_v52  ;;  %v795_v29 = vrot.slane %v7896_v4, 7  ;;  %v796_v10 = vrot.slane %v7900_v34, 7  ;;  %v10816_v4 = vunpack.c.h.bf16 %v7886_v52 }
 0x12e   : > { %10809 = vst [vmem:[#allocation135_spill] sm:$0xff] %v7900_v34  ;;  %10810 = vst [vmem:[#allocation136_spill] sm:$0xff] %v7906_v35  ;;  %v7922_v2 = vmax.f32 %v10813_v50, 0.0  ;;  %v797_v41 = vrot.slane %v7906_v35, 7  ;;  %v798_v3 = vrot.slane %v7910_v63, 7  ;;  %v799_v8 = vrot.slane %v7918_v47, 7 }
 0x12f   : > { %10811 = vst [vmem:[#allocation137_spill] sm:$0xff] %v7910_v63  ;;  %10812 = vst [vmem:[#allocation138_spill] sm:$0xff] %v7918_v47  ;;  %v7928_v13 = vmax.f32 %v10465_v62, 0.0  ;;  %v7932_v34 = vmax.f32 %v10816_v4, 0.0  ;;  %v906_v11 = vsel %vm853_vm0, %v791_v39, %v795_v29  ;;  %v907_v50 = vsel %vm853_vm0, %v792_v28, %v796_v10  ;;  %v7944_v35 = vld [vmem:[%s7090_s20 + $0x148] sm:$0xff]  ;;  %v7953_v28 = vld [vmem:[%s7090_s20 + $0x150] sm:$0xff] }
 0x130   : > { %10814 = vst [vmem:[#allocation139_spill] sm:$0xff] %v7922_v2  ;;  %10818 = vst [vmem:[#allocation142_spill] sm:$0xff] %v7935_v60  ;;  %v800_v63 = vrot.slane %v7922_v2, 7  ;;  %v908_v4 = vsel %vm853_vm0, %v793_v9, %v797_v41  ;;  %v909_v62 = vsel %vm853_vm0, %v794_v51, %v798_v3  ;;  %v902_v2 = vsel %vm853_vm0, %v795_v29, %v799_v8  ;;  %v7962_v47 = vld [vmem:[%s7090_s20 + $0x158] sm:$0xff] }
 0x131   : > { %10815 = vst [vmem:[#allocation140_spill] sm:$0xff] %v7928_v13  ;;  %10817 = vst [vmem:[#allocation141_spill] sm:$0xff] %v7932_v34  ;;  %v801_v39 = vrot.slane %v7928_v13, 7  ;;  %v802_v52 = vrot.slane %v7932_v34, 7  ;;  %v10473_v9 = vunpack.c.h.bf16 %v7935_v60  ;;  %v10479_v29 = vunpack.c.h.bf16 %v7944_v35  ;;  %v8011_v13 = vld [vmem:[%s7090_s20 + $0x160] sm:$0xff] }
 0x132   : > { %10819 = vst [vmem:[#allocation143_spill] sm:$0xff] %v7944_v35  ;;  %1054 = vst [vmem:[#allocation2 + $0x240] sm:$0xff] %v906_v11  ;;  %v903_v11 = vsel %vm853_vm0, %v796_v10, %v800_v63 }
 0x133   : > { %1055 = vst [vmem:[#allocation2 + $0x248] sm:$0xff] %v907_v50  ;;  %10820 = vst [vmem:[#allocation144_spill] sm:$0xff] %v7953_v28  ;;  %v10472_v50 = vunpack.c.l.bf16 %v7935_v60  ;;  %v904_v51 = vsel %vm853_vm0, %v797_v41, %v801_v39  ;;  %v10488_v41 = vunpack.c.l.bf16 %v7953_v28 }
 0x134   : > { %1056 = vst [vmem:[#allocation2 + $0x250] sm:$0xff] %v908_v4  ;;  %1057 = vst [vmem:[#allocation2 + $0x258] sm:$0xff] %v909_v62  ;;  %v905_v62 = vsel %vm853_vm0, %v798_v3, %v802_v52  ;;  %v10476_v4 = vunpack.c.l.bf16 %v7944_v35 }
 0x135   : > { %10821 = vst [vmem:[#allocation145_spill] sm:$0xff] %v7962_v47  ;;  %1058 = vst [vmem:[#allocation2 + $0x260] sm:$0xff] %v902_v2  ;;  %v7972_v10 = vmax.f32 %v10472_v50, 0.0  ;;  %v7976_v2 = vmax.f32 %v10473_v9, 0.0 }
 0x136   : > { %1059 = vst [vmem:[#allocation2 + $0x268] sm:$0xff] %v903_v11  ;;  %1060 = vst [vmem:[#allocation2 + $0x270] sm:$0xff] %v904_v51  ;;  %v7982_v3 = vmax.f32 %v10476_v4, 0.0  ;;  %v7986_v51 = vmax.f32 %v10479_v29, 0.0  ;;  %v7994_v11 = vmax.f32 %v10488_v41, 0.0  ;;  %v10827_v4 = vunpack.c.h.bf16 %v7953_v28 }
 0x137   : > { %1061 = vst [vmem:[#allocation2 + $0x278] sm:$0xff] %v905_v62  ;;  %10822 = vst [vmem:[#allocation146_spill] sm:$0xff] %v7972_v10  ;;  %v10495_v62 = vunpack.c.l.bf16 %v7962_v47  ;;  %v803_v9 = vrot.slane %v7972_v10, 7  ;;  %v804_v60 = vrot.slane %v7976_v2, 7  ;;  %v10830_v10 = vunpack.c.h.bf16 %v7962_v47 }
 0x138   : > { %10823 = vst [vmem:[#allocation147_spill] sm:$0xff] %v7976_v2  ;;  %10824 = vst [vmem:[#allocation148_spill] sm:$0xff] %v7982_v3  ;;  %v7998_v34 = vmax.f32 %v10827_v4, 0.0  ;;  %v805_v29 = vrot.slane %v7982_v3, 7  ;;  %v806_v35 = vrot.slane %v7986_v51, 7  ;;  %v807_v28 = vrot.slane %v7994_v11, 7 }
 0x139   : > { %10825 = vst [vmem:[#allocation149_spill] sm:$0xff] %v7986_v51  ;;  %10826 = vst [vmem:[#allocation150_spill] sm:$0xff] %v7994_v11  ;;  %v8004_v50 = vmax.f32 %v10495_v62, 0.0  ;;  %v8008_v2 = vmax.f32 %v10830_v10, 0.0  ;;  %v898_v41 = vsel %vm853_vm0, %v799_v8, %v803_v9  ;;  %v899_v4 = vsel %vm853_vm0, %v800_v63, %v804_v60  ;;  %v8020_v3 = vld [vmem:[%s7090_s20 + $0x168] sm:$0xff]  ;;  %v8029_v63 = vld [vmem:[%s7090_s20 + $0x170] sm:$0xff] }
 0x13a   : > { %10828 = vst [vmem:[#allocation151_spill] sm:$0xff] %v7998_v34  ;;  %10832 = vst [vmem:[#allocation154_spill] sm:$0xff] %v8011_v13  ;;  %v808_v51 = vrot.slane %v7998_v34, 7  ;;  %v900_v10 = vsel %vm853_vm0, %v801_v39, %v805_v29  ;;  %v901_v62 = vsel %vm853_vm0, %v802_v52, %v806_v35  ;;  %v894_v34 = vsel %vm853_vm0, %v803_v9, %v807_v28  ;;  %v8038_v11 = vld [vmem:[%s7090_s20 + $0x178] sm:$0xff] }
 0x13b   : > { %10829 = vst [vmem:[#allocation152_spill] sm:$0xff] %v8004_v50  ;;  %10831 = vst [vmem:[#allocation153_spill] sm:$0xff] %v8008_v2  ;;  %v809_v8 = vrot.slane %v8004_v50, 7  ;;  %v810_v47 = vrot.slane %v8008_v2, 7  ;;  %v10503_v39 = vunpack.c.h.bf16 %v8011_v13  ;;  %v10509_v9 = vunpack.c.h.bf16 %v8020_v3  ;;  %v8087_v50 = vld [vmem:[%s7090_s20 + $0x180] sm:$0xff] }
 0x13c   : > { %10833 = vst [vmem:[#allocation155_spill] sm:$0xff] %v8020_v3  ;;  %1062 = vst [vmem:[#allocation2 + $0x280] sm:$0xff] %v898_v41  ;;  %v895_v41 = vsel %vm853_vm0, %v804_v60, %v808_v51 }
 0x13d   : > { %1063 = vst [vmem:[#allocation2 + $0x288] sm:$0xff] %v899_v4  ;;  %10834 = vst [vmem:[#allocation156_spill] sm:$0xff] %v8029_v63  ;;  %v10502_v4 = vunpack.c.l.bf16 %v8011_v13  ;;  %v896_v52 = vsel %vm853_vm0, %v805_v29, %v809_v8  ;;  %v10518_v29 = vunpack.c.l.bf16 %v8029_v63 }
 0x13e   : > { %1064 = vst [vmem:[#allocation2 + $0x290] sm:$0xff] %v900_v10  ;;  %1065 = vst [vmem:[#allocation2 + $0x298] sm:$0xff] %v901_v62  ;;  %v897_v62 = vsel %vm853_vm0, %v806_v35, %v810_v47  ;;  %v10506_v10 = vunpack.c.l.bf16 %v8020_v3 }
 0x13f   : > { %10835 = vst [vmem:[#allocation157_spill] sm:$0xff] %v8038_v11  ;;  %1066 = vst [vmem:[#allocation2 + $0x2a0] sm:$0xff] %v894_v34  ;;  %v8048_v60 = vmax.f32 %v10502_v4, 0.0  ;;  %v8052_v34 = vmax.f32 %v10503_v39, 0.0 }
 0x140   : > { %1067 = vst [vmem:[#allocation2 + $0x2a8] sm:$0xff] %v895_v41  ;;  %1068 = vst [vmem:[#allocation2 + $0x2b0] sm:$0xff] %v896_v52  ;;  %v8058_v35 = vmax.f32 %v10506_v10, 0.0  ;;  %v8062_v52 = vmax.f32 %v10509_v9, 0.0  ;;  %v8070_v41 = vmax.f32 %v10518_v29, 0.0  ;;  %v10841_v10 = vunpack.c.h.bf16 %v8029_v63 }
 0x141   : > { %1069 = vst [vmem:[#allocation2 + $0x2b8] sm:$0xff] %v897_v62  ;;  %10836 = vst [vmem:[#allocation158_spill] sm:$0xff] %v8048_v60  ;;  %v10525_v62 = vunpack.c.l.bf16 %v8038_v11  ;;  %v811_v39 = vrot.slane %v8048_v60, 7  ;;  %v812_v13 = vrot.slane %v8052_v34, 7  ;;  %v10844_v60 = vunpack.c.h.bf16 %v8038_v11 }
 0x142   : > { %10837 = vst [vmem:[#allocation159_spill] sm:$0xff] %v8052_v34  ;;  %10838 = vst [vmem:[#allocation160_spill] sm:$0xff] %v8058_v35  ;;  %v8074_v2 = vmax.f32 %v10841_v10, 0.0  ;;  %v813_v9 = vrot.slane %v8058_v35, 7  ;;  %v814_v3 = vrot.slane %v8062_v52, 7  ;;  %v815_v63 = vrot.slane %v8070_v41, 7 }
 0x143   : > { %10839 = vst [vmem:[#allocation161_spill] sm:$0xff] %v8062_v52  ;;  %10840 = vst [vmem:[#allocation162_spill] sm:$0xff] %v8070_v41  ;;  %v8080_v4 = vmax.f32 %v10525_v62, 0.0  ;;  %v8084_v34 = vmax.f32 %v10844_v60, 0.0  ;;  %v890_v29 = vsel %vm853_vm0, %v807_v28, %v811_v39  ;;  %v891_v10 = vsel %vm853_vm0, %v808_v51, %v812_v13  ;;  %v8096_v35 = vld [vmem:[%s7090_s20 + $0x188] sm:$0xff]  ;;  %v8105_v51 = vld [vmem:[%s7090_s20 + $0x190] sm:$0xff] }
 0x144   : > { %10842 = vst [vmem:[#allocation163_spill] sm:$0xff] %v8074_v2  ;;  %10846 = vst [vmem:[#allocation166_spill] sm:$0xff] %v8087_v50  ;;  %v816_v52 = vrot.slane %v8074_v2, 7  ;;  %v892_v60 = vsel %vm853_vm0, %v809_v8, %v813_v9  ;;  %v893_v62 = vsel %vm853_vm0, %v810_v47, %v814_v3  ;;  %v886_v2 = vsel %vm853_vm0, %v811_v39, %v815_v63  ;;  %v8114_v41 = vld [vmem:[%s7090_s20 + $0x198] sm:$0xff] }
 0x145   : > { %10843 = vst [vmem:[#allocation164_spill] sm:$0xff] %v8080_v4  ;;  %10845 = vst [vmem:[#allocation165_spill] sm:$0xff] %v8084_v34  ;;  %v817_v28 = vrot.slane %v8080_v4, 7  ;;  %v818_v11 = vrot.slane %v8084_v34, 7  ;;  %v10533_v8 = vunpack.c.h.bf16 %v8087_v50  ;;  %v10539_v39 = vunpack.c.h.bf16 %v8096_v35  ;;  %v8163_v4 = vld [vmem:[%s7090_s20 + $0x1a0] sm:$0xff] }
 0x146   : > { %10847 = vst [vmem:[#allocation167_spill] sm:$0xff] %v8096_v35  ;;  %1070 = vst [vmem:[#allocation2 + $0x2c0] sm:$0xff] %v890_v29  ;;  %v887_v29 = vsel %vm853_vm0, %v812_v13, %v816_v52 }
 0x147   : > { %1071 = vst [vmem:[#allocation2 + $0x2c8] sm:$0xff] %v891_v10  ;;  %10848 = vst [vmem:[#allocation168_spill] sm:$0xff] %v8105_v51  ;;  %v10532_v10 = vunpack.c.l.bf16 %v8087_v50  ;;  %v888_v47 = vsel %vm853_vm0, %v813_v9, %v817_v28  ;;  %v10548_v9 = vunpack.c.l.bf16 %v8105_v51 }
 0x148   : > { %1072 = vst [vmem:[#allocation2 + $0x2d0] sm:$0xff] %v892_v60  ;;  %1073 = vst [vmem:[#allocation2 + $0x2d8] sm:$0xff] %v893_v62  ;;  %v889_v62 = vsel %vm853_vm0, %v814_v3, %v818_v11  ;;  %v10536_v60 = vunpack.c.l.bf16 %v8096_v35 }
 0x149   : > { %10849 = vst [vmem:[#allocation169_spill] sm:$0xff] %v8114_v41  ;;  %1074 = vst [vmem:[#allocation2 + $0x2e0] sm:$0xff] %v886_v2  ;;  %v8124_v13 = vmax.f32 %v10532_v10, 0.0  ;;  %v8128_v2 = vmax.f32 %v10533_v8, 0.0 }
 0x14a   : > { %1075 = vst [vmem:[#allocation2 + $0x2e8] sm:$0xff] %v887_v29  ;;  %1076 = vst [vmem:[#allocation2 + $0x2f0] sm:$0xff] %v888_v47  ;;  %v8134_v3 = vmax.f32 %v10536_v60, 0.0  ;;  %v8138_v47 = vmax.f32 %v10539_v39, 0.0  ;;  %v8146_v29 = vmax.f32 %v10548_v9, 0.0  ;;  %v10855_v60 = vunpack.c.h.bf16 %v8105_v51 }
 0x14b   : > { %1077 = vst [vmem:[#allocation2 + $0x2f8] sm:$0xff] %v889_v62  ;;  %10850 = vst [vmem:[#allocation170_spill] sm:$0xff] %v8124_v13  ;;  %v10555_v62 = vunpack.c.l.bf16 %v8114_v41  ;;  %v819_v8 = vrot.slane %v8124_v13, 7  ;;  %v820_v50 = vrot.slane %v8128_v2, 7  ;;  %v10858_v13 = vunpack.c.h.bf16 %v8114_v41 }
 0x14c   : > { %10851 = vst [vmem:[#allocation171_spill] sm:$0xff] %v8128_v2  ;;  %10852 = vst [vmem:[#allocation172_spill] sm:$0xff] %v8134_v3  ;;  %v8150_v34 = vmax.f32 %v10855_v60, 0.0  ;;  %v821_v39 = vrot.slane %v8134_v3, 7  ;;  %v822_v35 = vrot.slane %v8138_v47, 7  ;;  %v823_v51 = vrot.slane %v8146_v29, 7 }
 0x14d   : > { %10853 = vst [vmem:[#allocation173_spill] sm:$0xff] %v8138_v47  ;;  %10854 = vst [vmem:[#allocation174_spill] sm:$0xff] %v8146_v29  ;;  %v8156_v10 = vmax.f32 %v10555_v62, 0.0  ;;  %v8160_v2 = vmax.f32 %v10858_v13, 0.0  ;;  %v882_v9 = vsel %vm853_vm0, %v815_v63, %v819_v8  ;;  %v883_v60 = vsel %vm853_vm0, %v816_v52, %v820_v50  ;;  %v8172_v3 = vld [vmem:[%s7090_s20 + $0x1a8] sm:$0xff]  ;;  %v8181_v52 = vld [vmem:[%s7090_s20 + $0x1b0] sm:$0xff] }
 0x14e   : > { %10856 = vst [vmem:[#allocation175_spill] sm:$0xff] %v8150_v34  ;;  %10860 = vst [vmem:[#allocation178_spill] sm:$0xff] %v8163_v4  ;;  %v824_v47 = vrot.slane %v8150_v34, 7  ;;  %v884_v13 = vsel %vm853_vm0, %v817_v28, %v821_v39  ;;  %v885_v62 = vsel %vm853_vm0, %v818_v11, %v822_v35  ;;  %v878_v34 = vsel %vm853_vm0, %v819_v8, %v823_v51  ;;  %v8190_v29 = vld [vmem:[%s7090_s20 + $0x1b8] sm:$0xff] }
 0x14f   : > { %10857 = vst [vmem:[#allocation176_spill] sm:$0xff] %v8156_v10  ;;  %10859 = vst [vmem:[#allocation177_spill] sm:$0xff] %v8160_v2  ;;  %v825_v63 = vrot.slane %v8156_v10, 7  ;;  %v826_v41 = vrot.slane %v8160_v2, 7  ;;  %v10563_v28 = vunpack.c.h.bf16 %v8163_v4  ;;  %v10569_v8 = vunpack.c.h.bf16 %v8172_v3  ;;  %v8239_v10 = vld [vmem:[%s7090_s20 + $0x1c0] sm:$0xff] }
 0x150   : > { %10861 = vst [vmem:[#allocation179_spill] sm:$0xff] %v8172_v3  ;;  %1078 = vst [vmem:[#allocation2 + $0x300] sm:$0xff] %v882_v9  ;;  %v879_v9 = vsel %vm853_vm0, %v820_v50, %v824_v47 }
 0x151   : > { %1079 = vst [vmem:[#allocation2 + $0x308] sm:$0xff] %v883_v60  ;;  %10862 = vst [vmem:[#allocation180_spill] sm:$0xff] %v8181_v52  ;;  %v10562_v60 = vunpack.c.l.bf16 %v8163_v4  ;;  %v880_v11 = vsel %vm853_vm0, %v821_v39, %v825_v63  ;;  %v10578_v39 = vunpack.c.l.bf16 %v8181_v52 }
 0x152   : > { %1080 = vst [vmem:[#allocation2 + $0x310] sm:$0xff] %v884_v13  ;;  %1081 = vst [vmem:[#allocation2 + $0x318] sm:$0xff] %v885_v62  ;;  %v881_v62 = vsel %vm853_vm0, %v822_v35, %v826_v41  ;;  %v10566_v13 = vunpack.c.l.bf16 %v8172_v3 }
 0x153   : > { %10863 = vst [vmem:[#allocation181_spill] sm:$0xff] %v8190_v29  ;;  %1082 = vst [vmem:[#allocation2 + $0x320] sm:$0xff] %v878_v34  ;;  %v8200_v50 = vmax.f32 %v10562_v60, 0.0  ;;  %v8204_v34 = vmax.f32 %v10563_v28, 0.0 }
 0x154   : > { %1083 = vst [vmem:[#allocation2 + $0x328] sm:$0xff] %v879_v9  ;;  %1084 = vst [vmem:[#allocation2 + $0x330] sm:$0xff] %v880_v11  ;;  %v8210_v35 = vmax.f32 %v10566_v13, 0.0  ;;  %v8214_v11 = vmax.f32 %v10569_v8, 0.0  ;;  %v8222_v9 = vmax.f32 %v10578_v39, 0.0  ;;  %v10869_v13 = vunpack.c.h.bf16 %v8181_v52 }
 0x155   : > { %1085 = vst [vmem:[#allocation2 + $0x338] sm:$0xff] %v881_v62  ;;  %10864 = vst [vmem:[#allocation182_spill] sm:$0xff] %v8200_v50  ;;  %v10585_v62 = vunpack.c.l.bf16 %v8190_v29  ;;  %v827_v28 = vrot.slane %v8200_v50, 7  ;;  %v828_v4 = vrot.slane %v8204_v34, 7  ;;  %v10872_v50 = vunpack.c.h.bf16 %v8190_v29 }
 0x156   : > { %10865 = vst [vmem:[#allocation183_spill] sm:$0xff] %v8204_v34  ;;  %10866 = vst [vmem:[#allocation184_spill] sm:$0xff] %v8210_v35  ;;  %v8226_v2 = vmax.f32 %v10869_v13, 0.0  ;;  %v829_v8 = vrot.slane %v8210_v35, 7  ;;  %v830_v3 = vrot.slane %v8214_v11, 7  ;;  %v831_v52 = vrot.slane %v8222_v9, 7 }
 0x157   : > { %10867 = vst [vmem:[#allocation185_spill] sm:$0xff] %v8214_v11  ;;  %10868 = vst [vmem:[#allocation186_spill] sm:$0xff] %v8222_v9  ;;  %v8232_v60 = vmax.f32 %v10585_v62, 0.0  ;;  %v8236_v34 = vmax.f32 %v10872_v50, 0.0  ;;  %v874_v39 = vsel %vm853_vm0, %v823_v51, %v827_v28  ;;  %v875_v13 = vsel %vm853_vm0, %v824_v47, %v828_v4  ;;  %v8248_v35 = vld [vmem:[%s7090_s20 + $0x1c8] sm:$0xff]  ;;  %v8257_v47 = vld [vmem:[%s7090_s20 + $0x1d0] sm:$0xff] }
 0x158   : > { %10870 = vst [vmem:[#allocation187_spill] sm:$0xff] %v8226_v2  ;;  %10874 = vst [vmem:[#allocation190_spill] sm:$0xff] %v8239_v10  ;;  %v832_v11 = vrot.slane %v8226_v2, 7  ;;  %v876_v50 = vsel %vm853_vm0, %v825_v63, %v829_v8  ;;  %v877_v62 = vsel %vm853_vm0, %v826_v41, %v830_v3  ;;  %v870_v2 = vsel %vm853_vm0, %v827_v28, %v831_v52  ;;  %v8266_v9 = vld [vmem:[%s7090_s20 + $0x1d8] sm:$0xff] }
 0x159   : > { %10871 = vst [vmem:[#allocation188_spill] sm:$0xff] %v8232_v60  ;;  %10873 = vst [vmem:[#allocation189_spill] sm:$0xff] %v8236_v34  ;;  %v833_v51 = vrot.slane %v8232_v60, 7  ;;  %v834_v29 = vrot.slane %v8236_v34, 7  ;;  %v10595_v63 = vunpack.c.h.bf16 %v8239_v10  ;;  %v10599_v28 = vunpack.c.h.bf16 %v8248_v35 }
 0x15a   : > { %10875 = vst [vmem:[#allocation191_spill] sm:$0xff] %v8248_v35  ;;  %1086 = vst [vmem:[#allocation2 + $0x340] sm:$0xff] %v874_v39  ;;  %v871_v39 = vsel %vm853_vm0, %v828_v4, %v832_v11 }
 0x15b   : > { %1087 = vst [vmem:[#allocation2 + $0x348] sm:$0xff] %v875_v13  ;;  %10876 = vst [vmem:[#allocation192_spill] sm:$0xff] %v8257_v47  ;;  %v10592_v13 = vunpack.c.l.bf16 %v8239_v10  ;;  %v872_v41 = vsel %vm853_vm0, %v829_v8, %v833_v51  ;;  %v10609_v8 = vunpack.c.h.bf16 %v8257_v47 }
 0x15c   : > { %1088 = vst [vmem:[#allocation2 + $0x350] sm:$0xff] %v876_v50  ;;  %1089 = vst [vmem:[#allocation2 + $0x358] sm:$0xff] %v877_v62  ;;  %v873_v62 = vsel %vm853_vm0, %v830_v3, %v834_v29  ;;  %v10598_v50 = vunpack.c.l.bf16 %v8248_v35 }
 0x15d   : > { %10877 = vst [vmem:[#allocation193_spill] sm:$0xff] %v8266_v9  ;;  %1090 = vst [vmem:[#allocation2 + $0x360] sm:$0xff] %v870_v2  ;;  %v8276_v4 = vmax.f32 %v10592_v13, 0.0  ;;  %v8280_v2 = vmax.f32 %v10595_v63, 0.0 }
 0x15e   : > { %1091 = vst [vmem:[#allocation2 + $0x368] sm:$0xff] %v871_v39  ;;  %1092 = vst [vmem:[#allocation2 + $0x370] sm:$0xff] %v872_v41  ;;  %v10606_v39 = vunpack.c.l.bf16 %v8257_v47  ;;  %v8286_v3 = vmax.f32 %v10598_v50, 0.0  ;;  %v8290_v41 = vmax.f32 %v10599_v28, 0.0  ;;  %v8302_v50 = vmax.f32 %v10609_v8, 0.0 }
 0x15f   : > { %1093 = vst [vmem:[#allocation2 + $0x378] sm:$0xff] %v873_v62  ;;  %10878 = vst [vmem:[#allocation194_spill] sm:$0xff] %v8276_v4  ;;  %v10612_v62 = vunpack.c.l.bf16 %v8266_v9  ;;  %v835_v10 = vrot.slane %v8276_v4, 7  ;;  %v836_v63 = vrot.slane %v8280_v2, 7  ;;  %v10885_v4 = vunpack.c.h.bf16 %v8266_v9 }
 0x160   : > { %10879 = vst [vmem:[#allocation195_spill] sm:$0xff] %v8280_v2  ;;  %10880 = vst [vmem:[#allocation196_spill] sm:$0xff] %v8286_v3  ;;  %v8298_v34 = vmax.f32 %v10606_v39, 0.0  ;;  %v837_v28 = vrot.slane %v8286_v3, 7  ;;  %v838_v35 = vrot.slane %v8290_v41, 7  ;;  %v840_v3 = vrot.slane %v8302_v50, 7 }
 0x161   : > { %10881 = vst [vmem:[#allocation197_spill] sm:$0xff] %v8290_v41  ;;  %10883 = vst [vmem:[#allocation199_spill] sm:$0xff] %v8302_v50  ;;  %v8308_v13 = vmax.f32 %v10612_v62, 0.0  ;;  %v8312_v2 = vmax.f32 %v10885_v4, 0.0  ;;  %v866_v39 = vsel %vm853_vm0, %v831_v52, %v835_v10  ;;  %v867_v47 = vsel %vm853_vm0, %v832_v11, %v836_v63  ;;  %v720_v52 = vld [vmem:[%s7098_s23] sm:$0xf] }
 0x162   : > { %10882 = vst [vmem:[#allocation198_spill] sm:$0xff] %v8298_v34  ;;  %v839_v8 = vrot.slane %v8298_v34, 7  ;;  %1094 = vst [vmem:[#allocation2 + $0x380] sm:$0xff] %v866_v39  ;;  %v868_v62 = vsel %vm853_vm0, %v833_v51, %v837_v28  ;;  %v869_v9 = vsel %vm853_vm0, %v834_v29, %v838_v35  ;;  %v863_v39 = vsel %vm853_vm0, %v836_v63, %v840_v3 }
 0x163   : > { %10884 = vst [vmem:[#allocation200_spill] sm:$0xff] %v8308_v13  ;;  %10886 = vst [vmem:[#allocation201_spill] sm:$0xff] %v8312_v2  ;;  %v841_v4 = vrot.slane %v8308_v13, 7  ;;  %v842_v41 = vrot.slane %v8312_v2, 7  ;;  %v10888_v29 = vrot.slane %v7208_v45, 7  ;;  %v10889_v63 = vrot.slane %v7214_v48, 7 }
 0x164   : > { %1095 = vst [vmem:[#allocation2 + $0x388] sm:$0xff] %v867_v47  ;;  %1096 = vst [vmem:[#allocation2 + $0x390] sm:$0xff] %v868_v62  ;;  %v862_v11 = vsel %vm853_vm0, %v835_v10, %v839_v8  ;;  %v10887_v47 = vrot.slane %v7204_v44, 7  ;;  %v10890_v62 = vrot.slane %v7218_v49, 7 }
 0x165   : > { %1097 = vst [vmem:[#allocation2 + $0x398] sm:$0xff] %v869_v9  ;;  %v859_v13 = vsel %vm853_vm0, %v840_v3, %v10888_v29  ;;  %1098 = vst [vmem:[#allocation2 + $0x3a0] sm:$0xff] %v862_v11  ;;  %v864_v9 = vsel %vm853_vm0, %v837_v28, %v841_v4  ;;  %v865_v10 = vsel %vm853_vm0, %v838_v35, %v842_v41  ;;  %v721_v28 = vunpack.c.l.bf16 %v720_v52 }
 0x166   : > { %v858_v51 = vsel %vm853_vm0, %v839_v8, %v10887_v47  ;;  %1099 = vst [vmem:[#allocation2 + $0x3a8] sm:$0xff] %v863_v39  ;;  %1103 = vst [vmem:[#allocation2 + $0x3c8] sm:$0xff] %v859_v13  ;;  %v860_v8 = vsel %vm853_vm0, %v841_v4, %v10889_v63  ;;  %v861_v3 = vsel %vm853_vm0, %v842_v41, %v10890_v62  ;;  %v1113_v11 = vunpack.c.0.s8 %v7125_v6 }
 0x167   : > { %1102 = vst [vmem:[#allocation2 + $0x3c0] sm:$0xff] %v858_v51  ;;  %1100 = vst [vmem:[#allocation2 + $0x3b0] sm:$0xff] %v864_v9  ;;  %v10891_v35 = vlaneseq  ;;  %v10892_v13 = vmov 0  ;;  %v1125_v39 = vrot.slane %v7140_v16, 1  ;;  %v10622_v4 = vrot.slane %v7144_v17, 1 }
 0x168   : > { %1101 = vst [vmem:[#allocation2 + $0x3b8] sm:$0xff] %v865_v10  ;;  %1104 = vst [vmem:[#allocation2 + $0x3d0] sm:$0xff] %v860_v8  ;;  %v1126_v41 = vrot.slane %v7148_v18, 1  ;;  %v10619_v47 = vrot.slane %v7152_v19, 1  ;;  %v722_v51 = vmax.f32 %v721_v28, 0.0  ;;  %v1116_v52 = vsub.s32 %v1113_v11, %v7113_v1 }
 0x169   : > { %1105 = vst [vmem:[#allocation2 + $0x3d8] sm:$0xff] %v861_v3  ;;  %vm8353_vm1 = vcmp.lt.s32.totalorder %v10891_v35, 512  ;;  %v1127_v6 = vrot.slane %v7156_v20, 1  ;;  %v10621_v29 = vrot.slane %v7160_v21, 1  ;;  %v1378_v9 = vsel %vm1253_vm2, %v10622_v4, %v1125_v39 }
 0x16a   : > { %v10893_v13 = vsel %vm8353_vm1, 4294967295, %v10892_v13  ;;  %v1379_v10 = vsel %vm1253_vm2, %v10619_v47, %v1126_v41  ;;  %v1128_v63 = vrot.slane %v7164_v22, 1  ;;  %v10620_v8 = vrot.slane %v7168_v23, 1  ;;  %1506 = vst [vmem:[#allocation3 + $0x3e0] sm:$0xff] %v1378_v9 }
 0x16b   : > { %10894 = vst [vmem:[#allocation202_spill] sm:$0xff] %v10893_v13  ;;  %v1117_v62 = vrot.slane %v722_v51, %v1116_v52  ;;  %1507 = vst [vmem:[#allocation3 + $0x3e8] sm:$0xff] %v1379_v10  ;;  %v1380_v3 = vsel %vm1253_vm2, %v10621_v29, %v1127_v6  ;;  %v1129_v28 = vrot.slane %v7226_v54, 1  ;;  %v1130_v11 = vrot.slane %v7230_v55, 1 }
 0x16c   : > { %1508 = vst [vmem:[#allocation3 + $0x3f0] sm:$0xff] %v1380_v3  ;;  %v1381_v35 = vsel %vm1253_vm2, %v10620_v8, %v1128_v63  ;;  %v1131_v47 = vrot.slane %v7236_v58, 1  ;;  %v1132_v51 = vrot.slane %v7240_v59, 1  ;;  %v1133_v52 = vrot.slane %v7288_v27, 1 }
 0x16d   : > { %1123 = vst.msk [vmem:[#allocation2] ss:$8 sm:$0xf] %vm8353_vm1, %v1117_v62  ;;  %1509 = vst [vmem:[#allocation3 + $0x3f8] sm:$0xff] %v1381_v35  ;;  %v1510_v9 = vcombine.high %v1117_v62, %v1117_v62  ;;  %v8392_v10 = vsel %vm1253_vm2, %v1125_v39, %v1129_v28  ;;  %v8396_v3 = vsel %vm1253_vm2, %v1126_v41, %v1130_v11  ;;  %v1134_v8 = vrot.slane %v7292_v61, 1 }
 0x16e   : > { %v8401_v29 = vsel %vm1253_vm2, %v1127_v6, %v1131_v47  ;;  %v8405_v4 = vsel %vm1253_vm2, %v1128_v63, %v1132_v51  ;;  %v8409_v62 = vsel %vm1253_vm2, %v1129_v28, %v1133_v52  ;;  %v1135_v39 = vrot.slane %v7298_v32, 1 }
 0x16f   : > { %1513 = vst.msk [vmem:[#allocation3 + $0x3e7] ss:$8 sm:$0xf] %vm8353_vm1, %v1510_v9  ;;  %v8416_v41 = vsel %vm1253_vm2, %v1130_v11, %v1134_v8  ;;  %v1136_v6 = vrot.slane %v7302_v33, 1  ;;  %v1137_v35 = vrot.slane %v7310_v38, 1  ;;  %v1138_v63 = vrot.slane %v7314_v42, 1 }
 0x170   : > { %v8423_v61 = vsel %vm1253_vm2, %v1131_v47, %v1135_v39  ;;  %v1139_v28 = vrot.slane %v7320_v15, 1  ;;  %v1140_v32 = vrot.slane %v7324_v26, 1  ;;  %v1141_v9 = vrot.slane %v7364_v43, 1 }
 0x171   : > { %v8430_v11 = vsel %vm1253_vm2, %v1132_v51, %v1136_v6  ;;  %v8434_v13 = vsel %vm1253_vm2, %v1133_v52, %v1137_v35  ;;  %v8438_v42 = vsel %vm1253_vm2, %v1134_v8, %v1138_v63  ;;  %v1142_v47 = vrot.slane %v7368_v14, 1 }
 0x172   : > { %v8443_v15 = vsel %vm1253_vm2, %v1135_v39, %v1139_v28  ;;  %v8447_v43 = vsel %vm1253_vm2, %v1136_v6, %v1140_v32  ;;  %v8451_v51 = vsel %vm1253_vm2, %v1137_v35, %v1141_v9  ;;  %v1143_v52 = vrot.slane %v7374_v25, 1 }
 0x173   : > { %10895 = vst [vmem:[#allocation203_spill] sm:$0xff] %v8451_v51  ;;  %v8456_v8 = vsel %vm1253_vm2, %v1138_v63, %v1142_v47  ;;  %v1144_v14 = vrot.slane %v7378_v40, 1  ;;  %v1145_v26 = vrot.slane %v7386_v7, 1  ;;  %v1146_v39 = vrot.slane %v7390_v36, 1 }
 0x174   : > { %v1364_v6 = vsel %vm1253_vm2, %v1139_v28, %v1143_v52  ;;  %v1147_v38 = vrot.slane %v7396_v57, 1  ;;  %v1148_v35 = vrot.slane %v7400_v56, 1  ;;  %v1149_v51 = vrot.slane %v7440_v12, 1 }
 0x175   : > { %1396 = vst [vmem:[#allocation3 + $0x70] sm:$0xff] %v1364_v6  ;;  %v1365_v63 = vsel %vm1253_vm2, %v1140_v32, %v1144_v14  ;;  %v1358_v40 = vsel %vm1253_vm2, %v1141_v9, %v1145_v26  ;;  %v1359_v7 = vsel %vm1253_vm2, %v1142_v47, %v1146_v39  ;;  %v1150_v36 = vrot.slane %v7444_v24, 1 }
 0x176   : > { %1397 = vst [vmem:[#allocation3 + $0x78] sm:$0xff] %v1365_v63  ;;  %1398 = vst [vmem:[#allocation3 + $0x80] sm:$0xff] %v1358_v40  ;;  %v1360_v28 = vsel %vm1253_vm2, %v1143_v52, %v1147_v38  ;;  %v1361_v6 = vsel %vm1253_vm2, %v1144_v14, %v1148_v35  ;;  %v1354_v32 = vsel %vm1253_vm2, %v1145_v26, %v1149_v51  ;;  %v1151_v12 = vrot.slane %v7450_v0, 1 }
 0x177   : > { %1399 = vst [vmem:[#allocation3 + $0x88] sm:$0xff] %v1359_v7  ;;  %1400 = vst [vmem:[#allocation3 + $0x90] sm:$0xff] %v1360_v28  ;;  %v1355_v9 = vsel %vm1253_vm2, %v1146_v39, %v1150_v36  ;;  %v1152_v40 = vrot.slane %v7454_v46, 1  ;;  %v1153_v7 = vrot.slane %v7462_v37, 1  ;;  %v1154_v47 = vrot.slane %v7466_v5, 1  ;;  %v10902_v5 = vld [vmem:[#allocation81_spill] sm:$0xff] }
 0x178   : > { %1401 = vst [vmem:[#allocation3 + $0x98] sm:$0xff] %v1361_v6  ;;  %1402 = vst [vmem:[#allocation3 + $0xa0] sm:$0xff] %v1354_v32  ;;  %v1356_v14 = vsel %vm1253_vm2, %v1147_v38, %v1151_v12  ;;  %v1155_v26 = vrot.slane %v7472_v30, 1  ;;  %v1156_v52 = vrot.slane %v7476_v31, 1  ;;  %v1157_v63 = vrot.slane %v7516_v53, 1  ;;  %v10896_v32 = vld [vmem:[#allocation75_spill] sm:$0xff] }
 0x179   : > { %1403 = vst [vmem:[#allocation3 + $0xa8] sm:$0xff] %v1355_v9  ;;  %1404 = vst [vmem:[#allocation3 + $0xb0] sm:$0xff] %v1356_v14  ;;  %v1357_v39 = vsel %vm1253_vm2, %v1148_v35, %v1152_v40  ;;  %v1350_v28 = vsel %vm1253_vm2, %v1149_v51, %v1153_v7  ;;  %v1351_v6 = vsel %vm1253_vm2, %v1150_v36, %v1154_v47  ;;  %v1158_v9 = vrot.slane %v10896_v32, 1  ;;  %v10897_v53 = vld [vmem:[#allocation76_spill] sm:$0xff]  ;;  %v10898_v51 = vld [vmem:[#allocation77_spill] sm:$0xff] }
 0x17a   : > { %1405 = vst [vmem:[#allocation3 + $0xb8] sm:$0xff] %v1357_v39  ;;  %1406 = vst [vmem:[#allocation3 + $0xc0] sm:$0xff] %v1350_v28  ;;  %v1352_v38 = vsel %vm1253_vm2, %v1151_v12, %v1155_v26  ;;  %v1353_v14 = vsel %vm1253_vm2, %v1152_v40, %v1156_v52  ;;  %v1346_v35 = vsel %vm1253_vm2, %v1153_v7, %v1157_v63  ;;  %v1159_v31 = vrot.slane %v10897_v53, 1  ;;  %v10899_v28 = vld [vmem:[#allocation78_spill] sm:$0xff]  ;;  %v10900_v32 = vld [vmem:[#allocation79_spill] sm:$0xff] }
 0x17b   : > { %1407 = vst [vmem:[#allocation3 + $0xc8] sm:$0xff] %v1351_v6  ;;  %1408 = vst [vmem:[#allocation3 + $0xd0] sm:$0xff] %v1352_v38  ;;  %v1347_v36 = vsel %vm1253_vm2, %v1154_v47, %v1158_v9  ;;  %v1160_v39 = vrot.slane %v10898_v51, 1  ;;  %v1161_v6 = vrot.slane %v10899_v28, 1  ;;  %v1162_v12 = vrot.slane %v10900_v32, 1  ;;  %v10901_v30 = vld [vmem:[#allocation80_spill] sm:$0xff] }
 0x17c   : > { %1409 = vst [vmem:[#allocation3 + $0xd8] sm:$0xff] %v1353_v14  ;;  %1410 = vst [vmem:[#allocation3 + $0xe0] sm:$0xff] %v1346_v35  ;;  %v1348_v40 = vsel %vm1253_vm2, %v1155_v26, %v1159_v31  ;;  %v1163_v7 = vrot.slane %v10901_v30, 1  ;;  %v1164_v53 = vrot.slane %v10902_v5, 1  ;;  %v10903_v38 = vld [vmem:[#allocation86_spill] sm:$0xff]  ;;  %v10909_v30 = vld [vmem:[#allocation92_spill] sm:$0xff] }
 0x17d   : > { %1411 = vst [vmem:[#allocation3 + $0xe8] sm:$0xff] %v1347_v36  ;;  %v1165_v14 = vrot.slane %v10903_v38, 1  ;;  %1412 = vst [vmem:[#allocation3 + $0xf0] sm:$0xff] %v1348_v40  ;;  %v1349_v47 = vsel %vm1253_vm2, %v1156_v52, %v1160_v39  ;;  %v1342_v35 = vsel %vm1253_vm2, %v1157_v63, %v1161_v6  ;;  %v1343_v32 = vsel %vm1253_vm2, %v1158_v9, %v1162_v12  ;;  %v10904_v36 = vld [vmem:[#allocation87_spill] sm:$0xff]  ;;  %v10905_v38 = vld [vmem:[#allocation88_spill] sm:$0xff] }
 0x17e   : > { %v1166_v28 = vrot.slane %v10904_v36, 1  ;;  %1413 = vst [vmem:[#allocation3 + $0xf8] sm:$0xff] %v1349_v47  ;;  %1414 = vst [vmem:[#allocation3 + $0x100] sm:$0xff] %v1342_v35  ;;  %v1344_v26 = vsel %vm1253_vm2, %v1159_v31, %v1163_v7  ;;  %v1345_v40 = vsel %vm1253_vm2, %v1160_v39, %v1164_v53  ;;  %v1167_v5 = vrot.slane %v10905_v38, 1  ;;  %v10906_v9 = vld [vmem:[#allocation89_spill] sm:$0xff]  ;;  %v10908_v36 = vld [vmem:[#allocation91_spill] sm:$0xff] }
 0x17f   : > { %1415 = vst [vmem:[#allocation3 + $0x108] sm:$0xff] %v1343_v32  ;;  %v1338_v52 = vsel %vm1253_vm2, %v1161_v6, %v1165_v14  ;;  %1416 = vst [vmem:[#allocation3 + $0x110] sm:$0xff] %v1344_v26  ;;  %v1168_v47 = vrot.slane %v10906_v9, 1  ;;  %v10907_v32 = vld [vmem:[#allocation90_spill] sm:$0xff]  ;;  %v1170_v31 = vrot.slane %v10908_v36, 1  ;;  %v1171_v6 = vrot.slane %v10909_v30, 1 }
 0x180   : > { %1417 = vst [vmem:[#allocation3 + $0x118] sm:$0xff] %v1345_v40  ;;  %1418 = vst [vmem:[#allocation3 + $0x120] sm:$0xff] %v1338_v52  ;;  %v1339_v63 = vsel %vm1253_vm2, %v1162_v12, %v1166_v28  ;;  %v1169_v35 = vrot.slane %v10907_v32, 1  ;;  %v1340_v39 = vsel %vm1253_vm2, %v1163_v7, %v1167_v5  ;;  %v10910_v51 = vld [vmem:[#allocation93_spill] sm:$0xff]  ;;  %v10911_v26 = vld [vmem:[#allocation98_spill] sm:$0xff] }
 0x181   : > { %1419 = vst [vmem:[#allocation3 + $0x128] sm:$0xff] %v1339_v63  ;;  %v1172_v38 = vrot.slane %v10910_v51, 1  ;;  %v1173_v40 = vrot.slane %v10911_v26, 1  ;;  %1420 = vst [vmem:[#allocation3 + $0x130] sm:$0xff] %v1340_v39  ;;  %v1341_v12 = vsel %vm1253_vm2, %v1164_v53, %v1168_v47  ;;  %v1335_v36 = vsel %vm1253_vm2, %v1166_v28, %v1170_v31  ;;  %v10912_v63 = vld [vmem:[#allocation99_spill] sm:$0xff]  ;;  %v10913_v26 = vld [vmem:[#allocation100_spill] sm:$0xff] }
 0x182   : > { %v1334_v52 = vsel %vm1253_vm2, %v1165_v14, %v1169_v35  ;;  %v1174_v32 = vrot.slane %v10912_v63, 1  ;;  %1421 = vst [vmem:[#allocation3 + $0x138] sm:$0xff] %v1341_v12  ;;  %1423 = vst [vmem:[#allocation3 + $0x148] sm:$0xff] %v1335_v36  ;;  %v1336_v7 = vsel %vm1253_vm2, %v1167_v5, %v1171_v6  ;;  %v1175_v51 = vrot.slane %v10913_v26, 1  ;;  %v10914_v14 = vld [vmem:[#allocation101_spill] sm:$0xff]  ;;  %v10915_v36 = vld [vmem:[#allocation102_spill] sm:$0xff] }
 0x183   : > { %1422 = vst [vmem:[#allocation3 + $0x140] sm:$0xff] %v1334_v52  ;;  %v1337_v39 = vsel %vm1253_vm2, %v1168_v47, %v1172_v38  ;;  %v1330_v53 = vsel %vm1253_vm2, %v1169_v35, %v1173_v40  ;;  %1424 = vst [vmem:[#allocation3 + $0x150] sm:$0xff] %v1336_v7  ;;  %v1176_v12 = vrot.slane %v10914_v14, 1  ;;  %v1177_v52 = vrot.slane %v10915_v36, 1  ;;  %v10916_v63 = vld [vmem:[#allocation103_spill] sm:$0xff]  ;;  %v10917_v30 = vld [vmem:[#allocation104_spill] sm:$0xff] }
 0x184   : > { %1425 = vst [vmem:[#allocation3 + $0x158] sm:$0xff] %v1337_v39  ;;  %1426 = vst [vmem:[#allocation3 + $0x160] sm:$0xff] %v1330_v53  ;;  %v1331_v28 = vsel %vm1253_vm2, %v1170_v31, %v1174_v32  ;;  %v1178_v5 = vrot.slane %v10916_v63, 1  ;;  %v1332_v47 = vsel %vm1253_vm2, %v1171_v6, %v1175_v51  ;;  %v1179_v35 = vrot.slane %v10917_v30, 1  ;;  %v10918_v9 = vld [vmem:[#allocation105_spill] sm:$0xff]  ;;  %v10919_v7 = vld [vmem:[#allocation110_spill] sm:$0xff] }
 0x185   : > { %1427 = vst [vmem:[#allocation3 + $0x168] sm:$0xff] %v1331_v28  ;;  %v1180_v26 = vrot.slane %v10918_v9, 1  ;;  %v1181_v39 = vrot.slane %v10919_v7, 1  ;;  %1428 = vst [vmem:[#allocation3 + $0x170] sm:$0xff] %v1332_v47  ;;  %v1333_v31 = vsel %vm1253_vm2, %v1172_v38, %v1176_v12  ;;  %v1326_v53 = vsel %vm1253_vm2, %v1173_v40, %v1177_v52  ;;  %v10920_v28 = vld [vmem:[#allocation111_spill] sm:$0xff]  ;;  %v10921_v7 = vld [vmem:[#allocation112_spill] sm:$0xff] }
 0x186   : > { %v1327_v63 = vsel %vm1253_vm2, %v1174_v32, %v1178_v5  ;;  %v1182_v36 = vrot.slane %v10920_v28, 1  ;;  %1429 = vst [vmem:[#allocation3 + $0x178] sm:$0xff] %v1333_v31  ;;  %1430 = vst [vmem:[#allocation3 + $0x180] sm:$0xff] %v1326_v53  ;;  %v1328_v6 = vsel %vm1253_vm2, %v1175_v51, %v1179_v35  ;;  %v1183_v9 = vrot.slane %v10921_v7, 1  ;;  %v10922_v40 = vld [vmem:[#allocation113_spill] sm:$0xff]  ;;  %v10924_v28 = vld [vmem:[#allocation115_spill] sm:$0xff] }
 0x187   : > { %1431 = vst [vmem:[#allocation3 + $0x188] sm:$0xff] %v1327_v63  ;;  %v1329_v47 = vsel %vm1253_vm2, %v1176_v12, %v1180_v26  ;;  %v1322_v38 = vsel %vm1253_vm2, %v1177_v52, %v1181_v39  ;;  %1432 = vst [vmem:[#allocation3 + $0x190] sm:$0xff] %v1328_v6  ;;  %v1184_v31 = vrot.slane %v10922_v40, 1  ;;  %v10923_v63 = vld [vmem:[#allocation114_spill] sm:$0xff]  ;;  %v1186_v51 = vrot.slane %v10924_v28, 1  ;;  %v10925_v30 = vld [vmem:[#allocation116_spill] sm:$0xff] }
 0x188   : > { %1433 = vst [vmem:[#allocation3 + $0x198] sm:$0xff] %v1329_v47  ;;  %1434 = vst [vmem:[#allocation3 + $0x1a0] sm:$0xff] %v1322_v38  ;;  %v1323_v32 = vsel %vm1253_vm2, %v1178_v5, %v1182_v36  ;;  %v1185_v53 = vrot.slane %v10923_v63, 1  ;;  %v1324_v12 = vsel %vm1253_vm2, %v1179_v35, %v1183_v9  ;;  %v1187_v52 = vrot.slane %v10925_v30, 1  ;;  %v10926_v14 = vld [vmem:[#allocation117_spill] sm:$0xff]  ;;  %v10927_v6 = vld [vmem:[#allocation122_spill] sm:$0xff] }
 0x189   : > { %1435 = vst [vmem:[#allocation3 + $0x1a8] sm:$0xff] %v1323_v32  ;;  %v1188_v7 = vrot.slane %v10926_v14, 1  ;;  %v1189_v47 = vrot.slane %v10927_v6, 1  ;;  %1436 = vst [vmem:[#allocation3 + $0x1b0] sm:$0xff] %v1324_v12  ;;  %v1325_v5 = vsel %vm1253_vm2, %v1180_v26, %v1184_v31  ;;  %v1319_v28 = vsel %vm1253_vm2, %v1182_v36, %v1186_v51  ;;  %v10928_v32 = vld [vmem:[#allocation123_spill] sm:$0xff]  ;;  %v10929_v6 = vld [vmem:[#allocation124_spill] sm:$0xff] }
 0x18a   : > { %v1318_v38 = vsel %vm1253_vm2, %v1181_v39, %v1185_v53  ;;  %v1190_v63 = vrot.slane %v10928_v32, 1  ;;  %1437 = vst [vmem:[#allocation3 + $0x1b8] sm:$0xff] %v1325_v5  ;;  %1439 = vst [vmem:[#allocation3 + $0x1c8] sm:$0xff] %v1319_v28  ;;  %v1320_v35 = vsel %vm1253_vm2, %v1183_v9, %v1187_v52  ;;  %v1191_v14 = vrot.slane %v10929_v6, 1  ;;  %v10930_v39 = vld [vmem:[#allocation125_spill] sm:$0xff]  ;;  %v10931_v28 = vld [vmem:[#allocation126_spill] sm:$0xff] }
 0x18b   : > { %1438 = vst [vmem:[#allocation3 + $0x1c0] sm:$0xff] %v1318_v38  ;;  %v1321_v12 = vsel %vm1253_vm2, %v1184_v31, %v1188_v7  ;;  %v1314_v26 = vsel %vm1253_vm2, %v1185_v53, %v1189_v47  ;;  %1440 = vst [vmem:[#allocation3 + $0x1d0] sm:$0xff] %v1320_v35  ;;  %v1192_v5 = vrot.slane %v10930_v39, 1  ;;  %v1193_v38 = vrot.slane %v10931_v28, 1  ;;  %v10932_v32 = vld [vmem:[#allocation127_spill] sm:$0xff]  ;;  %v10933_v30 = vld [vmem:[#allocation128_spill] sm:$0xff] }
 0x18c   : > { %1441 = vst [vmem:[#allocation3 + $0x1d8] sm:$0xff] %v1321_v12  ;;  %1442 = vst [vmem:[#allocation3 + $0x1e0] sm:$0xff] %v1314_v26  ;;  %v1315_v36 = vsel %vm1253_vm2, %v1186_v51, %v1190_v63  ;;  %v1194_v9 = vrot.slane %v10932_v32, 1  ;;  %v1316_v31 = vsel %vm1253_vm2, %v1187_v52, %v1191_v14  ;;  %v1195_v53 = vrot.slane %v10933_v30, 1  ;;  %v10934_v40 = vld [vmem:[#allocation129_spill] sm:$0xff]  ;;  %v10935_v35 = vld [vmem:[#allocation134_spill] sm:$0xff] }
 0x18d   : > { %1443 = vst [vmem:[#allocation3 + $0x1e8] sm:$0xff] %v1315_v36  ;;  %v1196_v6 = vrot.slane %v10934_v40, 1  ;;  %v1197_v12 = vrot.slane %v10935_v35, 1  ;;  %1444 = vst [vmem:[#allocation3 + $0x1f0] sm:$0xff] %v1316_v31  ;;  %v1317_v51 = vsel %vm1253_vm2, %v1188_v7, %v1192_v5  ;;  %v1310_v26 = vsel %vm1253_vm2, %v1189_v47, %v1193_v38  ;;  %v10936_v36 = vld [vmem:[#allocation135_spill] sm:$0xff]  ;;  %v10937_v35 = vld [vmem:[#allocation136_spill] sm:$0xff] }
 0x18e   : > { %v1311_v32 = vsel %vm1253_vm2, %v1190_v63, %v1194_v9  ;;  %v1198_v28 = vrot.slane %v10936_v36, 1  ;;  %1445 = vst [vmem:[#allocation3 + $0x1f8] sm:$0xff] %v1317_v51  ;;  %1446 = vst [vmem:[#allocation3 + $0x200] sm:$0xff] %v1310_v26  ;;  %v1312_v52 = vsel %vm1253_vm2, %v1191_v14, %v1195_v53  ;;  %v1199_v40 = vrot.slane %v10937_v35, 1  ;;  %v10938_v47 = vld [vmem:[#allocation137_spill] sm:$0xff]  ;;  %v10940_v36 = vld [vmem:[#allocation139_spill] sm:$0xff] }
 0x18f   : > { %1447 = vst [vmem:[#allocation3 + $0x208] sm:$0xff] %v1311_v32  ;;  %v1313_v31 = vsel %vm1253_vm2, %v1192_v5, %v1196_v6  ;;  %v1306_v7 = vsel %vm1253_vm2, %v1193_v38, %v1197_v12  ;;  %1448 = vst [vmem:[#allocation3 + $0x210] sm:$0xff] %v1312_v52  ;;  %v1200_v51 = vrot.slane %v10938_v47, 1  ;;  %v10939_v32 = vld [vmem:[#allocation138_spill] sm:$0xff]  ;;  %v1202_v14 = vrot.slane %v10940_v36, 1  ;;  %v10941_v30 = vld [vmem:[#allocation140_spill] sm:$0xff] }
 0x190   : > { %1449 = vst [vmem:[#allocation3 + $0x218] sm:$0xff] %v1313_v31  ;;  %1450 = vst [vmem:[#allocation3 + $0x220] sm:$0xff] %v1306_v7  ;;  %v1307_v63 = vsel %vm1253_vm2, %v1194_v9, %v1198_v28  ;;  %v1201_v26 = vrot.slane %v10939_v32, 1  ;;  %v1308_v5 = vsel %vm1253_vm2, %v1195_v53, %v1199_v40  ;;  %v1203_v38 = vrot.slane %v10941_v30, 1  ;;  %v10942_v39 = vld [vmem:[#allocation141_spill] sm:$0xff]  ;;  %v10943_v52 = vld [vmem:[#allocation146_spill] sm:$0xff] }
 0x191   : > { %1451 = vst [vmem:[#allocation3 + $0x228] sm:$0xff] %v1307_v63  ;;  %v1204_v35 = vrot.slane %v10942_v39, 1  ;;  %v1205_v31 = vrot.slane %v10943_v52, 1  ;;  %1452 = vst [vmem:[#allocation3 + $0x230] sm:$0xff] %v1308_v5  ;;  %v1309_v9 = vsel %vm1253_vm2, %v1196_v6, %v1200_v51  ;;  %v1303_v36 = vsel %vm1253_vm2, %v1198_v28, %v1202_v14  ;;  %v10944_v63 = vld [vmem:[#allocation147_spill] sm:$0xff]  ;;  %v10945_v52 = vld [vmem:[#allocation148_spill] sm:$0xff] }
 0x192   : > { %v1302_v7 = vsel %vm1253_vm2, %v1197_v12, %v1201_v26  ;;  %v1206_v32 = vrot.slane %v10944_v63, 1  ;;  %1453 = vst [vmem:[#allocation3 + $0x238] sm:$0xff] %v1309_v9  ;;  %1455 = vst [vmem:[#allocation3 + $0x248] sm:$0xff] %v1303_v36  ;;  %v1304_v53 = vsel %vm1253_vm2, %v1199_v40, %v1203_v38  ;;  %v1207_v39 = vrot.slane %v10945_v52, 1  ;;  %v10946_v12 = vld [vmem:[#allocation149_spill] sm:$0xff]  ;;  %v10947_v36 = vld [vmem:[#allocation150_spill] sm:$0xff] }
 0x193   : > { %1454 = vst [vmem:[#allocation3 + $0x240] sm:$0xff] %v1302_v7  ;;  %v1305_v5 = vsel %vm1253_vm2, %v1200_v51, %v1204_v35  ;;  %v1298_v6 = vsel %vm1253_vm2, %v1201_v26, %v1205_v31  ;;  %1456 = vst [vmem:[#allocation3 + $0x250] sm:$0xff] %v1304_v53  ;;  %v1208_v9 = vrot.slane %v10946_v12, 1  ;;  %v1209_v7 = vrot.slane %v10947_v36, 1  ;;  %v10948_v63 = vld [vmem:[#allocation151_spill] sm:$0xff]  ;;  %v10949_v30 = vld [vmem:[#allocation152_spill] sm:$0xff] }
 0x194   : > { %1457 = vst [vmem:[#allocation3 + $0x258] sm:$0xff] %v1305_v5  ;;  %1458 = vst [vmem:[#allocation3 + $0x260] sm:$0xff] %v1298_v6  ;;  %v1299_v28 = vsel %vm1253_vm2, %v1202_v14, %v1206_v32  ;;  %v1210_v40 = vrot.slane %v10948_v63, 1  ;;  %v1300_v51 = vsel %vm1253_vm2, %v1203_v38, %v1207_v39  ;;  %v1211_v26 = vrot.slane %v10949_v30, 1  ;;  %v10950_v47 = vld [vmem:[#allocation153_spill] sm:$0xff]  ;;  %v10951_v53 = vld [vmem:[#allocation158_spill] sm:$0xff] }
 0x195   : > { %1459 = vst [vmem:[#allocation3 + $0x268] sm:$0xff] %v1299_v28  ;;  %v1212_v52 = vrot.slane %v10950_v47, 1  ;;  %v1213_v5 = vrot.slane %v10951_v53, 1  ;;  %1460 = vst [vmem:[#allocation3 + $0x270] sm:$0xff] %v1300_v51  ;;  %v1301_v14 = vsel %vm1253_vm2, %v1204_v35, %v1208_v9  ;;  %v1294_v6 = vsel %vm1253_vm2, %v1205_v31, %v1209_v7  ;;  %v10952_v28 = vld [vmem:[#allocation159_spill] sm:$0xff]  ;;  %v10953_v53 = vld [vmem:[#allocation160_spill] sm:$0xff] }
 0x196   : > { %v1295_v63 = vsel %vm1253_vm2, %v1206_v32, %v1210_v40  ;;  %v1214_v36 = vrot.slane %v10952_v28, 1  ;;  %1461 = vst [vmem:[#allocation3 + $0x278] sm:$0xff] %v1301_v14  ;;  %1462 = vst [vmem:[#allocation3 + $0x280] sm:$0xff] %v1294_v6  ;;  %v1296_v38 = vsel %vm1253_vm2, %v1207_v39, %v1211_v26  ;;  %v1215_v47 = vrot.slane %v10953_v53, 1  ;;  %v10954_v31 = vld [vmem:[#allocation161_spill] sm:$0xff]  ;;  %v10956_v28 = vld [vmem:[#allocation163_spill] sm:$0xff] }
 0x197   : > { %1463 = vst [vmem:[#allocation3 + $0x288] sm:$0xff] %v1295_v63  ;;  %v1297_v51 = vsel %vm1253_vm2, %v1208_v9, %v1212_v52  ;;  %v1290_v35 = vsel %vm1253_vm2, %v1209_v7, %v1213_v5  ;;  %1464 = vst [vmem:[#allocation3 + $0x290] sm:$0xff] %v1296_v38  ;;  %v1216_v14 = vrot.slane %v10954_v31, 1  ;;  %v10955_v63 = vld [vmem:[#allocation162_spill] sm:$0xff]  ;;  %v1218_v39 = vrot.slane %v10956_v28, 1  ;;  %v10957_v30 = vld [vmem:[#allocation164_spill] sm:$0xff] }
 0x198   : > { %1465 = vst [vmem:[#allocation3 + $0x298] sm:$0xff] %v1297_v51  ;;  %1466 = vst [vmem:[#allocation3 + $0x2a0] sm:$0xff] %v1290_v35  ;;  %v1291_v32 = vsel %vm1253_vm2, %v1210_v40, %v1214_v36  ;;  %v1217_v6 = vrot.slane %v10955_v63, 1  ;;  %v1292_v9 = vsel %vm1253_vm2, %v1211_v26, %v1215_v47  ;;  %v1219_v7 = vrot.slane %v10957_v30, 1  ;;  %v10958_v12 = vld [vmem:[#allocation165_spill] sm:$0xff]  ;;  %v10959_v38 = vld [vmem:[#allocation170_spill] sm:$0xff] }
 0x199   : > { %1467 = vst [vmem:[#allocation3 + $0x2a8] sm:$0xff] %v1291_v32  ;;  %v1220_v53 = vrot.slane %v10958_v12, 1  ;;  %v1221_v51 = vrot.slane %v10959_v38, 1  ;;  %1468 = vst [vmem:[#allocation3 + $0x2b0] sm:$0xff] %v1292_v9  ;;  %v1293_v40 = vsel %vm1253_vm2, %v1212_v52, %v1216_v14  ;;  %v1287_v28 = vsel %vm1253_vm2, %v1214_v36, %v1218_v39  ;;  %v10960_v32 = vld [vmem:[#allocation171_spill] sm:$0xff]  ;;  %v10961_v38 = vld [vmem:[#allocation172_spill] sm:$0xff] }
 0x19a   : > { %v1286_v35 = vsel %vm1253_vm2, %v1213_v5, %v1217_v6  ;;  %v1222_v63 = vrot.slane %v10960_v32, 1  ;;  %1469 = vst [vmem:[#allocation3 + $0x2b8] sm:$0xff] %v1293_v40  ;;  %1471 = vst [vmem:[#allocation3 + $0x2c8] sm:$0xff] %v1287_v28  ;;  %v1288_v26 = vsel %vm1253_vm2, %v1215_v47, %v1219_v7  ;;  %v1223_v12 = vrot.slane %v10961_v38, 1  ;;  %v10962_v5 = vld [vmem:[#allocation173_spill] sm:$0xff]  ;;  %v10963_v28 = vld [vmem:[#allocation174_spill] sm:$0xff] }
 0x19b   : > { %1470 = vst [vmem:[#allocation3 + $0x2c0] sm:$0xff] %v1286_v35  ;;  %v1289_v9 = vsel %vm1253_vm2, %v1216_v14, %v1220_v53  ;;  %v1282_v52 = vsel %vm1253_vm2, %v1217_v6, %v1221_v51  ;;  %1472 = vst [vmem:[#allocation3 + $0x2d0] sm:$0xff] %v1288_v26  ;;  %v1224_v40 = vrot.slane %v10962_v5, 1  ;;  %v1225_v35 = vrot.slane %v10963_v28, 1  ;;  %v10964_v32 = vld [vmem:[#allocation175_spill] sm:$0xff]  ;;  %v10965_v30 = vld [vmem:[#allocation176_spill] sm:$0xff] }
 0x19c   : > { %1473 = vst [vmem:[#allocation3 + $0x2d8] sm:$0xff] %v1289_v9  ;;  %1474 = vst [vmem:[#allocation3 + $0x2e0] sm:$0xff] %v1282_v52  ;;  %v1283_v36 = vsel %vm1253_vm2, %v1218_v39, %v1222_v63  ;;  %v1226_v47 = vrot.slane %v10964_v32, 1  ;;  %v1284_v14 = vsel %vm1253_vm2, %v1219_v7, %v1223_v12  ;;  %v1227_v6 = vrot.slane %v10965_v30, 1  ;;  %v10966_v31 = vld [vmem:[#allocation177_spill] sm:$0xff]  ;;  %v10967_v26 = vld [vmem:[#allocation182_spill] sm:$0xff] }
 0x19d   : > { %1475 = vst [vmem:[#allocation3 + $0x2e8] sm:$0xff] %v1283_v36  ;;  %v1228_v38 = vrot.slane %v10966_v31, 1  ;;  %v1229_v9 = vrot.slane %v10967_v26, 1  ;;  %1476 = vst [vmem:[#allocation3 + $0x2f0] sm:$0xff] %v1284_v14  ;;  %v1285_v39 = vsel %vm1253_vm2, %v1220_v53, %v1224_v40  ;;  %v1278_v52 = vsel %vm1253_vm2, %v1221_v51, %v1225_v35  ;;  %v10968_v36 = vld [vmem:[#allocation183_spill] sm:$0xff]  ;;  %v10969_v26 = vld [vmem:[#allocation184_spill] sm:$0xff] }
 0x19e   : > { %v1279_v32 = vsel %vm1253_vm2, %v1222_v63, %v1226_v47  ;;  %v1230_v28 = vrot.slane %v10968_v36, 1  ;;  %1477 = vst [vmem:[#allocation3 + $0x2f8] sm:$0xff] %v1285_v39  ;;  %1478 = vst [vmem:[#allocation3 + $0x300] sm:$0xff] %v1278_v52  ;;  %v1280_v7 = vsel %vm1253_vm2, %v1223_v12, %v1227_v6  ;;  %v1231_v31 = vrot.slane %v10969_v26, 1  ;;  %v10970_v51 = vld [vmem:[#allocation185_spill] sm:$0xff]  ;;  %v10972_v36 = vld [vmem:[#allocation187_spill] sm:$0xff] }
 0x19f   : > { %1479 = vst [vmem:[#allocation3 + $0x308] sm:$0xff] %v1279_v32  ;;  %v1281_v14 = vsel %vm1253_vm2, %v1224_v40, %v1228_v38  ;;  %v1274_v53 = vsel %vm1253_vm2, %v1225_v35, %v1229_v9  ;;  %1480 = vst [vmem:[#allocation3 + $0x310] sm:$0xff] %v1280_v7  ;;  %v1232_v39 = vrot.slane %v10970_v51, 1  ;;  %v10971_v32 = vld [vmem:[#allocation186_spill] sm:$0xff]  ;;  %v1234_v12 = vrot.slane %v10972_v36, 1  ;;  %v10973_v30 = vld [vmem:[#allocation189_spill] sm:$0xff] }
 0x1a0   : > { %1481 = vst [vmem:[#allocation3 + $0x318] sm:$0xff] %v1281_v14  ;;  %1482 = vst [vmem:[#allocation3 + $0x320] sm:$0xff] %v1274_v53  ;;  %v1275_v63 = vsel %vm1253_vm2, %v1226_v47, %v1230_v28  ;;  %v1233_v52 = vrot.slane %v10971_v32, 1  ;;  %v1276_v40 = vsel %vm1253_vm2, %v1227_v6, %v1231_v31  ;;  %v1235_v35 = vrot.slane %v8232_v60, 1  ;;  %v10974_v7 = vld [vmem:[#allocation194_spill] sm:$0xff]  ;;  %v2200_v60 = vld [vmem:[#allocation3 + $0x3f0] sm:$0xff] }
 0x1a1   : > { %1483 = vst [vmem:[#allocation3 + $0x328] sm:$0xff] %v1275_v63  ;;  %v1236_v26 = vrot.slane %v10973_v30, 1  ;;  %v1237_v14 = vrot.slane %v10974_v7, 1  ;;  %1484 = vst [vmem:[#allocation3 + $0x330] sm:$0xff] %v1276_v40  ;;  %v1277_v47 = vsel %vm1253_vm2, %v1228_v38, %v1232_v39  ;;  %v1271_v36 = vsel %vm1253_vm2, %v1230_v28, %v1234_v12  ;;  %v10975_v63 = vld [vmem:[#allocation195_spill] sm:$0xff]  ;;  %v10976_v7 = vld [vmem:[#allocation196_spill] sm:$0xff] }
 0x1a2   : > { %v1270_v53 = vsel %vm1253_vm2, %v1229_v9, %v1233_v52  ;;  %v1238_v32 = vrot.slane %v10975_v63, 1  ;;  %1485 = vst [vmem:[#allocation3 + $0x338] sm:$0xff] %v1277_v47  ;;  %1487 = vst [vmem:[#allocation3 + $0x348] sm:$0xff] %v1271_v36  ;;  %v1272_v6 = vsel %vm1253_vm2, %v1231_v31, %v1235_v35  ;;  %v1239_v30 = vrot.slane %v10976_v7, 1  ;;  %v10977_v9 = vld [vmem:[#allocation197_spill] sm:$0xff] }
 0x1a3   : > { %1486 = vst [vmem:[#allocation3 + $0x340] sm:$0xff] %v1270_v53  ;;  %v1273_v40 = vsel %vm1253_vm2, %v1232_v39, %v1236_v26  ;;  %v1266_v38 = vsel %vm1253_vm2, %v1233_v52, %v1237_v14  ;;  %1488 = vst [vmem:[#allocation3 + $0x350] sm:$0xff] %v1272_v6  ;;  %v1240_v47 = vrot.slane %v10977_v9, 1  ;;  %v1241_v36 = vrot.slane %v8298_v34, 1  ;;  %v10978_v53 = vld [vmem:[#allocation200_spill] sm:$0xff]  ;;  %v1643_v5 = vld [vmem:[#allocation2 + $0x3f8] sm:$0xff] }
 0x1a4   : > { %1489 = vst [vmem:[#allocation3 + $0x358] sm:$0xff] %v1273_v40  ;;  %1490 = vst [vmem:[#allocation3 + $0x360] sm:$0xff] %v1266_v38  ;;  %v1267_v28 = vsel %vm1253_vm2, %v1234_v12, %v1238_v32  ;;  %v1242_v31 = vrot.slane %v8302_v50, 1  ;;  %v1268_v39 = vsel %vm1253_vm2, %v1235_v35, %v1239_v30  ;;  %v1243_v52 = vrot.slane %v10978_v53, 1 }
 0x1a5   : > { %1491 = vst [vmem:[#allocation3 + $0x368] sm:$0xff] %v1267_v28  ;;  %v1244_v7 = vrot.slane %v8312_v2, 1  ;;  %v1245_v6 = vrot.slane %v7204_v44, 1  ;;  %1492 = vst [vmem:[#allocation3 + $0x370] sm:$0xff] %v1268_v39  ;;  %v1269_v12 = vsel %vm1253_vm2, %v1236_v26, %v1240_v47  ;;  %v1262_v40 = vsel %vm1253_vm2, %v1237_v14, %v1241_v36 }
 0x1a6   : > { %v1263_v38 = vsel %vm1253_vm2, %v1238_v32, %v1242_v31  ;;  %v1246_v28 = vrot.slane %v7208_v45, 1  ;;  %v1515_v50 = vld [vmem:[#allocation10] ss:$4 sm:$0xf]  ;;  %1493 = vst [vmem:[#allocation3 + $0x378] sm:$0xff] %v1269_v12  ;;  %1494 = vst [vmem:[#allocation3 + $0x380] sm:$0xff] %v1262_v40  ;;  %v1264_v44 = vsel %vm1253_vm2, %v1239_v30, %v1243_v52 }
 0x1a7   : > { %v1794_v35 = vld [vmem:[#allocation10 + $0x1] ss:$4 sm:$0xf]  ;;  %1495 = vst [vmem:[#allocation3 + $0x388] sm:$0xff] %v1263_v38  ;;  %v1265_v39 = vsel %vm1253_vm2, %v1240_v47, %v1244_v7  ;;  %v1258_v26 = vsel %vm1253_vm2, %v1241_v36, %v1245_v6  ;;  %v1247_v14 = vrot.slane %v7214_v48, 1  ;;  %1496 = vst [vmem:[#allocation3 + $0x390] sm:$0xff] %v1264_v44 }
 0x1a8   : > { %v2073_v2 = vld [vmem:[#allocation10 + $0x2] ss:$4 sm:$0xf]  ;;  %1497 = vst [vmem:[#allocation3 + $0x398] sm:$0xff] %v1265_v39  ;;  %1498 = vst [vmem:[#allocation3 + $0x3a0] sm:$0xff] %v1258_v26  ;;  %v1259_v32 = vsel %vm1253_vm2, %v1242_v31, %v1246_v28  ;;  %v1248_v12 = vrot.slane %v7218_v49, 1 }
 0x1a9   : > { %v10979_v40 = vrot.slane %v7144_v17, 1  ;;  %v10980_v47 = vrot.slane %v7152_v19, 1  ;;  %v2479_v38 = vld [vmem:[#allocation11] ss:$4 sm:$0xf]  ;;  %1499 = vst [vmem:[#allocation3 + $0x3a8] sm:$0xff] %v1259_v32  ;;  %v1260_v44 = vsel %vm1253_vm2, %v1243_v52, %v1247_v14 }
 0x1aa   : > { %v10981_v31 = vrot.slane %v7160_v21, 1  ;;  %v8786_v26 = vsub.s32 0, %v7113_v1  ;;  %1500 = vst [vmem:[#allocation3 + $0x3b0] sm:$0xff] %v1260_v44  ;;  %v10984_v52 = vrot.slane %v7168_v23, 1  ;;  %v1642_v49 = vld [vmem:[#allocation2 + $0x3f0] sm:$0xff] }
 0x1ab   : > { %v1254_v30 = vsel %vm1253_vm2, %v1245_v6, %v10979_v40  ;;  %v1255_v36 = vsel %vm1253_vm2, %v1246_v28, %v10980_v47  ;;  %v8789_v6 = vsub.s32 1, %v7113_v1  ;;  %v1261_v28 = vsel %vm1253_vm2, %v1244_v7, %v1248_v12  ;;  %v1640_v40 = vld [vmem:[#allocation2 + $0x3e0] sm:$0xff] }
 0x1ac   : > { %1502 = vst [vmem:[#allocation3 + $0x3c0] sm:$0xff] %v1254_v30  ;;  %1503 = vst [vmem:[#allocation3 + $0x3c8] sm:$0xff] %v1255_v36  ;;  %v1256_v39 = vsel %vm1253_vm2, %v1247_v14, %v10981_v31  ;;  %v1257_v32 = vsel %vm1253_vm2, %v1248_v12, %v10984_v52  ;;  %v2198_v30 = vld [vmem:[#allocation3 + $0x3e0] sm:$0xff]  ;;  %v8798_v14 = vsub.s32 2, %v7113_v1  ;;  %v8801_v47 = vsub.s32 3, %v7113_v1  ;;  %v1641_v31 = vld [vmem:[#allocation2 + $0x3e8] sm:$0xff] }
 0x1ad   : > { %10982 = vst [vmem:[#allocation204_spill] sm:$0xff] %v8786_v26  ;;  %10983 = vst [vmem:[#allocation205_spill] sm:$0xff] %v8789_v6  ;;  %v8804_v36 = vrot.slane %v1515_v50, %v8786_v26  ;;  %v8807_v7 = vrot.slane %v1794_v35, %v8786_v26  ;;  %v8810_v44 = vrot.slane %v2073_v2, %v8786_v26 }
 0x1ae   : > { %1504 = vst [vmem:[#allocation3 + $0x3d0] sm:$0xff] %v1256_v39  ;;  %10985 = vst [vmem:[#allocation206_spill] sm:$0xff] %v8798_v14  ;;  %v8813_v12 = vrot.slane %v2479_v38, %v8786_v26  ;;  %v2199_v39 = vld [vmem:[#allocation3 + $0x3e8] sm:$0xff]  ;;  %v8816_v52 = vrot.slane %v1515_v50, %v8789_v6  ;;  %v8819_v1 = vrot.slane %v1794_v35, %v8789_v6 }
 0x1af   : > { %1501 = vst [vmem:[#allocation3 + $0x3b8] sm:$0xff] %v1261_v28  ;;  %1505 = vst [vmem:[#allocation3 + $0x3d8] sm:$0xff] %v1257_v32  ;;  %v8822_v28 = vrot.slane %v2073_v2, %v8789_v6  ;;  %v8825_v32 = vrot.slane %v2479_v38, %v8789_v6  ;;  %v1789_v48 = vmul.f32 %v8804_v36, %v1640_v40 }
 0x1b0   : > { %v1940_v26 = vmul.f32 %v8807_v7, %v7144_v17  ;;  %v2347_v45 = vmul.f32 %v8810_v44, %v2198_v30  ;;  %v8832_v53 = vrot.slane %v1515_v50, %v8798_v14  ;;  %v1790_v34 = vmul.f32 %v8816_v52, %v1641_v31 }
 0x1b1   : > { %v1941_v9 = vmul.f32 %v8819_v1, %v7152_v19  ;;  %v2348_v63 = vmul.f32 %v8822_v28, %v2199_v39  ;;  %v8839_v6 = vrot.slane %v1794_v35, %v8798_v14  ;;  %v8843_v17 = vrot.slane %v2073_v2, %v8798_v14 }
 0x1b2   : > { %v2068_v40 = vadd.f32 %v1940_v26, %v1789_v48  ;;  %v1791_v51 = vmul.f32 %v8832_v53, %v1642_v49  ;;  %v8846_v30 = vrot.slane %v2479_v38, %v8798_v14  ;;  %v8851_v39 = vrot.slane %v1515_v50, %v8801_v47  ;;  %v2201_v48 = vld [vmem:[#allocation3 + $0x3f8] sm:$0xff]  ;;  %v1516_v26 = vld [vmem:[#allocation2] sm:$0xff] }
 0x1b3   : > { %v2069_v31 = vadd.f32 %v1941_v9, %v1790_v34  ;;  %v1942_v19 = vmul.f32 %v8839_v6, %v7160_v21  ;;  %v8854_v37 = vrot.slane %v1794_v35, %v8801_v47  ;;  %v2349_v46 = vmul.f32 %v8843_v17, %v2200_v60  ;;  %v1517_v35 = vld [vmem:[#allocation2 + $0x8] sm:$0xff] }
 0x1b4   : > { %v2475_v49 = vadd.f32 %v2347_v45, %v2068_v40  ;;  %v8858_v0 = vrot.slane %v2073_v2, %v8801_v47  ;;  %v8861_v14 = vrot.slane %v2479_v38, %v8801_v47  ;;  %v1792_v21 = vmul.f32 %v8851_v39, %v1643_v5  ;;  %v1518_v40 = vld [vmem:[#allocation2 + $0x10] sm:$0xff] }
 0x1b5   : > { %v2476_v34 = vadd.f32 %v2348_v63, %v2069_v31  ;;  %v2070_v9 = vadd.f32 %v1942_v19, %v1791_v51  ;;  %v1943_v50 = vmul.f32 %v8854_v37, %v7168_v23  ;;  %v1665_v60 = vmul.f32 %v8804_v36, %v1516_v26  ;;  %v1519_v31 = vld [vmem:[#allocation2 + $0x18] sm:$0xff] }
 0x1b6   : > { %v2625_v24 = vadd.f32 %v8813_v12, %v2475_v49  ;;  %v2350_v45 = vmul.f32 %v8858_v0, %v2201_v48  ;;  %v1816_v2 = vmul.f32 %v8807_v7, %v7140_v16  ;;  %v2223_v5 = vmul.f32 %v8810_v44, %v8392_v10 }
 0x1b7   : > { %v2626_v38 = vadd.f32 %v8825_v32, %v2476_v34  ;;  %v2477_v63 = vadd.f32 %v2349_v46, %v2070_v9  ;;  %v2071_v51 = vadd.f32 %v1943_v50, %v1792_v21  ;;  %v1666_v19 = vmul.f32 %v8816_v52, %v1517_v35  ;;  %v1520_v34 = vld [vmem:[#allocation2 + $0x20] sm:$0xff]  ;;  %v1521_v50 = vld [vmem:[#allocation2 + $0x28] sm:$0xff] }
 0x1b8   : > { %2753 = vst [vmem:[#allocation2 + $0x3e0] sm:$0xff] %v2625_v24  ;;  %v1944_v23 = vadd.f32 %v1816_v2, %v1665_v60  ;;  %v1817_v48 = vmul.f32 %v8819_v1, %v7148_v18  ;;  %v2224_v26 = vmul.f32 %v8822_v28, %v8396_v3  ;;  %v1667_v46 = vmul.f32 %v8832_v53, %v1518_v40 }
 0x1b9   : > { %2754 = vst [vmem:[#allocation2 + $0x3e8] sm:$0xff] %v2626_v38  ;;  %v2627_v16 = vadd.f32 %v8846_v30, %v2477_v63  ;;  %v2478_v49 = vadd.f32 %v2350_v45, %v2071_v51  ;;  %v1818_v10 = vmul.f32 %v8839_v6, %v7156_v20  ;;  %v2225_v21 = vmul.f32 %v8843_v17, %v8401_v29  ;;  %v1522_v38 = vld [vmem:[#allocation2 + $0x30] sm:$0xff] }
 0x1ba   : > { %v2351_v24 = vadd.f32 %v2223_v5, %v1944_v23  ;;  %v1945_v9 = vadd.f32 %v1817_v48, %v1666_v19  ;;  %v1668_v18 = vmul.f32 %v8851_v39, %v1519_v31  ;;  %v1819_v45 = vmul.f32 %v8854_v37, %v7164_v22  ;;  %v1523_v31 = vld [vmem:[#allocation2 + $0x38] sm:$0xff] }
 0x1bb   : > { %2755 = vst [vmem:[#allocation2 + $0x3f0] sm:$0xff] %v2627_v16  ;;  %v2628_v3 = vadd.f32 %v8861_v14, %v2478_v49  ;;  %v1946_v35 = vadd.f32 %v1818_v10, %v1667_v46  ;;  %v2226_v60 = vmul.f32 %v8858_v0, %v8405_v4  ;;  %v1669_v40 = vmul.f32 %v8804_v36, %v1520_v34  ;;  %v1524_v49 = vld [vmem:[#allocation2 + $0x40] sm:$0xff] }
 0x1bc   : > { %v2501_v20 = vadd.f32 %v8813_v12, %v2351_v24  ;;  %v2352_v2 = vadd.f32 %v2224_v26, %v1945_v9  ;;  %v1820_v29 = vmul.f32 %v8807_v7, %v7226_v54  ;;  %v1947_v51 = vadd.f32 %v1819_v45, %v1668_v18  ;;  %v1525_v24 = vld [vmem:[#allocation2 + $0x48] sm:$0xff] }
 0x1bd   : > { %2756 = vst [vmem:[#allocation2 + $0x3f8] sm:$0xff] %v2628_v3  ;;  %v2353_v63 = vadd.f32 %v2225_v21, %v1946_v35  ;;  %v2227_v5 = vmul.f32 %v8810_v44, %v8409_v62  ;;  %v1670_v22 = vmul.f32 %v8816_v52, %v1521_v50  ;;  %v1821_v19 = vmul.f32 %v8819_v1, %v7230_v55  ;;  %v1526_v35 = vld [vmem:[#allocation2 + $0x50] sm:$0xff] }
 0x1be   : > { %2629 = vst [vmem:[#allocation2] sm:$0xff] %v2501_v20  ;;  %v2502_v4 = vadd.f32 %v8825_v32, %v2352_v2  ;;  %v1948_v23 = vadd.f32 %v1820_v29, %v1669_v40  ;;  %v2228_v54 = vmul.f32 %v8822_v28, %v8416_v41  ;;  %v2354_v26 = vadd.f32 %v2226_v60, %v1947_v51  ;;  %v1527_v2 = vld [vmem:[#allocation2 + $0x58] sm:$0xff]  ;;  %v10986_v29 = vld [vmem:[#allocation43_spill] sm:$0xff] }
 0x1bf   : > { %v2503_v48 = vadd.f32 %v8846_v30, %v2353_v63  ;;  %v1671_v16 = vmul.f32 %v8832_v53, %v1522_v38  ;;  %v1822_v62 = vmul.f32 %v8839_v6, %v7236_v58  ;;  %v1949_v10 = vadd.f32 %v1821_v19, %v1670_v22  ;;  %v10987_v22 = vld [vmem:[#allocation44_spill] sm:$0xff] }
 0x1c0   : > { %2630 = vst [vmem:[#allocation2 + $0x8] sm:$0xff] %v2502_v4  ;;  %v2355_v46 = vadd.f32 %v2227_v5, %v1948_v23  ;;  %v2229_v34 = vmul.f32 %v8843_v17, %v8423_v61  ;;  %v1672_v55 = vmul.f32 %v8851_v39, %v1523_v31  ;;  %v2504_v41 = vadd.f32 %v8861_v14, %v2354_v26  ;;  %v1528_v31 = vld [vmem:[#allocation2 + $0x60] sm:$0xff] }
 0x1c1   : > { %2631 = vst [vmem:[#allocation2 + $0x10] sm:$0xff] %v2503_v48  ;;  %v1950_v9 = vadd.f32 %v1822_v62, %v1671_v16  ;;  %v1823_v21 = vmul.f32 %v8854_v37, %v7240_v59  ;;  %v2230_v58 = vmul.f32 %v8858_v0, %v8430_v11  ;;  %v2356_v50 = vadd.f32 %v2228_v54, %v1949_v10  ;;  %v1529_v48 = vld [vmem:[#allocation2 + $0x68] sm:$0xff] }
 0x1c2   : > { %v2505_v18 = vadd.f32 %v8813_v12, %v2355_v46  ;;  %v1673_v3 = vmul.f32 %v8804_v36, %v1524_v49  ;;  %v1824_v61 = vmul.f32 %v8807_v7, %v7288_v27  ;;  %2632 = vst [vmem:[#allocation2 + $0x18] sm:$0xff] %v2504_v41  ;;  %v2231_v20 = vmul.f32 %v8810_v44, %v8434_v13 }
 0x1c3   : > { %v2357_v45 = vadd.f32 %v2229_v34, %v1950_v9  ;;  %v1951_v60 = vadd.f32 %v1823_v21, %v1672_v55  ;;  %v1674_v59 = vmul.f32 %v8816_v52, %v1525_v24  ;;  %v2506_v11 = vadd.f32 %v8825_v32, %v2356_v50  ;;  %v10988_v34 = vld [vmem:[#allocation45_spill] sm:$0xff]  ;;  %v1530_v55 = vld [vmem:[#allocation2 + $0x70] sm:$0xff]  ;;  %v10989_v9 = vld [vmem:[#allocation203_spill] sm:$0xff] }
 0x1c4   : > { %2633 = vst [vmem:[#allocation2 + $0x20] sm:$0xff] %v2505_v18  ;;  %v1952_v40 = vadd.f32 %v1824_v61, %v1673_v3  ;;  %v1825_v38 = vmul.f32 %v8819_v1, %v10986_v29  ;;  %v2232_v27 = vmul.f32 %v8822_v28, %v8438_v42  ;;  %v1675_v5 = vmul.f32 %v8832_v53, %v1526_v35  ;;  %v1531_v18 = vld [vmem:[#allocation2 + $0x78] sm:$0xff]  ;;  %v10990_v3 = vld [vmem:[#allocation46_spill] sm:$0xff] }
 0x1c5   : > { %v2507_v63 = vadd.f32 %v8846_v30, %v2357_v45  ;;  %v2358_v51 = vadd.f32 %v2230_v58, %v1951_v60  ;;  %v1826_v13 = vmul.f32 %v8839_v6, %v10987_v22  ;;  %2634 = vst [vmem:[#allocation2 + $0x28] sm:$0xff] %v2506_v11  ;;  %v2233_v19 = vmul.f32 %v8843_v17, %v8443_v15  ;;  %v2088_v58 = vld [vmem:[#allocation3 + $0x70] sm:$0xff]  ;;  %v2089_v45 = vld [vmem:[#allocation3 + $0x78] sm:$0xff] }
 0x1c6   : > { %v2359_v4 = vadd.f32 %v2231_v20, %v1952_v40  ;;  %v1953_v23 = vadd.f32 %v1825_v38, %v1674_v59  ;;  %v1676_v54 = vmul.f32 %v8851_v39, %v1527_v2  ;;  %v1827_v16 = vmul.f32 %v8854_v37, %v7302_v33  ;;  %v10991_v2 = vld [vmem:[#allocation47_spill] sm:$0xff]  ;;  %v1532_v40 = vld [vmem:[#allocation2 + $0x80] sm:$0xff] }
 0x1c7   : > { %2635 = vst [vmem:[#allocation2 + $0x30] sm:$0xff] %v2507_v63  ;;  %v2508_v42 = vadd.f32 %v8861_v14, %v2358_v51  ;;  %v1954_v26 = vadd.f32 %v1826_v13, %v1675_v5  ;;  %v2234_v62 = vmul.f32 %v8858_v0, %v8447_v43  ;;  %v1677_v10 = vmul.f32 %v8804_v36, %v1528_v31  ;;  %v2090_v51 = vld [vmem:[#allocation3 + $0x80] sm:$0xff]  ;;  %v1533_v5 = vld [vmem:[#allocation2 + $0x88] sm:$0xff]  ;;  %v10992_v13 = vld [vmem:[#allocation48_spill] sm:$0xff] }
 0x1c8   : > { %v2509_v49 = vadd.f32 %v8813_v12, %v2359_v4  ;;  %v2360_v46 = vadd.f32 %v2232_v27, %v1953_v23  ;;  %v1828_v15 = vmul.f32 %v8807_v7, %v10988_v34  ;;  %v1955_v41 = vadd.f32 %v1827_v16, %v1676_v54  ;;  %v2091_v23 = vld [vmem:[#allocation3 + $0x88] sm:$0xff]  ;;  %v1534_v16 = vld [vmem:[#allocation2 + $0x90] sm:$0xff] }
 0x1c9   : > { %2636 = vst [vmem:[#allocation2 + $0x38] sm:$0xff] %v2508_v42  ;;  %v2361_v24 = vadd.f32 %v2233_v19, %v1954_v26  ;;  %v2235_v21 = vmul.f32 %v8810_v44, %v10989_v9  ;;  %v1678_v33 = vmul.f32 %v8816_v52, %v1529_v48  ;;  %v1829_v61 = vmul.f32 %v8819_v1, %v10990_v3  ;;  %v10993_v42 = vld [vmem:[#allocation53_spill] sm:$0xff]  ;;  %v2092_v34 = vld [vmem:[#allocation3 + $0x90] sm:$0xff]  ;;  %v1536_v3 = vld [vmem:[#allocation2 + $0xa0] sm:$0xff] }
 0x1ca   : > { %2637 = vst [vmem:[#allocation2 + $0x40] sm:$0xff] %v2509_v49  ;;  %v2510_v43 = vadd.f32 %v8825_v32, %v2360_v46  ;;  %v1956_v50 = vadd.f32 %v1828_v15, %v1677_v10  ;;  %v2236_v35 = vmul.f32 %v8822_v28, %v8456_v8  ;;  %v2362_v20 = vadd.f32 %v2234_v62, %v1955_v41  ;;  %v1535_v15 = vld [vmem:[#allocation2 + $0x98] sm:$0xff]  ;;  %v10994_v41 = vld [vmem:[#allocation54_spill] sm:$0xff] }
 0x1cb   : > { %v2511_v60 = vadd.f32 %v8846_v30, %v2361_v24  ;;  %v1679_v59 = vmul.f32 %v8832_v53, %v1530_v55  ;;  %v1830_v11 = vmul.f32 %v8839_v6, %v10991_v2  ;;  %v1957_v38 = vadd.f32 %v1829_v61, %v1678_v33  ;;  %v2093_v33 = vld [vmem:[#allocation3 + $0x98] sm:$0xff] }
 0x1cc   : > { %2638 = vst [vmem:[#allocation2 + $0x48] sm:$0xff] %v2510_v43  ;;  %v2363_v29 = vadd.f32 %v2235_v21, %v1956_v50  ;;  %v2237_v27 = vmul.f32 %v8843_v17, %v2088_v58  ;;  %v1680_v63 = vmul.f32 %v8851_v39, %v1531_v18  ;;  %v2512_v8 = vadd.f32 %v8861_v14, %v2362_v20  ;;  %v2094_v20 = vld [vmem:[#allocation3 + $0xa0] sm:$0xff] }
 0x1cd   : > { %2639 = vst [vmem:[#allocation2 + $0x50] sm:$0xff] %v2511_v60  ;;  %v1958_v22 = vadd.f32 %v1830_v11, %v1679_v59  ;;  %v1831_v31 = vmul.f32 %v8854_v37, %v10992_v13  ;;  %v2238_v4 = vmul.f32 %v8858_v0, %v2089_v45  ;;  %v2364_v54 = vadd.f32 %v2236_v35, %v1957_v38  ;;  %v1537_v59 = vld [vmem:[#allocation2 + $0xa8] sm:$0xff] }
 0x1ce   : > { %v2513_v19 = vadd.f32 %v8813_v12, %v2363_v29  ;;  %v1681_v48 = vmul.f32 %v8804_v36, %v1532_v40  ;;  %v1832_v26 = vmul.f32 %v8807_v7, %v10993_v42  ;;  %2640 = vst [vmem:[#allocation2 + $0x58] sm:$0xff] %v2512_v8  ;;  %v2239_v46 = vmul.f32 %v8810_v44, %v2090_v51  ;;  %v10995_v40 = vld [vmem:[#allocation55_spill] sm:$0xff] }
 0x1cf   : > { %v2365_v62 = vadd.f32 %v2237_v27, %v1958_v22  ;;  %v1959_v49 = vadd.f32 %v1831_v31, %v1680_v63  ;;  %v1682_v10 = vmul.f32 %v8816_v52, %v1533_v5  ;;  %v2514_v55 = vadd.f32 %v8825_v32, %v2364_v54  ;;  %v10996_v5 = vld [vmem:[#allocation56_spill] sm:$0xff]  ;;  %v1539_v54 = vld [vmem:[#allocation2 + $0xb8] sm:$0xff] }
 0x1d0   : > { %2641 = vst [vmem:[#allocation2 + $0x60] sm:$0xff] %v2513_v19  ;;  %v1960_v24 = vadd.f32 %v1832_v26, %v1681_v48  ;;  %v1833_v9 = vmul.f32 %v8819_v1, %v10994_v41  ;;  %v2240_v21 = vmul.f32 %v8822_v28, %v2091_v23  ;;  %v1683_v43 = vmul.f32 %v8832_v53, %v1534_v16  ;;  %v1538_v22 = vld [vmem:[#allocation2 + $0xb0] sm:$0xff]  ;;  %v10997_v26 = vld [vmem:[#allocation57_spill] sm:$0xff] }
 0x1d1   : > { %v2515_v58 = vadd.f32 %v8846_v30, %v2365_v62  ;;  %v2366_v18 = vadd.f32 %v2238_v4, %v1959_v49  ;;  %v1834_v50 = vmul.f32 %v8839_v6, %v7374_v25  ;;  %2642 = vst [vmem:[#allocation2 + $0x68] sm:$0xff] %v2514_v55  ;;  %v2241_v45 = vmul.f32 %v8843_v17, %v2092_v34  ;;  %v2095_v25 = vld [vmem:[#allocation3 + $0xa8] sm:$0xff]  ;;  %v2096_v19 = vld [vmem:[#allocation3 + $0xb0] sm:$0xff]  ;;  %v2097_v49 = vld [vmem:[#allocation3 + $0xb8] sm:$0xff] }
 0x1d2   : > { %v2367_v61 = vadd.f32 %v2239_v46, %v1960_v24  ;;  %v1961_v35 = vadd.f32 %v1833_v9, %v1682_v10  ;;  %v1684_v60 = vmul.f32 %v8851_v39, %v1535_v15  ;;  %v1835_v29 = vmul.f32 %v8854_v37, %v10995_v40  ;;  %v1540_v55 = vld [vmem:[#allocation2 + $0xc0] sm:$0xff] }
 0x1d3   : > { %2643 = vst [vmem:[#allocation2 + $0x70] sm:$0xff] %v2515_v58  ;;  %v2516_v2 = vadd.f32 %v8861_v14, %v2366_v18  ;;  %v1962_v11 = vadd.f32 %v1834_v50, %v1683_v43  ;;  %v2242_v38 = vmul.f32 %v8858_v0, %v2093_v33  ;;  %v1685_v51 = vmul.f32 %v8804_v36, %v1536_v3  ;;  %v2098_v33 = vld [vmem:[#allocation3 + $0xc0] sm:$0xff]  ;;  %v1541_v58 = vld [vmem:[#allocation2 + $0xc8] sm:$0xff] }
 0x1d4   : > { %v2517_v27 = vadd.f32 %v8813_v12, %v2367_v61  ;;  %v2368_v63 = vadd.f32 %v2240_v21, %v1961_v35  ;;  %v1836_v8 = vmul.f32 %v8807_v7, %v10996_v5  ;;  %v1963_v31 = vadd.f32 %v1835_v29, %v1684_v60  ;;  %v10998_v60 = vld [vmem:[#allocation62_spill] sm:$0xff] }
 0x1d5   : > { %2644 = vst [vmem:[#allocation2 + $0x78] sm:$0xff] %v2516_v2  ;;  %v2369_v13 = vadd.f32 %v2241_v45, %v1962_v11  ;;  %v2243_v4 = vmul.f32 %v8810_v44, %v2094_v20  ;;  %v1686_v23 = vmul.f32 %v8816_v52, %v1537_v59  ;;  %v1837_v16 = vmul.f32 %v8819_v1, %v10997_v26  ;;  %v1542_v59 = vld [vmem:[#allocation2 + $0xd0] sm:$0xff] }
 0x1d6   : > { %2645 = vst [vmem:[#allocation2 + $0x80] sm:$0xff] %v2517_v27  ;;  %v2518_v48 = vadd.f32 %v8825_v32, %v2368_v63  ;;  %v1964_v42 = vadd.f32 %v1836_v8, %v1685_v51  ;;  %v2244_v62 = vmul.f32 %v8822_v28, %v2095_v25  ;;  %v2370_v10 = vadd.f32 %v2242_v38, %v1963_v31  ;;  %v1543_v38 = vld [vmem:[#allocation2 + $0xd8] sm:$0xff]  ;;  %v10999_v63 = vld [vmem:[#allocation63_spill] sm:$0xff] }
 0x1d7   : > { %v2519_v46 = vadd.f32 %v8846_v30, %v2369_v13  ;;  %v1687_v34 = vmul.f32 %v8832_v53, %v1538_v22  ;;  %v1838_v15 = vmul.f32 %v8839_v6, %v7396_v57  ;;  %v1965_v41 = vadd.f32 %v1837_v16, %v1686_v23  ;;  %v2099_v57 = vld [vmem:[#allocation3 + $0xc8] sm:$0xff]  ;;  %v2101_v8 = vld [vmem:[#allocation3 + $0xd8] sm:$0xff]  ;;  %v2102_v16 = vld [vmem:[#allocation3 + $0xe0] sm:$0xff] }
 0x1d8   : > { %2646 = vst [vmem:[#allocation2 + $0x88] sm:$0xff] %v2518_v48  ;;  %v2371_v24 = vadd.f32 %v2243_v4, %v1964_v42  ;;  %v2245_v9 = vmul.f32 %v8843_v17, %v2096_v19  ;;  %v1688_v21 = vmul.f32 %v8851_v39, %v1539_v54  ;;  %v2520_v18 = vadd.f32 %v8861_v14, %v2370_v10  ;;  %v11000_v4 = vld [vmem:[#allocation64_spill] sm:$0xff]  ;;  %v1544_v19 = vld [vmem:[#allocation2 + $0xe0] sm:$0xff]  ;;  %v11001_v10 = vld [vmem:[#allocation65_spill] sm:$0xff] }
 0x1d9   : > { %2647 = vst [vmem:[#allocation2 + $0x90] sm:$0xff] %v2519_v46  ;;  %v1966_v43 = vadd.f32 %v1838_v15, %v1687_v34  ;;  %v1839_v50 = vmul.f32 %v8854_v37, %v7400_v56  ;;  %v2246_v3 = vmul.f32 %v8858_v0, %v2097_v49  ;;  %v2372_v35 = vadd.f32 %v2244_v62, %v1965_v41  ;;  %v2100_v56 = vld [vmem:[#allocation3 + $0xd0] sm:$0xff]  ;;  %v1545_v62 = vld [vmem:[#allocation2 + $0xe8] sm:$0xff] }
 0x1da   : > { %v2521_v61 = vadd.f32 %v8813_v12, %v2371_v24  ;;  %v1689_v45 = vmul.f32 %v8804_v36, %v1540_v55  ;;  %v1840_v20 = vmul.f32 %v8807_v7, %v10998_v60  ;;  %2648 = vst [vmem:[#allocation2 + $0x98] sm:$0xff] %v2520_v18  ;;  %v2247_v40 = vmul.f32 %v8810_v44, %v2098_v33  ;;  %v2103_v55 = vld [vmem:[#allocation3 + $0xe8] sm:$0xff] }
 0x1db   : > { %v2373_v2 = vadd.f32 %v2245_v9, %v1966_v43  ;;  %v1967_v11 = vadd.f32 %v1839_v50, %v1688_v21  ;;  %v1690_v29 = vmul.f32 %v8816_v52, %v1541_v58  ;;  %v2522_v25 = vadd.f32 %v8825_v32, %v2372_v35  ;;  %v11002_v21 = vld [vmem:[#allocation66_spill] sm:$0xff]  ;;  %v1546_v58 = vld [vmem:[#allocation2 + $0xf0] sm:$0xff]  ;;  %v11003_v60 = vld [vmem:[#allocation67_spill] sm:$0xff] }
 0x1dc   : > { %2649 = vst [vmem:[#allocation2 + $0xa0] sm:$0xff] %v2521_v61  ;;  %v1968_v27 = vadd.f32 %v1840_v20, %v1689_v45  ;;  %v1841_v51 = vmul.f32 %v8819_v1, %v10999_v63  ;;  %v2248_v5 = vmul.f32 %v8822_v28, %v2099_v57  ;;  %v1691_v31 = vmul.f32 %v8832_v53, %v1542_v59  ;;  %v2104_v57 = vld [vmem:[#allocation3 + $0xf0] sm:$0xff]  ;;  %v1547_v61 = vld [vmem:[#allocation2 + $0xf8] sm:$0xff] }
 0x1dd   : > { %v2523_v22 = vadd.f32 %v8846_v30, %v2373_v2  ;;  %v2374_v13 = vadd.f32 %v2246_v3, %v1967_v11  ;;  %v1842_v23 = vmul.f32 %v8839_v6, %v11000_v4  ;;  %2650 = vst [vmem:[#allocation2 + $0xa8] sm:$0xff] %v2522_v25  ;;  %v2249_v42 = vmul.f32 %v8843_v17, %v2100_v56  ;;  %v2105_v2 = vld [vmem:[#allocation3 + $0xf8] sm:$0xff]  ;;  %v11004_v56 = vld [vmem:[#allocation68_spill] sm:$0xff]  ;;  %v1548_v25 = vld [vmem:[#allocation2 + $0x100] sm:$0xff] }
 0x1de   : > { %v2375_v54 = vadd.f32 %v2247_v40, %v1968_v27  ;;  %v1969_v48 = vadd.f32 %v1841_v51, %v1690_v29  ;;  %v1692_v26 = vmul.f32 %v8851_v39, %v1543_v38  ;;  %v1843_v34 = vmul.f32 %v8854_v37, %v11001_v10  ;;  %v11005_v4 = vld [vmem:[#allocation69_spill] sm:$0xff] }
 0x1df   : > { %2651 = vst [vmem:[#allocation2 + $0xb0] sm:$0xff] %v2523_v22  ;;  %v2524_v49 = vadd.f32 %v8861_v14, %v2374_v13  ;;  %v1970_v46 = vadd.f32 %v1842_v23, %v1691_v31  ;;  %v2250_v15 = vmul.f32 %v8858_v0, %v2101_v8  ;;  %v1693_v9 = vmul.f32 %v8804_v36, %v1544_v19  ;;  %v2106_v8 = vld [vmem:[#allocation3 + $0x100] sm:$0xff]  ;;  %v1549_v22 = vld [vmem:[#allocation2 + $0x108] sm:$0xff] }
 0x1e0   : > { %v2525_v24 = vadd.f32 %v8813_v12, %v2375_v54  ;;  %v2376_v41 = vadd.f32 %v2248_v5, %v1969_v48  ;;  %v1844_v33 = vmul.f32 %v8807_v7, %v11002_v21  ;;  %v1971_v43 = vadd.f32 %v1843_v34, %v1692_v26  ;;  %v2107_v54 = vld [vmem:[#allocation3 + $0x108] sm:$0xff] }
 0x1e1   : > { %2652 = vst [vmem:[#allocation2 + $0xb8] sm:$0xff] %v2524_v49  ;;  %v2377_v18 = vadd.f32 %v2249_v42, %v1970_v46  ;;  %v2251_v50 = vmul.f32 %v8810_v44, %v2102_v16  ;;  %v1694_v3 = vmul.f32 %v8816_v52, %v1545_v62  ;;  %v1845_v20 = vmul.f32 %v8819_v1, %v11003_v60  ;;  %v11006_v16 = vld [vmem:[#allocation74_spill] sm:$0xff]  ;;  %v1550_v49 = vld [vmem:[#allocation2 + $0x110] sm:$0xff]  ;;  %v11007_v21 = vld [vmem:[#allocation75_spill] sm:$0xff] }
 0x1e2   : > { %2653 = vst [vmem:[#allocation2 + $0xc0] sm:$0xff] %v2525_v24  ;;  %v2526_v35 = vadd.f32 %v8825_v32, %v2376_v41  ;;  %v1972_v45 = vadd.f32 %v1844_v33, %v1693_v9  ;;  %v2252_v59 = vmul.f32 %v8822_v28, %v2103_v55  ;;  %v2378_v40 = vadd.f32 %v2250_v15, %v1971_v43  ;;  %v2108_v55 = vld [vmem:[#allocation3 + $0x110] sm:$0xff]  ;;  %v1551_v24 = vld [vmem:[#allocation2 + $0x118] sm:$0xff] }
 0x1e3   : > { %v2527_v11 = vadd.f32 %v8846_v30, %v2377_v18  ;;  %v1695_v29 = vmul.f32 %v8832_v53, %v1546_v58  ;;  %v1846_v38 = vmul.f32 %v8839_v6, %v11004_v56  ;;  %v1973_v63 = vadd.f32 %v1845_v20, %v1694_v3  ;;  %v2109_v18 = vld [vmem:[#allocation3 + $0x118] sm:$0xff] }
 0x1e4   : > { %2654 = vst [vmem:[#allocation2 + $0xc8] sm:$0xff] %v2526_v35  ;;  %v2379_v27 = vadd.f32 %v2251_v50, %v1972_v45  ;;  %v2253_v51 = vmul.f32 %v8843_v17, %v2104_v57  ;;  %v1696_v5 = vmul.f32 %v8851_v39, %v1547_v61  ;;  %v2528_v13 = vadd.f32 %v8861_v14, %v2378_v40  ;;  %v11008_v57 = vld [vmem:[#allocation76_spill] sm:$0xff]  ;;  %v1552_v35 = vld [vmem:[#allocation2 + $0x120] sm:$0xff]  ;;  %v11009_v56 = vld [vmem:[#allocation77_spill] sm:$0xff] }
 0x1e5   : > { %2655 = vst [vmem:[#allocation2 + $0xd0] sm:$0xff] %v2527_v11  ;;  %v1974_v31 = vadd.f32 %v1846_v38, %v1695_v29  ;;  %v1847_v23 = vmul.f32 %v8854_v37, %v11005_v4  ;;  %v2254_v19 = vmul.f32 %v8858_v0, %v2105_v2  ;;  %v2380_v42 = vadd.f32 %v2252_v59, %v1973_v63  ;;  %v2110_v2 = vld [vmem:[#allocation3 + $0x120] sm:$0xff]  ;;  %v1553_v11 = vld [vmem:[#allocation2 + $0x128] sm:$0xff] }
 0x1e6   : > { %v2529_v48 = vadd.f32 %v8813_v12, %v2379_v27  ;;  %v1697_v26 = vmul.f32 %v8804_v36, %v1548_v25  ;;  %v1848_v62 = vmul.f32 %v8807_v7, %v11006_v16  ;;  %2656 = vst [vmem:[#allocation2 + $0xd8] sm:$0xff] %v2528_v13  ;;  %v2255_v34 = vmul.f32 %v8810_v44, %v2106_v8  ;;  %v2111_v27 = vld [vmem:[#allocation3 + $0x128] sm:$0xff]  ;;  %v11010_v8 = vld [vmem:[#allocation78_spill] sm:$0xff]  ;;  %v1554_v13 = vld [vmem:[#allocation2 + $0x130] sm:$0xff] }
 0x1e7   : > { %v2381_v46 = vadd.f32 %v2253_v51, %v1974_v31  ;;  %v1975_v10 = vadd.f32 %v1847_v23, %v1696_v5  ;;  %v1698_v15 = vmul.f32 %v8816_v52, %v1549_v22  ;;  %v2530_v41 = vadd.f32 %v8825_v32, %v2380_v42  ;;  %v11011_v16 = vld [vmem:[#allocation79_spill] sm:$0xff] }
 0x1e8   : > { %2657 = vst [vmem:[#allocation2 + $0xe0] sm:$0xff] %v2529_v48  ;;  %v1976_v9 = vadd.f32 %v1848_v62, %v1697_v26  ;;  %v1849_v33 = vmul.f32 %v8819_v1, %v11007_v21  ;;  %v2256_v58 = vmul.f32 %v8822_v28, %v2107_v54  ;;  %v1699_v3 = vmul.f32 %v8832_v53, %v1550_v49  ;;  %v2112_v54 = vld [vmem:[#allocation3 + $0x130] sm:$0xff]  ;;  %v1555_v48 = vld [vmem:[#allocation2 + $0x138] sm:$0xff] }
 0x1e9   : > { %v2531_v43 = vadd.f32 %v8846_v30, %v2381_v46  ;;  %v2382_v50 = vadd.f32 %v2254_v19, %v1975_v10  ;;  %v1850_v61 = vmul.f32 %v8839_v6, %v11008_v57  ;;  %2658 = vst [vmem:[#allocation2 + $0xe8] sm:$0xff] %v2530_v41  ;;  %v2257_v20 = vmul.f32 %v8843_v17, %v2108_v55  ;;  %v2113_v46 = vld [vmem:[#allocation3 + $0x138] sm:$0xff]  ;;  %v11012_v55 = vld [vmem:[#allocation80_spill] sm:$0xff]  ;;  %v1556_v41 = vld [vmem:[#allocation2 + $0x140] sm:$0xff] }
 0x1ea   : > { %v2383_v45 = vadd.f32 %v2255_v34, %v1976_v9  ;;  %v1977_v60 = vadd.f32 %v1849_v33, %v1698_v15  ;;  %v1700_v59 = vmul.f32 %v8851_v39, %v1551_v24  ;;  %v1851_v38 = vmul.f32 %v8854_v37, %v11009_v56  ;;  %v11013_v57 = vld [vmem:[#allocation81_spill] sm:$0xff] }
 0x1eb   : > { %2659 = vst [vmem:[#allocation2 + $0xf0] sm:$0xff] %v2531_v43  ;;  %v2532_v40 = vadd.f32 %v8861_v14, %v2382_v50  ;;  %v1978_v29 = vadd.f32 %v1850_v61, %v1699_v3  ;;  %v2258_v25 = vmul.f32 %v8858_v0, %v2109_v18  ;;  %v1701_v5 = vmul.f32 %v8804_v36, %v1552_v35  ;;  %v2114_v18 = vld [vmem:[#allocation3 + $0x140] sm:$0xff]  ;;  %v1557_v43 = vld [vmem:[#allocation2 + $0x148] sm:$0xff] }
 0x1ec   : > { %v2533_v63 = vadd.f32 %v8813_v12, %v2383_v45  ;;  %v2384_v51 = vadd.f32 %v2256_v58, %v1977_v60  ;;  %v1852_v22 = vmul.f32 %v8807_v7, %v11010_v8  ;;  %v1979_v4 = vadd.f32 %v1851_v38, %v1700_v59  ;;  %v2115_v45 = vld [vmem:[#allocation3 + $0x148] sm:$0xff] }
 0x1ed   : > { %2660 = vst [vmem:[#allocation2 + $0xf8] sm:$0xff] %v2532_v40  ;;  %v2385_v31 = vadd.f32 %v2257_v20, %v1978_v29  ;;  %v2259_v23 = vmul.f32 %v8810_v44, %v2110_v2  ;;  %v1702_v19 = vmul.f32 %v8816_v52, %v1553_v11  ;;  %v1853_v62 = vmul.f32 %v8819_v1, %v11011_v16  ;;  %v11014_v2 = vld [vmem:[#allocation86_spill] sm:$0xff]  ;;  %v1558_v40 = vld [vmem:[#allocation2 + $0x150] sm:$0xff]  ;;  %v11015_v8 = vld [vmem:[#allocation87_spill] sm:$0xff] }
 0x1ee   : > { %2661 = vst [vmem:[#allocation2 + $0x100] sm:$0xff] %v2533_v63  ;;  %v2534_v42 = vadd.f32 %v8825_v32, %v2384_v51  ;;  %v1980_v26 = vadd.f32 %v1852_v22, %v1701_v5  ;;  %v2260_v49 = vmul.f32 %v8822_v28, %v2111_v27  ;;  %v2386_v34 = vadd.f32 %v2258_v25, %v1979_v4  ;;  %v2116_v27 = vld [vmem:[#allocation3 + $0x150] sm:$0xff]  ;;  %v1559_v63 = vld [vmem:[#allocation2 + $0x158] sm:$0xff] }
 0x1ef   : > { %v2535_v10 = vadd.f32 %v8846_v30, %v2385_v31  ;;  %v1703_v15 = vmul.f32 %v8832_v53, %v1554_v13  ;;  %v1854_v24 = vmul.f32 %v8839_v6, %v11012_v55  ;;  %v1981_v21 = vadd.f32 %v1853_v62, %v1702_v19  ;;  %v2117_v31 = vld [vmem:[#allocation3 + $0x158] sm:$0xff] }
 0x1f0   : > { %2662 = vst [vmem:[#allocation2 + $0x108] sm:$0xff] %v2534_v42  ;;  %v2387_v9 = vadd.f32 %v2259_v23, %v1980_v26  ;;  %v2261_v33 = vmul.f32 %v8843_v17, %v2112_v54  ;;  %v1704_v58 = vmul.f32 %v8851_v39, %v1555_v48  ;;  %v2536_v50 = vadd.f32 %v8861_v14, %v2386_v34  ;;  %v11016_v54 = vld [vmem:[#allocation88_spill] sm:$0xff]  ;;  %v1560_v42 = vld [vmem:[#allocation2 + $0x160] sm:$0xff]  ;;  %v11017_v55 = vld [vmem:[#allocation89_spill] sm:$0xff] }
 0x1f1   : > { %2663 = vst [vmem:[#allocation2 + $0x110] sm:$0xff] %v2535_v10  ;;  %v1982_v3 = vadd.f32 %v1854_v24, %v1703_v15  ;;  %v1855_v61 = vmul.f32 %v8854_v37, %v11013_v57  ;;  %v2262_v35 = vmul.f32 %v8858_v0, %v2113_v46  ;;  %v2388_v20 = vadd.f32 %v2260_v49, %v1981_v21  ;;  %v2118_v46 = vld [vmem:[#allocation3 + $0x160] sm:$0xff]  ;;  %v1561_v10 = vld [vmem:[#allocation2 + $0x168] sm:$0xff] }
 0x1f2   : > { %v2537_v60 = vadd.f32 %v8813_v12, %v2387_v9  ;;  %v1705_v59 = vmul.f32 %v8804_v36, %v1556_v41  ;;  %v1856_v11 = vmul.f32 %v8807_v7, %v11014_v2  ;;  %2664 = vst [vmem:[#allocation2 + $0x118] sm:$0xff] %v2536_v50  ;;  %v2263_v38 = vmul.f32 %v8810_v44, %v2114_v18  ;;  %v2119_v9 = vld [vmem:[#allocation3 + $0x168] sm:$0xff]  ;;  %v11018_v18 = vld [vmem:[#allocation90_spill] sm:$0xff]  ;;  %v1562_v50 = vld [vmem:[#allocation2 + $0x170] sm:$0xff] }
 0x1f3   : > { %v2389_v29 = vadd.f32 %v2261_v33, %v1982_v3  ;;  %v1983_v56 = vadd.f32 %v1855_v61, %v1704_v58  ;;  %v1706_v25 = vmul.f32 %v8816_v52, %v1557_v43  ;;  %v2538_v51 = vadd.f32 %v8825_v32, %v2388_v20  ;;  %v11019_v2 = vld [vmem:[#allocation91_spill] sm:$0xff] }
 0x1f4   : > { %2665 = vst [vmem:[#allocation2 + $0x120] sm:$0xff] %v2537_v60  ;;  %v1984_v5 = vadd.f32 %v1856_v11, %v1705_v59  ;;  %v1857_v22 = vmul.f32 %v8819_v1, %v11015_v8  ;;  %v2264_v13 = vmul.f32 %v8822_v28, %v2115_v45  ;;  %v1707_v19 = vmul.f32 %v8832_v53, %v1558_v40  ;;  %v2120_v45 = vld [vmem:[#allocation3 + $0x170] sm:$0xff]  ;;  %v1563_v60 = vld [vmem:[#allocation2 + $0x178] sm:$0xff] }
 0x1f5   : > { %v2539_v4 = vadd.f32 %v8846_v30, %v2389_v29  ;;  %v2390_v23 = vadd.f32 %v2262_v35, %v1983_v56  ;;  %v1858_v48 = vmul.f32 %v8839_v6, %v11016_v54  ;;  %2666 = vst [vmem:[#allocation2 + $0x128] sm:$0xff] %v2538_v51  ;;  %v2265_v62 = vmul.f32 %v8843_v17, %v2116_v27  ;;  %v2121_v29 = vld [vmem:[#allocation3 + $0x178] sm:$0xff]  ;;  %v11020_v27 = vld [vmem:[#allocation92_spill] sm:$0xff]  ;;  %v1564_v51 = vld [vmem:[#allocation2 + $0x180] sm:$0xff] }
 0x1f6   : > { %v2391_v26 = vadd.f32 %v2263_v38, %v1984_v5  ;;  %v1985_v16 = vadd.f32 %v1857_v22, %v1706_v25  ;;  %v1708_v49 = vmul.f32 %v8851_v39, %v1559_v63  ;;  %v1859_v24 = vmul.f32 %v8854_v37, %v11017_v55  ;;  %v11021_v54 = vld [vmem:[#allocation93_spill] sm:$0xff] }
 0x1f7   : > { %2667 = vst [vmem:[#allocation2 + $0x130] sm:$0xff] %v2539_v4  ;;  %v2540_v34 = vadd.f32 %v8861_v14, %v2390_v23  ;;  %v1986_v15 = vadd.f32 %v1858_v48, %v1707_v19  ;;  %v2266_v41 = vmul.f32 %v8858_v0, %v2117_v31  ;;  %v1709_v58 = vmul.f32 %v8804_v36, %v1560_v42  ;;  %v2122_v31 = vld [vmem:[#allocation3 + $0x180] sm:$0xff]  ;;  %v1565_v4 = vld [vmem:[#allocation2 + $0x188] sm:$0xff] }
 0x1f8   : > { %v2541_v21 = vadd.f32 %v8813_v12, %v2391_v26  ;;  %v2392_v33 = vadd.f32 %v2264_v13, %v1985_v16  ;;  %v1860_v43 = vmul.f32 %v8807_v7, %v11018_v18  ;;  %v1987_v57 = vadd.f32 %v1859_v24, %v1708_v49  ;;  %v2123_v26 = vld [vmem:[#allocation3 + $0x188] sm:$0xff] }
 0x1f9   : > { %2668 = vst [vmem:[#allocation2 + $0x138] sm:$0xff] %v2540_v34  ;;  %v2393_v3 = vadd.f32 %v2265_v62, %v1986_v15  ;;  %v2267_v61 = vmul.f32 %v8810_v44, %v2118_v46  ;;  %v1710_v35 = vmul.f32 %v8816_v52, %v1561_v10  ;;  %v1861_v11 = vmul.f32 %v8819_v1, %v11019_v2  ;;  %v11022_v46 = vld [vmem:[#allocation98_spill] sm:$0xff]  ;;  %v1566_v34 = vld [vmem:[#allocation2 + $0x190] sm:$0xff]  ;;  %v11023_v18 = vld [vmem:[#allocation99_spill] sm:$0xff] }
 0x1fa   : > { %2669 = vst [vmem:[#allocation2 + $0x140] sm:$0xff] %v2541_v21  ;;  %v2542_v20 = vadd.f32 %v8825_v32, %v2392_v33  ;;  %v1988_v59 = vadd.f32 %v1860_v43, %v1709_v58  ;;  %v2268_v40 = vmul.f32 %v8822_v28, %v2119_v9  ;;  %v2394_v38 = vadd.f32 %v2266_v41, %v1987_v57  ;;  %v2124_v9 = vld [vmem:[#allocation3 + $0x190] sm:$0xff]  ;;  %v1567_v21 = vld [vmem:[#allocation2 + $0x198] sm:$0xff] }
 0x1fb   : > { %v2543_v56 = vadd.f32 %v8846_v30, %v2393_v3  ;;  %v1711_v25 = vmul.f32 %v8832_v53, %v1562_v50  ;;  %v1862_v63 = vmul.f32 %v8839_v6, %v11020_v27  ;;  %v1989_v8 = vadd.f32 %v1861_v11, %v1710_v35  ;;  %v2125_v3 = vld [vmem:[#allocation3 + $0x198] sm:$0xff] }
 0x1fc   : > { %2670 = vst [vmem:[#allocation2 + $0x148] sm:$0xff] %v2542_v20  ;;  %v2395_v5 = vadd.f32 %v2267_v61, %v1988_v59  ;;  %v2269_v22 = vmul.f32 %v8843_v17, %v2120_v45  ;;  %v1712_v13 = vmul.f32 %v8851_v39, %v1563_v60  ;;  %v2544_v23 = vadd.f32 %v8861_v14, %v2394_v38  ;;  %v11024_v45 = vld [vmem:[#allocation100_spill] sm:$0xff]  ;;  %v1568_v20 = vld [vmem:[#allocation2 + $0x1a0] sm:$0xff]  ;;  %v11025_v27 = vld [vmem:[#allocation101_spill] sm:$0xff] }
 0x1fd   : > { %2671 = vst [vmem:[#allocation2 + $0x150] sm:$0xff] %v2543_v56  ;;  %v1990_v19 = vadd.f32 %v1862_v63, %v1711_v25  ;;  %v1863_v48 = vmul.f32 %v8854_v37, %v11021_v54  ;;  %v2270_v42 = vmul.f32 %v8858_v0, %v2121_v29  ;;  %v2396_v62 = vadd.f32 %v2268_v40, %v1989_v8  ;;  %v2126_v29 = vld [vmem:[#allocation3 + $0x1a0] sm:$0xff]  ;;  %v1569_v56 = vld [vmem:[#allocation2 + $0x1a8] sm:$0xff] }
 0x1fe   : > { %v2545_v16 = vadd.f32 %v8813_v12, %v2395_v5  ;;  %v1713_v49 = vmul.f32 %v8804_v36, %v1564_v51  ;;  %v1864_v10 = vmul.f32 %v8807_v7, %v11022_v46  ;;  %2672 = vst [vmem:[#allocation2 + $0x158] sm:$0xff] %v2544_v23  ;;  %v2271_v24 = vmul.f32 %v8810_v44, %v2122_v31  ;;  %v2127_v5 = vld [vmem:[#allocation3 + $0x1a8] sm:$0xff]  ;;  %v11026_v31 = vld [vmem:[#allocation102_spill] sm:$0xff]  ;;  %v1570_v23 = vld [vmem:[#allocation2 + $0x1b0] sm:$0xff] }
 0x1ff   : > { %v2397_v15 = vadd.f32 %v2269_v22, %v1990_v19  ;;  %v1991_v55 = vadd.f32 %v1863_v48, %v1712_v13  ;;  %v1714_v41 = vmul.f32 %v8816_v52, %v1565_v4  ;;  %v2546_v33 = vadd.f32 %v8825_v32, %v2396_v62  ;;  %v11027_v46 = vld [vmem:[#allocation103_spill] sm:$0xff] }
 0x200   : > { %2673 = vst [vmem:[#allocation2 + $0x160] sm:$0xff] %v2545_v16  ;;  %v1992_v58 = vadd.f32 %v1864_v10, %v1713_v49  ;;  %v1865_v43 = vmul.f32 %v8819_v1, %v11023_v18  ;;  %v2272_v50 = vmul.f32 %v8822_v28, %v2123_v26  ;;  %v1715_v35 = vmul.f32 %v8832_v53, %v1566_v34  ;;  %v2128_v26 = vld [vmem:[#allocation3 + $0x1b0] sm:$0xff]  ;;  %v1571_v16 = vld [vmem:[#allocation2 + $0x1b8] sm:$0xff] }
 0x201   : > { %v2547_v57 = vadd.f32 %v8846_v30, %v2397_v15  ;;  %v2398_v61 = vadd.f32 %v2270_v42, %v1991_v55  ;;  %v1866_v60 = vmul.f32 %v8839_v6, %v11024_v45  ;;  %2674 = vst [vmem:[#allocation2 + $0x168] sm:$0xff] %v2546_v33  ;;  %v2273_v11 = vmul.f32 %v8843_v17, %v2124_v9  ;;  %v2129_v15 = vld [vmem:[#allocation3 + $0x1b8] sm:$0xff]  ;;  %v11028_v9 = vld [vmem:[#allocation104_spill] sm:$0xff]  ;;  %v1572_v33 = vld [vmem:[#allocation2 + $0x1c0] sm:$0xff] }
 0x202   : > { %v2399_v59 = vadd.f32 %v2271_v24, %v1992_v58  ;;  %v1993_v2 = vadd.f32 %v1865_v43, %v1714_v41  ;;  %v1716_v40 = vmul.f32 %v8851_v39, %v1567_v21  ;;  %v1867_v63 = vmul.f32 %v8854_v37, %v11025_v27  ;;  %v11029_v45 = vld [vmem:[#allocation105_spill] sm:$0xff] }
 0x203   : > { %2675 = vst [vmem:[#allocation2 + $0x170] sm:$0xff] %v2547_v57  ;;  %v2548_v38 = vadd.f32 %v8861_v14, %v2398_v61  ;;  %v1994_v25 = vadd.f32 %v1866_v60, %v1715_v35  ;;  %v2274_v51 = vmul.f32 %v8858_v0, %v2125_v3  ;;  %v1717_v13 = vmul.f32 %v8804_v36, %v1568_v20  ;;  %v2130_v3 = vld [vmem:[#allocation3 + $0x1c0] sm:$0xff]  ;;  %v1573_v57 = vld [vmem:[#allocation2 + $0x1c8] sm:$0xff] }
 0x204   : > { %v2549_v8 = vadd.f32 %v8813_v12, %v2399_v59  ;;  %v2400_v22 = vadd.f32 %v2272_v50, %v1993_v2  ;;  %v1868_v4 = vmul.f32 %v8807_v7, %v11026_v31  ;;  %v1995_v54 = vadd.f32 %v1867_v63, %v1716_v40  ;;  %v2131_v59 = vld [vmem:[#allocation3 + $0x1c8] sm:$0xff] }
 0x205   : > { %2676 = vst [vmem:[#allocation2 + $0x178] sm:$0xff] %v2548_v38  ;;  %v2401_v19 = vadd.f32 %v2273_v11, %v1994_v25  ;;  %v2275_v48 = vmul.f32 %v8810_v44, %v2126_v29  ;;  %v1718_v42 = vmul.f32 %v8816_v52, %v1569_v56  ;;  %v1869_v10 = vmul.f32 %v8819_v1, %v11027_v46  ;;  %v11030_v29 = vld [vmem:[#allocation110_spill] sm:$0xff]  ;;  %v1574_v38 = vld [vmem:[#allocation2 + $0x1d0] sm:$0xff]  ;;  %v11031_v31 = vld [vmem:[#allocation111_spill] sm:$0xff] }
 0x206   : > { %2677 = vst [vmem:[#allocation2 + $0x180] sm:$0xff] %v2549_v8  ;;  %v2550_v62 = vadd.f32 %v8825_v32, %v2400_v22  ;;  %v1996_v49 = vadd.f32 %v1868_v4, %v1717_v13  ;;  %v2276_v34 = vmul.f32 %v8822_v28, %v2127_v5  ;;  %v2402_v24 = vadd.f32 %v2274_v51, %v1995_v54  ;;  %v2132_v5 = vld [vmem:[#allocation3 + $0x1d0] sm:$0xff]  ;;  %v1575_v8 = vld [vmem:[#allocation2 + $0x1d8] sm:$0xff] }
 0x207   : > { %v2551_v55 = vadd.f32 %v8846_v30, %v2401_v19  ;;  %v1719_v41 = vmul.f32 %v8832_v53, %v1570_v23  ;;  %v1870_v21 = vmul.f32 %v8839_v6, %v11028_v9  ;;  %v1997_v18 = vadd.f32 %v1869_v10, %v1718_v42  ;;  %v2133_v19 = vld [vmem:[#allocation3 + $0x1d8] sm:$0xff] }
 0x208   : > { %2678 = vst [vmem:[#allocation2 + $0x188] sm:$0xff] %v2550_v62  ;;  %v2403_v58 = vadd.f32 %v2275_v48, %v1996_v49  ;;  %v2277_v43 = vmul.f32 %v8843_v17, %v2128_v26  ;;  %v1720_v50 = vmul.f32 %v8851_v39, %v1571_v16  ;;  %v2552_v61 = vadd.f32 %v8861_v14, %v2402_v24  ;;  %v11032_v26 = vld [vmem:[#allocation112_spill] sm:$0xff]  ;;  %v1576_v62 = vld [vmem:[#allocation2 + $0x1e0] sm:$0xff]  ;;  %v11033_v9 = vld [vmem:[#allocation113_spill] sm:$0xff] }
 0x209   : > { %2679 = vst [vmem:[#allocation2 + $0x190] sm:$0xff] %v2551_v55  ;;  %v1998_v35 = vadd.f32 %v1870_v21, %v1719_v41  ;;  %v1871_v60 = vmul.f32 %v8854_v37, %v11029_v45  ;;  %v2278_v20 = vmul.f32 %v8858_v0, %v2129_v15  ;;  %v2404_v11 = vadd.f32 %v2276_v34, %v1997_v18  ;;  %v2134_v15 = vld [vmem:[#allocation3 + $0x1e0] sm:$0xff]  ;;  %v1577_v55 = vld [vmem:[#allocation2 + $0x1e8] sm:$0xff] }
 0x20a   : > { %v2553_v2 = vadd.f32 %v8813_v12, %v2403_v58  ;;  %v1721_v40 = vmul.f32 %v8804_v36, %v1572_v33  ;;  %v1872_v56 = vmul.f32 %v8807_v7, %v11030_v29  ;;  %2680 = vst [vmem:[#allocation2 + $0x198] sm:$0xff] %v2552_v61  ;;  %v2279_v63 = vmul.f32 %v8810_v44, %v2130_v3  ;;  %v2135_v58 = vld [vmem:[#allocation3 + $0x1e8] sm:$0xff]  ;;  %v11034_v3 = vld [vmem:[#allocation114_spill] sm:$0xff]  ;;  %v1578_v61 = vld [vmem:[#allocation2 + $0x1f0] sm:$0xff] }
 0x20b   : > { %v2405_v25 = vadd.f32 %v2277_v43, %v1998_v35  ;;  %v1999_v27 = vadd.f32 %v1871_v60, %v1720_v50  ;;  %v1722_v51 = vmul.f32 %v8816_v52, %v1573_v57  ;;  %v2554_v22 = vadd.f32 %v8825_v32, %v2404_v11  ;;  %v11035_v29 = vld [vmem:[#allocation115_spill] sm:$0xff] }
 0x20c   : > { %2681 = vst [vmem:[#allocation2 + $0x1a0] sm:$0xff] %v2553_v2  ;;  %v2000_v13 = vadd.f32 %v1872_v56, %v1721_v40  ;;  %v1873_v4 = vmul.f32 %v8819_v1, %v11031_v31  ;;  %v2280_v23 = vmul.f32 %v8822_v28, %v2131_v59  ;;  %v1723_v42 = vmul.f32 %v8832_v53, %v1574_v38  ;;  %v2136_v59 = vld [vmem:[#allocation3 + $0x1f0] sm:$0xff]  ;;  %v1579_v2 = vld [vmem:[#allocation2 + $0x1f8] sm:$0xff] }
 0x20d   : > { %v2555_v54 = vadd.f32 %v8846_v30, %v2405_v25  ;;  %v2406_v48 = vadd.f32 %v2278_v20, %v1999_v27  ;;  %v1874_v16 = vmul.f32 %v8839_v6, %v11032_v26  ;;  %2682 = vst [vmem:[#allocation2 + $0x1a8] sm:$0xff] %v2554_v22  ;;  %v2281_v10 = vmul.f32 %v8843_v17, %v2132_v5  ;;  %v2137_v25 = vld [vmem:[#allocation3 + $0x1f8] sm:$0xff]  ;;  %v11036_v5 = vld [vmem:[#allocation116_spill] sm:$0xff]  ;;  %v1580_v22 = vld [vmem:[#allocation2 + $0x200] sm:$0xff] }
 0x20e   : > { %v2407_v49 = vadd.f32 %v2279_v63, %v2000_v13  ;;  %v2001_v46 = vadd.f32 %v1873_v4, %v1722_v51  ;;  %v1724_v34 = vmul.f32 %v8851_v39, %v1575_v8  ;;  %v1875_v21 = vmul.f32 %v8854_v37, %v11033_v9  ;;  %v11037_v26 = vld [vmem:[#allocation117_spill] sm:$0xff] }
 0x20f   : > { %2683 = vst [vmem:[#allocation2 + $0x1b0] sm:$0xff] %v2555_v54  ;;  %v2556_v24 = vadd.f32 %v8861_v14, %v2406_v48  ;;  %v2002_v41 = vadd.f32 %v1874_v16, %v1723_v42  ;;  %v2282_v33 = vmul.f32 %v8858_v0, %v2133_v19  ;;  %v1725_v50 = vmul.f32 %v8804_v36, %v1576_v62  ;;  %v2138_v19 = vld [vmem:[#allocation3 + $0x200] sm:$0xff]  ;;  %v1581_v54 = vld [vmem:[#allocation2 + $0x208] sm:$0xff] }
 0x210   : > { %v2557_v18 = vadd.f32 %v8813_v12, %v2407_v49  ;;  %v2408_v43 = vadd.f32 %v2280_v23, %v2001_v46  ;;  %v1876_v57 = vmul.f32 %v8807_v7, %v11034_v3  ;;  %v2003_v45 = vadd.f32 %v1875_v21, %v1724_v34  ;;  %v2139_v49 = vld [vmem:[#allocation3 + $0x208] sm:$0xff] }
 0x211   : > { %2684 = vst [vmem:[#allocation2 + $0x1b8] sm:$0xff] %v2556_v24  ;;  %v2409_v35 = vadd.f32 %v2281_v10, %v2002_v41  ;;  %v2283_v60 = vmul.f32 %v8810_v44, %v2134_v15  ;;  %v1726_v20 = vmul.f32 %v8816_v52, %v1577_v55  ;;  %v1877_v56 = vmul.f32 %v8819_v1, %v11035_v29  ;;  %v11038_v15 = vld [vmem:[#allocation122_spill] sm:$0xff]  ;;  %v1582_v24 = vld [vmem:[#allocation2 + $0x210] sm:$0xff]  ;;  %v11039_v3 = vld [vmem:[#allocation123_spill] sm:$0xff] }
 0x212   : > { %2685 = vst [vmem:[#allocation2 + $0x1c0] sm:$0xff] %v2557_v18  ;;  %v2558_v11 = vadd.f32 %v8825_v32, %v2408_v43  ;;  %v2004_v40 = vadd.f32 %v1876_v57, %v1725_v50  ;;  %v2284_v38 = vmul.f32 %v8822_v28, %v2135_v58  ;;  %v2410_v63 = vadd.f32 %v2282_v33, %v2003_v45  ;;  %v2140_v58 = vld [vmem:[#allocation3 + $0x210] sm:$0xff]  ;;  %v1583_v18 = vld [vmem:[#allocation2 + $0x218] sm:$0xff] }
 0x213   : > { %v2559_v27 = vadd.f32 %v8846_v30, %v2409_v35  ;;  %v1727_v51 = vmul.f32 %v8832_v53, %v1578_v61  ;;  %v1878_v8 = vmul.f32 %v8839_v6, %v11036_v5  ;;  %v2005_v31 = vadd.f32 %v1877_v56, %v1726_v20  ;;  %v2141_v35 = vld [vmem:[#allocation3 + $0x218] sm:$0xff] }
 0x214   : > { %2686 = vst [vmem:[#allocation2 + $0x1c8] sm:$0xff] %v2558_v11  ;;  %v2411_v13 = vadd.f32 %v2283_v60, %v2004_v40  ;;  %v2285_v4 = vmul.f32 %v8843_v17, %v2136_v59  ;;  %v1728_v23 = vmul.f32 %v8851_v39, %v1579_v2  ;;  %v2560_v48 = vadd.f32 %v8861_v14, %v2410_v63  ;;  %v11040_v59 = vld [vmem:[#allocation124_spill] sm:$0xff]  ;;  %v1584_v11 = vld [vmem:[#allocation2 + $0x220] sm:$0xff]  ;;  %v11041_v5 = vld [vmem:[#allocation125_spill] sm:$0xff] }
 0x215   : > { %2687 = vst [vmem:[#allocation2 + $0x1d0] sm:$0xff] %v2559_v27  ;;  %v2006_v42 = vadd.f32 %v1878_v8, %v1727_v51  ;;  %v1879_v16 = vmul.f32 %v8854_v37, %v11037_v26  ;;  %v2286_v62 = vmul.f32 %v8858_v0, %v2137_v25  ;;  %v2412_v10 = vadd.f32 %v2284_v38, %v2005_v31  ;;  %v2142_v25 = vld [vmem:[#allocation3 + $0x220] sm:$0xff]  ;;  %v1585_v27 = vld [vmem:[#allocation2 + $0x228] sm:$0xff] }
 0x216   : > { %v2561_v46 = vadd.f32 %v8813_v12, %v2411_v13  ;;  %v1729_v34 = vmul.f32 %v8804_v36, %v1580_v22  ;;  %v1880_v55 = vmul.f32 %v8807_v7, %v11038_v15  ;;  %2688 = vst [vmem:[#allocation2 + $0x1d8] sm:$0xff] %v2560_v48  ;;  %v2287_v21 = vmul.f32 %v8810_v44, %v2138_v19  ;;  %v2143_v13 = vld [vmem:[#allocation3 + $0x228] sm:$0xff]  ;;  %v11042_v19 = vld [vmem:[#allocation126_spill] sm:$0xff]  ;;  %v1586_v48 = vld [vmem:[#allocation2 + $0x230] sm:$0xff] }
 0x217   : > { %v2413_v41 = vadd.f32 %v2285_v4, %v2006_v42  ;;  %v2007_v9 = vadd.f32 %v1879_v16, %v1728_v23  ;;  %v1730_v33 = vmul.f32 %v8816_v52, %v1581_v54  ;;  %v2562_v43 = vadd.f32 %v8825_v32, %v2412_v10  ;;  %v11043_v15 = vld [vmem:[#allocation127_spill] sm:$0xff] }
 0x218   : > { %2689 = vst [vmem:[#allocation2 + $0x1e0] sm:$0xff] %v2561_v46  ;;  %v2008_v50 = vadd.f32 %v1880_v55, %v1729_v34  ;;  %v1881_v57 = vmul.f32 %v8819_v1, %v11039_v3  ;;  %v2288_v61 = vmul.f32 %v8822_v28, %v2139_v49  ;;  %v1731_v20 = vmul.f32 %v8832_v53, %v1582_v24  ;;  %v2144_v49 = vld [vmem:[#allocation3 + $0x230] sm:$0xff]  ;;  %v1587_v46 = vld [vmem:[#allocation2 + $0x238] sm:$0xff] }
 0x219   : > { %v2563_v45 = vadd.f32 %v8846_v30, %v2413_v41  ;;  %v2414_v60 = vadd.f32 %v2286_v62, %v2007_v9  ;;  %v1882_v2 = vmul.f32 %v8839_v6, %v11040_v59  ;;  %2690 = vst [vmem:[#allocation2 + $0x1e8] sm:$0xff] %v2562_v43  ;;  %v2289_v56 = vmul.f32 %v8843_v17, %v2140_v58  ;;  %v2145_v41 = vld [vmem:[#allocation3 + $0x238] sm:$0xff]  ;;  %v11044_v58 = vld [vmem:[#allocation128_spill] sm:$0xff]  ;;  %v1588_v43 = vld [vmem:[#allocation2 + $0x240] sm:$0xff] }
 0x21a   : > { %v2415_v40 = vadd.f32 %v2287_v21, %v2008_v50  ;;  %v2009_v29 = vadd.f32 %v1881_v57, %v1730_v33  ;;  %v1732_v38 = vmul.f32 %v8851_v39, %v1583_v18  ;;  %v1883_v8 = vmul.f32 %v8854_v37, %v11041_v5  ;;  %v11045_v59 = vld [vmem:[#allocation129_spill] sm:$0xff] }
 0x21b   : > { %2691 = vst [vmem:[#allocation2 + $0x1f0] sm:$0xff] %v2563_v45  ;;  %v2564_v63 = vadd.f32 %v8861_v14, %v2414_v60  ;;  %v2010_v51 = vadd.f32 %v1882_v2, %v1731_v20  ;;  %v2290_v22 = vmul.f32 %v8858_v0, %v2141_v35  ;;  %v1733_v23 = vmul.f32 %v8804_v36, %v1584_v11  ;;  %v2146_v35 = vld [vmem:[#allocation3 + $0x240] sm:$0xff]  ;;  %v1589_v45 = vld [vmem:[#allocation2 + $0x248] sm:$0xff] }
 0x21c   : > { %v2565_v31 = vadd.f32 %v8813_v12, %v2415_v40  ;;  %v2416_v4 = vadd.f32 %v2288_v61, %v2009_v29  ;;  %v1884_v54 = vmul.f32 %v8807_v7, %v11042_v19  ;;  %v2011_v26 = vadd.f32 %v1883_v8, %v1732_v38  ;;  %v2147_v40 = vld [vmem:[#allocation3 + $0x248] sm:$0xff] }
 0x21d   : > { %2692 = vst [vmem:[#allocation2 + $0x1f8] sm:$0xff] %v2564_v63  ;;  %v2417_v42 = vadd.f32 %v2289_v56, %v2010_v51  ;;  %v2291_v16 = vmul.f32 %v8810_v44, %v2142_v25  ;;  %v1734_v62 = vmul.f32 %v8816_v52, %v1585_v27  ;;  %v1885_v55 = vmul.f32 %v8819_v1, %v11043_v15  ;;  %v11046_v25 = vld [vmem:[#allocation134_spill] sm:$0xff]  ;;  %v1590_v63 = vld [vmem:[#allocation2 + $0x250] sm:$0xff]  ;;  %v11047_v19 = vld [vmem:[#allocation135_spill] sm:$0xff] }
 0x21e   : > { %2693 = vst [vmem:[#allocation2 + $0x200] sm:$0xff] %v2565_v31  ;;  %v2566_v10 = vadd.f32 %v8825_v32, %v2416_v4  ;;  %v2012_v34 = vadd.f32 %v1884_v54, %v1733_v23  ;;  %v2292_v24 = vmul.f32 %v8822_v28, %v2143_v13  ;;  %v2418_v21 = vadd.f32 %v2290_v22, %v2011_v26  ;;  %v2148_v13 = vld [vmem:[#allocation3 + $0x250] sm:$0xff]  ;;  %v1591_v31 = vld [vmem:[#allocation2 + $0x258] sm:$0xff] }
 0x21f   : > { %v2567_v9 = vadd.f32 %v8846_v30, %v2417_v42  ;;  %v1735_v33 = vmul.f32 %v8832_v53, %v1586_v48  ;;  %v1886_v18 = vmul.f32 %v8839_v6, %v11044_v58  ;;  %v2013_v3 = vadd.f32 %v1885_v55, %v1734_v62  ;;  %v2149_v42 = vld [vmem:[#allocation3 + $0x258] sm:$0xff] }
 0x220   : > { %2694 = vst [vmem:[#allocation2 + $0x208] sm:$0xff] %v2566_v10  ;;  %v2419_v50 = vadd.f32 %v2291_v16, %v2012_v34  ;;  %v2293_v57 = vmul.f32 %v8843_v17, %v2144_v49  ;;  %v1736_v61 = vmul.f32 %v8851_v39, %v1587_v46  ;;  %v2568_v60 = vadd.f32 %v8861_v14, %v2418_v21  ;;  %v11048_v49 = vld [vmem:[#allocation136_spill] sm:$0xff]  ;;  %v1592_v10 = vld [vmem:[#allocation2 + $0x260] sm:$0xff]  ;;  %v11049_v58 = vld [vmem:[#allocation137_spill] sm:$0xff] }
 0x221   : > { %2695 = vst [vmem:[#allocation2 + $0x210] sm:$0xff] %v2567_v9  ;;  %v2014_v20 = vadd.f32 %v1886_v18, %v1735_v33  ;;  %v1887_v2 = vmul.f32 %v8854_v37, %v11045_v59  ;;  %v2294_v11 = vmul.f32 %v8858_v0, %v2145_v41  ;;  %v2420_v56 = vadd.f32 %v2292_v24, %v2013_v3  ;;  %v2150_v41 = vld [vmem:[#allocation3 + $0x260] sm:$0xff]  ;;  %v1593_v9 = vld [vmem:[#allocation2 + $0x268] sm:$0xff] }
 0x222   : > { %v2569_v29 = vadd.f32 %v8813_v12, %v2419_v50  ;;  %v1737_v38 = vmul.f32 %v8804_v36, %v1588_v43  ;;  %v1888_v27 = vmul.f32 %v8807_v7, %v11046_v25  ;;  %2696 = vst [vmem:[#allocation2 + $0x218] sm:$0xff] %v2568_v60  ;;  %v2295_v8 = vmul.f32 %v8810_v44, %v2146_v35  ;;  %v2151_v50 = vld [vmem:[#allocation3 + $0x268] sm:$0xff]  ;;  %v11050_v35 = vld [vmem:[#allocation138_spill] sm:$0xff]  ;;  %v1594_v60 = vld [vmem:[#allocation2 + $0x270] sm:$0xff] }
 0x223   : > { %v2421_v51 = vadd.f32 %v2293_v57, %v2014_v20  ;;  %v2015_v5 = vadd.f32 %v1887_v2, %v1736_v61  ;;  %v1738_v22 = vmul.f32 %v8816_v52, %v1589_v45  ;;  %v2570_v4 = vadd.f32 %v8825_v32, %v2420_v56  ;;  %v11051_v25 = vld [vmem:[#allocation139_spill] sm:$0xff] }
 0x224   : > { %2697 = vst [vmem:[#allocation2 + $0x220] sm:$0xff] %v2569_v29  ;;  %v2016_v23 = vadd.f32 %v1888_v27, %v1737_v38  ;;  %v1889_v54 = vmul.f32 %v8819_v1, %v11047_v19  ;;  %v2296_v48 = vmul.f32 %v8822_v28, %v2147_v40  ;;  %v1739_v62 = vmul.f32 %v8832_v53, %v1590_v63  ;;  %v2152_v40 = vld [vmem:[#allocation3 + $0x270] sm:$0xff]  ;;  %v1595_v29 = vld [vmem:[#allocation2 + $0x278] sm:$0xff] }
 0x225   : > { %v2571_v26 = vadd.f32 %v8846_v30, %v2421_v51  ;;  %v2422_v16 = vadd.f32 %v2294_v11, %v2015_v5  ;;  %v1890_v46 = vmul.f32 %v8839_v6, %v11048_v49  ;;  %2698 = vst [vmem:[#allocation2 + $0x228] sm:$0xff] %v2570_v4  ;;  %v2297_v55 = vmul.f32 %v8843_v17, %v2148_v13  ;;  %v2153_v51 = vld [vmem:[#allocation3 + $0x278] sm:$0xff]  ;;  %v11052_v13 = vld [vmem:[#allocation140_spill] sm:$0xff]  ;;  %v1596_v4 = vld [vmem:[#allocation2 + $0x280] sm:$0xff] }
 0x226   : > { %v2423_v34 = vadd.f32 %v2295_v8, %v2016_v23  ;;  %v2017_v15 = vadd.f32 %v1889_v54, %v1738_v22  ;;  %v1740_v24 = vmul.f32 %v8851_v39, %v1591_v31  ;;  %v1891_v18 = vmul.f32 %v8854_v37, %v11049_v58  ;;  %v11053_v49 = vld [vmem:[#allocation141_spill] sm:$0xff] }
 0x227   : > { %2699 = vst [vmem:[#allocation2 + $0x230] sm:$0xff] %v2571_v26  ;;  %v2572_v21 = vadd.f32 %v8861_v14, %v2422_v16  ;;  %v2018_v33 = vadd.f32 %v1890_v46, %v1739_v62  ;;  %v2298_v43 = vmul.f32 %v8858_v0, %v2149_v42  ;;  %v1741_v61 = vmul.f32 %v8804_v36, %v1592_v10  ;;  %v2154_v42 = vld [vmem:[#allocation3 + $0x280] sm:$0xff]  ;;  %v1597_v26 = vld [vmem:[#allocation2 + $0x288] sm:$0xff] }
 0x228   : > { %v2573_v3 = vadd.f32 %v8813_v12, %v2423_v34  ;;  %v2424_v57 = vadd.f32 %v2296_v48, %v2017_v15  ;;  %v1892_v45 = vmul.f32 %v8807_v7, %v11050_v35  ;;  %v2019_v59 = vadd.f32 %v1891_v18, %v1740_v24  ;;  %v2155_v34 = vld [vmem:[#allocation3 + $0x288] sm:$0xff] }
 0x229   : > { %2700 = vst [vmem:[#allocation2 + $0x238] sm:$0xff] %v2572_v21  ;;  %v2425_v20 = vadd.f32 %v2297_v55, %v2018_v33  ;;  %v2299_v2 = vmul.f32 %v8810_v44, %v2150_v41  ;;  %v1742_v11 = vmul.f32 %v8816_v52, %v1593_v9  ;;  %v1893_v27 = vmul.f32 %v8819_v1, %v11051_v25  ;;  %v11054_v41 = vld [vmem:[#allocation146_spill] sm:$0xff]  ;;  %v1598_v21 = vld [vmem:[#allocation2 + $0x290] sm:$0xff]  ;;  %v11055_v35 = vld [vmem:[#allocation147_spill] sm:$0xff] }
 0x22a   : > { %2701 = vst [vmem:[#allocation2 + $0x240] sm:$0xff] %v2573_v3  ;;  %v2574_v56 = vadd.f32 %v8825_v32, %v2424_v57  ;;  %v2020_v38 = vadd.f32 %v1892_v45, %v1741_v61  ;;  %v2300_v63 = vmul.f32 %v8822_v28, %v2151_v50  ;;  %v2426_v8 = vadd.f32 %v2298_v43, %v2019_v59  ;;  %v2156_v50 = vld [vmem:[#allocation3 + $0x290] sm:$0xff]  ;;  %v1599_v3 = vld [vmem:[#allocation2 + $0x298] sm:$0xff] }
 0x22b   : > { %v2575_v5 = vadd.f32 %v8846_v30, %v2425_v20  ;;  %v1743_v22 = vmul.f32 %v8832_v53, %v1594_v60  ;;  %v1894_v31 = vmul.f32 %v8839_v6, %v11052_v13  ;;  %v2021_v19 = vadd.f32 %v1893_v27, %v1742_v11  ;;  %v2157_v20 = vld [vmem:[#allocation3 + $0x298] sm:$0xff] }
 0x22c   : > { %2702 = vst [vmem:[#allocation2 + $0x248] sm:$0xff] %v2574_v56  ;;  %v2427_v23 = vadd.f32 %v2299_v2, %v2020_v38  ;;  %v2301_v54 = vmul.f32 %v8843_v17, %v2152_v40  ;;  %v1744_v48 = vmul.f32 %v8851_v39, %v1595_v29  ;;  %v2576_v16 = vadd.f32 %v8861_v14, %v2426_v8  ;;  %v11056_v40 = vld [vmem:[#allocation148_spill] sm:$0xff]  ;;  %v1600_v56 = vld [vmem:[#allocation2 + $0x2a0] sm:$0xff]  ;;  %v11057_v13 = vld [vmem:[#allocation149_spill] sm:$0xff] }
 0x22d   : > { %2703 = vst [vmem:[#allocation2 + $0x250] sm:$0xff] %v2575_v5  ;;  %v2022_v62 = vadd.f32 %v1894_v31, %v1743_v22  ;;  %v1895_v46 = vmul.f32 %v8854_v37, %v11053_v49  ;;  %v2302_v10 = vmul.f32 %v8858_v0, %v2153_v51  ;;  %v2428_v55 = vadd.f32 %v2300_v63, %v2021_v19  ;;  %v2158_v51 = vld [vmem:[#allocation3 + $0x2a0] sm:$0xff]  ;;  %v1601_v5 = vld [vmem:[#allocation2 + $0x2a8] sm:$0xff] }
 0x22e   : > { %v2577_v15 = vadd.f32 %v8813_v12, %v2427_v23  ;;  %v1745_v24 = vmul.f32 %v8804_v36, %v1596_v4  ;;  %v1896_v9 = vmul.f32 %v8807_v7, %v11054_v41  ;;  %2704 = vst [vmem:[#allocation2 + $0x258] sm:$0xff] %v2576_v16  ;;  %v2303_v18 = vmul.f32 %v8810_v44, %v2154_v42  ;;  %v2159_v23 = vld [vmem:[#allocation3 + $0x2a8] sm:$0xff]  ;;  %v11058_v42 = vld [vmem:[#allocation150_spill] sm:$0xff]  ;;  %v1602_v16 = vld [vmem:[#allocation2 + $0x2b0] sm:$0xff] }
 0x22f   : > { %v2429_v33 = vadd.f32 %v2301_v54, %v2022_v62  ;;  %v2023_v58 = vadd.f32 %v1895_v46, %v1744_v48  ;;  %v1746_v43 = vmul.f32 %v8816_v52, %v1597_v26  ;;  %v2578_v57 = vadd.f32 %v8825_v32, %v2428_v55  ;;  %v11059_v41 = vld [vmem:[#allocation151_spill] sm:$0xff] }
 0x230   : > { %2705 = vst [vmem:[#allocation2 + $0x260] sm:$0xff] %v2577_v15  ;;  %v2024_v61 = vadd.f32 %v1896_v9, %v1745_v24  ;;  %v1897_v45 = vmul.f32 %v8819_v1, %v11055_v35  ;;  %v2304_v60 = vmul.f32 %v8822_v28, %v2155_v34  ;;  %v1747_v11 = vmul.f32 %v8832_v53, %v1598_v21  ;;  %v2160_v34 = vld [vmem:[#allocation3 + $0x2b0] sm:$0xff]  ;;  %v1603_v15 = vld [vmem:[#allocation2 + $0x2b8] sm:$0xff] }
 0x231   : > { %v2579_v59 = vadd.f32 %v8846_v30, %v2429_v33  ;;  %v2430_v2 = vadd.f32 %v2302_v10, %v2023_v58  ;;  %v1898_v29 = vmul.f32 %v8839_v6, %v11056_v40  ;;  %2706 = vst [vmem:[#allocation2 + $0x268] sm:$0xff] %v2578_v57  ;;  %v2305_v27 = vmul.f32 %v8843_v17, %v2156_v50  ;;  %v2161_v33 = vld [vmem:[#allocation3 + $0x2b8] sm:$0xff]  ;;  %v11060_v50 = vld [vmem:[#allocation152_spill] sm:$0xff]  ;;  %v1604_v57 = vld [vmem:[#allocation2 + $0x2c0] sm:$0xff] }
 0x232   : > { %v2431_v38 = vadd.f32 %v2303_v18, %v2024_v61  ;;  %v2025_v25 = vadd.f32 %v1897_v45, %v1746_v43  ;;  %v1748_v63 = vmul.f32 %v8851_v39, %v1599_v3  ;;  %v1899_v31 = vmul.f32 %v8854_v37, %v11057_v13  ;;  %v11061_v40 = vld [vmem:[#allocation153_spill] sm:$0xff] }
 0x233   : > { %2707 = vst [vmem:[#allocation2 + $0x270] sm:$0xff] %v2579_v59  ;;  %v2580_v8 = vadd.f32 %v8861_v14, %v2430_v2  ;;  %v2026_v22 = vadd.f32 %v1898_v29, %v1747_v11  ;;  %v2306_v4 = vmul.f32 %v8858_v0, %v2157_v20  ;;  %v1749_v48 = vmul.f32 %v8804_v36, %v1600_v56  ;;  %v2162_v20 = vld [vmem:[#allocation3 + $0x2c0] sm:$0xff]  ;;  %v1605_v59 = vld [vmem:[#allocation2 + $0x2c8] sm:$0xff] }
 0x234   : > { %v2581_v19 = vadd.f32 %v8813_v12, %v2431_v38  ;;  %v2432_v54 = vadd.f32 %v2304_v60, %v2025_v25  ;;  %v1900_v26 = vmul.f32 %v8807_v7, %v11058_v42  ;;  %v2027_v49 = vadd.f32 %v1899_v31, %v1748_v63  ;;  %v2163_v38 = vld [vmem:[#allocation3 + $0x2c8] sm:$0xff] }
 0x235   : > { %2708 = vst [vmem:[#allocation2 + $0x278] sm:$0xff] %v2580_v8  ;;  %v2433_v62 = vadd.f32 %v2305_v27, %v2026_v22  ;;  %v2307_v46 = vmul.f32 %v8810_v44, %v2158_v51  ;;  %v1750_v10 = vmul.f32 %v8816_v52, %v1601_v5  ;;  %v1901_v9 = vmul.f32 %v8819_v1, %v11059_v41  ;;  %v11062_v51 = vld [vmem:[#allocation158_spill] sm:$0xff]  ;;  %v1606_v8 = vld [vmem:[#allocation2 + $0x2d0] sm:$0xff]  ;;  %v11063_v42 = vld [vmem:[#allocation159_spill] sm:$0xff] }
 0x236   : > { %2709 = vst [vmem:[#allocation2 + $0x280] sm:$0xff] %v2581_v19  ;;  %v2582_v55 = vadd.f32 %v8825_v32, %v2432_v54  ;;  %v2028_v24 = vadd.f32 %v1900_v26, %v1749_v48  ;;  %v2308_v21 = vmul.f32 %v8822_v28, %v2159_v23  ;;  %v2434_v18 = vadd.f32 %v2306_v4, %v2027_v49  ;;  %v2164_v23 = vld [vmem:[#allocation3 + $0x2d0] sm:$0xff]  ;;  %v1607_v19 = vld [vmem:[#allocation2 + $0x2d8] sm:$0xff] }
 0x237   : > { %v2583_v58 = vadd.f32 %v8846_v30, %v2433_v62  ;;  %v1751_v43 = vmul.f32 %v8832_v53, %v1602_v16  ;;  %v1902_v3 = vmul.f32 %v8839_v6, %v11060_v50  ;;  %v2029_v35 = vadd.f32 %v1901_v9, %v1750_v10  ;;  %v2165_v62 = vld [vmem:[#allocation3 + $0x2d8] sm:$0xff] }
 0x238   : > { %2710 = vst [vmem:[#allocation2 + $0x288] sm:$0xff] %v2582_v55  ;;  %v2435_v61 = vadd.f32 %v2307_v46, %v2028_v24  ;;  %v2309_v45 = vmul.f32 %v8843_v17, %v2160_v34  ;;  %v1752_v60 = vmul.f32 %v8851_v39, %v1603_v15  ;;  %v2584_v2 = vadd.f32 %v8861_v14, %v2434_v18  ;;  %v11064_v34 = vld [vmem:[#allocation160_spill] sm:$0xff]  ;;  %v1608_v55 = vld [vmem:[#allocation2 + $0x2e0] sm:$0xff]  ;;  %v11065_v50 = vld [vmem:[#allocation161_spill] sm:$0xff] }
 0x239   : > { %2711 = vst [vmem:[#allocation2 + $0x290] sm:$0xff] %v2583_v58  ;;  %v2030_v11 = vadd.f32 %v1902_v3, %v1751_v43  ;;  %v1903_v29 = vmul.f32 %v8854_v37, %v11061_v40  ;;  %v2310_v56 = vmul.f32 %v8858_v0, %v2161_v33  ;;  %v2436_v27 = vadd.f32 %v2308_v21, %v2029_v35  ;;  %v2166_v33 = vld [vmem:[#allocation3 + $0x2e0] sm:$0xff]  ;;  %v1609_v58 = vld [vmem:[#allocation2 + $0x2e8] sm:$0xff] }
 0x23a   : > { %v2585_v25 = vadd.f32 %v8813_v12, %v2435_v61  ;;  %v1753_v63 = vmul.f32 %v8804_v36, %v1604_v57  ;;  %v1904_v5 = vmul.f32 %v8807_v7, %v11062_v51  ;;  %2712 = vst [vmem:[#allocation2 + $0x298] sm:$0xff] %v2584_v2  ;;  %v2311_v31 = vmul.f32 %v8810_v44, %v2162_v20  ;;  %v2167_v61 = vld [vmem:[#allocation3 + $0x2e8] sm:$0xff]  ;;  %v11066_v20 = vld [vmem:[#allocation162_spill] sm:$0xff]  ;;  %v1610_v2 = vld [vmem:[#allocation2 + $0x2f0] sm:$0xff] }
 0x23b   : > { %v2437_v22 = vadd.f32 %v2309_v45, %v2030_v11  ;;  %v2031_v13 = vadd.f32 %v1903_v29, %v1752_v60  ;;  %v1754_v4 = vmul.f32 %v8816_v52, %v1605_v59  ;;  %v2586_v54 = vadd.f32 %v8825_v32, %v2436_v27  ;;  %v11067_v51 = vld [vmem:[#allocation163_spill] sm:$0xff] }
 0x23c   : > { %2713 = vst [vmem:[#allocation2 + $0x2a0] sm:$0xff] %v2585_v25  ;;  %v2032_v48 = vadd.f32 %v1904_v5, %v1753_v63  ;;  %v1905_v26 = vmul.f32 %v8819_v1, %v11063_v42  ;;  %v2312_v16 = vmul.f32 %v8822_v28, %v2163_v38  ;;  %v1755_v10 = vmul.f32 %v8832_v53, %v1606_v8  ;;  %v2168_v38 = vld [vmem:[#allocation3 + $0x2f0] sm:$0xff]  ;;  %v1611_v25 = vld [vmem:[#allocation2 + $0x2f8] sm:$0xff] }
 0x23d   : > { %v2587_v49 = vadd.f32 %v8846_v30, %v2437_v22  ;;  %v2438_v46 = vadd.f32 %v2310_v56, %v2031_v13  ;;  %v1906_v15 = vmul.f32 %v8839_v6, %v11064_v34  ;;  %2714 = vst [vmem:[#allocation2 + $0x2a8] sm:$0xff] %v2586_v54  ;;  %v2313_v9 = vmul.f32 %v8843_v17, %v2164_v23  ;;  %v2169_v22 = vld [vmem:[#allocation3 + $0x2f8] sm:$0xff]  ;;  %v11068_v23 = vld [vmem:[#allocation164_spill] sm:$0xff]  ;;  %v1612_v54 = vld [vmem:[#allocation2 + $0x300] sm:$0xff] }
 0x23e   : > { %v2439_v24 = vadd.f32 %v2311_v31, %v2032_v48  ;;  %v2033_v41 = vadd.f32 %v1905_v26, %v1754_v4  ;;  %v1756_v21 = vmul.f32 %v8851_v39, %v1607_v19  ;;  %v1907_v3 = vmul.f32 %v8854_v37, %v11065_v50  ;;  %v11069_v34 = vld [vmem:[#allocation165_spill] sm:$0xff] }
 0x23f   : > { %2715 = vst [vmem:[#allocation2 + $0x2b0] sm:$0xff] %v2587_v49  ;;  %v2588_v18 = vadd.f32 %v8861_v14, %v2438_v46  ;;  %v2034_v43 = vadd.f32 %v1906_v15, %v1755_v10  ;;  %v2314_v57 = vmul.f32 %v8858_v0, %v2165_v62  ;;  %v1757_v60 = vmul.f32 %v8804_v36, %v1608_v55  ;;  %v2170_v62 = vld [vmem:[#allocation3 + $0x300] sm:$0xff]  ;;  %v1613_v49 = vld [vmem:[#allocation2 + $0x308] sm:$0xff] }
 0x240   : > { %v2589_v35 = vadd.f32 %v8813_v12, %v2439_v24  ;;  %v2440_v45 = vadd.f32 %v2312_v16, %v2033_v41  ;;  %v1908_v59 = vmul.f32 %v8807_v7, %v11066_v20  ;;  %v2035_v40 = vadd.f32 %v1907_v3, %v1756_v21  ;;  %v2171_v24 = vld [vmem:[#allocation3 + $0x308] sm:$0xff] }
 0x241   : > { %2716 = vst [vmem:[#allocation2 + $0x2b8] sm:$0xff] %v2588_v18  ;;  %v2441_v11 = vadd.f32 %v2313_v9, %v2034_v43  ;;  %v2315_v29 = vmul.f32 %v8810_v44, %v2166_v33  ;;  %v1758_v56 = vmul.f32 %v8816_v52, %v1609_v58  ;;  %v1909_v5 = vmul.f32 %v8819_v1, %v11067_v51  ;;  %v11070_v33 = vld [vmem:[#allocation170_spill] sm:$0xff]  ;;  %v1614_v18 = vld [vmem:[#allocation2 + $0x310] sm:$0xff]  ;;  %v11071_v20 = vld [vmem:[#allocation171_spill] sm:$0xff] }
 0x242   : > { %2717 = vst [vmem:[#allocation2 + $0x2c0] sm:$0xff] %v2589_v35  ;;  %v2590_v27 = vadd.f32 %v8825_v32, %v2440_v45  ;;  %v2036_v63 = vadd.f32 %v1908_v59, %v1757_v60  ;;  %v2316_v8 = vmul.f32 %v8822_v28, %v2167_v61  ;;  %v2442_v31 = vadd.f32 %v2314_v57, %v2035_v40  ;;  %v2172_v61 = vld [vmem:[#allocation3 + $0x310] sm:$0xff]  ;;  %v1615_v35 = vld [vmem:[#allocation2 + $0x318] sm:$0xff] }
 0x243   : > { %v2591_v13 = vadd.f32 %v8846_v30, %v2441_v11  ;;  %v1759_v4 = vmul.f32 %v8832_v53, %v1610_v2  ;;  %v1910_v19 = vmul.f32 %v8839_v6, %v11068_v23  ;;  %v2037_v42 = vadd.f32 %v1909_v5, %v1758_v56  ;;  %v2173_v11 = vld [vmem:[#allocation3 + $0x318] sm:$0xff] }
 0x244   : > { %2718 = vst [vmem:[#allocation2 + $0x2c8] sm:$0xff] %v2590_v27  ;;  %v2443_v48 = vadd.f32 %v2315_v29, %v2036_v63  ;;  %v2317_v26 = vmul.f32 %v8843_v17, %v2168_v38  ;;  %v1760_v16 = vmul.f32 %v8851_v39, %v1611_v25  ;;  %v2592_v46 = vadd.f32 %v8861_v14, %v2442_v31  ;;  %v11072_v38 = vld [vmem:[#allocation172_spill] sm:$0xff]  ;;  %v1616_v27 = vld [vmem:[#allocation2 + $0x320] sm:$0xff]  ;;  %v11073_v23 = vld [vmem:[#allocation173_spill] sm:$0xff] }
 0x245   : > { %2719 = vst [vmem:[#allocation2 + $0x2d0] sm:$0xff] %v2591_v13  ;;  %v2038_v10 = vadd.f32 %v1910_v19, %v1759_v4  ;;  %v1911_v15 = vmul.f32 %v8854_v37, %v11069_v34  ;;  %v2318_v55 = vmul.f32 %v8858_v0, %v2169_v22  ;;  %v2444_v9 = vadd.f32 %v2316_v8, %v2037_v42  ;;  %v2174_v22 = vld [vmem:[#allocation3 + $0x320] sm:$0xff]  ;;  %v1617_v13 = vld [vmem:[#allocation2 + $0x328] sm:$0xff] }
 0x246   : > { %v2593_v41 = vadd.f32 %v8813_v12, %v2443_v48  ;;  %v1761_v21 = vmul.f32 %v8804_v36, %v1612_v54  ;;  %v1912_v58 = vmul.f32 %v8807_v7, %v11070_v33  ;;  %2720 = vst [vmem:[#allocation2 + $0x2d8] sm:$0xff] %v2592_v46  ;;  %v2319_v3 = vmul.f32 %v8810_v44, %v2170_v62  ;;  %v2175_v48 = vld [vmem:[#allocation3 + $0x328] sm:$0xff]  ;;  %v11074_v62 = vld [vmem:[#allocation174_spill] sm:$0xff]  ;;  %v1618_v46 = vld [vmem:[#allocation2 + $0x330] sm:$0xff] }
 0x247   : > { %v2445_v43 = vadd.f32 %v2317_v26, %v2038_v10  ;;  %v2039_v50 = vadd.f32 %v1911_v15, %v1760_v16  ;;  %v1762_v57 = vmul.f32 %v8816_v52, %v1613_v49  ;;  %v2594_v45 = vadd.f32 %v8825_v32, %v2444_v9  ;;  %v11075_v33 = vld [vmem:[#allocation175_spill] sm:$0xff] }
 0x248   : > { %2721 = vst [vmem:[#allocation2 + $0x2e0] sm:$0xff] %v2593_v41  ;;  %v2040_v60 = vadd.f32 %v1912_v58, %v1761_v21  ;;  %v1913_v59 = vmul.f32 %v8819_v1, %v11071_v20  ;;  %v2320_v2 = vmul.f32 %v8822_v28, %v2171_v24  ;;  %v1763_v56 = vmul.f32 %v8832_v53, %v1614_v18  ;;  %v2176_v24 = vld [vmem:[#allocation3 + $0x330] sm:$0xff]  ;;  %v1619_v41 = vld [vmem:[#allocation2 + $0x338] sm:$0xff] }
 0x249   : > { %v2595_v40 = vadd.f32 %v8846_v30, %v2445_v43  ;;  %v2446_v29 = vadd.f32 %v2318_v55, %v2039_v50  ;;  %v1914_v25 = vmul.f32 %v8839_v6, %v11072_v38  ;;  %2722 = vst [vmem:[#allocation2 + $0x2e8] sm:$0xff] %v2594_v45  ;;  %v2321_v5 = vmul.f32 %v8843_v17, %v2172_v61  ;;  %v2177_v43 = vld [vmem:[#allocation3 + $0x338] sm:$0xff]  ;;  %v11076_v61 = vld [vmem:[#allocation176_spill] sm:$0xff]  ;;  %v1620_v45 = vld [vmem:[#allocation2 + $0x340] sm:$0xff] }
 0x24a   : > { %v2447_v63 = vadd.f32 %v2319_v3, %v2040_v60  ;;  %v2041_v51 = vadd.f32 %v1913_v59, %v1762_v57  ;;  %v1764_v8 = vmul.f32 %v8851_v39, %v1615_v35  ;;  %v1915_v19 = vmul.f32 %v8854_v37, %v11073_v23  ;;  %v11077_v38 = vld [vmem:[#allocation177_spill] sm:$0xff] }
 0x24b   : > { %2723 = vst [vmem:[#allocation2 + $0x2f0] sm:$0xff] %v2595_v40  ;;  %v2596_v31 = vadd.f32 %v8861_v14, %v2446_v29  ;;  %v2042_v4 = vadd.f32 %v1914_v25, %v1763_v56  ;;  %v2322_v54 = vmul.f32 %v8858_v0, %v2173_v11  ;;  %v1765_v16 = vmul.f32 %v8804_v36, %v1616_v27  ;;  %v2178_v11 = vld [vmem:[#allocation3 + $0x340] sm:$0xff]  ;;  %v1621_v40 = vld [vmem:[#allocation2 + $0x348] sm:$0xff] }
 0x24c   : > { %v2597_v42 = vadd.f32 %v8813_v12, %v2447_v63  ;;  %v2448_v26 = vadd.f32 %v2320_v2, %v2041_v51  ;;  %v1916_v49 = vmul.f32 %v8807_v7, %v11074_v62  ;;  %v2043_v34 = vadd.f32 %v1915_v19, %v1764_v8  ;;  %v2179_v63 = vld [vmem:[#allocation3 + $0x348] sm:$0xff] }
 0x24d   : > { %2724 = vst [vmem:[#allocation2 + $0x2f8] sm:$0xff] %v2596_v31  ;;  %v2449_v10 = vadd.f32 %v2321_v5, %v2042_v4  ;;  %v2323_v15 = vmul.f32 %v8810_v44, %v2174_v22  ;;  %v1766_v55 = vmul.f32 %v8816_v52, %v1617_v13  ;;  %v1917_v58 = vmul.f32 %v8819_v1, %v11075_v33  ;;  %v11078_v22 = vld [vmem:[#allocation182_spill] sm:$0xff]  ;;  %v1622_v31 = vld [vmem:[#allocation2 + $0x350] sm:$0xff]  ;;  %v11079_v62 = vld [vmem:[#allocation183_spill] sm:$0xff] }
 0x24e   : > { %2725 = vst [vmem:[#allocation2 + $0x300] sm:$0xff] %v2597_v42  ;;  %v2598_v9 = vadd.f32 %v8825_v32, %v2448_v26  ;;  %v2044_v21 = vadd.f32 %v1916_v49, %v1765_v16  ;;  %v2324_v18 = vmul.f32 %v8822_v28, %v2175_v48  ;;  %v2450_v3 = vadd.f32 %v2322_v54, %v2043_v34  ;;  %v2180_v48 = vld [vmem:[#allocation3 + $0x350] sm:$0xff]  ;;  %v1623_v42 = vld [vmem:[#allocation2 + $0x358] sm:$0xff] }
 0x24f   : > { %v2599_v50 = vadd.f32 %v8846_v30, %v2449_v10  ;;  %v1767_v57 = vmul.f32 %v8832_v53, %v1618_v46  ;;  %v1918_v35 = vmul.f32 %v8839_v6, %v11076_v61  ;;  %v2045_v20 = vadd.f32 %v1917_v58, %v1766_v55  ;;  %v2181_v10 = vld [vmem:[#allocation3 + $0x358] sm:$0xff] }
 0x250   : > { %2726 = vst [vmem:[#allocation2 + $0x308] sm:$0xff] %v2598_v9  ;;  %v2451_v60 = vadd.f32 %v2323_v15, %v2044_v21  ;;  %v2325_v59 = vmul.f32 %v8843_v17, %v2176_v24  ;;  %v1768_v2 = vmul.f32 %v8851_v39, %v1619_v41  ;;  %v2600_v29 = vadd.f32 %v8861_v14, %v2450_v3  ;;  %v11080_v24 = vld [vmem:[#allocation184_spill] sm:$0xff]  ;;  %v1624_v9 = vld [vmem:[#allocation2 + $0x360] sm:$0xff]  ;;  %v11081_v61 = vld [vmem:[#allocation185_spill] sm:$0xff] }
 0x251   : > { %2727 = vst [vmem:[#allocation2 + $0x310] sm:$0xff] %v2599_v50  ;;  %v2046_v56 = vadd.f32 %v1918_v35, %v1767_v57  ;;  %v1919_v25 = vmul.f32 %v8854_v37, %v11077_v38  ;;  %v2326_v27 = vmul.f32 %v8858_v0, %v2177_v43  ;;  %v2452_v5 = vadd.f32 %v2324_v18, %v2045_v20  ;;  %v2182_v43 = vld [vmem:[#allocation3 + $0x360] sm:$0xff]  ;;  %v1625_v50 = vld [vmem:[#allocation2 + $0x368] sm:$0xff] }
 0x252   : > { %v2601_v51 = vadd.f32 %v8813_v12, %v2451_v60  ;;  %v1769_v8 = vmul.f32 %v8804_v36, %v1620_v45  ;;  %v1920_v13 = vmul.f32 %v8807_v7, %v11078_v22  ;;  %2728 = vst [vmem:[#allocation2 + $0x318] sm:$0xff] %v2600_v29  ;;  %v2327_v19 = vmul.f32 %v8810_v44, %v2178_v11  ;;  %v2183_v60 = vld [vmem:[#allocation3 + $0x368] sm:$0xff]  ;;  %v11082_v11 = vld [vmem:[#allocation186_spill] sm:$0xff]  ;;  %v1626_v29 = vld [vmem:[#allocation2 + $0x370] sm:$0xff] }
 0x253   : > { %v2453_v4 = vadd.f32 %v2325_v59, %v2046_v56  ;;  %v2047_v23 = vadd.f32 %v1919_v25, %v1768_v2  ;;  %v1770_v54 = vmul.f32 %v8816_v52, %v1621_v40  ;;  %v2602_v26 = vadd.f32 %v8825_v32, %v2452_v5  ;;  %v11083_v22 = vld [vmem:[#allocation187_spill] sm:$0xff] }
 0x254   : > { %2729 = vst [vmem:[#allocation2 + $0x320] sm:$0xff] %v2601_v51  ;;  %v2048_v16 = vadd.f32 %v1920_v13, %v1769_v8  ;;  %v1921_v49 = vmul.f32 %v8819_v1, %v11079_v62  ;;  %v2328_v46 = vmul.f32 %v8822_v28, %v2179_v63  ;;  %v1771_v55 = vmul.f32 %v8832_v53, %v1622_v31  ;;  %v2184_v63 = vld [vmem:[#allocation3 + $0x370] sm:$0xff]  ;;  %v1627_v51 = vld [vmem:[#allocation2 + $0x378] sm:$0xff] }
 0x255   : > { %v2603_v34 = vadd.f32 %v8846_v30, %v2453_v4  ;;  %v2454_v15 = vadd.f32 %v2326_v27, %v2047_v23  ;;  %v1922_v41 = vmul.f32 %v8839_v6, %v11080_v24  ;;  %2730 = vst [vmem:[#allocation2 + $0x328] sm:$0xff] %v2602_v26  ;;  %v2329_v58 = vmul.f32 %v8843_v17, %v2180_v48  ;;  %v2185_v4 = vld [vmem:[#allocation3 + $0x378] sm:$0xff]  ;;  %v11084_v48 = vld [vmem:[#allocation188_spill] sm:$0xff]  ;;  %v1628_v26 = vld [vmem:[#allocation2 + $0x380] sm:$0xff] }
 0x256   : > { %v2455_v21 = vadd.f32 %v2327_v19, %v2048_v16  ;;  %v2049_v33 = vadd.f32 %v1921_v49, %v1770_v54  ;;  %v1772_v18 = vmul.f32 %v8851_v39, %v1623_v42  ;;  %v1923_v35 = vmul.f32 %v8854_v37, %v11081_v61  ;;  %v11085_v24 = vld [vmem:[#allocation189_spill] sm:$0xff] }
 0x257   : > { %2731 = vst [vmem:[#allocation2 + $0x330] sm:$0xff] %v2603_v34  ;;  %v2604_v3 = vadd.f32 %v8861_v14, %v2454_v15  ;;  %v2050_v57 = vadd.f32 %v1922_v41, %v1771_v55  ;;  %v2330_v45 = vmul.f32 %v8858_v0, %v2181_v10  ;;  %v1773_v2 = vmul.f32 %v8804_v36, %v1624_v9  ;;  %v2186_v10 = vld [vmem:[#allocation3 + $0x380] sm:$0xff]  ;;  %v1629_v34 = vld [vmem:[#allocation2 + $0x388] sm:$0xff] }
 0x258   : > { %v2605_v20 = vadd.f32 %v8813_v12, %v2455_v21  ;;  %v2456_v59 = vadd.f32 %v2328_v46, %v2049_v33  ;;  %v1924_v40 = vmul.f32 %v8807_v7, %v11082_v11  ;;  %v2051_v38 = vadd.f32 %v1923_v35, %v1772_v18  ;;  %v2187_v21 = vld [vmem:[#allocation3 + $0x388] sm:$0xff] }
 0x259   : > { %2732 = vst [vmem:[#allocation2 + $0x338] sm:$0xff] %v2604_v3  ;;  %v2457_v56 = vadd.f32 %v2329_v58, %v2050_v57  ;;  %v2331_v25 = vmul.f32 %v8810_v44, %v2182_v43  ;;  %v1774_v27 = vmul.f32 %v8816_v52, %v1625_v50  ;;  %v1925_v13 = vmul.f32 %v8819_v1, %v11083_v22  ;;  %v11086_v43 = vld [vmem:[#allocation194_spill] sm:$0xff]  ;;  %v1630_v3 = vld [vmem:[#allocation2 + $0x390] sm:$0xff]  ;;  %v11087_v11 = vld [vmem:[#allocation195_spill] sm:$0xff] }
 0x25a   : > { %2733 = vst [vmem:[#allocation2 + $0x340] sm:$0xff] %v2605_v20  ;;  %v2606_v5 = vadd.f32 %v8825_v32, %v2456_v59  ;;  %v2052_v8 = vadd.f32 %v1924_v40, %v1773_v2  ;;  %v2332_v31 = vmul.f32 %v8822_v28, %v2183_v60  ;;  %v2458_v19 = vadd.f32 %v2330_v45, %v2051_v38  ;;  %v2188_v60 = vld [vmem:[#allocation3 + $0x390] sm:$0xff]  ;;  %v1631_v20 = vld [vmem:[#allocation2 + $0x398] sm:$0xff] }
 0x25b   : > { %v2607_v23 = vadd.f32 %v8846_v30, %v2457_v56  ;;  %v1775_v54 = vmul.f32 %v8832_v53, %v1626_v29  ;;  %v1926_v42 = vmul.f32 %v8839_v6, %v11084_v48  ;;  %v2053_v62 = vadd.f32 %v1925_v13, %v1774_v27  ;;  %v2189_v56 = vld [vmem:[#allocation3 + $0x398] sm:$0xff] }
 0x25c   : > { %2734 = vst [vmem:[#allocation2 + $0x348] sm:$0xff] %v2606_v5  ;;  %v2459_v16 = vadd.f32 %v2331_v25, %v2052_v8  ;;  %v2333_v49 = vmul.f32 %v8843_v17, %v2184_v63  ;;  %v1776_v46 = vmul.f32 %v8851_v39, %v1627_v51  ;;  %v2608_v15 = vadd.f32 %v8861_v14, %v2458_v19  ;;  %v11088_v63 = vld [vmem:[#allocation196_spill] sm:$0xff]  ;;  %v1632_v5 = vld [vmem:[#allocation2 + $0x3a0] sm:$0xff]  ;;  %v11089_v48 = vld [vmem:[#allocation197_spill] sm:$0xff] }
 0x25d   : > { %2735 = vst [vmem:[#allocation2 + $0x350] sm:$0xff] %v2607_v23  ;;  %v2054_v55 = vadd.f32 %v1926_v42, %v1775_v54  ;;  %v1927_v41 = vmul.f32 %v8854_v37, %v11085_v24  ;;  %v2334_v9 = vmul.f32 %v8858_v0, %v2185_v4  ;;  %v2460_v58 = vadd.f32 %v2332_v31, %v2053_v62  ;;  %v2190_v4 = vld [vmem:[#allocation3 + $0x3a0] sm:$0xff]  ;;  %v1633_v23 = vld [vmem:[#allocation2 + $0x3a8] sm:$0xff] }
 0x25e   : > { %v2609_v33 = vadd.f32 %v8813_v12, %v2459_v16  ;;  %v1777_v18 = vmul.f32 %v8804_v36, %v1628_v26  ;;  %v1928_v50 = vmul.f32 %v8807_v7, %v11086_v43  ;;  %2736 = vst [vmem:[#allocation2 + $0x358] sm:$0xff] %v2608_v15  ;;  %v2335_v35 = vmul.f32 %v8810_v44, %v2186_v10  ;;  %v2191_v16 = vld [vmem:[#allocation3 + $0x3a8] sm:$0xff]  ;;  %v11090_v10 = vld [vmem:[#allocation198_spill] sm:$0xff]  ;;  %v1634_v15 = vld [vmem:[#allocation2 + $0x3b0] sm:$0xff] }
 0x25f   : > { %v2461_v57 = vadd.f32 %v2333_v49, %v2054_v55  ;;  %v2055_v61 = vadd.f32 %v1927_v41, %v1776_v46  ;;  %v1778_v45 = vmul.f32 %v8816_v52, %v1629_v34  ;;  %v2610_v59 = vadd.f32 %v8825_v32, %v2460_v58  ;;  %v11091_v43 = vld [vmem:[#allocation199_spill] sm:$0xff] }
 0x260   : > { %2737 = vst [vmem:[#allocation2 + $0x360] sm:$0xff] %v2609_v33  ;;  %v2056_v2 = vadd.f32 %v1928_v50, %v1777_v18  ;;  %v1929_v40 = vmul.f32 %v8819_v1, %v11087_v11  ;;  %v2336_v29 = vmul.f32 %v8822_v28, %v2187_v21  ;;  %v1779_v27 = vmul.f32 %v8832_v53, %v1630_v3  ;;  %v2192_v21 = vld [vmem:[#allocation3 + $0x3b0] sm:$0xff]  ;;  %v1635_v33 = vld [vmem:[#allocation2 + $0x3b8] sm:$0xff] }
 0x261   : > { %v2611_v38 = vadd.f32 %v8846_v30, %v2461_v57  ;;  %v2462_v25 = vadd.f32 %v2334_v9, %v2055_v61  ;;  %v1930_v51 = vmul.f32 %v8839_v6, %v11088_v63  ;;  %2738 = vst [vmem:[#allocation2 + $0x368] sm:$0xff] %v2610_v59  ;;  %v2337_v13 = vmul.f32 %v8843_v17, %v2188_v60  ;;  %v2193_v57 = vld [vmem:[#allocation3 + $0x3b8] sm:$0xff]  ;;  %v11092_v60 = vld [vmem:[#allocation200_spill] sm:$0xff]  ;;  %v1636_v59 = vld [vmem:[#allocation2 + $0x3c0] sm:$0xff] }
 0x262   : > { %v2463_v8 = vadd.f32 %v2335_v35, %v2056_v2  ;;  %v2057_v22 = vadd.f32 %v1929_v40, %v1778_v45  ;;  %v1780_v31 = vmul.f32 %v8851_v39, %v1631_v20  ;;  %v1931_v42 = vmul.f32 %v8854_v37, %v11089_v48  ;;  %v11093_v63 = vld [vmem:[#allocation201_spill] sm:$0xff] }
 0x263   : > { %2739 = vst [vmem:[#allocation2 + $0x370] sm:$0xff] %v2611_v38  ;;  %v2612_v19 = vadd.f32 %v8861_v14, %v2462_v25  ;;  %v2058_v54 = vadd.f32 %v1930_v51, %v1779_v27  ;;  %v2338_v26 = vmul.f32 %v8858_v0, %v2189_v56  ;;  %v1781_v46 = vmul.f32 %v8804_v36, %v1632_v5  ;;  %v2194_v56 = vld [vmem:[#allocation3 + $0x3c0] sm:$0xff]  ;;  %v1637_v38 = vld [vmem:[#allocation2 + $0x3c8] sm:$0xff] }
 0x264   : > { %v2613_v62 = vadd.f32 %v8813_v12, %v2463_v8  ;;  %v2464_v49 = vadd.f32 %v2336_v29, %v2057_v22  ;;  %v1932_v34 = vmul.f32 %v8807_v7, %v11090_v10  ;;  %v2059_v24 = vadd.f32 %v1931_v42, %v1780_v31  ;;  %v2195_v8 = vld [vmem:[#allocation3 + $0x3c8] sm:$0xff]  ;;  %v11095_v10 = vld [vmem:[#allocation36_spill] sm:$0xff] }
 0x265   : > { %2740 = vst [vmem:[#allocation2 + $0x378] sm:$0xff] %v2612_v19  ;;  %v2465_v55 = vadd.f32 %v2337_v13, %v2058_v54  ;;  %v2339_v41 = vmul.f32 %v8810_v44, %v2190_v4  ;;  %v1782_v9 = vmul.f32 %v8816_v52, %v1633_v23  ;;  %v1933_v50 = vmul.f32 %v8819_v1, %v11091_v43  ;;  %v11094_v4 = vld [vmem:[#allocation35_spill] sm:$0xff]  ;;  %v1638_v19 = vld [vmem:[#allocation2 + $0x3d0] sm:$0xff] }
 0x266   : > { %2741 = vst [vmem:[#allocation2 + $0x380] sm:$0xff] %v2613_v62  ;;  %v2614_v58 = vadd.f32 %v8825_v32, %v2464_v49  ;;  %v2060_v18 = vadd.f32 %v1932_v34, %v1781_v46  ;;  %v2340_v3 = vmul.f32 %v8822_v28, %v2191_v16  ;;  %v2466_v35 = vadd.f32 %v2338_v26, %v2059_v24  ;;  %v2196_v16 = vld [vmem:[#allocation3 + $0x3d0] sm:$0xff]  ;;  %v1639_v62 = vld [vmem:[#allocation2 + $0x3d8] sm:$0xff] }
 0x267   : > { %v2615_v61 = vadd.f32 %v8846_v30, %v2465_v55  ;;  %v1783_v45 = vmul.f32 %v8832_v53, %v1634_v15  ;;  %v1934_v20 = vmul.f32 %v8839_v6, %v11092_v60  ;;  %v2061_v11 = vadd.f32 %v1933_v50, %v1782_v9 }
 0x268   : > { %2742 = vst [vmem:[#allocation2 + $0x388] sm:$0xff] %v2614_v58  ;;  %v2467_v2 = vadd.f32 %v2339_v41, %v2060_v18  ;;  %v2341_v40 = vmul.f32 %v8843_v17, %v2192_v21  ;;  %v1784_v29 = vmul.f32 %v8851_v39, %v1635_v33  ;;  %v2616_v25 = vadd.f32 %v8861_v14, %v2466_v35  ;;  %v11097_v58 = vld [vmem:[#allocation38_spill] sm:$0xff] }
 0x269   : > { %2743 = vst [vmem:[#allocation2 + $0x390] sm:$0xff] %v2615_v61  ;;  %v2062_v27 = vadd.f32 %v1934_v20, %v1783_v45  ;;  %v1935_v51 = vmul.f32 %v8854_v37, %v11093_v63  ;;  %v2342_v5 = vmul.f32 %v8858_v0, %v2193_v57  ;;  %v2468_v13 = vadd.f32 %v2340_v3, %v2061_v11 }
 0x26a   : > { %v2617_v22 = vadd.f32 %v8813_v12, %v2467_v2  ;;  %v1785_v31 = vmul.f32 %v8804_v36, %v1636_v59  ;;  %v1936_v23 = vmul.f32 %v8807_v7, %v11094_v4  ;;  %2744 = vst [vmem:[#allocation2 + $0x398] sm:$0xff] %v2616_v25  ;;  %v2343_v42 = vmul.f32 %v8810_v44, %v2194_v56  ;;  %v2197_v7 = vld [vmem:[#allocation3 + $0x3d8] sm:$0xff] }
 0x26b   : > { %v2469_v54 = vadd.f32 %v2341_v40, %v2062_v27  ;;  %v2063_v48 = vadd.f32 %v1935_v51, %v1784_v29  ;;  %v1786_v26 = vmul.f32 %v8816_v52, %v1637_v38  ;;  %v2618_v49 = vadd.f32 %v8825_v32, %v2468_v13  ;;  %v11096_v44 = vld [vmem:[#allocation37_spill] sm:$0xff] }
 0x26c   : > { %2745 = vst [vmem:[#allocation2 + $0x3a0] sm:$0xff] %v2617_v22  ;;  %v2064_v46 = vadd.f32 %v1936_v23, %v1785_v31  ;;  %v1937_v36 = vmul.f32 %v8819_v1, %v11095_v10  ;;  %v2344_v34 = vmul.f32 %v8822_v28, %v2195_v8  ;;  %v1787_v24 = vmul.f32 %v8832_v53, %v1638_v19 }
 0x26d   : > { %v2619_v15 = vadd.f32 %v8846_v30, %v2469_v54  ;;  %v2470_v55 = vadd.f32 %v2342_v5, %v2063_v48  ;;  %v1938_v52 = vmul.f32 %v8839_v6, %v11096_v44  ;;  %2746 = vst [vmem:[#allocation2 + $0x3a8] sm:$0xff] %v2618_v49  ;;  %v2345_v21 = vmul.f32 %v8843_v17, %v2196_v16 }
 0x26e   : > { %v2471_v41 = vadd.f32 %v2343_v42, %v2064_v46  ;;  %v2065_v9 = vadd.f32 %v1937_v36, %v1786_v26  ;;  %v1788_v33 = vmul.f32 %v8851_v39, %v1639_v62  ;;  %v1939_v18 = vmul.f32 %v8854_v37, %v11097_v58  ;;  %v2761_v37 = vld [vmem:[#allocation2] ss:$8 sm:$0xf] (!%p5678_p11) }
 0x26f   : > { %2747 = vst [vmem:[#allocation2 + $0x3b0] sm:$0xff] %v2619_v15  ;;  %v2620_v1 = vadd.f32 %v8861_v14, %v2470_v55  ;;  %v2066_v28 = vadd.f32 %v1938_v52, %v1787_v24  ;;  %v2346_v53 = vmul.f32 %v8858_v0, %v2197_v7  ;;  %v2763_v0 = vld [vmem:[#allocation11 + $0x1] ss:$4 sm:$0xf] (!%p5678_p11) }
 0x270   : > { %v2621_v43 = vadd.f32 %v8813_v12, %v2471_v41  ;;  %v2472_v6 = vadd.f32 %v2344_v34, %v2065_v9  ;;  %v2067_v3 = vadd.f32 %v1939_v18, %v1788_v33  ;;  %2760 = sbr.rel (%p5678_p11) target bundleno = 631 (0x277), region = 72  ;;  %v2764_v12 = vsub.f32 (!%p5678_p11), %v2761_v37, %v2763_v0 }
 0x271   : > { %2748 = vst [vmem:[#allocation2 + $0x3b8] sm:$0xff] %v2620_v1  ;;  %v2473_v50 = vadd.f32 %v2345_v21, %v2066_v28 }
 0x272   : > { %2749 = vst [vmem:[#allocation2 + $0x3c0] sm:$0xff] %v2621_v43  ;;  %v2622_v17 = vadd.f32 %v8825_v32, %v2472_v6  ;;  %v2474_v57 = vadd.f32 %v2346_v53, %v2067_v3  ;;  %2765 = vst.msk [vmem:[#allocation2] ss:$8 sm:$0xf] (!%p5678_p11), %vm8353_vm1, %v2764_v12 }
 0x273   : > { %v2623_v39 = vadd.f32 %v8846_v30, %v2473_v50 }
 0x274   : > { %2750 = vst [vmem:[#allocation2 + $0x3c8] sm:$0xff] %v2622_v17  ;;  %v2624_v61 = vadd.f32 %v8861_v14, %v2474_v57 }
 0x275   : > { %2751 = vst [vmem:[#allocation2 + $0x3d0] sm:$0xff] %v2623_v39 }
 0x276   : > { %2752 = vst [vmem:[#allocation2 + $0x3d8] sm:$0xff] %v2624_v61 }
 0x277 PF: > { %p5679_p13 = scmp.ne.s32.totalorder %s6750_s29, 1 }
 0x278   : > { %v2772_v32 = vld [vmem:[#allocation2 + $0x3e7] ss:$8 sm:$0xf] (!%p5679_p13)  ;;  %v2774_v30 = vld [vmem:[#allocation11 + $0x2] ss:$4 sm:$0xf] (!%p5679_p13) }
 0x279   : > { %2770 = sbr.rel (%p5679_p13) target bundleno = 640 (0x280), region = 76  ;;  %v2775_v14 = vsub.f32 (!%p5679_p13), %v2772_v32, %v2774_v30 }
 0x27b   : > { %2776 = vst.msk [vmem:[#allocation2 + $0x3e7] ss:$8 sm:$0xf] (!%p5679_p13), %vm8353_vm1, %v2775_v14 }
 0x280 PF: > { %v6320_v60 = vld [vmem:[#allocation13 + $0x4] ss:$16 sps:$4 sm:$0xff]   ;;  %v6322_v20 = vld [vmem:[#allocation13 + $0xc] ss:$16 sps:$4 sm:$0xff]   ;;  %v6324_v59 = vld [vmem:[#allocation13] ss:$16 sps:$4 sm:$0xff]  }
 0x281   : > { %4146 = vmatprep.subr.bf16.mxu0 %v6320_v60  ;;  %v6325_v2 = vld [vmem:[#allocation13 + $0x8] ss:$16 sps:$4 sm:$0xff]   ;;  %4532 = vmatprep.subr.bf16.mxu1 %v6322_v20  ;;  %v6326_v11 = vld [vmem:[#allocation13 + $0x24] ss:$16 sps:$4 sm:$0xff]   ;;  %v6328_v40 = vld [vmem:[#allocation13 + $0x2c] ss:$16 sps:$4 sm:$0xff]  }
 0x282   : > { %4147 = vmatpush1.bf16.msra.mxu0 %v6324_v59  ;;  %4533 = vmatpush1.bf16.msra.mxu1 %v6325_v2  ;;  %v6330_v29 = vld [vmem:[#allocation13 + $0x20] ss:$16 sps:$4 sm:$0xff]   ;;  %v6331_v56 = vld [vmem:[#allocation13 + $0x28] ss:$16 sps:$4 sm:$0xff]   ;;  %v6332_v38 = vld [vmem:[#allocation13 + $0x44] ss:$16 sps:$4 sm:$0xff]  }
 0x283   : > { %4148 = vmatprep.subr.bf16.mxu0 %v6326_v11  ;;  %4534 = vmatprep.subr.bf16.mxu1 %v6328_v40  ;;  %v6334_v25 = vld [vmem:[#allocation13 + $0x4c] ss:$16 sps:$4 sm:$0xff]   ;;  %v6336_v27 = vld [vmem:[#allocation13 + $0x40] ss:$16 sps:$4 sm:$0xff]   ;;  %v6337_v63 = vld [vmem:[#allocation13 + $0x48] ss:$16 sps:$4 sm:$0xff]  }
 0x284   : > { %v6338_v51 = vld [vmem:[#allocation13 + $0x64] ss:$16 sps:$4 sm:$0xff]   ;;  %v6340_v5 = vld [vmem:[#allocation13 + $0x6c] ss:$16 sps:$4 sm:$0xff]   ;;  %v6342_v8 = vld [vmem:[#allocation13 + $0x60] ss:$16 sps:$4 sm:$0xff]  }
 0x285   : > { %v6343_v22 = vld [vmem:[#allocation13 + $0x68] ss:$16 sps:$4 sm:$0xff]   ;;  %v6344_v13 = vld [vmem:[#allocation13 + $0x84] ss:$16 sps:$4 sm:$0xff]   ;;  %v6346_v31 = vld [vmem:[#allocation13 + $0x8c] ss:$16 sps:$4 sm:$0xff]  }
 0x286   : > { %4149 = vmatpush1.bf16.msra.mxu0 %v6330_v29  ;;  %4535 = vmatpush1.bf16.msra.mxu1 %v6331_v56  ;;  %v6348_v4 = vld [vmem:[#allocation13 + $0x80] ss:$16 sps:$4 sm:$0xff]   ;;  %v6349_v23 = vld [vmem:[#allocation13 + $0x88] ss:$16 sps:$4 sm:$0xff]   ;;  %v6350_v19 = vld [vmem:[#allocation13 + $0xa4] ss:$16 sps:$4 sm:$0xff]  }
 0x287   : > { %4150 = vmatprep.subr.bf16.mxu0 %v6332_v38  ;;  %4536 = vmatprep.subr.bf16.mxu1 %v6334_v25  ;;  %v6352_v54 = vld [vmem:[#allocation13 + $0xac] ss:$16 sps:$4 sm:$0xff]   ;;  %v6354_v48 = vld [vmem:[#allocation13 + $0xa0] ss:$16 sps:$4 sm:$0xff]   ;;  %v6355_v42 = vld [vmem:[#allocation13 + $0xa8] ss:$16 sps:$4 sm:$0xff]  }
 0x288   : > { %v6356_v26 = vld [vmem:[#allocation13 + $0xc4] ss:$16 sps:$4 sm:$0xff]   ;;  %v6358_v16 = vld [vmem:[#allocation13 + $0xcc] ss:$16 sps:$4 sm:$0xff]   ;;  %v6360_v62 = vld [vmem:[#allocation13 + $0xc0] ss:$16 sps:$4 sm:$0xff]  }
 0x289   : > { %v6361_v49 = vld [vmem:[#allocation13 + $0xc8] ss:$16 sps:$4 sm:$0xff]   ;;  %v6362_v46 = vld [vmem:[#allocation13 + $0xe4] ss:$16 sps:$4 sm:$0xff]   ;;  %v6364_v10 = vld [vmem:[#allocation13 + $0xec] ss:$16 sps:$4 sm:$0xff]  }
 0x28a   : > { %4151 = vmatpush1.bf16.msra.mxu0 %v6336_v27  ;;  %4537 = vmatpush1.bf16.msra.mxu1 %v6337_v63  ;;  %v6366_v36 = vld [vmem:[#allocation13 + $0xe0] ss:$16 sps:$4 sm:$0xff]   ;;  %v6367_v34 = vld [vmem:[#allocation13 + $0xe8] ss:$16 sps:$4 sm:$0xff]   ;;  %v6368_v7 = vld [vmem:[#allocation13 + $0x104] ss:$16 sps:$4 sm:$0xff]  }
 0x28b   : > { %4152 = vmatprep.subr.bf16.mxu0 %v6338_v51  ;;  %4538 = vmatprep.subr.bf16.mxu1 %v6340_v5  ;;  %v6370_v15 = vld [vmem:[#allocation13 + $0x10c] ss:$16 sps:$4 sm:$0xff]   ;;  %v6372_v55 = vld [vmem:[#allocation13 + $0x100] ss:$16 sps:$4 sm:$0xff]   ;;  %v6373_v24 = vld [vmem:[#allocation13 + $0x108] ss:$16 sps:$4 sm:$0xff]  }
 0x28c   : > { %v6374_v44 = vld [vmem:[#allocation13 + $0x124] ss:$16 sps:$4 sm:$0xff]   ;;  %s2906_s12 = sld [smem:[#allocation4]]  ;;  %v6376_v52 = vld [vmem:[#allocation13 + $0x12c] ss:$16 sps:$4 sm:$0xff]   ;;  %s5944_s26 = sshll.u32 %s6750_s29, 7 }
 0x28d   : > { %v6378_v41 = vld [vmem:[#allocation13 + $0x120] ss:$16 sps:$4 sm:$0xff]   ;;  %v6379_v9 = vld [vmem:[#allocation13 + $0x128] ss:$16 sps:$4 sm:$0xff]   ;;  %v6380_v21 = vld [vmem:[#allocation13 + $0x144] ss:$16 sps:$4 sm:$0xff]  }
 0x28e   : > { %4153 = vmatpush1.bf16.msra.mxu0 %v6342_v8  ;;  %4539 = vmatpush1.bf16.msra.mxu1 %v6343_v22  ;;  %v6382_v33 = vld [vmem:[#allocation13 + $0x14c] ss:$16 sps:$4 sm:$0xff]   ;;  %v6384_v1 = vld [vmem:[#allocation13 + $0x140] ss:$16 sps:$4 sm:$0xff]   ;;  %v6385_v28 = vld [vmem:[#allocation13 + $0x148] ss:$16 sps:$4 sm:$0xff]  }
 0x28f   : > { %4154 = vmatprep.subr.bf16.mxu0 %v6344_v13  ;;  %4540 = vmatprep.subr.bf16.mxu1 %v6346_v31  ;;  %v6386_v58 = vld [vmem:[#allocation13 + $0x164] ss:$16 sps:$4 sm:$0xff]   ;;  %v6388_v53 = vld [vmem:[#allocation13 + $0x16c] ss:$16 sps:$4 sm:$0xff]   ;;  %v6390_v6 = vld [vmem:[#allocation13 + $0x160] ss:$16 sps:$4 sm:$0xff]  }
 0x290   : > { %v2779_v43 = vld [vmem:[#allocation2 + $0x8] sm:$0xff]  ;;  %v6391_v50 = vld [vmem:[#allocation13 + $0x168] ss:$16 sps:$4 sm:$0xff]   ;;  %v6394_v61 = vld [vmem:[#allocation13 + $0x18c] ss:$16 sps:$4 sm:$0xff]   ;;  %s5875_s13 = sshll.u32 %s6754_s30, 8 }
 0x291   : > { %v2783_v3 = vld [vmem:[#allocation2 + $0x28] sm:$0xff]  ;;  %vm2908_vm3 = vcmp.gt.f32.partialorder %v2779_v43, 0.0  ;;  %v6397_v35 = vld [vmem:[#allocation13 + $0x188] ss:$16 sps:$4 sm:$0xff]   ;;  %v6400_v14 = vld [vmem:[#allocation13 + $0x1ac] ss:$16 sps:$4 sm:$0xff]   ;;  %s5508_s15 = sadd.s32 %s5944_s26, %s5875_s13 }
 0x292   : > { %4155 = vmatpush1.bf16.msra.mxu0 %v6348_v4  ;;  %4541 = vmatpush1.bf16.msra.mxu1 %v6349_v23  ;;  %v9515_v18 = vstv %s2906_s12  ;;  %vm2912_vm4 = vcmp.gt.f32.partialorder %v2783_v3, 0.0  ;;  %v6392_v57 = vld [vmem:[#allocation13 + $0x184] ss:$16 sps:$4 sm:$0xff]   ;;  %v6396_v12 = vld [vmem:[#allocation13 + $0x180] ss:$16 sps:$4 sm:$0xff]   ;;  %v2778_v2 = vld [vmem:[#allocation2] sm:$0xff] }
 0x293   : > { %4156 = vmatprep.subr.bf16.mxu0 %v6350_v19  ;;  %4542 = vmatprep.subr.bf16.mxu1 %v6352_v54  ;;  %v3037_v17 = vmul.f32 %v9515_v18, %v2779_v43  ;;  %v3041_v39 = vmul.f32 %v9515_v18, %v2783_v3  ;;  %v6398_v30 = vld [vmem:[#allocation13 + $0x1a4] ss:$16 sps:$4 sm:$0xff]   ;;  %v6402_v45 = vld [vmem:[#allocation13 + $0x1a0] ss:$16 sps:$4 sm:$0xff]   ;;  %v6403_v60 = vld [vmem:[#allocation13 + $0x1a8] ss:$16 sps:$4 sm:$0xff]   ;;  %v3036_v27 = vmul.f32 %v9515_v18, %v2778_v2 }
 0x294   : > { %v6404_v20 = vld [vmem:[#allocation13 + $0x1c4] ss:$16 sps:$4 sm:$0xff]   ;;  %v6406_v59 = vld [vmem:[#allocation13 + $0x1cc] ss:$16 sps:$4 sm:$0xff]   ;;  %v6408_v40 = vld [vmem:[#allocation13 + $0x1c0] ss:$16 sps:$4 sm:$0xff]  }
 0x295   : > { %v3165_v37 = vsel %vm2908_vm3, %v2779_v43, %v3037_v17  ;;  %v3169_v0 = vsel %vm2912_vm4, %v2783_v3, %v3041_v39  ;;  %v2782_v11 = vld [vmem:[#allocation2 + $0x20] sm:$0xff]  ;;  %v2787_v56 = vld [vmem:[#allocation2 + $0x48] sm:$0xff]  ;;  %vm2907_vm5 = vcmp.gt.f32.partialorder %v2778_v2, 0.0  ;;  %s5876_s29 = sshll.u32 %s5508_s15, 6  ;;  %s5511_s30 = sshll.u32 %s9507_s10, 4  ;;  %s10136_s30 = int_to_ptr.vmem [resolvable:$true] %s5511_s30 }
 0x296   : > { %4157 = vmatpush1.bf16.msra.mxu0 %v6354_v48  ;;  %4543 = vmatpush1.bf16.msra.mxu1 %v6355_v42  ;;  %v3293_v32 = vpack.c.bf16 %v3169_v0, %v3165_v37  ;;  %v6409_v29 = vld [vmem:[#allocation13 + $0x1c8] ss:$16 sps:$4 sm:$0xff]   ;;  %v2791_v38 = vld [vmem:[#allocation2 + $0x68] sm:$0xff]  ;;  %v3040_v63 = vmul.f32 %v9515_v18, %v2782_v11  ;;  %v6412_v51 = vld [vmem:[#allocation13 + $0x1ec] ss:$16 sps:$4 sm:$0xff]   ;;  %vm2911_vm6 = vcmp.gt.f32.partialorder %v2782_v11, 0.0  ;;  %v3045_v22 = vmul.f32 %v9515_v18, %v2787_v56 }
 0x297   : > { %4158 = vmatprep.subr.bf16.mxu0 %v6356_v26  ;;  %4544 = vmatprep.subr.bf16.mxu1 %v6358_v16  ;;  %v6410_v25 = vld [vmem:[#allocation13 + $0x1e4] ss:$16 sps:$4 sm:$0xff]   ;;  %v6414_v5 = vld [vmem:[#allocation13 + $0x1e0] ss:$16 sps:$4 sm:$0xff]   ;;  %v6415_v8 = vld [vmem:[#allocation13 + $0x1e8] ss:$16 sps:$4 sm:$0xff]   ;;  %v3049_v13 = vmul.f32 %v9515_v18, %v2791_v38  ;;  %v3164_v23 = vsel %vm2907_vm5, %v2778_v2, %v3036_v27 }
 0x298   : > { %4178 = vmatprep.mubr.bf16.mxu0 %v3293_v32  ;;  %4564 = vmatprep.mubr.bf16.mxu1 %v3293_v32  ;;  %v6418_v31 = vld [vmem:[#allocation13 + $0x204] ss:$16 sps:$4 sm:$0xff]   ;;  %v6421_v4 = vld [vmem:[#allocation13 + $0x20c] ss:$16 sps:$4 sm:$0xff]   ;;  %vm2916_vm7 = vcmp.gt.f32.partialorder %v2787_v56, 0.0  ;;  %vm2920_vm8 = vcmp.gt.f32.partialorder %v2791_v38, 0.0  ;;  %v3168_v19 = vsel %vm2911_vm6, %v2782_v11, %v3040_v63 }
 0x299   : > { %v2786_v54 = vld [vmem:[#allocation2 + $0x40] sm:$0xff]  ;;  %v3173_v42 = vsel %vm2916_vm7, %v2787_v56, %v3045_v22  ;;  %v3177_v26 = vsel %vm2920_vm8, %v2791_v38, %v3049_v13  ;;  %v2795_v16 = vld [vmem:[#allocation2 + $0x88] sm:$0xff]  ;;  %s11296_s3 = sld [smem:[#allocation211_spill]]  ;;  %s5495_s16 = scalar_lea.sflag [#allocation7], %s7084_s11 }
 0x29a   : > { %4159 = vmatpush1.bf16.msra.mxu0 %v6360_v62  ;;  %4545 = vmatpush1.bf16.msra.mxu1 %v6361_v49  ;;  %v2790_v48 = vld [vmem:[#allocation2 + $0x60] sm:$0xff]  ;;  %v2799_v62 = vld [vmem:[#allocation2 + $0xa8] sm:$0xff]  ;;  %v3292_v49 = vpack.c.bf16 %v3168_v19, %v3164_v23  ;;  %vm2915_vm9 = vcmp.gt.f32.partialorder %v2786_v54, 0.0  ;;  %vm2924_vm11 = vcmp.gt.f32.partialorder %v2795_v16, 0.0  ;;  %s6656_s21 = scalar_lea.vmem %s10136_s30, 8192  ;;  %s6776_s7 = smov [#allocation14]  }
 0x29b   : > { %4160 = vmatprep.subr.bf16.mxu0 %v6362_v46  ;;  %4546 = vmatprep.subr.bf16.mxu1 %v6364_v10  ;;  %v6416_v46 = vld [vmem:[#allocation13 + $0x200] ss:$16 sps:$4 sm:$0xff]   ;;  %v6419_v10 = vld [vmem:[#allocation13 + $0x208] ss:$16 sps:$4 sm:$0xff]   ;;  %vm2919_vm10 = vcmp.gt.f32.partialorder %v2790_v48, 0.0  ;;  %vm2928_vm12 = vcmp.gt.f32.partialorder %v2799_v62, 0.0  ;;  %p6657_p9 = scmp.ne.s32.totalorder %s10136_s30, %s6656_s21 }
 0x29c   : > { %v6433_v43 = vld [vmem:[#allocation13 + $0x24c] ss:$16 sps:$4 sm:$0xff]   ;;  %v6431_v37 = vld [vmem:[#allocation13 + $0x248] ss:$16 sps:$4 sm:$0xff]   ;;  %v6442_v56 = vld [vmem:[#allocation13 + $0x284] ss:$16 sps:$4 sm:$0xff]  }
 0x29d   : > { %v6439_v32 = vld [vmem:[#allocation13 + $0x26c] ss:$16 sps:$4 sm:$0xff]   ;;  %v6443_v13 = vld [vmem:[#allocation13 + $0x288] ss:$16 sps:$4 sm:$0xff]   ;;  %p6658_p2 = pnand %p6657_p9, %p6984_p4  ;;  %s6660_s25 = sshll.u32 %s6776_s7, 4  ;;  %s6661_s25 = int_to_ptr.vmem [resolvable:$false] %s6660_s25 }
 0x29e   : > { %4161 = vmatpush1.bf16.msra.mxu0 %v6366_v36  ;;  %4547 = vmatpush1.bf16.msra.mxu1 %v6367_v34  ;;  %v3044_v36 = vmul.f32 %v9515_v18, %v2786_v54  ;;  %v3048_v34 = vmul.f32 %v9515_v18, %v2790_v48  ;;  %v6445_v38 = vld [vmem:[#allocation13 + $0x28c] ss:$16 sps:$4 sm:$0xff]   ;;  %s6662_s5 = scalar_lea.vmem %s6661_s25, 16384  ;;  %p6663_p6 = scmp.lt.s32.totalorder %s10136_s30, %s6661_s25 }
 0x29f   : > { %4162 = vmatprep.subr.bf16.mxu0 %v6368_v7  ;;  %4548 = vmatprep.subr.bf16.mxu1 %v6370_v15  ;;  %v3297_v7 = vpack.c.bf16 %v3177_v26, %v3173_v42  ;;  %v3053_v15 = vmul.f32 %v9515_v18, %v2795_v16  ;;  %v2810_v23 = vld [vmem:[#allocation2 + $0x100] sm:$0xff]  ;;  %v2819_v42 = vld [vmem:[#allocation2 + $0x148] sm:$0xff]  ;;  %s10134_s2 = scalar_lea.hbm %s11296_s3, %s5876_s29  ;;  %p6659_p10 = pneg %p6658_p2 }
 0x2a0   : > { %v2814_v19 = vld [vmem:[#allocation2 + $0x120] sm:$0xff]  ;;  %v6446_v26 = vld [vmem:[#allocation13 + $0x2a0] ss:$16 sps:$4 sm:$0xff]   ;;  %vm2939_vm5 = vcmp.gt.f32.partialorder %v2810_v23, 0.0  ;;  %vm2948_vm7 = vcmp.gt.f32.partialorder %v2819_v42, 0.0  ;;  %p6664_p8 = scmp.lt.s32.totalorder %s6662_s5, %s6656_s21 }
 0x2a1   : > { %vm2943_vm6 = vcmp.gt.f32.partialorder %v2814_v19, 0.0 }
 0x2a2   : > { %4163 = vmatpush1.bf16.msra.mxu0 %v6372_v55  ;;  %4549 = vmatpush1.bf16.msra.mxu1 %v6373_v24  ;;  %v3057_v55 = vmul.f32 %v9515_v18, %v2799_v62  ;;  %v6422_v24 = vld [vmem:[#allocation13 + $0x220] ss:$16 sps:$4 sm:$0xff]   ;;  %p6665_p1 = por %p6664_p8, %p6663_p6 }
 0x2a3   : > { %4164 = vmatprep.subr.bf16.mxu0 %v6374_v44  ;;  %4550 = vmatprep.subr.bf16.mxu1 %v6376_v52  ;;  %v6424_v44 = vld [vmem:[#allocation13 + $0x224] ss:$16 sps:$4 sm:$0xff]   ;;  %v6427_v52 = vld [vmem:[#allocation13 + $0x22c] ss:$16 sps:$4 sm:$0xff]  }
 0x2a4   : > { %p6666_p5 = pnand %p6665_p1, %p6659_p10 }
 0x2a6   : > { %4165 = vmatpush1.bf16.msra.mxu0 %v6378_v41  ;;  %4551 = vmatpush1.bf16.msra.mxu1 %v6379_v9  ;;  %v6425_v41 = vld [vmem:[#allocation13 + $0x228] ss:$16 sps:$4 sm:$0xff]  }
 0x2a7   : > { %4166 = vmatprep.subr.bf16.mxu0 %v6380_v21  ;;  %4552 = vmatprep.subr.bf16.mxu1 %v6382_v33  ;;  %v2794_v9 = vld [vmem:[#allocation2 + $0x80] sm:$0xff]  ;;  %v3172_v33 = vsel %vm2915_vm9, %v2786_v54, %v3044_v36 }
 0x2a8   : > { %v2798_v21 = vld [vmem:[#allocation2 + $0xa0] sm:$0xff]  ;;  %v3052_v39 = vmul.f32 %v9515_v18, %v2794_v9  ;;  %vm2923_vm13 = vcmp.gt.f32.partialorder %v2794_v9, 0.0 }
 0x2a9   : > { %vm2927_vm14 = vcmp.gt.f32.partialorder %v2798_v21, 0.0  ;;  %v6457_v36 = vld [vmem:[#allocation13 + $0x2cc] ss:$16 sps:$4 sm:$0xff]  }
 0x2aa   : > { %4167 = vmatpush1.bf16.msra.mxu0 %v6384_v1  ;;  %4553 = vmatpush1.bf16.msra.mxu1 %v6385_v28  ;;  %v3176_v1 = vsel %vm2919_vm10, %v2790_v48, %v3048_v34  ;;  %v6430_v28 = vld [vmem:[#allocation13 + $0x244] ss:$16 sps:$4 sm:$0xff]  }
 0x2ab   : > { %4168 = vmatprep.subr.bf16.mxu0 %v6386_v58  ;;  %4554 = vmatprep.subr.bf16.mxu1 %v6388_v53  ;;  %v3181_v58 = vsel %vm2924_vm11, %v2795_v16, %v3053_v15  ;;  %v3185_v53 = vsel %vm2928_vm12, %v2799_v62, %v3057_v55  ;;  %v3296_v3 = vpack.c.bf16 %v3176_v1, %v3172_v33  ;;  %v2818_v33 = vld [vmem:[#allocation2 + $0x140] sm:$0xff] }
 0x2ac   : > { %v3301_v17 = vpack.c.bf16 %v3185_v53, %v3181_v58  ;;  %v3068_v15 = vmul.f32 %v9515_v18, %v2810_v23  ;;  %v3072_v55 = vmul.f32 %v9515_v18, %v2814_v19  ;;  %v2822_v1 = vld [vmem:[#allocation2 + $0x160] sm:$0xff]  ;;  %v2827_v53 = vld [vmem:[#allocation2 + $0x188] sm:$0xff]  ;;  %vm2947_vm9 = vcmp.gt.f32.partialorder %v2818_v33, 0.0 }
 0x2ad   : > { %vm2951_vm10 = vcmp.gt.f32.partialorder %v2822_v1, 0.0  ;;  %vm2956_vm11 = vcmp.gt.f32.partialorder %v2827_v53, 0.0 }
 0x2ae   : > { %4169 = vmatpush1.bf16.msra.mxu0 %v6390_v6  ;;  %4555 = vmatpush1.bf16.msra.mxu1 %v6391_v50  ;;  %v2803_v6 = vld [vmem:[#allocation2 + $0xc8] sm:$0xff]  ;;  %v3200_v58 = vsel %vm2943_vm6, %v2814_v19, %v3072_v55  ;;  %v6479_v19 = vld [vmem:[#allocation13 + $0x348] ss:$16 sps:$4 sm:$0xff]   ;;  %v6493_v55 = vld [vmem:[#allocation13 + $0x38c] ss:$16 sps:$4 sm:$0xff]  }
 0x2af   : > { %4170 = vmatprep.subr.bf16.mxu0 %v6392_v57  ;;  %4556 = vmatprep.subr.bf16.mxu1 %v6394_v61  ;;  %v2807_v50 = vld [vmem:[#allocation2 + $0xe8] sm:$0xff]  ;;  %v3056_v57 = vmul.f32 %v9515_v18, %v2798_v21  ;;  %v3061_v0 = vmul.f32 %v9515_v18, %v2803_v6  ;;  %vm2932_vm15 = vcmp.gt.f32.partialorder %v2803_v6, 0.0 }
 0x2b0   : > { %v6428_v61 = vld [vmem:[#allocation13 + $0x240] ss:$16 sps:$4 sm:$0xff]   ;;  %vm2936_vm0 = vcmp.gt.f32.partialorder %v2807_v50, 0.0 }
 0x2b1   : > { %v3189_v2 = vsel %vm2932_vm15, %v2803_v6, %v3061_v0  ;;  %v3076_v0 = vmul.f32 %v9515_v18, %v2818_v33 }
 0x2b2   : > { %4171 = vmatpush1.bf16.msra.mxu0 %v6396_v12  ;;  %4557 = vmatpush1.bf16.msra.mxu1 %v6397_v35  ;;  %v3065_v12 = vmul.f32 %v9515_v18, %v2807_v50  ;;  %v6436_v35 = vld [vmem:[#allocation13 + $0x264] ss:$16 sps:$4 sm:$0xff]  }
 0x2b3   : > { %4172 = vmatprep.subr.bf16.mxu0 %v6398_v30  ;;  %4558 = vmatprep.subr.bf16.mxu1 %v6400_v14  ;;  %v2802_v30 = vld [vmem:[#allocation2 + $0xc0] sm:$0xff] }
 0x2b4   : > { %v2806_v14 = vld [vmem:[#allocation2 + $0xe0] sm:$0xff]  ;;  %v3193_v11 = vsel %vm2936_vm0, %v2807_v50, %v3065_v12  ;;  %v3060_v63 = vmul.f32 %v9515_v18, %v2802_v30  ;;  %vm2931_vm1 = vcmp.gt.f32.partialorder %v2802_v30, 0.0  ;;  %v3080_v12 = vmul.f32 %v9515_v18, %v2822_v1 }
 0x2b5   : > { %v3305_v27 = vpack.c.bf16 %v3193_v11, %v3189_v2  ;;  %vm2935_vm2 = vcmp.gt.f32.partialorder %v2806_v14, 0.0  ;;  %v3204_v2 = vsel %vm2947_vm9, %v2818_v33, %v3076_v0  ;;  %v6488_v33 = vld [vmem:[#allocation13 + $0x380] ss:$16 sps:$4 sm:$0xff]   ;;  %v6502_v0 = vld [vmem:[#allocation13 + $0x3c4] ss:$16 sps:$4 sm:$0xff]  }
 0x2b6   : > { %4173 = vmatpush1.bf16.msra.mxu0 %v6402_v45  ;;  %4559 = vmatpush1.bf16.msra.mxu1 %v6403_v60  ;;  %v6434_v45 = vld [vmem:[#allocation13 + $0x260] ss:$16 sps:$4 sm:$0xff]   ;;  %v3180_v60 = vsel %vm2923_vm13, %v2794_v9, %v3052_v39  ;;  %v3188_v54 = vsel %vm2931_vm1, %v2802_v30, %v3060_v63  ;;  %v6460_v9 = vld [vmem:[#allocation13 + $0x2e4] ss:$16 sps:$4 sm:$0xff]   ;;  %v3208_v11 = vsel %vm2951_vm10, %v2822_v1, %v3080_v12  ;;  %v6491_v1 = vld [vmem:[#allocation13 + $0x388] ss:$16 sps:$4 sm:$0xff]  }
 0x2b7   : > { %4174 = vmatprep.subr.bf16.mxu0 %v6404_v20  ;;  %4560 = vmatprep.subr.bf16.mxu1 %v6406_v59  ;;  %v3184_v20 = vsel %vm2927_vm14, %v2798_v21, %v3056_v57  ;;  %v6437_v59 = vld [vmem:[#allocation13 + $0x268] ss:$16 sps:$4 sm:$0xff]   ;;  %v6463_v21 = vld [vmem:[#allocation13 + $0x2ec] ss:$16 sps:$4 sm:$0xff]   ;;  %v6466_v39 = vld [vmem:[#allocation13 + $0x304] ss:$16 sps:$4 sm:$0xff]  }
 0x2b8   : > { %v6469_v57 = vld [vmem:[#allocation13 + $0x30c] ss:$16 sps:$4 sm:$0xff]   ;;  %v6478_v63 = vld [vmem:[#allocation13 + $0x344] ss:$16 sps:$4 sm:$0xff]  }
 0x2b9   : > { %v6505_v12 = vld [vmem:[#allocation13 + $0x3cc] ss:$16 sps:$4 sm:$0xff]  }
 0x2ba   : > { %4175 = vmatpush1.bf16.msra.mxu0 %v6408_v40  ;;  %4561 = vmatpush1.bf16.msra.mxu1 %v6409_v29  ;;  %v2811_v40 = vld [vmem:[#allocation2 + $0x108] sm:$0xff] }
 0x2bb   : > { %4176 = vmatprep.subr.bf16.mxu0 %v6410_v25  ;;  %4562 = vmatprep.subr.bf16.mxu1 %v6412_v51  ;;  %v2815_v29 = vld [vmem:[#allocation2 + $0x128] sm:$0xff]  ;;  %v3300_v25 = vpack.c.bf16 %v3184_v20, %v3180_v60  ;;  %v3064_v51 = vmul.f32 %v9515_v18, %v2806_v14  ;;  %vm2940_vm3 = vcmp.gt.f32.partialorder %v2811_v40, 0.0  ;;  %v6475_v60 = vld [vmem:[#allocation13 + $0x32c] ss:$16 sps:$4 sm:$0xff]  }
 0x2bc   : > { %v3073_v22 = vmul.f32 %v9515_v18, %v2815_v29  ;;  %vm2944_vm4 = vcmp.gt.f32.partialorder %v2815_v29, 0.0  ;;  %v2826_v20 = vld [vmem:[#allocation2 + $0x180] sm:$0xff] }
 0x2bd   : > { %v3192_v48 = vsel %vm2935_vm2, %v2806_v14, %v3064_v51  ;;  %v6467_v14 = vld [vmem:[#allocation13 + $0x308] ss:$16 sps:$4 sm:$0xff]   ;;  %v6481_v51 = vld [vmem:[#allocation13 + $0x34c] ss:$16 sps:$4 sm:$0xff]   ;;  %vm2955_vm13 = vcmp.gt.f32.partialorder %v2826_v20, 0.0 }
 0x2be   : > { %4177 = vmatpush1.bf16.msra.mxu0 %v6414_v5  ;;  %4563 = vmatpush1.bf16.msra.mxu1 %v6415_v8  ;;  %v6440_v5 = vld [vmem:[#allocation13 + $0x280] ss:$16 sps:$4 sm:$0xff]   ;;  %v3069_v8 = vmul.f32 %v9515_v18, %v2811_v40  ;;  %v3201_v62 = vsel %vm2944_vm4, %v2815_v29, %v3073_v22  ;;  %v3304_v34 = vpack.c.bf16 %v3192_v48, %v3188_v54  ;;  %v6484_v54 = vld [vmem:[#allocation13 + $0x364] ss:$16 sps:$4 sm:$0xff]   ;;  %v6487_v48 = vld [vmem:[#allocation13 + $0x36c] ss:$16 sps:$4 sm:$0xff]  }
 0x2bf   : > { %4339 = vmatprep.subr.bf16.mxu0 %v6418_v31  ;;  %4725 = vmatprep.subr.bf16.mxu1 %v6421_v4  ;;  %v6448_v31 = vld [vmem:[#allocation13 + $0x2a4] ss:$16 sps:$4 sm:$0xff]   ;;  %v6451_v4 = vld [vmem:[#allocation13 + $0x2ac] ss:$16 sps:$4 sm:$0xff]   ;;  %v6470_v29 = vld [vmem:[#allocation13 + $0x320] ss:$16 sps:$4 sm:$0xff]   ;;  %v3084_v22 = vmul.f32 %v9515_v18, %v2826_v20 }
 0x2c0   : > { %v3197_v16 = vsel %vm2940_vm3, %v2811_v40, %v3069_v8  ;;  %v2835_v40 = vld [vmem:[#allocation2 + $0x1c8] sm:$0xff] }
 0x2c1   : > { %4179 = vmatmul.mubr.bf16.vlgmr.msra.gmra.mrb[0].mxu0 %v3292_v49  ;;  %4565 = vmatmul.mubr.bf16.vlgmr.msra.gmra.mrb[0].mxu1 %v3292_v49  ;;  %v6449_v49 = vld [vmem:[#allocation13 + $0x2a8] ss:$16 sps:$4 sm:$0xff]   ;;  %vm2964_vm15 = vcmp.gt.f32.partialorder %v2835_v40, 0.0 }
 0x2c2   : > { %4340 = vmatpush1.bf16.msra.mxu0 %v6416_v46  ;;  %4726 = vmatpush1.bf16.msra.mxu1 %v6419_v10  ;;  %v2823_v46 = vld [vmem:[#allocation2 + $0x168] sm:$0xff] }
 0x2c3   : > { %4188 = vmatprep.mubr.bf16.mxu0 %v3297_v7  ;;  %4574 = vmatprep.mubr.bf16.mxu1 %v3297_v7  ;;  %v6454_v10 = vld [vmem:[#allocation13 + $0x2c4] ss:$16 sps:$4 sm:$0xff]   ;;  %v3309_v7 = vpack.c.bf16 %v3201_v62, %v3197_v16  ;;  %vm2952_vm8 = vcmp.gt.f32.partialorder %v2823_v46, 0.0  ;;  %v2834_v16 = vld [vmem:[#allocation2 + $0x1c0] sm:$0xff] }
 0x2c4   : > { %4341 = vmatprep.subr.bf16.mxu0 %v6424_v44  ;;  %4727 = vmatprep.subr.bf16.mxu1 %v6427_v52  ;;  %v3077_v44 = vmul.f32 %v9515_v18, %v2819_v42  ;;  %v3081_v52 = vmul.f32 %v9515_v18, %v2823_v46  ;;  %v2838_v62 = vld [vmem:[#allocation2 + $0x1e0] sm:$0xff]  ;;  %vm2963_vm1 = vcmp.gt.f32.partialorder %v2834_v16, 0.0 }
 0x2c5   : > { %vm2967_vm2 = vcmp.gt.f32.partialorder %v2838_v62, 0.0 }
 0x2c6   : > { %4342 = vmatpush1.bf16.msra.mxu0 %v6422_v24  ;;  %4728 = vmatpush1.bf16.msra.mxu1 %v6425_v41  ;;  %v6452_v24 = vld [vmem:[#allocation13 + $0x2c0] ss:$16 sps:$4 sm:$0xff]   ;;  %v6455_v41 = vld [vmem:[#allocation13 + $0x2c8] ss:$16 sps:$4 sm:$0xff]   ;;  %v3205_v6 = vsel %vm2948_vm7, %v2819_v42, %v3077_v44  ;;  %v3209_v50 = vsel %vm2952_vm8, %v2823_v46, %v3081_v52  ;;  %v3212_v42 = vsel %vm2955_vm13, %v2826_v20, %v3084_v22 }
 0x2c7   : > { %4343 = vmatprep.subr.bf16.mxu0 %v6430_v28  ;;  %4729 = vmatprep.subr.bf16.mxu1 %v6433_v43  ;;  %v3196_v28 = vsel %vm2939_vm5, %v2810_v23, %v3068_v15  ;;  %v6458_v43 = vld [vmem:[#allocation13 + $0x2e0] ss:$16 sps:$4 sm:$0xff]   ;;  %v6490_v15 = vld [vmem:[#allocation13 + $0x384] ss:$16 sps:$4 sm:$0xff]   ;;  %v3092_v52 = vmul.f32 %v9515_v18, %v2834_v16 }
 0x2c8   : > { %v6500_v20 = vld [vmem:[#allocation13 + $0x3c0] ss:$16 sps:$4 sm:$0xff]  }
 0x2c9   : > { %4189 = vmatmul.mubr.bf16.gmra.mrb[4].mxu0 %v3296_v3  ;;  %4575 = vmatmul.mubr.bf16.gmra.mrb[4].mxu1 %v3296_v3  ;;  %v6461_v3 = vld [vmem:[#allocation13 + $0x2e8] ss:$16 sps:$4 sm:$0xff]  }
 0x2ca   : > { %4198 = vmatprep.mubr.bf16.mxu0 %v3301_v17  ;;  %4584 = vmatprep.mubr.bf16.mxu1 %v3301_v17  ;;  %v2831_v17 = vld [vmem:[#allocation2 + $0x1a8] sm:$0xff] }
 0x2cb   : > { %4344 = vmatpush1.bf16.msra.mxu0 %v6428_v61  ;;  %4730 = vmatpush1.bf16.msra.mxu1 %v6431_v37  ;;  %v3308_v61 = vpack.c.bf16 %v3200_v58, %v3196_v28  ;;  %v3313_v37 = vpack.c.bf16 %v3209_v50, %v3205_v6  ;;  %v3089_v30 = vmul.f32 %v9515_v18, %v2831_v17  ;;  %vm2960_vm12 = vcmp.gt.f32.partialorder %v2831_v17, 0.0  ;;  %v6496_v28 = vld [vmem:[#allocation13 + $0x3a4] ss:$16 sps:$4 sm:$0xff]   ;;  %v6499_v58 = vld [vmem:[#allocation13 + $0x3ac] ss:$16 sps:$4 sm:$0xff]  }
 0x2cc   : > { %4345 = vmatprep.subr.bf16.mxu0 %v6436_v35  ;;  %4731 = vmatprep.subr.bf16.mxu1 %v6439_v32  ;;  %v6464_v35 = vld [vmem:[#allocation13 + $0x300] ss:$16 sps:$4 sm:$0xff]   ;;  %v3085_v32 = vmul.f32 %v9515_v18, %v2827_v53  ;;  %v2842_v6 = vld [vmem:[#allocation2 + $0x200] sm:$0xff] }
 0x2cd   : > { %v2846_v50 = vld [vmem:[#allocation2 + $0x220] sm:$0xff]  ;;  %vm2971_vm5 = vcmp.gt.f32.partialorder %v2842_v6, 0.0 }
 0x2ce   : > { %vm2975_vm6 = vcmp.gt.f32.partialorder %v2846_v50, 0.0 }
 0x2cf   : > { %4346 = vmatpush1.bf16.msra.mxu0 %v6434_v45  ;;  %4732 = vmatpush1.bf16.msra.mxu1 %v6437_v59  ;;  %v6472_v45 = vld [vmem:[#allocation13 + $0x324] ss:$16 sps:$4 sm:$0xff]   ;;  %v2830_v59 = vld [vmem:[#allocation2 + $0x1a0] sm:$0xff] }
 0x2d0   : > { %4347 = vmatprep.subr.bf16.mxu0 %v6442_v56  ;;  %4733 = vmatprep.subr.bf16.mxu1 %v6445_v38  ;;  %v3213_v56 = vsel %vm2956_vm11, %v2827_v53, %v3085_v32  ;;  %v3217_v38 = vsel %vm2960_vm12, %v2831_v17, %v3089_v30  ;;  %vm2959_vm14 = vcmp.gt.f32.partialorder %v2830_v59, 0.0  ;;  %v3220_v53 = vsel %vm2963_vm1, %v2834_v16, %v3092_v52  ;;  %v2858_v16 = vld [vmem:[#allocation2 + $0x280] sm:$0xff] }
 0x2d1   : > { %4199 = vmatmul.mubr.bf16.gmra.mrb[8].mxu0 %v3300_v25  ;;  %4585 = vmatmul.mubr.bf16.gmra.mrb[8].mxu1 %v3300_v25  ;;  %v6473_v25 = vld [vmem:[#allocation13 + $0x328] ss:$16 sps:$4 sm:$0xff]   ;;  %v3317_v8 = vpack.c.bf16 %v3217_v38, %v3213_v56  ;;  %v3100_v30 = vmul.f32 %v9515_v18, %v2842_v6  ;;  %vm2987_vm13 = vcmp.gt.f32.partialorder %v2858_v16, 0.0 }
 0x2d2   : > { %4208 = vmatprep.mubr.bf16.mxu0 %v3305_v27  ;;  %4594 = vmatprep.mubr.bf16.mxu1 %v3305_v27  ;;  %v2839_v27 = vld [vmem:[#allocation2 + $0x1e8] sm:$0xff]  ;;  %v2850_v56 = vld [vmem:[#allocation2 + $0x240] sm:$0xff] }
 0x2d3   : > { %4348 = vmatpush1.bf16.msra.mxu0 %v6440_v5  ;;  %4734 = vmatpush1.bf16.msra.mxu1 %v6443_v13  ;;  %v3312_v5 = vpack.c.bf16 %v3208_v11, %v3204_v2  ;;  %v3088_v13 = vmul.f32 %v9515_v18, %v2830_v59  ;;  %v3097_v23 = vmul.f32 %v9515_v18, %v2839_v27  ;;  %vm2968_vm0 = vcmp.gt.f32.partialorder %v2839_v27, 0.0  ;;  %v6508_v2 = vld [vmem:[#allocation13 + $0x3e4] ss:$16 sps:$4 sm:$0xff]   ;;  %v6511_v11 = vld [vmem:[#allocation13 + $0x3ec] ss:$16 sps:$4 sm:$0xff]  }
 0x2d4   : > { %4349 = vmatprep.subr.bf16.mxu0 %v6448_v31  ;;  %4735 = vmatprep.subr.bf16.mxu1 %v6451_v4  ;;  %v6476_v31 = vld [vmem:[#allocation13 + $0x340] ss:$16 sps:$4 sm:$0xff]   ;;  %v3093_v4 = vmul.f32 %v9515_v18, %v2835_v40  ;;  %vm2979_vm9 = vcmp.gt.f32.partialorder %v2850_v56, 0.0 }
 0x2d5   : > { %v3225_v46 = vsel %vm2968_vm0, %v2839_v27, %v3097_v23  ;;  %v2854_v27 = vld [vmem:[#allocation2 + $0x260] sm:$0xff] }
 0x2d6   : > { %vm2983_vm10 = vcmp.gt.f32.partialorder %v2854_v27, 0.0 }
 0x2d7   : > { %4350 = vmatpush1.bf16.msra.mxu0 %v6446_v26  ;;  %4736 = vmatpush1.bf16.msra.mxu1 %v6449_v49  ;;  %v3216_v26 = vsel %vm2959_vm14, %v2830_v59, %v3088_v13  ;;  %v3221_v49 = vsel %vm2964_vm15, %v2835_v40, %v3093_v4  ;;  %v6503_v59 = vld [vmem:[#allocation13 + $0x3c8] ss:$16 sps:$4 sm:$0xff]   ;;  %v3228_v40 = vsel %vm2971_vm5, %v2842_v6, %v3100_v30 }
 0x2d8   : > { %4351 = vmatprep.subr.bf16.mxu0 %v6454_v10  ;;  %4737 = vmatprep.subr.bf16.mxu1 %v6457_v36  ;;  %v2843_v10 = vld [vmem:[#allocation2 + $0x208] sm:$0xff]  ;;  %v3321_v44 = vpack.c.bf16 %v3225_v46, %v3221_v49  ;;  %v3112_v4 = vmul.f32 %v9515_v18, %v2854_v27 }
 0x2d9   : > { %4209 = vmatmul.mubr.bf16.gmra.mrb[12].mxu0 %v3304_v34  ;;  %4595 = vmatmul.mubr.bf16.gmra.mrb[12].mxu1 %v3304_v34  ;;  %v6482_v36 = vld [vmem:[#allocation13 + $0x360] ss:$16 sps:$4 sm:$0xff]   ;;  %v6485_v34 = vld [vmem:[#allocation13 + $0x368] ss:$16 sps:$4 sm:$0xff]   ;;  %vm2972_vm3 = vcmp.gt.f32.partialorder %v2843_v10, 0.0 }
 0x2da   : > { %4218 = vmatprep.mubr.bf16.mxu0 %v3309_v7  ;;  %4604 = vmatprep.mubr.bf16.mxu1 %v3309_v7  ;;  %v2847_v7 = vld [vmem:[#allocation2 + $0x228] sm:$0xff] }
 0x2db   : > { %4352 = vmatpush1.bf16.msra.mxu0 %v6452_v24  ;;  %4738 = vmatpush1.bf16.msra.mxu1 %v6455_v41  ;;  %v3316_v24 = vpack.c.bf16 %v3216_v26, %v3212_v42  ;;  %v3096_v41 = vmul.f32 %v9515_v18, %v2838_v62  ;;  %vm2976_vm4 = vcmp.gt.f32.partialorder %v2847_v7, 0.0  ;;  %v2867_v49 = vld [vmem:[#allocation2 + $0x2c8] sm:$0xff] }
 0x2dc   : > { %4353 = vmatprep.subr.bf16.mxu0 %v6460_v9  ;;  %4739 = vmatprep.subr.bf16.mxu1 %v6463_v21  ;;  %v3101_v9 = vmul.f32 %v9515_v18, %v2843_v10  ;;  %v3105_v21 = vmul.f32 %v9515_v18, %v2847_v7  ;;  %v2871_v46 = vld [vmem:[#allocation2 + $0x2e8] sm:$0xff]  ;;  %vm2996_vm15 = vcmp.gt.f32.partialorder %v2867_v49, 0.0 }
 0x2dd   : > { %vm3000_vm0 = vcmp.gt.f32.partialorder %v2871_v46, 0.0 }
 0x2de   : > { %v3233_v17 = vsel %vm2976_vm4, %v2847_v7, %v3105_v21  ;;  %v2870_v21 = vld [vmem:[#allocation2 + $0x2e0] sm:$0xff] }
 0x2df   : > { %4354 = vmatpush1.bf16.msra.mxu0 %v6458_v43  ;;  %4740 = vmatpush1.bf16.msra.mxu1 %v6461_v3  ;;  %v3224_v43 = vsel %vm2967_vm2, %v2838_v62, %v3096_v41  ;;  %v3229_v3 = vsel %vm2972_vm3, %v2843_v10, %v3101_v9  ;;  %v2862_v62 = vld [vmem:[#allocation2 + $0x2a0] sm:$0xff]  ;;  %vm2999_vm2 = vcmp.gt.f32.partialorder %v2870_v21, 0.0 }
 0x2e0   : > { %4355 = vmatprep.subr.bf16.mxu0 %v6466_v39  ;;  %4741 = vmatprep.subr.bf16.mxu1 %v6469_v57  ;;  %v2851_v39 = vld [vmem:[#allocation2 + $0x248] sm:$0xff]  ;;  %v3325_v32 = vpack.c.bf16 %v3233_v17, %v3229_v3  ;;  %v3120_v7 = vmul.f32 %v9515_v18, %v2862_v62  ;;  %vm2991_vm14 = vcmp.gt.f32.partialorder %v2862_v62, 0.0  ;;  %v2866_v9 = vld [vmem:[#allocation2 + $0x2c0] sm:$0xff] }
 0x2e1   : > { %4219 = vmatmul.mubr.bf16.gmra.mrb[16].mxu0 %v3308_v61  ;;  %4605 = vmatmul.mubr.bf16.gmra.mrb[16].mxu1 %v3308_v61  ;;  %v6494_v57 = vld [vmem:[#allocation13 + $0x3a0] ss:$16 sps:$4 sm:$0xff]   ;;  %v6497_v61 = vld [vmem:[#allocation13 + $0x3a8] ss:$16 sps:$4 sm:$0xff]   ;;  %vm2980_vm7 = vcmp.gt.f32.partialorder %v2851_v39, 0.0  ;;  %vm2995_vm1 = vcmp.gt.f32.partialorder %v2866_v9, 0.0 }
 0x2e2   : > { %4228 = vmatprep.mubr.bf16.mxu0 %v3313_v37  ;;  %4614 = vmatprep.mubr.bf16.mxu1 %v3313_v37  ;;  %v2855_v37 = vld [vmem:[#allocation2 + $0x268] sm:$0xff] }
 0x2e3   : > { %4356 = vmatpush1.bf16.msra.mxu0 %v6464_v35  ;;  %4742 = vmatpush1.bf16.msra.mxu1 %v6467_v14  ;;  %v3320_v35 = vpack.c.bf16 %v3224_v43, %v3220_v53  ;;  %v3104_v14 = vmul.f32 %v9515_v18, %v2846_v50  ;;  %vm2984_vm8 = vcmp.gt.f32.partialorder %v2855_v37, 0.0  ;;  %v3124_v53 = vmul.f32 %v9515_v18, %v2866_v9 }
 0x2e4   : > { %4357 = vmatprep.subr.bf16.mxu0 %v6472_v45  ;;  %4743 = vmatprep.subr.bf16.mxu1 %v6475_v60  ;;  %v3109_v45 = vmul.f32 %v9515_v18, %v2851_v39  ;;  %v3113_v60 = vmul.f32 %v9515_v18, %v2855_v37  ;;  %v3128_v43 = vmul.f32 %v9515_v18, %v2870_v21 }
 0x2e5   : > { %v3252_v3 = vsel %vm2995_vm1, %v2866_v9, %v3124_v53 }
 0x2e6   : > { %v3237_v38 = vsel %vm2980_vm7, %v2851_v39, %v3109_v45  ;;  %v3256_v17 = vsel %vm2999_vm2, %v2870_v21, %v3128_v43 }
 0x2e7   : > { %4358 = vmatpush1.bf16.msra.mxu0 %v6470_v29  ;;  %4744 = vmatpush1.bf16.msra.mxu1 %v6473_v25  ;;  %v3232_v29 = vsel %vm2975_vm6, %v2846_v50, %v3104_v14  ;;  %v3241_v25 = vsel %vm2984_vm8, %v2855_v37, %v3113_v60  ;;  %v2878_v37 = vld [vmem:[#allocation2 + $0x320] sm:$0xff] }
 0x2e8   : > { %4359 = vmatprep.subr.bf16.mxu0 %v6478_v63  ;;  %4745 = vmatprep.subr.bf16.mxu1 %v6481_v51  ;;  %v6506_v63 = vld [vmem:[#allocation13 + $0x3e0] ss:$16 sps:$4 sm:$0xff]   ;;  %v6509_v51 = vld [vmem:[#allocation13 + $0x3e8] ss:$16 sps:$4 sm:$0xff]   ;;  %v3324_v22 = vpack.c.bf16 %v3232_v29, %v3228_v40  ;;  %v3329_v13 = vpack.c.bf16 %v3241_v25, %v3237_v38  ;;  %v3136_v14 = vmul.f32 %v9515_v18, %v2878_v37  ;;  %vm3007_vm6 = vcmp.gt.f32.partialorder %v2878_v37, 0.0 }
 0x2e9   : > { %4229 = vmatmul.mubr.bf16.gmra.mrb[20].mxu0 %v3312_v5  ;;  %4615 = vmatmul.mubr.bf16.gmra.mrb[20].mxu1 %v3312_v5  ;;  %v2859_v5 = vld [vmem:[#allocation2 + $0x288] sm:$0xff]  ;;  %v2882_v40 = vld [vmem:[#allocation2 + $0x340] sm:$0xff] }
 0x2ea   : > { %4238 = vmatprep.mubr.bf16.mxu0 %v3317_v8  ;;  %4624 = vmatprep.mubr.bf16.mxu1 %v3317_v8  ;;  %v2863_v8 = vld [vmem:[#allocation2 + $0x2a8] sm:$0xff]  ;;  %v3117_v23 = vmul.f32 %v9515_v18, %v2859_v5  ;;  %vm2988_vm11 = vcmp.gt.f32.partialorder %v2859_v5, 0.0  ;;  %v2886_v29 = vld [vmem:[#allocation2 + $0x360] sm:$0xff] }
 0x2eb   : > { %4360 = vmatpush1.bf16.msra.mxu0 %v6476_v31  ;;  %4746 = vmatpush1.bf16.msra.mxu1 %v6479_v19  ;;  %v3108_v31 = vmul.f32 %v9515_v18, %v2850_v56  ;;  %v3121_v19 = vmul.f32 %v9515_v18, %v2863_v8  ;;  %vm2992_vm12 = vcmp.gt.f32.partialorder %v2863_v8, 0.0  ;;  %v2895_v38 = vld [vmem:[#allocation2 + $0x3a8] sm:$0xff] }
 0x2ec   : > { %4361 = vmatprep.subr.bf16.mxu0 %v6484_v54  ;;  %4747 = vmatprep.subr.bf16.mxu1 %v6487_v48  ;;  %v3240_v48 = vsel %vm2983_vm10, %v2854_v27, %v3112_v4  ;;  %v3245_v42 = vsel %vm2988_vm11, %v2859_v5, %v3117_v23  ;;  %vm3015_vm10 = vcmp.gt.f32.partialorder %v2886_v29, 0.0  ;;  %v2890_v23 = vld [vmem:[#allocation2 + $0x380] sm:$0xff] }
 0x2ed   : > { %v3236_v54 = vsel %vm2979_vm9, %v2850_v56, %v3108_v31  ;;  %v3249_v26 = vsel %vm2992_vm12, %v2863_v8, %v3121_v19  ;;  %v2891_v56 = vld [vmem:[#allocation2 + $0x388] sm:$0xff]  ;;  %vm3011_vm9 = vcmp.gt.f32.partialorder %v2882_v40, 0.0  ;;  %v3153_v8 = vmul.f32 %v9515_v18, %v2895_v38  ;;  %v2894_v19 = vld [vmem:[#allocation2 + $0x3a0] sm:$0xff] }
 0x2ee   : > { %v3328_v10 = vpack.c.bf16 %v3240_v48, %v3236_v54  ;;  %v3149_v5 = vmul.f32 %v9515_v18, %v2891_v56  ;;  %vm3020_vm11 = vcmp.gt.f32.partialorder %v2891_v56, 0.0  ;;  %vm3024_vm12 = vcmp.gt.f32.partialorder %v2895_v38, 0.0  ;;  %v2899_v54 = vld [vmem:[#allocation2 + $0x3c8] sm:$0xff] }
 0x2ef   : > { %4362 = vmatpush1.bf16.msra.mxu0 %v6482_v36  ;;  %4748 = vmatpush1.bf16.msra.mxu1 %v6485_v34  ;;  %v3333_v36 = vpack.c.bf16 %v3249_v26, %v3245_v42  ;;  %v3116_v34 = vmul.f32 %v9515_v18, %v2858_v16  ;;  %v3281_v4 = vsel %vm3024_vm12, %v2895_v38, %v3153_v8  ;;  %v2903_v48 = vld [vmem:[#allocation2 + $0x3e8] sm:$0xff]  ;;  %v2800_v8 = vld [vmem:[#allocation2 + $0xb0] sm:$0xff] }
 0x2f0   : > { %4363 = vmatprep.subr.bf16.mxu0 %v6490_v15  ;;  %4749 = vmatprep.subr.bf16.mxu1 %v6493_v55  ;;  %v3125_v15 = vmul.f32 %v9515_v18, %v2867_v49  ;;  %v3129_v55 = vmul.f32 %v9515_v18, %v2871_v46  ;;  %v3277_v31 = vsel %vm3020_vm11, %v2891_v56, %v3149_v5  ;;  %v2796_v5 = vld [vmem:[#allocation2 + $0x90] sm:$0xff] }
 0x2f1   : > { %4239 = vmatmul.mubr.bf16.gmra.mrb[24].mxu0 %v3316_v24  ;;  %4625 = vmatmul.mubr.bf16.gmra.mrb[24].mxu1 %v3316_v24  ;;  %v3244_v24 = vsel %vm2987_vm13, %v2858_v16, %v3116_v34  ;;  %v3349_v26 = vpack.c.bf16 %v3281_v4, %v3277_v31  ;;  %v3148_v16 = vmul.f32 %v9515_v18, %v2890_v23  ;;  %vm3019_vm13 = vcmp.gt.f32.partialorder %v2890_v23, 0.0 }
 0x2f2   : > { %4248 = vmatprep.mubr.bf16.mxu0 %v3321_v44  ;;  %4634 = vmatprep.mubr.bf16.mxu1 %v3321_v44  ;;  %v3248_v44 = vsel %vm2991_vm14, %v2862_v62, %v3120_v7  ;;  %v3253_v52 = vsel %vm2996_vm15, %v2867_v49, %v3125_v15  ;;  %v3257_v41 = vsel %vm3000_vm0, %v2871_v46, %v3129_v55  ;;  %vm3023_vm14 = vcmp.gt.f32.partialorder %v2894_v19, 0.0  ;;  %v2898_v15 = vld [vmem:[#allocation2 + $0x3c0] sm:$0xff] }
 0x2f3   : > { %4364 = vmatpush1.bf16.msra.mxu0 %v6488_v33  ;;  %4750 = vmatpush1.bf16.msra.mxu1 %v6491_v1  ;;  %v2875_v33 = vld [vmem:[#allocation2 + $0x308] sm:$0xff]  ;;  %v3152_v62 = vmul.f32 %v9515_v18, %v2894_v19  ;;  %v3157_v49 = vmul.f32 %v9515_v18, %v2899_v54  ;;  %v3161_v46 = vmul.f32 %v9515_v18, %v2903_v48  ;;  %vm3028_vm15 = vcmp.gt.f32.partialorder %v2899_v54, 0.0  ;;  %v2902_v55 = vld [vmem:[#allocation2 + $0x3e0] sm:$0xff] }
 0x2f4   : > { %4365 = vmatprep.subr.bf16.mxu0 %v6496_v28  ;;  %4751 = vmatprep.subr.bf16.mxu1 %v6499_v58  ;;  %v2879_v1 = vld [vmem:[#allocation2 + $0x328] sm:$0xff]  ;;  %v3332_v28 = vpack.c.bf16 %v3248_v44, %v3244_v24  ;;  %v3337_v58 = vpack.c.bf16 %v3257_v41, %v3253_v52  ;;  %v3133_v6 = vmul.f32 %v9515_v18, %v2875_v33  ;;  %vm3004_vm3 = vcmp.gt.f32.partialorder %v2875_v33, 0.0  ;;  %v2781_v24 = vld [vmem:[#allocation2 + $0x18] sm:$0xff] }
 0x2f5   : > { %v3137_v50 = vmul.f32 %v9515_v18, %v2879_v1  ;;  %vm3008_vm4 = vcmp.gt.f32.partialorder %v2879_v1, 0.0  ;;  %vm3032_vm0 = vcmp.gt.f32.partialorder %v2903_v48, 0.0  ;;  %v3285_v34 = vsel %vm3028_vm15, %v2899_v54, %v3157_v49  ;;  %v2785_v44 = vld [vmem:[#allocation2 + $0x38] sm:$0xff]  ;;  %v2804_v49 = vld [vmem:[#allocation2 + $0xd0] sm:$0xff] }
 0x2f6   : > { %v3261_v39 = vsel %vm3004_vm3, %v2875_v33, %v3133_v6  ;;  %v3289_v7 = vsel %vm3032_vm0, %v2903_v48, %v3161_v46  ;;  %v3156_v9 = vmul.f32 %v9515_v18, %v2898_v15  ;;  %v3160_v21 = vmul.f32 %v9515_v18, %v2902_v55  ;;  %v2780_v6 = vld [vmem:[#allocation2 + $0x10] sm:$0xff] }
 0x2f7   : > { %4366 = vmatpush1.bf16.msra.mxu0 %v6494_v57  ;;  %4752 = vmatpush1.bf16.msra.mxu1 %v6497_v61  ;;  %v3265_v57 = vsel %vm3008_vm4, %v2879_v1, %v3137_v50  ;;  %v2874_v61 = vld [vmem:[#allocation2 + $0x300] sm:$0xff]  ;;  %v3353_v41 = vpack.c.bf16 %v3289_v7, %v3285_v34  ;;  %vm3027_vm1 = vcmp.gt.f32.partialorder %v2898_v15, 0.0  ;;  %vm3031_vm2 = vcmp.gt.f32.partialorder %v2902_v55, 0.0  ;;  %v2784_v50 = vld [vmem:[#allocation2 + $0x30] sm:$0xff] }
 0x2f8   : > { %4367 = vmatprep.subr.bf16.mxu0 %v6502_v0  ;;  %4753 = vmatprep.subr.bf16.mxu1 %v6505_v12  ;;  %v2883_v0 = vld [vmem:[#allocation2 + $0x348] sm:$0xff]  ;;  %v3132_v30 = vmul.f32 %v9515_v18, %v2874_v61  ;;  %vm3003_vm5 = vcmp.gt.f32.partialorder %v2874_v61, 0.0  ;;  %v3039_v33 = vmul.f32 %v9515_v18, %v2781_v24  ;;  %v3043_v1 = vmul.f32 %v9515_v18, %v2785_v44  ;;  %v2808_v46 = vld [vmem:[#allocation2 + $0xf0] sm:$0xff] }
 0x2f9   : > { %4249 = vmatmul.mubr.bf16.gmra.mrb[28].mxu0 %v3320_v35  ;;  %4635 = vmatmul.mubr.bf16.gmra.mrb[28].mxu1 %v3320_v35  ;;  %v2887_v12 = vld [vmem:[#allocation2 + $0x368] sm:$0xff]  ;;  %v3336_v35 = vpack.c.bf16 %v3256_v17, %v3252_v3  ;;  %v3141_v45 = vmul.f32 %v9515_v18, %v2883_v0  ;;  %vm3012_vm7 = vcmp.gt.f32.partialorder %v2883_v0, 0.0  ;;  %vm2910_vm3 = vcmp.gt.f32.partialorder %v2781_v24, 0.0  ;;  %v2789_v3 = vld [vmem:[#allocation2 + $0x58] sm:$0xff] }
 0x2fa   : > { %4258 = vmatprep.mubr.bf16.mxu0 %v3325_v32  ;;  %4644 = vmatprep.mubr.bf16.mxu1 %v3325_v32  ;;  %v3341_v32 = vpack.c.bf16 %v3265_v57, %v3261_v39  ;;  %v3145_v60 = vmul.f32 %v9515_v18, %v2887_v12  ;;  %vm3016_vm8 = vcmp.gt.f32.partialorder %v2887_v12, 0.0  ;;  %vm2914_vm4 = vcmp.gt.f32.partialorder %v2785_v44, 0.0  ;;  %v2793_v17 = vld [vmem:[#allocation2 + $0x78] sm:$0xff] }
 0x2fb   : > { %4368 = vmatpush1.bf16.msra.mxu0 %v6500_v20  ;;  %4754 = vmatpush1.bf16.msra.mxu1 %v6503_v59  ;;  %v3260_v20 = vsel %vm3003_vm5, %v2874_v61, %v3132_v30  ;;  %v3264_v59 = vsel %vm3007_vm6, %v2878_v37, %v3136_v14  ;;  %v3167_v53 = vsel %vm2910_vm3, %v2781_v24, %v3039_v33  ;;  %vm2909_vm5 = vcmp.gt.f32.partialorder %v2780_v6, 0.0  ;;  %v2812_v33 = vld [vmem:[#allocation2 + $0x110] sm:$0xff] }
 0x2fc   : > { %4369 = vmatprep.subr.bf16.mxu0 %v6508_v2  ;;  %4755 = vmatprep.subr.bf16.mxu1 %v6511_v11  ;;  %v3269_v2 = vsel %vm3012_vm7, %v2883_v0, %v3141_v45  ;;  %v3273_v11 = vsel %vm3016_vm8, %v2887_v12, %v3145_v60  ;;  %v3340_v25 = vpack.c.bf16 %v3264_v59, %v3260_v20  ;;  %vm2913_vm6 = vcmp.gt.f32.partialorder %v2784_v50, 0.0  ;;  %v2788_v45 = vld [vmem:[#allocation2 + $0x50] sm:$0xff]  ;;  %v2797_v20 = vld [vmem:[#allocation2 + $0x98] sm:$0xff] }
 0x2fd   : > { %v3345_v27 = vpack.c.bf16 %v3273_v11, %v3269_v2  ;;  %v3171_v43 = vsel %vm2914_vm4, %v2785_v44, %v3043_v1  ;;  %v3038_v61 = vmul.f32 %v9515_v18, %v2780_v6  ;;  %v3042_v37 = vmul.f32 %v9515_v18, %v2784_v50  ;;  %v2792_v60 = vld [vmem:[#allocation2 + $0x70] sm:$0xff]  ;;  %v2801_v59 = vld [vmem:[#allocation2 + $0xb8] sm:$0xff] }
 0x2fe   : > { %v3295_v57 = vpack.c.bf16 %v3171_v43, %v3167_v53  ;;  %v3047_v0 = vmul.f32 %v9515_v18, %v2789_v3  ;;  %v3051_v12 = vmul.f32 %v9515_v18, %v2793_v17  ;;  %vm2918_vm7 = vcmp.gt.f32.partialorder %v2789_v3, 0.0  ;;  %v2816_v1 = vld [vmem:[#allocation2 + $0x130] sm:$0xff] }
 0x2ff   : > { %4370 = vmatpush1.bf16.msra.mxu0 %v6506_v63  ;;  %4756 = vmatpush1.bf16.msra.mxu1 %v6509_v51  ;;  %v3140_v63 = vmul.f32 %v9515_v18, %v2882_v40  ;;  %v3144_v51 = vmul.f32 %v9515_v18, %v2886_v29  ;;  %vm2922_vm8 = vcmp.gt.f32.partialorder %v2793_v17, 0.0  ;;  %v3055_v56 = vmul.f32 %v9515_v18, %v2797_v20 }
 0x300   : > { %v3175_v30 = vsel %vm2918_vm7, %v2789_v3, %v3047_v0  ;;  %v3179_v14 = vsel %vm2922_vm8, %v2793_v17, %v3051_v12  ;;  %v3059_v38 = vmul.f32 %v9515_v18, %v2801_v59  ;;  %vm2926_vm11 = vcmp.gt.f32.partialorder %v2797_v20, 0.0  ;;  %v2820_v0 = vld [vmem:[#allocation2 + $0x150] sm:$0xff] }
 0x301   : > { %4259 = vmatmul.mubr.bf16.gmra.mrb[32].mxu0 %v3324_v22  ;;  %4645 = vmatmul.mubr.bf16.gmra.mrb[32].mxu1 %v3324_v22  ;;  %v3268_v22 = vsel %vm3011_vm9, %v2882_v40, %v3140_v63  ;;  %v3299_v11 = vpack.c.bf16 %v3179_v14, %v3175_v30  ;;  %v3046_v40 = vmul.f32 %v9515_v18, %v2788_v45  ;;  %vm2917_vm9 = vcmp.gt.f32.partialorder %v2788_v45, 0.0  ;;  %v2824_v12 = vld [vmem:[#allocation2 + $0x170] sm:$0xff] }
 0x302   : > { %4268 = vmatprep.mubr.bf16.mxu0 %v3329_v13  ;;  %4654 = vmatprep.mubr.bf16.mxu1 %v3329_v13  ;;  %v3272_v13 = vsel %vm3015_vm10, %v2886_v29, %v3144_v51  ;;  %v3050_v29 = vmul.f32 %v9515_v18, %v2792_v60  ;;  %vm2921_vm10 = vcmp.gt.f32.partialorder %v2792_v60, 0.0  ;;  %vm2930_vm12 = vcmp.gt.f32.partialorder %v2801_v59, 0.0 }
 0x303   : > { %v3344_v42 = vpack.c.bf16 %v3272_v13, %v3268_v22  ;;  %v3183_v63 = vsel %vm2926_vm11, %v2797_v20, %v3055_v56  ;;  %v3187_v51 = vsel %vm2930_vm12, %v2801_v59, %v3059_v38  ;;  %v2805_v22 = vld [vmem:[#allocation2 + $0xd8] sm:$0xff]  ;;  %v2828_v56 = vld [vmem:[#allocation2 + $0x190] sm:$0xff] }
 0x304   : > { %v2809_v13 = vld [vmem:[#allocation2 + $0xf8] sm:$0xff]  ;;  %v3303_v4 = vpack.c.bf16 %v3187_v51, %v3183_v63  ;;  %v3063_v54 = vmul.f32 %v9515_v18, %v2805_v22  ;;  %vm2934_vm15 = vcmp.gt.f32.partialorder %v2805_v22, 0.0  ;;  %v2832_v38 = vld [vmem:[#allocation2 + $0x1b0] sm:$0xff] }
 0x305   : > { %v3067_v48 = vmul.f32 %v9515_v18, %v2809_v13  ;;  %vm2938_vm0 = vcmp.gt.f32.partialorder %v2809_v13, 0.0 }
 0x309   : > { %4269 = vmatmul.mubr.bf16.gmra.mrb[36].mxu0 %v3328_v10  ;;  %4655 = vmatmul.mubr.bf16.gmra.mrb[36].mxu1 %v3328_v10  ;;  %v3276_v10 = vsel %vm3019_vm13, %v2890_v23, %v3148_v16  ;;  %v3054_v23 = vmul.f32 %v9515_v18, %v2796_v5  ;;  %vm2925_vm13 = vcmp.gt.f32.partialorder %v2796_v5, 0.0  ;;  %v3191_v16 = vsel %vm2934_vm15, %v2805_v22, %v3063_v54  ;;  %v2836_v54 = vld [vmem:[#allocation2 + $0x1d0] sm:$0xff] }
 0x30a   : > { %4278 = vmatprep.mubr.bf16.mxu0 %v3333_v36  ;;  %4664 = vmatprep.mubr.bf16.mxu1 %v3333_v36  ;;  %v3280_v36 = vsel %vm3023_vm14, %v2894_v19, %v3152_v62  ;;  %v3058_v19 = vmul.f32 %v9515_v18, %v2800_v8  ;;  %vm2929_vm14 = vcmp.gt.f32.partialorder %v2800_v8, 0.0  ;;  %v3195_v62 = vsel %vm2938_vm0, %v2809_v13, %v3067_v48  ;;  %v2840_v48 = vld [vmem:[#allocation2 + $0x1f0] sm:$0xff] }
 0x30b   : > { %v3348_v52 = vpack.c.bf16 %v3280_v36, %v3276_v10  ;;  %v2813_v10 = vld [vmem:[#allocation2 + $0x118] sm:$0xff]  ;;  %v3307_v7 = vpack.c.bf16 %v3195_v62, %v3191_v16 }
 0x30c   : > { %v2817_v36 = vld [vmem:[#allocation2 + $0x138] sm:$0xff]  ;;  %v3071_v24 = vmul.f32 %v9515_v18, %v2813_v10  ;;  %vm2942_vm3 = vcmp.gt.f32.partialorder %v2813_v10, 0.0 }
 0x30d   : > { %v3075_v44 = vmul.f32 %v9515_v18, %v2817_v36  ;;  %vm2946_vm4 = vcmp.gt.f32.partialorder %v2817_v36, 0.0 }
 0x311   : > { %4279 = vmatmul.mubr.bf16.gmra.mrb[40].mxu0 %v3332_v28  ;;  %4665 = vmatmul.mubr.bf16.gmra.mrb[40].mxu1 %v3332_v28  ;;  %v3284_v28 = vsel %vm3027_vm1, %v2898_v15, %v3156_v9  ;;  %v3062_v15 = vmul.f32 %v9515_v18, %v2804_v49  ;;  %vm2933_vm1 = vcmp.gt.f32.partialorder %v2804_v49, 0.0  ;;  %v3199_v9 = vsel %vm2942_vm3, %v2813_v10, %v3071_v24  ;;  %v2844_v24 = vld [vmem:[#allocation2 + $0x210] sm:$0xff] }
 0x312   : > { %4288 = vmatprep.mubr.bf16.mxu0 %v3337_v58  ;;  %4674 = vmatprep.mubr.bf16.mxu1 %v3337_v58  ;;  %v3288_v58 = vsel %vm3031_vm2, %v2902_v55, %v3160_v21  ;;  %v3066_v55 = vmul.f32 %v9515_v18, %v2808_v46  ;;  %vm2937_vm2 = vcmp.gt.f32.partialorder %v2808_v46, 0.0  ;;  %v3203_v21 = vsel %vm2946_vm4, %v2817_v36, %v3075_v44  ;;  %v2848_v44 = vld [vmem:[#allocation2 + $0x230] sm:$0xff] }
 0x313   : > { %v3352_v39 = vpack.c.bf16 %v3288_v58, %v3284_v28  ;;  %v2821_v28 = vld [vmem:[#allocation2 + $0x158] sm:$0xff]  ;;  %v3311_v43 = vpack.c.bf16 %v3203_v21, %v3199_v9 }
 0x314   : > { %v2825_v58 = vld [vmem:[#allocation2 + $0x178] sm:$0xff]  ;;  %v3079_v3 = vmul.f32 %v9515_v18, %v2821_v28  ;;  %vm2950_vm7 = vcmp.gt.f32.partialorder %v2821_v28, 0.0 }
 0x315   : > { %v3083_v17 = vmul.f32 %v9515_v18, %v2825_v58  ;;  %vm2954_vm8 = vcmp.gt.f32.partialorder %v2825_v58, 0.0 }
 0x319   : > { %4289 = vmatmul.mubr.bf16.gmra.mrb[44].mxu0 %v3336_v35  ;;  %4675 = vmatmul.mubr.bf16.gmra.mrb[44].mxu1 %v3336_v35  ;;  %v3166_v35 = vsel %vm2909_vm5, %v2780_v6, %v3038_v61  ;;  %v3070_v6 = vmul.f32 %v9515_v18, %v2812_v33  ;;  %vm2941_vm5 = vcmp.gt.f32.partialorder %v2812_v33, 0.0  ;;  %v3207_v61 = vsel %vm2950_vm7, %v2821_v28, %v3079_v3  ;;  %v2852_v3 = vld [vmem:[#allocation2 + $0x250] sm:$0xff] }
 0x31a   : > { %4298 = vmatprep.mubr.bf16.mxu0 %v3341_v32  ;;  %4684 = vmatprep.mubr.bf16.mxu1 %v3341_v32  ;;  %v3170_v32 = vsel %vm2913_vm6, %v2784_v50, %v3042_v37  ;;  %v3074_v50 = vmul.f32 %v9515_v18, %v2816_v1  ;;  %vm2945_vm6 = vcmp.gt.f32.partialorder %v2816_v1, 0.0  ;;  %v3211_v37 = vsel %vm2954_vm8, %v2825_v58, %v3083_v17  ;;  %v2856_v17 = vld [vmem:[#allocation2 + $0x270] sm:$0xff] }
 0x31b   : > { %v3294_v2 = vpack.c.bf16 %v3170_v32, %v3166_v35  ;;  %v2829_v35 = vld [vmem:[#allocation2 + $0x198] sm:$0xff]  ;;  %v3315_v14 = vpack.c.bf16 %v3211_v37, %v3207_v61 }
 0x31c   : > { %v2833_v32 = vld [vmem:[#allocation2 + $0x1b8] sm:$0xff]  ;;  %v3087_v20 = vmul.f32 %v9515_v18, %v2829_v35  ;;  %vm2958_vm11 = vcmp.gt.f32.partialorder %v2829_v35, 0.0 }
 0x31d   : > { %v3091_v59 = vmul.f32 %v9515_v18, %v2833_v32  ;;  %vm2962_vm12 = vcmp.gt.f32.partialorder %v2833_v32, 0.0 }
 0x321   : > { %4299 = vmatmul.mubr.bf16.gmra.mrb[48].mxu0 %v3340_v25  ;;  %4685 = vmatmul.mubr.bf16.gmra.mrb[48].mxu1 %v3340_v25  ;;  %v3174_v25 = vsel %vm2917_vm9, %v2788_v45, %v3046_v40  ;;  %v3078_v45 = vmul.f32 %v9515_v18, %v2820_v0  ;;  %vm2949_vm9 = vcmp.gt.f32.partialorder %v2820_v0, 0.0  ;;  %v3215_v40 = vsel %vm2958_vm11, %v2829_v35, %v3087_v20  ;;  %v2860_v20 = vld [vmem:[#allocation2 + $0x290] sm:$0xff] }
 0x322   : > { %4308 = vmatprep.mubr.bf16.mxu0 %v3345_v27  ;;  %4694 = vmatprep.mubr.bf16.mxu1 %v3345_v27  ;;  %v3178_v27 = vsel %vm2921_vm10, %v2792_v60, %v3050_v29  ;;  %v3082_v60 = vmul.f32 %v9515_v18, %v2824_v12  ;;  %vm2953_vm10 = vcmp.gt.f32.partialorder %v2824_v12, 0.0  ;;  %v3219_v29 = vsel %vm2962_vm12, %v2833_v32, %v3091_v59  ;;  %v2864_v59 = vld [vmem:[#allocation2 + $0x2b0] sm:$0xff] }
 0x323   : > { %v3298_v31 = vpack.c.bf16 %v3178_v27, %v3174_v25  ;;  %v2837_v25 = vld [vmem:[#allocation2 + $0x1d8] sm:$0xff]  ;;  %v3319_v51 = vpack.c.bf16 %v3219_v29, %v3215_v40 }
 0x324   : > { %v2841_v27 = vld [vmem:[#allocation2 + $0x1f8] sm:$0xff]  ;;  %v3095_v22 = vmul.f32 %v9515_v18, %v2837_v25  ;;  %vm2966_vm15 = vcmp.gt.f32.partialorder %v2837_v25, 0.0 }
 0x325   : > { %v3099_v13 = vmul.f32 %v9515_v18, %v2841_v27  ;;  %vm2970_vm0 = vcmp.gt.f32.partialorder %v2841_v27, 0.0 }
 0x329   : > { %4309 = vmatmul.mubr.bf16.gmra.mrb[52].mxu0 %v3344_v42  ;;  %4695 = vmatmul.mubr.bf16.gmra.mrb[52].mxu1 %v3344_v42  ;;  %v3182_v42 = vsel %vm2925_vm13, %v2796_v5, %v3054_v23  ;;  %v3086_v5 = vmul.f32 %v9515_v18, %v2828_v56  ;;  %vm2957_vm13 = vcmp.gt.f32.partialorder %v2828_v56, 0.0  ;;  %v3223_v23 = vsel %vm2966_vm15, %v2837_v25, %v3095_v22  ;;  %v2868_v22 = vld [vmem:[#allocation2 + $0x2d0] sm:$0xff] }
 0x32a   : > { %4318 = vmatprep.mubr.bf16.mxu0 %v3349_v26  ;;  %4704 = vmatprep.mubr.bf16.mxu1 %v3349_v26  ;;  %v3186_v26 = vsel %vm2929_vm14, %v2800_v8, %v3058_v19  ;;  %v3090_v8 = vmul.f32 %v9515_v18, %v2832_v38  ;;  %vm2961_vm14 = vcmp.gt.f32.partialorder %v2832_v38, 0.0  ;;  %v3227_v19 = vsel %vm2970_vm0, %v2841_v27, %v3099_v13  ;;  %v2872_v13 = vld [vmem:[#allocation2 + $0x2f0] sm:$0xff] }
 0x32b   : > { %v3302_v34 = vpack.c.bf16 %v3186_v26, %v3182_v42  ;;  %v2845_v42 = vld [vmem:[#allocation2 + $0x218] sm:$0xff]  ;;  %v3323_v62 = vpack.c.bf16 %v3227_v19, %v3223_v23 }
 0x32c   : > { %v2849_v26 = vld [vmem:[#allocation2 + $0x238] sm:$0xff]  ;;  %v3103_v10 = vmul.f32 %v9515_v18, %v2845_v42  ;;  %vm2974_vm3 = vcmp.gt.f32.partialorder %v2845_v42, 0.0 }
 0x32d   : > { %v3107_v36 = vmul.f32 %v9515_v18, %v2849_v26  ;;  %vm2978_vm4 = vcmp.gt.f32.partialorder %v2849_v26, 0.0 }
 0x331   : > { %4319 = vmatmul.mubr.bf16.gmra.mrb[56].mxu0 %v3348_v52  ;;  %4705 = vmatmul.mubr.bf16.gmra.mrb[56].mxu1 %v3348_v52  ;;  %v3190_v52 = vsel %vm2933_vm1, %v2804_v49, %v3062_v15  ;;  %v3094_v49 = vmul.f32 %v9515_v18, %v2836_v54  ;;  %vm2965_vm1 = vcmp.gt.f32.partialorder %v2836_v54, 0.0  ;;  %v3231_v15 = vsel %vm2974_vm3, %v2845_v42, %v3103_v10  ;;  %v2876_v10 = vld [vmem:[#allocation2 + $0x310] sm:$0xff] }
 0x332   : > { %4328 = vmatprep.mubr.bf16.mxu0 %v3353_v41  ;;  %4714 = vmatprep.mubr.bf16.mxu1 %v3353_v41  ;;  %v3194_v41 = vsel %vm2937_vm2, %v2808_v46, %v3066_v55  ;;  %v3098_v46 = vmul.f32 %v9515_v18, %v2840_v48  ;;  %vm2969_vm2 = vcmp.gt.f32.partialorder %v2840_v48, 0.0  ;;  %v3235_v55 = vsel %vm2978_vm4, %v2849_v26, %v3107_v36  ;;  %v2880_v36 = vld [vmem:[#allocation2 + $0x330] sm:$0xff] }
 0x333   : > { %v3306_v53 = vpack.c.bf16 %v3194_v41, %v3190_v52  ;;  %v2853_v52 = vld [vmem:[#allocation2 + $0x258] sm:$0xff]  ;;  %v3327_v21 = vpack.c.bf16 %v3235_v55, %v3231_v15 }
 0x334   : > { %v2857_v41 = vld [vmem:[#allocation2 + $0x278] sm:$0xff]  ;;  %v3111_v28 = vmul.f32 %v9515_v18, %v2853_v52  ;;  %vm2982_vm7 = vcmp.gt.f32.partialorder %v2853_v52, 0.0 }
 0x335   : > { %v3115_v58 = vmul.f32 %v9515_v18, %v2857_v41  ;;  %vm2986_vm8 = vcmp.gt.f32.partialorder %v2857_v41, 0.0 }
 0x339   : > { %4329 = vmatmul.mubr.bf16.gmra.mrb[60].mxu0 %v3352_v39  ;;  %4715 = vmatmul.mubr.bf16.gmra.mrb[60].mxu1 %v3352_v39  ;;  %v3198_v39 = vsel %vm2941_vm5, %v2812_v33, %v3070_v6  ;;  %v3102_v33 = vmul.f32 %v9515_v18, %v2844_v24  ;;  %vm2973_vm5 = vcmp.gt.f32.partialorder %v2844_v24, 0.0  ;;  %v3239_v6 = vsel %vm2982_vm7, %v2853_v52, %v3111_v28  ;;  %v2884_v28 = vld [vmem:[#allocation2 + $0x350] sm:$0xff] }
 0x33a   : > { %4371 = vmatprep.mubr.bf16.mxu0 %v3295_v57  ;;  %4757 = vmatprep.mubr.bf16.mxu1 %v3295_v57  ;;  %v3202_v57 = vsel %vm2945_vm6, %v2816_v1, %v3074_v50  ;;  %v3106_v1 = vmul.f32 %v9515_v18, %v2848_v44  ;;  %vm2977_vm6 = vcmp.gt.f32.partialorder %v2848_v44, 0.0  ;;  %v3243_v50 = vsel %vm2986_vm8, %v2857_v41, %v3115_v58  ;;  %v2888_v58 = vld [vmem:[#allocation2 + $0x370] sm:$0xff] }
 0x33b   : > { %v3310_v30 = vpack.c.bf16 %v3202_v57, %v3198_v39  ;;  %v2861_v39 = vld [vmem:[#allocation2 + $0x298] sm:$0xff]  ;;  %v3331_v37 = vpack.c.bf16 %v3243_v50, %v3239_v6 }
 0x33c   : > { %v2865_v57 = vld [vmem:[#allocation2 + $0x2b8] sm:$0xff]  ;;  %v3119_v35 = vmul.f32 %v9515_v18, %v2861_v39  ;;  %vm2990_vm11 = vcmp.gt.f32.partialorder %v2861_v39, 0.0 }
 0x33d   : > { %v3123_v32 = vmul.f32 %v9515_v18, %v2865_v57  ;;  %vm2994_vm12 = vcmp.gt.f32.partialorder %v2865_v57, 0.0 }
 0x341   : > { %4372 = vmatmul.mubr.bf16.vlgmr.msra.gmra.mrb[0].mxu0 %v3294_v2  ;;  %4758 = vmatmul.mubr.bf16.vlgmr.msra.gmra.mrb[0].mxu1 %v3294_v2  ;;  %v3206_v2 = vsel %vm2949_vm9, %v2820_v0, %v3078_v45  ;;  %v3110_v0 = vmul.f32 %v9515_v18, %v2852_v3  ;;  %vm2981_vm9 = vcmp.gt.f32.partialorder %v2852_v3, 0.0  ;;  %v3247_v45 = vsel %vm2990_vm11, %v2861_v39, %v3119_v35  ;;  %v2892_v35 = vld [vmem:[#allocation2 + $0x390] sm:$0xff] }
 0x342   : > { %4381 = vmatprep.mubr.bf16.mxu0 %v3299_v11  ;;  %4767 = vmatprep.mubr.bf16.mxu1 %v3299_v11  ;;  %v3210_v11 = vsel %vm2953_vm10, %v2824_v12, %v3082_v60  ;;  %v3114_v12 = vmul.f32 %v9515_v18, %v2856_v17  ;;  %vm2985_vm10 = vcmp.gt.f32.partialorder %v2856_v17, 0.0  ;;  %v3251_v60 = vsel %vm2994_vm12, %v2865_v57, %v3123_v32  ;;  %v2896_v32 = vld [vmem:[#allocation2 + $0x3b0] sm:$0xff] }
 0x343   : > { %v3314_v63 = vpack.c.bf16 %v3210_v11, %v3206_v2  ;;  %v2869_v2 = vld [vmem:[#allocation2 + $0x2d8] sm:$0xff]  ;;  %v3335_v29 = vpack.c.bf16 %v3251_v60, %v3247_v45 }
 0x344   : > { %v2873_v11 = vld [vmem:[#allocation2 + $0x2f8] sm:$0xff]  ;;  %v3127_v25 = vmul.f32 %v9515_v18, %v2869_v2  ;;  %vm2998_vm15 = vcmp.gt.f32.partialorder %v2869_v2, 0.0 }
 0x345   : > { %v3131_v27 = vmul.f32 %v9515_v18, %v2873_v11  ;;  %vm3002_vm0 = vcmp.gt.f32.partialorder %v2873_v11, 0.0 }
 0x349   : > { %4382 = vmatmul.mubr.bf16.gmra.mrb[4].mxu0 %v3298_v31  ;;  %4768 = vmatmul.mubr.bf16.gmra.mrb[4].mxu1 %v3298_v31  ;;  %v3214_v31 = vsel %vm2957_vm13, %v2828_v56, %v3086_v5  ;;  %v3118_v56 = vmul.f32 %v9515_v18, %v2860_v20  ;;  %vm2989_vm13 = vcmp.gt.f32.partialorder %v2860_v20, 0.0  ;;  %v3255_v5 = vsel %vm2998_vm15, %v2869_v2, %v3127_v25  ;;  %v2900_v25 = vld [vmem:[#allocation2 + $0x3d0] sm:$0xff] }
 0x34a   : > { %4391 = vmatprep.mubr.bf16.mxu0 %v3303_v4  ;;  %4777 = vmatprep.mubr.bf16.mxu1 %v3303_v4  ;;  %v3218_v4 = vsel %vm2961_vm14, %v2832_v38, %v3090_v8  ;;  %v3122_v38 = vmul.f32 %v9515_v18, %v2864_v59  ;;  %vm2993_vm14 = vcmp.gt.f32.partialorder %v2864_v59, 0.0  ;;  %v3259_v8 = vsel %vm3002_vm0, %v2873_v11, %v3131_v27  ;;  %v2904_v27 = vld [vmem:[#allocation2 + $0x3f0] sm:$0xff] }
 0x34b   : > { %v3318_v16 = vpack.c.bf16 %v3218_v4, %v3214_v31  ;;  %v2877_v31 = vld [vmem:[#allocation2 + $0x318] sm:$0xff]  ;;  %v3339_v19 = vpack.c.bf16 %v3259_v8, %v3255_v5  ;;  %v3158_v5 = vmul.f32 %v9515_v18, %v2900_v25  ;;  %v3162_v8 = vmul.f32 %v9515_v18, %v2904_v27 }
 0x34c   : > { %v2881_v4 = vld [vmem:[#allocation2 + $0x338] sm:$0xff]  ;;  %v3135_v42 = vmul.f32 %v9515_v18, %v2877_v31  ;;  %vm3006_vm3 = vcmp.gt.f32.partialorder %v2877_v31, 0.0 }
 0x34d   : > { %v3139_v26 = vmul.f32 %v9515_v18, %v2881_v4  ;;  %vm3010_vm4 = vcmp.gt.f32.partialorder %v2881_v4, 0.0 }
 0x351   : > { %4392 = vmatmul.mubr.bf16.gmra.mrb[8].mxu0 %v3302_v34  ;;  %4778 = vmatmul.mubr.bf16.gmra.mrb[8].mxu1 %v3302_v34  ;;  %v3222_v34 = vsel %vm2965_vm1, %v2836_v54, %v3094_v49  ;;  %v3126_v54 = vmul.f32 %v9515_v18, %v2868_v22  ;;  %vm2997_vm1 = vcmp.gt.f32.partialorder %v2868_v22, 0.0  ;;  %v3263_v49 = vsel %vm3006_vm3, %v2877_v31, %v3135_v42 }
 0x352   : > { %4401 = vmatprep.mubr.bf16.mxu0 %v3307_v7  ;;  %4787 = vmatprep.mubr.bf16.mxu1 %v3307_v7  ;;  %v3226_v7 = vsel %vm2969_vm2, %v2840_v48, %v3098_v46  ;;  %v3130_v48 = vmul.f32 %v9515_v18, %v2872_v13  ;;  %vm3001_vm2 = vcmp.gt.f32.partialorder %v2872_v13, 0.0  ;;  %v3267_v46 = vsel %vm3010_vm4, %v2881_v4, %v3139_v26  ;;  %v3484_v4 = vld [vmem:[%s10200_s6] sm:$0xf] }
 0x353   : > { %v3322_v9 = vpack.c.bf16 %v3226_v7, %v3222_v34  ;;  %v2885_v34 = vld [vmem:[#allocation2 + $0x358] sm:$0xff]  ;;  %v3343_v55 = vpack.c.bf16 %v3267_v46, %v3263_v49  ;;  %v9682_v26 = vrot.slane %v3484_v4, %v8801_v47 }
 0x354   : > { %v2889_v7 = vld [vmem:[#allocation2 + $0x378] sm:$0xff]  ;;  %v3143_v52 = vmul.f32 %v9515_v18, %v2885_v34  ;;  %vm3014_vm7 = vcmp.gt.f32.partialorder %v2885_v34, 0.0 }
 0x355   : > { %v3147_v41 = vmul.f32 %v9515_v18, %v2889_v7  ;;  %vm3018_vm8 = vcmp.gt.f32.partialorder %v2889_v7, 0.0 }
 0x359   : > { %4402 = vmatmul.mubr.bf16.gmra.mrb[12].mxu0 %v3306_v53  ;;  %4788 = vmatmul.mubr.bf16.gmra.mrb[12].mxu1 %v3306_v53  ;;  %v3230_v53 = vsel %vm2973_vm5, %v2844_v24, %v3102_v33  ;;  %v3134_v24 = vmul.f32 %v9515_v18, %v2876_v10  ;;  %vm3005_vm5 = vcmp.gt.f32.partialorder %v2876_v10, 0.0  ;;  %v3271_v33 = vsel %vm3014_vm7, %v2885_v34, %v3143_v52 }
 0x35a   : > { %4411 = vmatprep.mubr.bf16.mxu0 %v3311_v43  ;;  %4797 = vmatprep.mubr.bf16.mxu1 %v3311_v43  ;;  %v3234_v43 = vsel %vm2977_vm6, %v2848_v44, %v3106_v1  ;;  %v3138_v44 = vmul.f32 %v9515_v18, %v2880_v36  ;;  %vm3009_vm6 = vcmp.gt.f32.partialorder %v2880_v36, 0.0  ;;  %v3275_v1 = vsel %vm3018_vm8, %v2889_v7, %v3147_v41  ;;  %v11105_v41 = vld [vmem:[#allocation29_spill] sm:$0xff] }
 0x35b   : > { %v3326_v61 = vpack.c.bf16 %v3234_v43, %v3230_v53  ;;  %v2893_v53 = vld [vmem:[#allocation2 + $0x398] sm:$0xff]  ;;  %v3347_v50 = vpack.c.bf16 %v3275_v1, %v3271_v33  ;;  %v11106_v47 = vunpack.c.l.bf16 %v11105_v41 }
 0x35c   : > { %v2897_v43 = vld [vmem:[#allocation2 + $0x3b8] sm:$0xff]  ;;  %v3151_v39 = vmul.f32 %v9515_v18, %v2893_v53  ;;  %vm3022_vm11 = vcmp.gt.f32.partialorder %v2893_v53, 0.0 }
 0x35d   : > { %v3155_v57 = vmul.f32 %v9515_v18, %v2897_v43  ;;  %vm3026_vm12 = vcmp.gt.f32.partialorder %v2897_v43, 0.0 }
 0x361   : > { %4412 = vmatmul.mubr.bf16.gmra.mrb[16].mxu0 %v3310_v30  ;;  %4798 = vmatmul.mubr.bf16.gmra.mrb[16].mxu1 %v3310_v30  ;;  %v3238_v30 = vsel %vm2981_vm9, %v2852_v3, %v3110_v0  ;;  %v3142_v3 = vmul.f32 %v9515_v18, %v2884_v28  ;;  %vm3013_vm9 = vcmp.gt.f32.partialorder %v2884_v28, 0.0  ;;  %v3279_v0 = vsel %vm3022_vm11, %v2893_v53, %v3151_v39 }
 0x362   : > { %4421 = vmatprep.mubr.bf16.mxu0 %v3315_v14  ;;  %4807 = vmatprep.mubr.bf16.mxu1 %v3315_v14  ;;  %v3242_v14 = vsel %vm2985_vm10, %v2856_v17, %v3114_v12  ;;  %v3146_v17 = vmul.f32 %v9515_v18, %v2888_v58  ;;  %vm3017_vm10 = vcmp.gt.f32.partialorder %v2888_v58, 0.0  ;;  %v3283_v12 = vsel %vm3026_vm12, %v2897_v43, %v3155_v57 }
 0x363   : > { %v3330_v40 = vpack.c.bf16 %v3242_v14, %v3238_v30  ;;  %v2901_v30 = vld [vmem:[#allocation2 + $0x3d8] sm:$0xff]  ;;  %v3351_v60 = vpack.c.bf16 %v3283_v12, %v3279_v0  ;;  %v11108_v43 = vunpack.c.h.bf16 %v11105_v41 }
 0x364   : > { %v2905_v14 = vld [vmem:[#allocation2 + $0x3f8] sm:$0xff]  ;;  %v3159_v2 = vmul.f32 %v9515_v18, %v2901_v30  ;;  %vm3030_vm15 = vcmp.gt.f32.partialorder %v2901_v30, 0.0 }
 0x365   : > { %v3163_v11 = vmul.f32 %v9515_v18, %v2905_v14  ;;  %vm3034_vm0 = vcmp.gt.f32.partialorder %v2905_v14, 0.0 }
 0x369   : > { %4422 = vmatmul.mubr.bf16.gmra.mrb[20].mxu0 %v3314_v63  ;;  %4808 = vmatmul.mubr.bf16.gmra.mrb[20].mxu1 %v3314_v63  ;;  %v3246_v63 = vsel %vm2989_vm13, %v2860_v20, %v3118_v56  ;;  %v3150_v20 = vmul.f32 %v9515_v18, %v2892_v35  ;;  %vm3021_vm13 = vcmp.gt.f32.partialorder %v2892_v35, 0.0  ;;  %v3287_v56 = vsel %vm3030_vm15, %v2901_v30, %v3159_v2 }
 0x36a   : > { %4431 = vmatprep.mubr.bf16.mxu0 %v3319_v51  ;;  %4817 = vmatprep.mubr.bf16.mxu1 %v3319_v51  ;;  %v3250_v51 = vsel %vm2993_vm14, %v2864_v59, %v3122_v38  ;;  %v3154_v59 = vmul.f32 %v9515_v18, %v2896_v32  ;;  %vm3025_vm14 = vcmp.gt.f32.partialorder %v2896_v32, 0.0  ;;  %v3291_v38 = vsel %vm3034_vm0, %v2905_v14, %v3163_v11 }
 0x36b   : > { %v3334_v23 = vpack.c.bf16 %v3250_v51, %v3246_v63  ;;  %v3355_v51 = vpack.c.bf16 %v3291_v38, %v3287_v56 }
 0x371   : > { %4432 = vmatmul.mubr.bf16.gmra.mrb[24].mxu0 %v3318_v16  ;;  %4818 = vmatmul.mubr.bf16.gmra.mrb[24].mxu1 %v3318_v16  ;;  %v3254_v16 = vsel %vm2997_vm1, %v2868_v22, %v3126_v54  ;;  %vm3029_vm1 = vcmp.gt.f32.partialorder %v2900_v25, 0.0  ;;  %v11101_v54 = vld [vmem:[#allocation206_spill] sm:$0xff] }
 0x372   : > { %4441 = vmatprep.mubr.bf16.mxu0 %v3323_v62  ;;  %4827 = vmatprep.mubr.bf16.mxu1 %v3323_v62  ;;  %v3258_v62 = vsel %vm3001_vm2, %v2872_v13, %v3130_v48  ;;  %vm3033_vm2 = vcmp.gt.f32.partialorder %v2904_v27, 0.0  ;;  %v3286_v22 = vsel %vm3029_vm1, %v2900_v25, %v3158_v5  ;;  %v9676_v18 = vrot.slane %v3484_v4, %v11101_v54  ;;  %v11102_v48 = vld [vmem:[#allocation205_spill] sm:$0xff] }
 0x373   : > { %v3338_v15 = vpack.c.bf16 %v3258_v62, %v3254_v16  ;;  %v3290_v13 = vsel %vm3033_vm2, %v2904_v27, %v3162_v8  ;;  %v9679_v42 = vrot.slane %v3484_v4, %v11102_v48 }
 0x374   : > { %v3354_v31 = vpack.c.bf16 %v3290_v13, %v3286_v22  ;;  %v11117_v22 = vld [vmem:[#allocation40_spill] sm:$0xff] }
 0x375   : > { %v11118_v13 = vunpack.c.l.bf16 %v11117_v22 }
 0x379   : > { %4442 = vmatmul.mubr.bf16.gmra.mrb[28].mxu0 %v3322_v9  ;;  %4828 = vmatmul.mubr.bf16.gmra.mrb[28].mxu1 %v3322_v9  ;;  %v3262_v9 = vsel %vm3005_vm5, %v2876_v10, %v3134_v24  ;;  %v11103_v24 = vld [vmem:[#allocation27_spill] sm:$0xff] }
 0x37a   : > { %4451 = vmatprep.mubr.bf16.mxu0 %v3327_v21  ;;  %4837 = vmatprep.mubr.bf16.mxu1 %v3327_v21  ;;  %v3266_v21 = vsel %vm3009_vm6, %v2880_v36, %v3138_v44  ;;  %v11104_v44 = vunpack.c.l.bf16 %v11103_v24 }
 0x37b   : > { %v3342_v6 = vpack.c.bf16 %v3266_v21, %v3262_v9 }
 0x381   : > { %4452 = vmatmul.mubr.bf16.gmra.mrb[32].mxu0 %v3326_v61  ;;  %4838 = vmatmul.mubr.bf16.gmra.mrb[32].mxu1 %v3326_v61  ;;  %v3270_v61 = vsel %vm3013_vm9, %v2884_v28, %v3142_v3 }
 0x382   : > { %4461 = vmatprep.mubr.bf16.mxu0 %v3331_v37  ;;  %4847 = vmatprep.mubr.bf16.mxu1 %v3331_v37  ;;  %v3274_v37 = vsel %vm3017_vm10, %v2888_v58, %v3146_v17  ;;  %v11107_v58 = vunpack.c.h.bf16 %v11103_v24  ;;  %v11109_v17 = vld [vmem:[#allocation33_spill] sm:$0xff] }
 0x383   : > { %v3346_v45 = vpack.c.bf16 %v3274_v37, %v3270_v61  ;;  %v11110_v39 = vunpack.c.l.bf16 %v11109_v17  ;;  %v11111_v61 = vld [vmem:[#allocation34_spill] sm:$0xff] }
 0x384   : > { %v11112_v37 = vunpack.c.l.bf16 %v11111_v61  ;;  %v11114_v14 = vunpack.c.h.bf16 %v11111_v61 }
 0x389   : > { %4462 = vmatmul.mubr.bf16.gmra.mrb[36].mxu0 %v3330_v40  ;;  %4848 = vmatmul.mubr.bf16.gmra.mrb[36].mxu1 %v3330_v40  ;;  %v3278_v40 = vsel %vm3021_vm13, %v2892_v35, %v3150_v20 }
 0x38a   : > { %4471 = vmatprep.mubr.bf16.mxu0 %v3335_v29  ;;  %4857 = vmatprep.mubr.bf16.mxu1 %v3335_v29  ;;  %v3282_v29 = vsel %vm3025_vm14, %v2896_v32, %v3154_v59  ;;  %v11113_v32 = vunpack.c.h.bf16 %v11109_v17 }
 0x38b   : > { %v3350_v63 = vpack.c.bf16 %v3282_v29, %v3278_v40 }
 0x391   : > { %4472 = vmatmul.mubr.bf16.gmra.mrb[40].mxu0 %v3334_v23  ;;  %4858 = vmatmul.mubr.bf16.gmra.mrb[40].mxu1 %v3334_v23  ;;  %v11100_v23 = vld [vmem:[#allocation204_spill] sm:$0xff] }
 0x392   : > { %4481 = vmatprep.mubr.bf16.mxu0 %v3339_v19  ;;  %4867 = vmatprep.mubr.bf16.mxu1 %v3339_v19  ;;  %v9673_v19 = vrot.slane %v3484_v4, %v11100_v23 }
 0x399   : > { %4482 = vmatmul.mubr.bf16.gmra.mrb[44].mxu0 %v3338_v15  ;;  %4868 = vmatmul.mubr.bf16.gmra.mrb[44].mxu1 %v3338_v15 }
 0x39a   : > { %4491 = vmatprep.mubr.bf16.mxu0 %v3343_v55  ;;  %4877 = vmatprep.mubr.bf16.mxu1 %v3343_v55 }
 0x3a1   : > { %4492 = vmatmul.mubr.bf16.gmra.mrb[48].mxu0 %v3342_v6  ;;  %4878 = vmatmul.mubr.bf16.gmra.mrb[48].mxu1 %v3342_v6 }
 0x3a2   : > { %4501 = vmatprep.mubr.bf16.mxu0 %v3347_v50  ;;  %4887 = vmatprep.mubr.bf16.mxu1 %v3347_v50 }
 0x3a9   : > { %4502 = vmatmul.mubr.bf16.gmra.mrb[52].mxu0 %v3346_v45  ;;  %4888 = vmatmul.mubr.bf16.gmra.mrb[52].mxu1 %v3346_v45 }
 0x3aa   : > { %4511 = vmatprep.mubr.bf16.mxu0 %v3351_v60  ;;  %4897 = vmatprep.mubr.bf16.mxu1 %v3351_v60 }
 0x3b1   : > { %4512 = vmatmul.mubr.bf16.gmra.mrb[56].mxu0 %v3350_v63  ;;  %4898 = vmatmul.mubr.bf16.gmra.mrb[56].mxu1 %v3350_v63 }
 0x3b2   : > { %4521 = vmatprep.mubr.bf16.mxu0 %v3355_v51  ;;  %4907 = vmatprep.mubr.bf16.mxu1 %v3355_v51  ;;  %v11115_v51 = vld [vmem:[#allocation39_spill] sm:$0xff] }
 0x3b3   : > { %v11116_v5 = vunpack.c.l.bf16 %v11115_v51 }
 0x3b9   : > { %4522 = vmatmul.mubr.bf16.gmra.mrb[60].mxu0 %v3354_v31  ;;  %4908 = vmatmul.mubr.bf16.gmra.mrb[60].mxu1 %v3354_v31 }
 0x414   : > { %v4373_v16 = vpop.f32.mrb[0].mxu0  ;;  %v4759_v62 = vpop.f32.mrb[0].mxu1 }
 0x415   : > { %v5945_v49 = vadd.f32 %v4373_v16, %v9673_v19  ;;  %v6009_v46 = vadd.f32 %v4759_v62, %v9676_v18  ;;  %v4375_v10 = vpop.f32.mrb[1].mxu0  ;;  %v4761_v36 = vpop.f32.mrb[1].mxu1  ;;  %v11119_v16 = vunpack.c.h.bf16 %v11115_v51 }
 0x416   : > { %v5946_v34 = vadd.f32 %v4375_v10, %v9679_v42  ;;  %v6010_v7 = vadd.f32 %v4761_v36, %v9682_v26  ;;  %v4377_v15 = vpop.f32.mrb[2].mxu0  ;;  %v4763_v55 = vpop.f32.mrb[2].mxu1 }
 0x417   : > { %v4918_v52 = vadd.f32 %v5945_v49, %v11104_v44  ;;  %v4920_v9 = vadd.f32 %v6009_v46, %v11106_v47  ;;  %v5947_v21 = vadd.f32 %v4377_v15, %v9673_v19  ;;  %v6011_v33 = vadd.f32 %v4763_v55, %v9676_v18  ;;  %v4379_v1 = vpop.f32.mrb[3].mxu0  ;;  %v4765_v28 = vpop.f32.mrb[3].mxu1  ;;  %v11123_v55 = vld [vmem:[#allocation42_spill] sm:$0xff] }
 0x418   : > { %v4919_v53 = vadd.f32 %v5946_v34, %v11107_v58  ;;  %v4921_v6 = vadd.f32 %v6010_v7, %v11108_v43  ;;  %v5948_v50 = vadd.f32 %v4379_v1, %v9679_v42  ;;  %v6012_v3 = vadd.f32 %v4765_v28, %v9682_v26  ;;  %v11121_v34 = vld [vmem:[#allocation41_spill] sm:$0xff] }
 0x419   : > { %v4922_v57 = vadd.f32 %v5947_v21, %v11110_v39  ;;  %v4924_v0 = vadd.f32 %v6011_v33, %v11112_v37  ;;  %v11120_v49 = vunpack.c.h.bf16 %v11117_v22  ;;  %v11122_v7 = vunpack.c.l.bf16 %v11121_v34  ;;  %v11127_v37 = vld [vmem:[#allocation49_spill] sm:$0xff] }
 0x41a   : > { %v5880_v12 = vpack.c.bf16 %v4919_v53, %v4918_v52  ;;  %v5881_v35 = vpack.c.bf16 %v4921_v6, %v4920_v9  ;;  %v4923_v30 = vadd.f32 %v5948_v50, %v11113_v32  ;;  %v4925_v45 = vadd.f32 %v6012_v3, %v11114_v14 }
 0x41b   : > { %v11124_v24 = vunpack.c.l.bf16 %v11123_v55  ;;  %v11125_v47 = vunpack.c.h.bf16 %v11121_v34  ;;  %v11126_v21 = vunpack.c.h.bf16 %v11123_v55 }
 0x41c   : > { %5430 = vst [vmem:[%s9507_s10] sm:$0xff] %v5880_v12  ;;  %5431 = vst [vmem:[%s9507_s10 + $0x8] sm:$0xff] %v5881_v35  ;;  %v5882_v60 = vpack.c.bf16 %v4923_v30, %v4922_v57  ;;  %v5883_v20 = vpack.c.bf16 %v4925_v45, %v4924_v0  ;;  %v4383_v59 = vpop.f32.mrb[4].mxu0  ;;  %v4769_v2 = vpop.f32.mrb[4].mxu1  ;;  %v11128_v0 = vunpack.c.l.bf16 %v11127_v37  ;;  %v11129_v35 = vld [vmem:[#allocation50_spill] sm:$0xff] }
 0x41d   : > { %v5949_v11 = vadd.f32 %v4383_v59, %v9673_v19  ;;  %v6013_v40 = vadd.f32 %v4769_v2, %v9676_v18  ;;  %v4385_v29 = vpop.f32.mrb[5].mxu0  ;;  %v4771_v56 = vpop.f32.mrb[5].mxu1  ;;  %v11130_v32 = vunpack.c.l.bf16 %v11129_v35  ;;  %v11131_v59 = vunpack.c.h.bf16 %v11127_v37 }
 0x41e   : > { %5432 = vst [vmem:[%s9507_s10 + $0x10] sm:$0xff] %v5882_v60  ;;  %5433 = vst [vmem:[%s9507_s10 + $0x18] sm:$0xff] %v5883_v20  ;;  %v5950_v38 = vadd.f32 %v4385_v29, %v9679_v42  ;;  %v6014_v25 = vadd.f32 %v4771_v56, %v9682_v26  ;;  %v4387_v27 = vpop.f32.mrb[6].mxu0  ;;  %v4773_v63 = vpop.f32.mrb[6].mxu1 }
 0x41f   : > { %v4926_v8 = vadd.f32 %v5949_v11, %v11116_v5  ;;  %v4928_v31 = vadd.f32 %v6013_v40, %v11118_v13  ;;  %v5951_v4 = vadd.f32 %v4387_v27, %v9673_v19  ;;  %v6015_v23 = vadd.f32 %v4773_v63, %v9676_v18  ;;  %v4389_v54 = vpop.f32.mrb[7].mxu0  ;;  %v4775_v48 = vpop.f32.mrb[7].mxu1  ;;  %v11135_v63 = vld [vmem:[#allocation52_spill] sm:$0xff] }
 0x420   : > { %v4927_v62 = vadd.f32 %v5950_v38, %v11119_v16  ;;  %v4929_v46 = vadd.f32 %v6014_v25, %v11120_v49  ;;  %v5952_v10 = vadd.f32 %v4389_v54, %v9679_v42  ;;  %v6016_v36 = vadd.f32 %v4775_v48, %v9682_v26  ;;  %v11133_v38 = vld [vmem:[#allocation51_spill] sm:$0xff] }
 0x421   : > { %v4930_v15 = vadd.f32 %v5951_v4, %v11122_v7  ;;  %v4932_v44 = vadd.f32 %v6015_v23, %v11124_v24  ;;  %v11132_v11 = vunpack.c.h.bf16 %v11129_v35  ;;  %v11134_v25 = vunpack.c.l.bf16 %v11133_v38  ;;  %v11139_v24 = vld [vmem:[#allocation58_spill] sm:$0xff] }
 0x422   : > { %v5884_v52 = vpack.c.bf16 %v4927_v62, %v4926_v8  ;;  %v5885_v41 = vpack.c.bf16 %v4929_v46, %v4928_v31  ;;  %v4931_v9 = vadd.f32 %v5952_v10, %v11125_v47  ;;  %v4933_v33 = vadd.f32 %v6016_v36, %v11126_v21 }
 0x423   : > { %v11136_v51 = vunpack.c.l.bf16 %v11135_v63  ;;  %v11137_v13 = vunpack.c.h.bf16 %v11133_v38  ;;  %v11138_v4 = vunpack.c.h.bf16 %v11135_v63 }
 0x424   : > { %5434 = vst [vmem:[%s9507_s10 + $0x20] sm:$0xff] %v5884_v52  ;;  %5435 = vst [vmem:[%s9507_s10 + $0x28] sm:$0xff] %v5885_v41  ;;  %v5886_v1 = vpack.c.bf16 %v4931_v9, %v4930_v15  ;;  %v5887_v28 = vpack.c.bf16 %v4933_v33, %v4932_v44  ;;  %v4393_v58 = vpop.f32.mrb[8].mxu0  ;;  %v4779_v53 = vpop.f32.mrb[8].mxu1  ;;  %v11140_v44 = vunpack.c.l.bf16 %v11139_v24  ;;  %v11141_v41 = vld [vmem:[#allocation59_spill] sm:$0xff] }
 0x425   : > { %v5953_v43 = vadd.f32 %v4393_v58, %v9673_v19  ;;  %v6017_v6 = vadd.f32 %v4779_v53, %v9676_v18  ;;  %v4395_v50 = vpop.f32.mrb[9].mxu0  ;;  %v4781_v3 = vpop.f32.mrb[9].mxu1  ;;  %v11142_v47 = vunpack.c.l.bf16 %v11141_v41  ;;  %v11143_v58 = vunpack.c.h.bf16 %v11139_v24 }
 0x426   : > { %5436 = vst [vmem:[%s9507_s10 + $0x30] sm:$0xff] %v5886_v1  ;;  %5437 = vst [vmem:[%s9507_s10 + $0x38] sm:$0xff] %v5887_v28  ;;  %v5954_v17 = vadd.f32 %v4395_v50, %v9679_v42  ;;  %v6018_v39 = vadd.f32 %v4781_v3, %v9682_v26  ;;  %v4397_v57 = vpop.f32.mrb[10].mxu0  ;;  %v4783_v61 = vpop.f32.mrb[10].mxu1 }
 0x427   : > { %v4934_v12 = vadd.f32 %v5953_v43, %v11128_v0  ;;  %v4936_v30 = vadd.f32 %v6017_v6, %v11130_v32  ;;  %v5955_v14 = vadd.f32 %v4397_v57, %v9673_v19  ;;  %v6019_v45 = vadd.f32 %v4783_v61, %v9676_v18  ;;  %v4399_v60 = vpop.f32.mrb[11].mxu0  ;;  %v4785_v20 = vpop.f32.mrb[11].mxu1  ;;  %v11147_v61 = vld [vmem:[#allocation61_spill] sm:$0xff] }
 0x428   : > { %v4935_v2 = vadd.f32 %v5954_v17, %v11131_v59  ;;  %v4937_v40 = vadd.f32 %v6018_v39, %v11132_v11  ;;  %v5956_v29 = vadd.f32 %v4399_v60, %v9679_v42  ;;  %v6020_v56 = vadd.f32 %v4785_v20, %v9682_v26  ;;  %v11145_v17 = vld [vmem:[#allocation60_spill] sm:$0xff] }
 0x429   : > { %v4938_v27 = vadd.f32 %v5955_v14, %v11134_v25  ;;  %v4940_v5 = vadd.f32 %v6019_v45, %v11136_v51  ;;  %v11144_v43 = vunpack.c.h.bf16 %v11141_v41  ;;  %v11146_v39 = vunpack.c.l.bf16 %v11145_v17  ;;  %v11151_v51 = vld [vmem:[#allocation70_spill] sm:$0xff] }
 0x42a   : > { %v5888_v8 = vpack.c.bf16 %v4935_v2, %v4934_v12  ;;  %v5889_v22 = vpack.c.bf16 %v4937_v40, %v4936_v30  ;;  %v4939_v31 = vadd.f32 %v5956_v29, %v11137_v13  ;;  %v4941_v23 = vadd.f32 %v6020_v56, %v11138_v4 }
 0x42b   : > { %v11148_v37 = vunpack.c.l.bf16 %v11147_v61  ;;  %v11149_v32 = vunpack.c.h.bf16 %v11145_v17  ;;  %v11150_v14 = vunpack.c.h.bf16 %v11147_v61 }
 0x42c   : > { %5438 = vst [vmem:[%s9507_s10 + $0x40] sm:$0xff] %v5888_v8  ;;  %5439 = vst [vmem:[%s9507_s10 + $0x48] sm:$0xff] %v5889_v22  ;;  %v5890_v54 = vpack.c.bf16 %v4939_v31, %v4938_v27  ;;  %v5891_v48 = vpack.c.bf16 %v4941_v23, %v4940_v5  ;;  %v4403_v16 = vpop.f32.mrb[12].mxu0  ;;  %v4789_v62 = vpop.f32.mrb[12].mxu1  ;;  %v11152_v5 = vunpack.c.l.bf16 %v11151_v51  ;;  %v11153_v22 = vld [vmem:[#allocation71_spill] sm:$0xff] }
 0x42d   : > { %v5957_v49 = vadd.f32 %v4403_v16, %v9673_v19  ;;  %v6021_v46 = vadd.f32 %v4789_v62, %v9676_v18  ;;  %v4405_v10 = vpop.f32.mrb[13].mxu0  ;;  %v4791_v36 = vpop.f32.mrb[13].mxu1  ;;  %v11154_v13 = vunpack.c.l.bf16 %v11153_v22  ;;  %v11155_v16 = vunpack.c.h.bf16 %v11151_v51 }
 0x42e   : > { %5440 = vst [vmem:[%s9507_s10 + $0x50] sm:$0xff] %v5890_v54  ;;  %5441 = vst [vmem:[%s9507_s10 + $0x58] sm:$0xff] %v5891_v48  ;;  %v5958_v34 = vadd.f32 %v4405_v10, %v9679_v42  ;;  %v6022_v7 = vadd.f32 %v4791_v36, %v9682_v26  ;;  %v4407_v15 = vpop.f32.mrb[14].mxu0  ;;  %v4793_v55 = vpop.f32.mrb[14].mxu1 }
 0x42f   : > { %v4942_v52 = vadd.f32 %v5957_v49, %v11140_v44  ;;  %v4944_v9 = vadd.f32 %v6021_v46, %v11142_v47  ;;  %v5959_v21 = vadd.f32 %v4407_v15, %v9673_v19  ;;  %v6023_v33 = vadd.f32 %v4793_v55, %v9676_v18  ;;  %v4409_v1 = vpop.f32.mrb[15].mxu0  ;;  %v4795_v28 = vpop.f32.mrb[15].mxu1  ;;  %v11159_v55 = vld [vmem:[#allocation73_spill] sm:$0xff] }
 0x430   : > { %v4943_v53 = vadd.f32 %v5958_v34, %v11143_v58  ;;  %v4945_v6 = vadd.f32 %v6022_v7, %v11144_v43  ;;  %v5960_v50 = vadd.f32 %v4409_v1, %v9679_v42  ;;  %v6024_v3 = vadd.f32 %v4795_v28, %v9682_v26  ;;  %v11157_v34 = vld [vmem:[#allocation72_spill] sm:$0xff] }
 0x431   : > { %v4946_v57 = vadd.f32 %v5959_v21, %v11146_v39  ;;  %v4948_v0 = vadd.f32 %v6023_v33, %v11148_v37  ;;  %v11156_v49 = vunpack.c.h.bf16 %v11153_v22  ;;  %v11158_v7 = vunpack.c.l.bf16 %v11157_v34  ;;  %v11163_v37 = vld [vmem:[#allocation82_spill] sm:$0xff] }
 0x432   : > { %v5892_v12 = vpack.c.bf16 %v4943_v53, %v4942_v52  ;;  %v5893_v35 = vpack.c.bf16 %v4945_v6, %v4944_v9  ;;  %v4947_v30 = vadd.f32 %v5960_v50, %v11149_v32  ;;  %v4949_v45 = vadd.f32 %v6024_v3, %v11150_v14 }
 0x433   : > { %v11160_v24 = vunpack.c.l.bf16 %v11159_v55  ;;  %v11161_v47 = vunpack.c.h.bf16 %v11157_v34  ;;  %v11162_v21 = vunpack.c.h.bf16 %v11159_v55 }
 0x434   : > { %5442 = vst [vmem:[%s9507_s10 + $0x60] sm:$0xff] %v5892_v12  ;;  %5443 = vst [vmem:[%s9507_s10 + $0x68] sm:$0xff] %v5893_v35  ;;  %v5894_v60 = vpack.c.bf16 %v4947_v30, %v4946_v57  ;;  %v5895_v20 = vpack.c.bf16 %v4949_v45, %v4948_v0  ;;  %v4413_v59 = vpop.f32.mrb[16].mxu0  ;;  %v4799_v2 = vpop.f32.mrb[16].mxu1  ;;  %v11164_v0 = vunpack.c.l.bf16 %v11163_v37  ;;  %v11165_v35 = vld [vmem:[#allocation83_spill] sm:$0xff] }
 0x435   : > { %v5961_v11 = vadd.f32 %v4413_v59, %v9673_v19  ;;  %v6025_v40 = vadd.f32 %v4799_v2, %v9676_v18  ;;  %v4415_v29 = vpop.f32.mrb[17].mxu0  ;;  %v4801_v56 = vpop.f32.mrb[17].mxu1  ;;  %v11166_v32 = vunpack.c.l.bf16 %v11165_v35  ;;  %v11167_v59 = vunpack.c.h.bf16 %v11163_v37 }
 0x436   : > { %5444 = vst [vmem:[%s9507_s10 + $0x70] sm:$0xff] %v5894_v60  ;;  %5445 = vst [vmem:[%s9507_s10 + $0x78] sm:$0xff] %v5895_v20  ;;  %v5962_v38 = vadd.f32 %v4415_v29, %v9679_v42  ;;  %v6026_v25 = vadd.f32 %v4801_v56, %v9682_v26  ;;  %v4417_v27 = vpop.f32.mrb[18].mxu0  ;;  %v4803_v63 = vpop.f32.mrb[18].mxu1 }
 0x437   : > { %v4950_v8 = vadd.f32 %v5961_v11, %v11152_v5  ;;  %v4952_v31 = vadd.f32 %v6025_v40, %v11154_v13  ;;  %v5963_v4 = vadd.f32 %v4417_v27, %v9673_v19  ;;  %v6027_v23 = vadd.f32 %v4803_v63, %v9676_v18  ;;  %v4419_v54 = vpop.f32.mrb[19].mxu0  ;;  %v4805_v48 = vpop.f32.mrb[19].mxu1  ;;  %v11171_v63 = vld [vmem:[#allocation85_spill] sm:$0xff] }
 0x438   : > { %v4951_v62 = vadd.f32 %v5962_v38, %v11155_v16  ;;  %v4953_v46 = vadd.f32 %v6026_v25, %v11156_v49  ;;  %v5964_v10 = vadd.f32 %v4419_v54, %v9679_v42  ;;  %v6028_v36 = vadd.f32 %v4805_v48, %v9682_v26  ;;  %v11169_v38 = vld [vmem:[#allocation84_spill] sm:$0xff] }
 0x439   : > { %v4954_v15 = vadd.f32 %v5963_v4, %v11158_v7  ;;  %v4956_v44 = vadd.f32 %v6027_v23, %v11160_v24  ;;  %v11168_v11 = vunpack.c.h.bf16 %v11165_v35  ;;  %v11170_v25 = vunpack.c.l.bf16 %v11169_v38  ;;  %v11175_v24 = vld [vmem:[#allocation94_spill] sm:$0xff] }
 0x43a   : > { %v5896_v52 = vpack.c.bf16 %v4951_v62, %v4950_v8  ;;  %v5897_v41 = vpack.c.bf16 %v4953_v46, %v4952_v31  ;;  %v4955_v9 = vadd.f32 %v5964_v10, %v11161_v47  ;;  %v4957_v33 = vadd.f32 %v6028_v36, %v11162_v21 }
 0x43b   : > { %v11172_v51 = vunpack.c.l.bf16 %v11171_v63  ;;  %v11173_v13 = vunpack.c.h.bf16 %v11169_v38  ;;  %v11174_v4 = vunpack.c.h.bf16 %v11171_v63 }
 0x43c   : > { %5446 = vst [vmem:[%s9507_s10 + $0x80] sm:$0xff] %v5896_v52  ;;  %5447 = vst [vmem:[%s9507_s10 + $0x88] sm:$0xff] %v5897_v41  ;;  %v5898_v1 = vpack.c.bf16 %v4955_v9, %v4954_v15  ;;  %v5899_v28 = vpack.c.bf16 %v4957_v33, %v4956_v44  ;;  %v4423_v58 = vpop.f32.mrb[20].mxu0  ;;  %v4809_v53 = vpop.f32.mrb[20].mxu1  ;;  %v11176_v44 = vunpack.c.l.bf16 %v11175_v24  ;;  %v11177_v41 = vld [vmem:[#allocation95_spill] sm:$0xff] }
 0x43d   : > { %v5965_v43 = vadd.f32 %v4423_v58, %v9673_v19  ;;  %v6029_v6 = vadd.f32 %v4809_v53, %v9676_v18  ;;  %v4425_v50 = vpop.f32.mrb[21].mxu0  ;;  %v4811_v3 = vpop.f32.mrb[21].mxu1  ;;  %v11178_v47 = vunpack.c.l.bf16 %v11177_v41  ;;  %v11179_v58 = vunpack.c.h.bf16 %v11175_v24 }
 0x43e   : > { %5448 = vst [vmem:[%s9507_s10 + $0x90] sm:$0xff] %v5898_v1  ;;  %5449 = vst [vmem:[%s9507_s10 + $0x98] sm:$0xff] %v5899_v28  ;;  %v5966_v17 = vadd.f32 %v4425_v50, %v9679_v42  ;;  %v6030_v39 = vadd.f32 %v4811_v3, %v9682_v26  ;;  %v4427_v57 = vpop.f32.mrb[22].mxu0  ;;  %v4813_v61 = vpop.f32.mrb[22].mxu1 }
 0x43f   : > { %v4958_v12 = vadd.f32 %v5965_v43, %v11164_v0  ;;  %v4960_v30 = vadd.f32 %v6029_v6, %v11166_v32  ;;  %v5967_v14 = vadd.f32 %v4427_v57, %v9673_v19  ;;  %v6031_v45 = vadd.f32 %v4813_v61, %v9676_v18  ;;  %v4429_v60 = vpop.f32.mrb[23].mxu0  ;;  %v4815_v20 = vpop.f32.mrb[23].mxu1  ;;  %v11183_v61 = vld [vmem:[#allocation97_spill] sm:$0xff] }
 0x440   : > { %v4959_v2 = vadd.f32 %v5966_v17, %v11167_v59  ;;  %v4961_v40 = vadd.f32 %v6030_v39, %v11168_v11  ;;  %v5968_v29 = vadd.f32 %v4429_v60, %v9679_v42  ;;  %v6032_v56 = vadd.f32 %v4815_v20, %v9682_v26  ;;  %v11181_v17 = vld [vmem:[#allocation96_spill] sm:$0xff] }
 0x441   : > { %v4962_v27 = vadd.f32 %v5967_v14, %v11170_v25  ;;  %v4964_v5 = vadd.f32 %v6031_v45, %v11172_v51  ;;  %v11180_v43 = vunpack.c.h.bf16 %v11177_v41  ;;  %v11182_v39 = vunpack.c.l.bf16 %v11181_v17  ;;  %v11187_v51 = vld [vmem:[#allocation106_spill] sm:$0xff] }
 0x442   : > { %v5900_v8 = vpack.c.bf16 %v4959_v2, %v4958_v12  ;;  %v5901_v22 = vpack.c.bf16 %v4961_v40, %v4960_v30  ;;  %v4963_v31 = vadd.f32 %v5968_v29, %v11173_v13  ;;  %v4965_v23 = vadd.f32 %v6032_v56, %v11174_v4 }
 0x443   : > { %v11184_v37 = vunpack.c.l.bf16 %v11183_v61  ;;  %v11185_v32 = vunpack.c.h.bf16 %v11181_v17  ;;  %v11186_v14 = vunpack.c.h.bf16 %v11183_v61 }
 0x444   : > { %5450 = vst [vmem:[%s9507_s10 + $0xa0] sm:$0xff] %v5900_v8  ;;  %5451 = vst [vmem:[%s9507_s10 + $0xa8] sm:$0xff] %v5901_v22  ;;  %v5902_v54 = vpack.c.bf16 %v4963_v31, %v4962_v27  ;;  %v5903_v48 = vpack.c.bf16 %v4965_v23, %v4964_v5  ;;  %v4433_v16 = vpop.f32.mrb[24].mxu0  ;;  %v4819_v62 = vpop.f32.mrb[24].mxu1  ;;  %v11188_v5 = vunpack.c.l.bf16 %v11187_v51  ;;  %v11189_v22 = vld [vmem:[#allocation107_spill] sm:$0xff] }
 0x445   : > { %v5969_v49 = vadd.f32 %v4433_v16, %v9673_v19  ;;  %v6033_v46 = vadd.f32 %v4819_v62, %v9676_v18  ;;  %v4435_v10 = vpop.f32.mrb[25].mxu0  ;;  %v4821_v36 = vpop.f32.mrb[25].mxu1  ;;  %v11190_v13 = vunpack.c.l.bf16 %v11189_v22  ;;  %v11191_v16 = vunpack.c.h.bf16 %v11187_v51 }
 0x446   : > { %5452 = vst [vmem:[%s9507_s10 + $0xb0] sm:$0xff] %v5902_v54  ;;  %5453 = vst [vmem:[%s9507_s10 + $0xb8] sm:$0xff] %v5903_v48  ;;  %v5970_v34 = vadd.f32 %v4435_v10, %v9679_v42  ;;  %v6034_v7 = vadd.f32 %v4821_v36, %v9682_v26  ;;  %v4437_v15 = vpop.f32.mrb[26].mxu0  ;;  %v4823_v55 = vpop.f32.mrb[26].mxu1 }
 0x447   : > { %v4966_v52 = vadd.f32 %v5969_v49, %v11176_v44  ;;  %v4968_v9 = vadd.f32 %v6033_v46, %v11178_v47  ;;  %v5971_v21 = vadd.f32 %v4437_v15, %v9673_v19  ;;  %v6035_v33 = vadd.f32 %v4823_v55, %v9676_v18  ;;  %v4439_v1 = vpop.f32.mrb[27].mxu0  ;;  %v4825_v28 = vpop.f32.mrb[27].mxu1  ;;  %v11195_v55 = vld [vmem:[#allocation109_spill] sm:$0xff] }
 0x448   : > { %v4967_v53 = vadd.f32 %v5970_v34, %v11179_v58  ;;  %v4969_v6 = vadd.f32 %v6034_v7, %v11180_v43  ;;  %v5972_v50 = vadd.f32 %v4439_v1, %v9679_v42  ;;  %v6036_v3 = vadd.f32 %v4825_v28, %v9682_v26  ;;  %v11193_v34 = vld [vmem:[#allocation108_spill] sm:$0xff] }
 0x449   : > { %v4970_v57 = vadd.f32 %v5971_v21, %v11182_v39  ;;  %v4972_v0 = vadd.f32 %v6035_v33, %v11184_v37  ;;  %v11192_v49 = vunpack.c.h.bf16 %v11189_v22  ;;  %v11194_v7 = vunpack.c.l.bf16 %v11193_v34  ;;  %v11199_v37 = vld [vmem:[#allocation118_spill] sm:$0xff] }
 0x44a   : > { %v5904_v12 = vpack.c.bf16 %v4967_v53, %v4966_v52  ;;  %v5905_v35 = vpack.c.bf16 %v4969_v6, %v4968_v9  ;;  %v4971_v30 = vadd.f32 %v5972_v50, %v11185_v32  ;;  %v4973_v45 = vadd.f32 %v6036_v3, %v11186_v14 }
 0x44b   : > { %v11196_v24 = vunpack.c.l.bf16 %v11195_v55  ;;  %v11197_v47 = vunpack.c.h.bf16 %v11193_v34  ;;  %v11198_v21 = vunpack.c.h.bf16 %v11195_v55 }
 0x44c   : > { %5454 = vst [vmem:[%s9507_s10 + $0xc0] sm:$0xff] %v5904_v12  ;;  %5455 = vst [vmem:[%s9507_s10 + $0xc8] sm:$0xff] %v5905_v35  ;;  %v5906_v60 = vpack.c.bf16 %v4971_v30, %v4970_v57  ;;  %v5907_v20 = vpack.c.bf16 %v4973_v45, %v4972_v0  ;;  %v4443_v59 = vpop.f32.mrb[28].mxu0  ;;  %v4829_v2 = vpop.f32.mrb[28].mxu1  ;;  %v11200_v0 = vunpack.c.l.bf16 %v11199_v37  ;;  %v11201_v35 = vld [vmem:[#allocation119_spill] sm:$0xff] }
 0x44d   : > { %v5973_v11 = vadd.f32 %v4443_v59, %v9673_v19  ;;  %v6037_v40 = vadd.f32 %v4829_v2, %v9676_v18  ;;  %v4445_v29 = vpop.f32.mrb[29].mxu0  ;;  %v4831_v56 = vpop.f32.mrb[29].mxu1  ;;  %v11202_v32 = vunpack.c.l.bf16 %v11201_v35  ;;  %v11203_v59 = vunpack.c.h.bf16 %v11199_v37 }
 0x44e   : > { %5456 = vst [vmem:[%s9507_s10 + $0xd0] sm:$0xff] %v5906_v60  ;;  %5457 = vst [vmem:[%s9507_s10 + $0xd8] sm:$0xff] %v5907_v20  ;;  %v5974_v38 = vadd.f32 %v4445_v29, %v9679_v42  ;;  %v6038_v25 = vadd.f32 %v4831_v56, %v9682_v26  ;;  %v4447_v27 = vpop.f32.mrb[30].mxu0  ;;  %v4833_v63 = vpop.f32.mrb[30].mxu1 }
 0x44f   : > { %v4974_v8 = vadd.f32 %v5973_v11, %v11188_v5  ;;  %v4976_v31 = vadd.f32 %v6037_v40, %v11190_v13  ;;  %v5975_v4 = vadd.f32 %v4447_v27, %v9673_v19  ;;  %v6039_v23 = vadd.f32 %v4833_v63, %v9676_v18  ;;  %v4449_v54 = vpop.f32.mrb[31].mxu0  ;;  %v4835_v48 = vpop.f32.mrb[31].mxu1  ;;  %v11207_v63 = vld [vmem:[#allocation121_spill] sm:$0xff] }
 0x450   : > { %v4975_v62 = vadd.f32 %v5974_v38, %v11191_v16  ;;  %v4977_v46 = vadd.f32 %v6038_v25, %v11192_v49  ;;  %v5976_v10 = vadd.f32 %v4449_v54, %v9679_v42  ;;  %v6040_v36 = vadd.f32 %v4835_v48, %v9682_v26  ;;  %v11205_v38 = vld [vmem:[#allocation120_spill] sm:$0xff] }
 0x451   : > { %v4978_v15 = vadd.f32 %v5975_v4, %v11194_v7  ;;  %v4980_v44 = vadd.f32 %v6039_v23, %v11196_v24  ;;  %v11204_v11 = vunpack.c.h.bf16 %v11201_v35  ;;  %v11206_v25 = vunpack.c.l.bf16 %v11205_v38  ;;  %v11211_v24 = vld [vmem:[#allocation130_spill] sm:$0xff] }
 0x452   : > { %v5908_v52 = vpack.c.bf16 %v4975_v62, %v4974_v8  ;;  %v5909_v41 = vpack.c.bf16 %v4977_v46, %v4976_v31  ;;  %v4979_v9 = vadd.f32 %v5976_v10, %v11197_v47  ;;  %v4981_v33 = vadd.f32 %v6040_v36, %v11198_v21 }
 0x453   : > { %v11208_v51 = vunpack.c.l.bf16 %v11207_v63  ;;  %v11209_v13 = vunpack.c.h.bf16 %v11205_v38  ;;  %v11210_v4 = vunpack.c.h.bf16 %v11207_v63 }
 0x454   : > { %5458 = vst [vmem:[%s9507_s10 + $0xe0] sm:$0xff] %v5908_v52  ;;  %5459 = vst [vmem:[%s9507_s10 + $0xe8] sm:$0xff] %v5909_v41  ;;  %v5910_v1 = vpack.c.bf16 %v4979_v9, %v4978_v15  ;;  %v5911_v28 = vpack.c.bf16 %v4981_v33, %v4980_v44  ;;  %v4453_v58 = vpop.f32.mrb[32].mxu0  ;;  %v4839_v53 = vpop.f32.mrb[32].mxu1  ;;  %v11212_v44 = vunpack.c.l.bf16 %v11211_v24  ;;  %v11213_v41 = vld [vmem:[#allocation131_spill] sm:$0xff] }
 0x455   : > { %v5977_v43 = vadd.f32 %v4453_v58, %v9673_v19  ;;  %v6041_v6 = vadd.f32 %v4839_v53, %v9676_v18  ;;  %v4455_v50 = vpop.f32.mrb[33].mxu0  ;;  %v4841_v3 = vpop.f32.mrb[33].mxu1  ;;  %v11214_v47 = vunpack.c.l.bf16 %v11213_v41  ;;  %v11215_v58 = vunpack.c.h.bf16 %v11211_v24 }
 0x456   : > { %5460 = vst [vmem:[%s9507_s10 + $0xf0] sm:$0xff] %v5910_v1  ;;  %5461 = vst [vmem:[%s9507_s10 + $0xf8] sm:$0xff] %v5911_v28  ;;  %v5978_v17 = vadd.f32 %v4455_v50, %v9679_v42  ;;  %v6042_v39 = vadd.f32 %v4841_v3, %v9682_v26  ;;  %v4457_v57 = vpop.f32.mrb[34].mxu0  ;;  %v4843_v61 = vpop.f32.mrb[34].mxu1 }
 0x457   : > { %v4982_v12 = vadd.f32 %v5977_v43, %v11200_v0  ;;  %v4984_v30 = vadd.f32 %v6041_v6, %v11202_v32  ;;  %v5979_v14 = vadd.f32 %v4457_v57, %v9673_v19  ;;  %v6043_v45 = vadd.f32 %v4843_v61, %v9676_v18  ;;  %v4459_v60 = vpop.f32.mrb[35].mxu0  ;;  %v4845_v20 = vpop.f32.mrb[35].mxu1  ;;  %v11219_v61 = vld [vmem:[#allocation133_spill] sm:$0xff] }
 0x458   : > { %v4983_v2 = vadd.f32 %v5978_v17, %v11203_v59  ;;  %v4985_v40 = vadd.f32 %v6042_v39, %v11204_v11  ;;  %v5980_v29 = vadd.f32 %v4459_v60, %v9679_v42  ;;  %v6044_v56 = vadd.f32 %v4845_v20, %v9682_v26  ;;  %v11217_v17 = vld [vmem:[#allocation132_spill] sm:$0xff] }
 0x459   : > { %v4986_v27 = vadd.f32 %v5979_v14, %v11206_v25  ;;  %v4988_v5 = vadd.f32 %v6043_v45, %v11208_v51  ;;  %v11216_v43 = vunpack.c.h.bf16 %v11213_v41  ;;  %v11218_v39 = vunpack.c.l.bf16 %v11217_v17  ;;  %v11223_v51 = vld [vmem:[#allocation142_spill] sm:$0xff] }
 0x45a   : > { %v5912_v8 = vpack.c.bf16 %v4983_v2, %v4982_v12  ;;  %v5913_v22 = vpack.c.bf16 %v4985_v40, %v4984_v30  ;;  %v4987_v31 = vadd.f32 %v5980_v29, %v11209_v13  ;;  %v4989_v23 = vadd.f32 %v6044_v56, %v11210_v4 }
 0x45b   : > { %v11220_v37 = vunpack.c.l.bf16 %v11219_v61  ;;  %v11221_v32 = vunpack.c.h.bf16 %v11217_v17  ;;  %v11222_v14 = vunpack.c.h.bf16 %v11219_v61 }
 0x45c   : > { %5462 = vst [vmem:[%s9507_s10 + $0x100] sm:$0xff] %v5912_v8  ;;  %5463 = vst [vmem:[%s9507_s10 + $0x108] sm:$0xff] %v5913_v22  ;;  %v5914_v54 = vpack.c.bf16 %v4987_v31, %v4986_v27  ;;  %v5915_v48 = vpack.c.bf16 %v4989_v23, %v4988_v5  ;;  %v4463_v16 = vpop.f32.mrb[36].mxu0  ;;  %v4849_v62 = vpop.f32.mrb[36].mxu1  ;;  %v11224_v5 = vunpack.c.l.bf16 %v11223_v51  ;;  %v11225_v22 = vld [vmem:[#allocation143_spill] sm:$0xff] }
 0x45d   : > { %v5981_v49 = vadd.f32 %v4463_v16, %v9673_v19  ;;  %v6045_v46 = vadd.f32 %v4849_v62, %v9676_v18  ;;  %v4465_v10 = vpop.f32.mrb[37].mxu0  ;;  %v4851_v36 = vpop.f32.mrb[37].mxu1  ;;  %v11226_v13 = vunpack.c.l.bf16 %v11225_v22  ;;  %v11227_v16 = vunpack.c.h.bf16 %v11223_v51 }
 0x45e   : > { %5464 = vst [vmem:[%s9507_s10 + $0x110] sm:$0xff] %v5914_v54  ;;  %5465 = vst [vmem:[%s9507_s10 + $0x118] sm:$0xff] %v5915_v48  ;;  %v5982_v34 = vadd.f32 %v4465_v10, %v9679_v42  ;;  %v6046_v7 = vadd.f32 %v4851_v36, %v9682_v26  ;;  %v4467_v15 = vpop.f32.mrb[38].mxu0  ;;  %v4853_v55 = vpop.f32.mrb[38].mxu1 }
 0x45f   : > { %v4990_v52 = vadd.f32 %v5981_v49, %v11212_v44  ;;  %v4992_v9 = vadd.f32 %v6045_v46, %v11214_v47  ;;  %v5983_v21 = vadd.f32 %v4467_v15, %v9673_v19  ;;  %v6047_v33 = vadd.f32 %v4853_v55, %v9676_v18  ;;  %v4469_v1 = vpop.f32.mrb[39].mxu0  ;;  %v4855_v28 = vpop.f32.mrb[39].mxu1  ;;  %v11231_v55 = vld [vmem:[#allocation145_spill] sm:$0xff] }
 0x460   : > { %v4991_v53 = vadd.f32 %v5982_v34, %v11215_v58  ;;  %v4993_v6 = vadd.f32 %v6046_v7, %v11216_v43  ;;  %v5984_v50 = vadd.f32 %v4469_v1, %v9679_v42  ;;  %v6048_v3 = vadd.f32 %v4855_v28, %v9682_v26  ;;  %v11229_v34 = vld [vmem:[#allocation144_spill] sm:$0xff] }
 0x461   : > { %v4994_v57 = vadd.f32 %v5983_v21, %v11218_v39  ;;  %v4996_v0 = vadd.f32 %v6047_v33, %v11220_v37  ;;  %v11228_v49 = vunpack.c.h.bf16 %v11225_v22  ;;  %v11230_v7 = vunpack.c.l.bf16 %v11229_v34  ;;  %v11235_v37 = vld [vmem:[#allocation154_spill] sm:$0xff] }
 0x462   : > { %v5916_v12 = vpack.c.bf16 %v4991_v53, %v4990_v52  ;;  %v5917_v35 = vpack.c.bf16 %v4993_v6, %v4992_v9  ;;  %v4995_v30 = vadd.f32 %v5984_v50, %v11221_v32  ;;  %v4997_v45 = vadd.f32 %v6048_v3, %v11222_v14 }
 0x463   : > { %v11232_v24 = vunpack.c.l.bf16 %v11231_v55  ;;  %v11233_v47 = vunpack.c.h.bf16 %v11229_v34  ;;  %v11234_v21 = vunpack.c.h.bf16 %v11231_v55 }
 0x464   : > { %5466 = vst [vmem:[%s9507_s10 + $0x120] sm:$0xff] %v5916_v12  ;;  %5467 = vst [vmem:[%s9507_s10 + $0x128] sm:$0xff] %v5917_v35  ;;  %v5918_v60 = vpack.c.bf16 %v4995_v30, %v4994_v57  ;;  %v5919_v20 = vpack.c.bf16 %v4997_v45, %v4996_v0  ;;  %v4473_v59 = vpop.f32.mrb[40].mxu0  ;;  %v4859_v2 = vpop.f32.mrb[40].mxu1  ;;  %v11236_v0 = vunpack.c.l.bf16 %v11235_v37  ;;  %v11237_v35 = vld [vmem:[#allocation155_spill] sm:$0xff] }
 0x465   : > { %v5985_v11 = vadd.f32 %v4473_v59, %v9673_v19  ;;  %v6049_v40 = vadd.f32 %v4859_v2, %v9676_v18  ;;  %v4475_v29 = vpop.f32.mrb[41].mxu0  ;;  %v4861_v56 = vpop.f32.mrb[41].mxu1  ;;  %v11238_v32 = vunpack.c.l.bf16 %v11237_v35  ;;  %v11239_v59 = vunpack.c.h.bf16 %v11235_v37 }
 0x466   : > { %5468 = vst [vmem:[%s9507_s10 + $0x130] sm:$0xff] %v5918_v60  ;;  %5469 = vst [vmem:[%s9507_s10 + $0x138] sm:$0xff] %v5919_v20  ;;  %v5986_v38 = vadd.f32 %v4475_v29, %v9679_v42  ;;  %v6050_v25 = vadd.f32 %v4861_v56, %v9682_v26  ;;  %v4477_v27 = vpop.f32.mrb[42].mxu0  ;;  %v4863_v63 = vpop.f32.mrb[42].mxu1 }
 0x467   : > { %v4998_v8 = vadd.f32 %v5985_v11, %v11224_v5  ;;  %v5000_v31 = vadd.f32 %v6049_v40, %v11226_v13  ;;  %v5987_v4 = vadd.f32 %v4477_v27, %v9673_v19  ;;  %v6051_v23 = vadd.f32 %v4863_v63, %v9676_v18  ;;  %v4479_v54 = vpop.f32.mrb[43].mxu0  ;;  %v4865_v48 = vpop.f32.mrb[43].mxu1  ;;  %v11243_v63 = vld [vmem:[#allocation157_spill] sm:$0xff] }
 0x468   : > { %v4999_v62 = vadd.f32 %v5986_v38, %v11227_v16  ;;  %v5001_v46 = vadd.f32 %v6050_v25, %v11228_v49  ;;  %v5988_v10 = vadd.f32 %v4479_v54, %v9679_v42  ;;  %v6052_v36 = vadd.f32 %v4865_v48, %v9682_v26  ;;  %v11241_v38 = vld [vmem:[#allocation156_spill] sm:$0xff] }
 0x469   : > { %v5002_v15 = vadd.f32 %v5987_v4, %v11230_v7  ;;  %v5004_v44 = vadd.f32 %v6051_v23, %v11232_v24  ;;  %v11240_v11 = vunpack.c.h.bf16 %v11237_v35  ;;  %v11242_v25 = vunpack.c.l.bf16 %v11241_v38  ;;  %v11247_v24 = vld [vmem:[#allocation166_spill] sm:$0xff] }
 0x46a   : > { %v5920_v52 = vpack.c.bf16 %v4999_v62, %v4998_v8  ;;  %v5921_v41 = vpack.c.bf16 %v5001_v46, %v5000_v31  ;;  %v5003_v9 = vadd.f32 %v5988_v10, %v11233_v47  ;;  %v5005_v33 = vadd.f32 %v6052_v36, %v11234_v21 }
 0x46b   : > { %v11244_v51 = vunpack.c.l.bf16 %v11243_v63  ;;  %v11245_v13 = vunpack.c.h.bf16 %v11241_v38  ;;  %v11246_v4 = vunpack.c.h.bf16 %v11243_v63 }
 0x46c   : > { %5470 = vst [vmem:[%s9507_s10 + $0x140] sm:$0xff] %v5920_v52  ;;  %5471 = vst [vmem:[%s9507_s10 + $0x148] sm:$0xff] %v5921_v41  ;;  %v5922_v1 = vpack.c.bf16 %v5003_v9, %v5002_v15  ;;  %v5923_v28 = vpack.c.bf16 %v5005_v33, %v5004_v44  ;;  %v4483_v58 = vpop.f32.mrb[44].mxu0  ;;  %v4869_v53 = vpop.f32.mrb[44].mxu1  ;;  %v11248_v44 = vunpack.c.l.bf16 %v11247_v24  ;;  %v11249_v41 = vld [vmem:[#allocation167_spill] sm:$0xff] }
 0x46d   : > { %v5989_v43 = vadd.f32 %v4483_v58, %v9673_v19  ;;  %v6053_v6 = vadd.f32 %v4869_v53, %v9676_v18  ;;  %v4485_v50 = vpop.f32.mrb[45].mxu0  ;;  %v4871_v3 = vpop.f32.mrb[45].mxu1  ;;  %v11250_v47 = vunpack.c.l.bf16 %v11249_v41  ;;  %v11251_v58 = vunpack.c.h.bf16 %v11247_v24 }
 0x46e   : > { %5472 = vst [vmem:[%s9507_s10 + $0x150] sm:$0xff] %v5922_v1  ;;  %5473 = vst [vmem:[%s9507_s10 + $0x158] sm:$0xff] %v5923_v28  ;;  %v5990_v17 = vadd.f32 %v4485_v50, %v9679_v42  ;;  %v6054_v39 = vadd.f32 %v4871_v3, %v9682_v26  ;;  %v4487_v57 = vpop.f32.mrb[46].mxu0  ;;  %v4873_v61 = vpop.f32.mrb[46].mxu1 }
 0x46f   : > { %v5006_v12 = vadd.f32 %v5989_v43, %v11236_v0  ;;  %v5008_v30 = vadd.f32 %v6053_v6, %v11238_v32  ;;  %v5991_v14 = vadd.f32 %v4487_v57, %v9673_v19  ;;  %v6055_v45 = vadd.f32 %v4873_v61, %v9676_v18  ;;  %v4489_v60 = vpop.f32.mrb[47].mxu0  ;;  %v4875_v20 = vpop.f32.mrb[47].mxu1  ;;  %v11255_v61 = vld [vmem:[#allocation169_spill] sm:$0xff] }
 0x470   : > { %v5007_v2 = vadd.f32 %v5990_v17, %v11239_v59  ;;  %v5009_v40 = vadd.f32 %v6054_v39, %v11240_v11  ;;  %v5992_v29 = vadd.f32 %v4489_v60, %v9679_v42  ;;  %v6056_v56 = vadd.f32 %v4875_v20, %v9682_v26  ;;  %v11253_v17 = vld [vmem:[#allocation168_spill] sm:$0xff] }
 0x471   : > { %v5010_v27 = vadd.f32 %v5991_v14, %v11242_v25  ;;  %v5012_v5 = vadd.f32 %v6055_v45, %v11244_v51  ;;  %v11252_v43 = vunpack.c.h.bf16 %v11249_v41  ;;  %v11254_v39 = vunpack.c.l.bf16 %v11253_v17  ;;  %v11259_v51 = vld [vmem:[#allocation178_spill] sm:$0xff] }
 0x472   : > { %v5924_v8 = vpack.c.bf16 %v5007_v2, %v5006_v12  ;;  %v5925_v22 = vpack.c.bf16 %v5009_v40, %v5008_v30  ;;  %v5011_v31 = vadd.f32 %v5992_v29, %v11245_v13  ;;  %v5013_v23 = vadd.f32 %v6056_v56, %v11246_v4 }
 0x473   : > { %v11256_v37 = vunpack.c.l.bf16 %v11255_v61  ;;  %v11257_v32 = vunpack.c.h.bf16 %v11253_v17  ;;  %v11258_v14 = vunpack.c.h.bf16 %v11255_v61 }
 0x474   : > { %5474 = vst [vmem:[%s9507_s10 + $0x160] sm:$0xff] %v5924_v8  ;;  %5475 = vst [vmem:[%s9507_s10 + $0x168] sm:$0xff] %v5925_v22  ;;  %v5926_v54 = vpack.c.bf16 %v5011_v31, %v5010_v27  ;;  %v5927_v48 = vpack.c.bf16 %v5013_v23, %v5012_v5  ;;  %v4493_v16 = vpop.f32.mrb[48].mxu0  ;;  %v4879_v62 = vpop.f32.mrb[48].mxu1  ;;  %v11260_v5 = vunpack.c.l.bf16 %v11259_v51  ;;  %v11261_v22 = vld [vmem:[#allocation179_spill] sm:$0xff] }
 0x475   : > { %v5993_v49 = vadd.f32 %v4493_v16, %v9673_v19  ;;  %v6057_v46 = vadd.f32 %v4879_v62, %v9676_v18  ;;  %v4495_v10 = vpop.f32.mrb[49].mxu0  ;;  %v4881_v36 = vpop.f32.mrb[49].mxu1  ;;  %v11262_v13 = vunpack.c.l.bf16 %v11261_v22  ;;  %v11263_v16 = vunpack.c.h.bf16 %v11259_v51 }
 0x476   : > { %5476 = vst [vmem:[%s9507_s10 + $0x170] sm:$0xff] %v5926_v54  ;;  %5477 = vst [vmem:[%s9507_s10 + $0x178] sm:$0xff] %v5927_v48  ;;  %v5994_v34 = vadd.f32 %v4495_v10, %v9679_v42  ;;  %v6058_v7 = vadd.f32 %v4881_v36, %v9682_v26  ;;  %v4497_v15 = vpop.f32.mrb[50].mxu0  ;;  %v4883_v55 = vpop.f32.mrb[50].mxu1 }
 0x477   : > { %v5014_v52 = vadd.f32 %v5993_v49, %v11248_v44  ;;  %v5016_v9 = vadd.f32 %v6057_v46, %v11250_v47  ;;  %v5995_v21 = vadd.f32 %v4497_v15, %v9673_v19  ;;  %v6059_v33 = vadd.f32 %v4883_v55, %v9676_v18  ;;  %v4499_v1 = vpop.f32.mrb[51].mxu0  ;;  %v4885_v28 = vpop.f32.mrb[51].mxu1  ;;  %v11267_v55 = vld [vmem:[#allocation181_spill] sm:$0xff] }
 0x478   : > { %v5015_v53 = vadd.f32 %v5994_v34, %v11251_v58  ;;  %v5017_v6 = vadd.f32 %v6058_v7, %v11252_v43  ;;  %v5996_v50 = vadd.f32 %v4499_v1, %v9679_v42  ;;  %v6060_v3 = vadd.f32 %v4885_v28, %v9682_v26  ;;  %v11265_v34 = vld [vmem:[#allocation180_spill] sm:$0xff] }
 0x479   : > { %v5018_v57 = vadd.f32 %v5995_v21, %v11254_v39  ;;  %v5020_v0 = vadd.f32 %v6059_v33, %v11256_v37  ;;  %v11264_v49 = vunpack.c.h.bf16 %v11261_v22  ;;  %v11266_v7 = vunpack.c.l.bf16 %v11265_v34  ;;  %v11271_v37 = vld [vmem:[#allocation190_spill] sm:$0xff] }
 0x47a   : > { %v5928_v12 = vpack.c.bf16 %v5015_v53, %v5014_v52  ;;  %v5929_v35 = vpack.c.bf16 %v5017_v6, %v5016_v9  ;;  %v5019_v30 = vadd.f32 %v5996_v50, %v11257_v32  ;;  %v5021_v45 = vadd.f32 %v6060_v3, %v11258_v14 }
 0x47b   : > { %v11268_v24 = vunpack.c.l.bf16 %v11267_v55  ;;  %v11269_v47 = vunpack.c.h.bf16 %v11265_v34  ;;  %v11270_v21 = vunpack.c.h.bf16 %v11267_v55 }
 0x47c   : > { %5478 = vst [vmem:[%s9507_s10 + $0x180] sm:$0xff] %v5928_v12  ;;  %5479 = vst [vmem:[%s9507_s10 + $0x188] sm:$0xff] %v5929_v35  ;;  %v5930_v60 = vpack.c.bf16 %v5019_v30, %v5018_v57  ;;  %v5931_v20 = vpack.c.bf16 %v5021_v45, %v5020_v0  ;;  %v4503_v59 = vpop.f32.mrb[52].mxu0  ;;  %v4889_v2 = vpop.f32.mrb[52].mxu1  ;;  %v11272_v0 = vunpack.c.l.bf16 %v11271_v37  ;;  %v11273_v35 = vld [vmem:[#allocation191_spill] sm:$0xff] }
 0x47d   : > { %v5997_v11 = vadd.f32 %v4503_v59, %v9673_v19  ;;  %v6061_v40 = vadd.f32 %v4889_v2, %v9676_v18  ;;  %v4505_v29 = vpop.f32.mrb[53].mxu0  ;;  %v4891_v56 = vpop.f32.mrb[53].mxu1  ;;  %v11274_v32 = vunpack.c.l.bf16 %v11273_v35  ;;  %v11275_v59 = vunpack.c.h.bf16 %v11271_v37 }
 0x47e   : > { %5480 = vst [vmem:[%s9507_s10 + $0x190] sm:$0xff] %v5930_v60  ;;  %5481 = vst [vmem:[%s9507_s10 + $0x198] sm:$0xff] %v5931_v20  ;;  %v5998_v38 = vadd.f32 %v4505_v29, %v9679_v42  ;;  %v6062_v25 = vadd.f32 %v4891_v56, %v9682_v26  ;;  %v4507_v27 = vpop.f32.mrb[54].mxu0  ;;  %v4893_v63 = vpop.f32.mrb[54].mxu1 }
 0x47f   : > { %v5022_v8 = vadd.f32 %v5997_v11, %v11260_v5  ;;  %v5024_v31 = vadd.f32 %v6061_v40, %v11262_v13  ;;  %v5999_v4 = vadd.f32 %v4507_v27, %v9673_v19  ;;  %v6063_v23 = vadd.f32 %v4893_v63, %v9676_v18  ;;  %v4509_v54 = vpop.f32.mrb[55].mxu0  ;;  %v4895_v48 = vpop.f32.mrb[55].mxu1  ;;  %v11279_v63 = vld [vmem:[#allocation193_spill] sm:$0xff] }
 0x480   : > { %v5023_v62 = vadd.f32 %v5998_v38, %v11263_v16  ;;  %v5025_v46 = vadd.f32 %v6062_v25, %v11264_v49  ;;  %v6000_v10 = vadd.f32 %v4509_v54, %v9679_v42  ;;  %v6064_v36 = vadd.f32 %v4895_v48, %v9682_v26  ;;  %v11277_v38 = vld [vmem:[#allocation192_spill] sm:$0xff] }
 0x481   : > { %v5026_v15 = vadd.f32 %v5999_v4, %v11266_v7  ;;  %v5028_v44 = vadd.f32 %v6063_v23, %v11268_v24  ;;  %v11276_v11 = vunpack.c.h.bf16 %v11273_v35  ;;  %v11278_v25 = vunpack.c.l.bf16 %v11277_v38  ;;  %v11283_v24 = vld [vmem:[#allocation31_spill] sm:$0xff] }
 0x482   : > { %v5932_v52 = vpack.c.bf16 %v5023_v62, %v5022_v8  ;;  %v5933_v41 = vpack.c.bf16 %v5025_v46, %v5024_v31  ;;  %v5027_v9 = vadd.f32 %v6000_v10, %v11269_v47  ;;  %v5029_v33 = vadd.f32 %v6064_v36, %v11270_v21 }
 0x483   : > { %v11280_v51 = vunpack.c.l.bf16 %v11279_v63  ;;  %v11281_v13 = vunpack.c.h.bf16 %v11277_v38  ;;  %v11282_v4 = vunpack.c.h.bf16 %v11279_v63 }
 0x484   : > { %5482 = vst [vmem:[%s9507_s10 + $0x1a0] sm:$0xff] %v5932_v52  ;;  %5483 = vst [vmem:[%s9507_s10 + $0x1a8] sm:$0xff] %v5933_v41  ;;  %v5934_v1 = vpack.c.bf16 %v5027_v9, %v5026_v15  ;;  %v5935_v28 = vpack.c.bf16 %v5029_v33, %v5028_v44  ;;  %v4513_v58 = vpop.f32.mrb[56].mxu0  ;;  %v4899_v53 = vpop.f32.mrb[56].mxu1  ;;  %v11284_v44 = vunpack.c.l.bf16 %v11283_v24  ;;  %v11285_v41 = vld [vmem:[#allocation32_spill] sm:$0xff] }
 0x485   : > { %v6001_v43 = vadd.f32 %v4513_v58, %v9673_v19  ;;  %v6065_v6 = vadd.f32 %v4899_v53, %v9676_v18  ;;  %v4515_v50 = vpop.f32.mrb[57].mxu0  ;;  %v4901_v3 = vpop.f32.mrb[57].mxu1  ;;  %v11286_v47 = vunpack.c.l.bf16 %v11285_v41  ;;  %v11287_v58 = vunpack.c.h.bf16 %v11283_v24 }
 0x486   : > { %5484 = vst [vmem:[%s9507_s10 + $0x1b0] sm:$0xff] %v5934_v1  ;;  %5485 = vst [vmem:[%s9507_s10 + $0x1b8] sm:$0xff] %v5935_v28  ;;  %v6002_v17 = vadd.f32 %v4515_v50, %v9679_v42  ;;  %v6066_v39 = vadd.f32 %v4901_v3, %v9682_v26  ;;  %v4517_v57 = vpop.f32.mrb[58].mxu0  ;;  %v4903_v61 = vpop.f32.mrb[58].mxu1 }
 0x487   : > { %v5030_v12 = vadd.f32 %v6001_v43, %v11272_v0  ;;  %v5032_v30 = vadd.f32 %v6065_v6, %v11274_v32  ;;  %v6003_v14 = vadd.f32 %v4517_v57, %v9673_v19  ;;  %v6067_v45 = vadd.f32 %v4903_v61, %v9676_v18  ;;  %v4519_v60 = vpop.f32.mrb[59].mxu0  ;;  %v4905_v20 = vpop.f32.mrb[59].mxu1 }
 0x488   : > { %v5031_v2 = vadd.f32 %v6002_v17, %v11275_v59  ;;  %v5033_v40 = vadd.f32 %v6066_v39, %v11276_v11  ;;  %v6004_v29 = vadd.f32 %v4519_v60, %v9679_v42  ;;  %v6068_v56 = vadd.f32 %v4905_v20, %v9682_v26  ;;  %v11291_v39 = vld [vmem:[#allocation30_spill] sm:$0xff] }
 0x489   : > { %v5034_v27 = vadd.f32 %v6003_v14, %v11278_v25  ;;  %v5036_v5 = vadd.f32 %v6067_v45, %v11280_v51  ;;  %v11288_v43 = vunpack.c.h.bf16 %v11285_v41  ;;  %v11292_v57 = vunpack.c.l.bf16 %v11291_v39 }
 0x48a   : > { %v5936_v8 = vpack.c.bf16 %v5031_v2, %v5030_v12  ;;  %v5937_v22 = vpack.c.bf16 %v5033_v40, %v5032_v30  ;;  %v5035_v31 = vadd.f32 %v6004_v29, %v11281_v13  ;;  %v5037_v23 = vadd.f32 %v6068_v56, %v11282_v4 }
 0x48c   : > { %5486 = vst [vmem:[%s9507_s10 + $0x1c0] sm:$0xff] %v5936_v8  ;;  %5487 = vst [vmem:[%s9507_s10 + $0x1c8] sm:$0xff] %v5937_v22  ;;  %v5938_v54 = vpack.c.bf16 %v5035_v31, %v5034_v27  ;;  %v5939_v48 = vpack.c.bf16 %v5037_v23, %v5036_v5  ;;  %v4523_v16 = vpop.f32.mrb[60].mxu0  ;;  %v4909_v62 = vpop.f32.mrb[60].mxu1 }
 0x48d   : > { %v6005_v49 = vadd.f32 %v4523_v16, %v9673_v19  ;;  %v6069_v46 = vadd.f32 %v4909_v62, %v9676_v18  ;;  %v4525_v10 = vpop.f32.mrb[61].mxu0  ;;  %v4911_v36 = vpop.f32.mrb[61].mxu1 }
 0x48e   : > { %5488 = vst [vmem:[%s9507_s10 + $0x1d0] sm:$0xff] %v5938_v54  ;;  %5489 = vst [vmem:[%s9507_s10 + $0x1d8] sm:$0xff] %v5939_v48  ;;  %v6006_v34 = vadd.f32 %v4525_v10, %v9679_v42  ;;  %v6070_v7 = vadd.f32 %v4911_v36, %v9682_v26  ;;  %v4527_v15 = vpop.f32.mrb[62].mxu0  ;;  %v4913_v55 = vpop.f32.mrb[62].mxu1 }
 0x48f   : > { %v5038_v52 = vadd.f32 %v6005_v49, %v11284_v44  ;;  %v5040_v9 = vadd.f32 %v6069_v46, %v11286_v47  ;;  %v6007_v21 = vadd.f32 %v4527_v15, %v9673_v19  ;;  %v6071_v33 = vadd.f32 %v4913_v55, %v9676_v18  ;;  %v4529_v1 = vpop.f32.mrb[63].mxu0  ;;  %v4915_v28 = vpop.f32.mrb[63].mxu1  ;;  %v11289_v19 = vld [vmem:[#allocation28_spill] sm:$0xff] }
 0x490   : > { %v5039_v53 = vadd.f32 %v6006_v34, %v11287_v58  ;;  %v5041_v6 = vadd.f32 %v6070_v7, %v11288_v43  ;;  %v6008_v50 = vadd.f32 %v4529_v1, %v9679_v42  ;;  %v6072_v3 = vadd.f32 %v4915_v28, %v9682_v26 }
 0x491   : > { %v11290_v18 = vunpack.c.l.bf16 %v11289_v19  ;;  %v5044_v61 = vadd.f32 %v6071_v33, %v11292_v57  ;;  %v11294_v12 = vunpack.c.h.bf16 %v11289_v19  ;;  %v11295_v42 = vunpack.c.h.bf16 %v11291_v39 }
 0x492   : > { %v5940_v37 = vpack.c.bf16 %v5039_v53, %v5038_v52  ;;  %v5941_v0 = vpack.c.bf16 %v5041_v6, %v5040_v9 }
 0x493   : > { %v5042_v17 = vadd.f32 %v6007_v21, %v11290_v18  ;;  %v5043_v35 = vadd.f32 %v6008_v50, %v11294_v12  ;;  %v5045_v32 = vadd.f32 %v6072_v3, %v11295_v42 }
 0x494   : > { %5490 = vst [vmem:[%s9507_s10 + $0x1e0] sm:$0xff] %v5940_v37  ;;  %5491 = vst [vmem:[%s9507_s10 + $0x1e8] sm:$0xff] %v5941_v0 }
 0x495   : > { %v5942_v26 = vpack.c.bf16 %v5043_v35, %v5042_v17  ;;  %v5943_v30 = vpack.c.bf16 %v5045_v32, %v5044_v61 }
 0x497   : > { %5492 = vst [vmem:[%s9507_s10 + $0x1f0] sm:$0xff] %v5942_v26  ;;  %5493 = vst [vmem:[%s9507_s10 + $0x1f8] sm:$0xff] %v5943_v30 }
 0x498   : > { %6669 = shalt.err (!%p6666_p5)
}
 0x499   : > { %s6670_s20 = scalar_lea.hbm %s10134_s2, 8192  ;;  %s6674_s14 = scalar_lea.hbm %s11296_s3, 32768 }
 0x49a   : > { %p6671_p0 = scmp.ne.s32.totalorder %s10134_s2, %s6670_s20  ;;  %p6675_p12 = scmp.lt.u32.totalorder %s10134_s2, %s11296_s3 }
 0x49b   : > { %p6676_p11 = scmp.lt.u32.totalorder %s6674_s14, %s6670_s20  ;;  %p6678_p9 = scmp.lt.u32.totalorder %s6670_s20, %s10134_s2 }
 0x49c   : > { %p6672_p3 = pnand %p6671_p0, %p6984_p4 }
 0x49d   : > { %p6677_p13 = por %p6676_p11, %p6675_p12 }
 0x49e   : > { %p6673_p7 = pneg %p6672_p3 }
 0x49f   : > { %p6679_p2 = por %p6678_p9, %p6677_p13 }
 0x4a1   : > { %p6680_p10 = pnand %p6679_p2, %p6673_p7 }
 0x4a3   : > { %6683 = shalt.err (!%p6680_p10)
}
 0x4a4   : > { %s6777_s12 = smov 256   ;;  %s6778_s22 = smov 16  }
 0x4a5   : > { %6217 = dma.vmem_to_hbm [thread:$0]  (%p6984_p4), %s10136_s30, 8192, %s10134_s2, %s5495_s16, %s6777_s12, %s6777_s12, %s6778_s22  }
 0x4a6 PF: > { %s11297_s18 = sld [smem:[#allocation20_spill]]  ;;  %s11298_s26 = sld [smem:[#allocation22_spill]] }
 0x4a7   : > { %p6247_p6 = scmp.ge.s32.totalorder %s6766_s9, 2 }
 0x4ac   : > { %s5526_s13 = sand.u32 1, %s11297_s18   ;;  %p11299_p8 = scmp.ne.s32.totalorder %s11298_s26, 0 }
 0x4ad   : > { %s5527_s15 = scalar_lea.sflag [#allocation7], %s5526_s13 }
 0x4ae   : > { %p6237_p1 = pnand %p6247_p6, %p11299_p8 }
 0x4b0   : > { %6733 = dma.done.wait (!%p6237_p1), %s5527_s15, 8192  }
 0x4b1   : > { %6735 = vsyncadd (!%p6237_p1), %s5527_s15, 4294959104  ;;  %s28_s9 = sadd.s32 1, %s6766_s9   ;;  %s11300_s29 = sld [smem:[#allocation21_spill]] }
 0x4b2   : > { %p25_p5 = scmp.ge.s32.totalorder %s28_s9, 6   ;;  %s11301_s28 = sld [smem:[#allocation26_spill]] }
 0x4b3   : > { %s11302_s11 = sld [smem:[#allocation23_spill]]  ;;  %s11303_s17 = sld [smem:[#allocation25_spill]] }
 0x4b4   : > { %s11304_s26 = smov %s6742_s27  ;;  %s11307_s30 = smov %s6762_s4 }
 0x4b5   :  { %27 = sbr.rel (!%p25_p5) target bundleno = 17 (0x11), region = 132 }
 0x4b7   : > { %s11305_s27 = smov %s11300_s29  ;;  %s11306_s29 = smov %s6758_s8 }
 0x4b9   : > { %s11308_s8 = smov %s11302_s11  ;;  %s11309_s4 = smov %s11303_s17 }
 0x4bc   :  { %5532 = vsyncpa [#allocation6], 1 }
 0x4bd   :  { %5534 = vsyncpa [#allocation6 + $0x1], 1 }
 0x4be   :  { %5535 = vsyncpa [#allocation9], 1 }
 0x4bf   :  { %5537 = vsyncpa [#allocation9 + $0x1], 1 }
 0x4c0   :  { %5538 = vsyncpa [#allocation12], 1 }
 0x4c1   :  { %5539 = vsyncpa [#allocation7], 1 }
 0x4c2   :  { %5541 = vsyncpa [#allocation7 + $0x1], 1 }

</bundles_post_ra>
